<compile_context>
chip_gen: v5e
topology: v5e:2x2
jax: 0.10.0
libtpu: 0.0.40
codegen_flags: <defaults>
</compile_context>

<pallas_src>
import jax
import jax.numpy as jnp
from jax.experimental import pallas as pl
from jax.experimental.pallas import tpu as pltpu

EPS = 1e-5
H = 256  # LSTM hidden size / l_256 width


def _sigmoid(x):
    # 0.5*tanh(0.5*x)+0.5 == 1/(1+exp(-x)); routes to the EUP tanh slot instead of a
    # VPU divide sequence on the serial recurrence path.
    return 0.5 * jnp.tanh(0.5 * x) + 0.5


def linear_decode_kernel(
    feat_ref, srt_last_ref,
    w1_ref, b1_ref,
    wih_ref, whh_ref, bl_ref,
    w2a_ref, w2b_ref, b2_ref,
    w3_ref, b3_ref,
    out_ref,
    last_scr, gx_scr,
):
    B = feat_ref.shape[0]

    # ---- l_256 branch: BN-folded Linear(512->256) + ReLU -------------------------------
    y = jnp.dot(feat_ref[...].astype(jnp.bfloat16), w1_ref[...],
                preferred_element_type=jnp.float32) + b1_ref[...]
    y = jnp.maximum(y, 0.0)                                              # [B, 256]

    # ---- nn.LSTM(256, 256): only the consumed batch column (T-1) ----------------------
    # Hoisted input-to-hidden matmul for all B recurrence steps: one MXU pass.
    gx_scr[...] = jnp.dot(srt_last_ref[...].astype(jnp.bfloat16), wih_ref[...],
                          preferred_element_type=jnp.float32) + bl_ref[...]   # [B, 4H]

    def step(t, carry):
        h, c = carry                                                     # [1, 256] f32 each
        gates = gx_scr[pl.ds(t, 1), :] + jnp.dot(
            h.astype(jnp.bfloat16), whh_ref[...],
            preferred_element_type=jnp.float32)                          # [1, 4H]; gate order i,f,g,o
        i_g = _sigmoid(gates[:, 0 * H:1 * H])
        f_g = _sigmoid(gates[:, 1 * H:2 * H])
        g_g = jnp.tanh(gates[:, 2 * H:3 * H])
        o_g = _sigmoid(gates[:, 3 * H:4 * H])
        c_new = f_g * c + i_g * g_g
        h_new = o_g * jnp.tanh(c_new)
        last_scr[pl.ds(t, 1), :] = h_new                                 # = lstm_out[t, -1, :]
        return (h_new, c_new)

    h0 = jnp.zeros((1, H), jnp.float32)
    c0 = jnp.zeros((1, H), jnp.float32)
    jax.lax.fori_loop(0, B, step, (h0, c0), unroll=True)

    # ---- head: BN-folded Linear(512->128) + ReLU + Dropout(id) + Linear(128->6 padded) --
    # torch.cat([l_256(feat), lstm_last], -1) @ W2 folded into two matmuls (W2 split rows).
    z = (jnp.dot(y.astype(jnp.bfloat16), w2a_ref[...], preferred_element_type=jnp.float32)
         + jnp.dot(last_scr[...].astype(jnp.bfloat16), w2b_ref[...],
                   preferred_element_type=jnp.float32)
         + b2_ref[...])                                                  # [B, 128]
    z = jnp.maximum(z, 0.0)
    # TODO(synk): Dropout is identity here (inference semantics); no RNG path is emitted.
    out_ref[...] = jnp.dot(z.astype(jnp.bfloat16), w3_ref[...],
                           preferred_element_type=jnp.float32) + b3_ref[...]   # [B, 128] lane-dense


def _fold_bn(w, b, gamma, beta, mu, var):
    """Fold an eval-mode BatchNorm1d into the preceding Linear (weights are [in, out])."""
    scale = gamma * jax.lax.rsqrt(var + EPS)        # [1, out]
    return w * scale, (b - mu) * scale + beta


def init_params(key):
    ks = jax.random.split(key, 18)

    def nrm(k, shape, scale=0.05):
        return (scale * jax.random.normal(k, shape)).astype(jnp.float32)

    p = {}
    # l_256: Linear(512, 256) (weights stored transposed: [in, out]) + BatchNorm1d(256)
    p["w1"] = nrm(ks[0], (512, 256))
    p["b1"] = nrm(ks[1], (1, 256))
    p["g1"] = 1.0 + nrm(ks[2], (1, 256))
    p["bt1"] = nrm(ks[3], (1, 256))
    p["mu1"] = nrm(ks[4], (1, 256))
    p["var1"] = jax.random.uniform(ks[5], (1, 256), jnp.float32, 0.5, 1.5)
    # LSTM(256, 256): weight_ih^T / weight_hh^T, bias = bias_ih + bias_hh, gate order i,f,g,o
    p["w_ih"] = nrm(ks[6], (256, 1024))
    p["w_hh"] = nrm(ks[7], (256, 1024))
    p["b_lstm"] = nrm(ks[8], (1, 1024)) + nrm(ks[9], (1, 1024))
    # l: Linear(512, 128) + BatchNorm1d(128) + Linear(128, 6)
    p["w2"] = nrm(ks[10], (512, 128))
    p["b2"] = nrm(ks[11], (1, 128))
    p["g2"] = 1.0 + nrm(ks[12], (1, 128))
    p["bt2"] = nrm(ks[13], (1, 128))
    p["mu2"] = nrm(ks[14], (1, 128))
    p["var2"] = jax.random.uniform(ks[15], (1, 128), jnp.float32, 0.5, 1.5)
    p["w3"] = nrm(ks[16], (128, 6))
    p["b3"] = nrm(ks[17], (1, 6))
    return p


def pack_params(p):
    """One-time pack: fold BN, split the head weight along the concat axis, zero-pad the
    6-wide output projection to 128 lanes, and cast weight matrices to bf16."""
    w1f, b1f = _fold_bn(p["w1"], p["b1"], p["g1"], p["bt1"], p["mu1"], p["var1"])
    w2f, b2f = _fold_bn(p["w2"], p["b2"], p["g2"], p["bt2"], p["mu2"], p["var2"])
    w3p = jnp.zeros((128, 128), jnp.float32).at[:, :6].set(p["w3"])
    b3p = jnp.zeros((1, 128), jnp.float32).at[:, :6].set(p["b3"])
    bf16 = lambda a: a.astype(jnp.bfloat16)
    return {
        "w1": bf16(w1f), "b1": b1f,
        "w_ih": bf16(p["w_ih"]), "w_hh": bf16(p["w_hh"]), "b_lstm": p["b_lstm"],
        "w2a": bf16(w2f[:256]), "w2b": bf16(w2f[256:]), "b2": b2f,
        "w3": bf16(w3p), "b3": b3p,
    }


def linear_decode(rt, s_rt, audio, pk):
    if audio.ndim == 3:                       # audio.squeeze(1)
        audio = jnp.squeeze(audio, axis=1)
    feat = jnp.concatenate([rt, audio], axis=-1).astype(jnp.float32)    # [B, 512]
    # Only LSTM batch column T-1 is ever consumed (batch columns are independent).
    srt_last = s_rt[:, -1, :].astype(jnp.float32)                       # [B, 256]
    B = feat.shape[0]

    inputs = (feat, srt_last,
              pk["w1"], pk["b1"],
              pk["w_ih"], pk["w_hh"], pk["b_lstm"],
              pk["w2a"], pk["w2b"], pk["b2"],
              pk["w3"], pk["b3"])

    def full_spec(a):
        nd = a.ndim
        return pl.BlockSpec(a.shape, lambda i: (0,) * nd)

    out = pl.pallas_call(
        linear_decode_kernel,
        out_shape=jax.ShapeDtypeStruct((B, 128), jnp.float32),
        grid=(1,),
        in_specs=[full_spec(a) for a in inputs],
        out_specs=pl.BlockSpec((B, 128), lambda i: (0, 0)),
        scratch_shapes=[
            pltpu.VMEM((B, 256), jnp.float32),    # lstm_out[:, -1, :]
            pltpu.VMEM((B, 1024), jnp.float32),   # hoisted input-to-hidden gates
        ],
        compiler_params=pltpu.CompilerParams(dimension_semantics=("arbitrary",)),
    )(*inputs)

    return out[:, :6][:, None, :]                 # unsqueeze(1) -> [B, 1, 6]


if __name__ == "__main__":
    key = jax.random.PRNGKey(0)
    kp, k_rt, k_srt, k_audio = jax.random.split(key, 4)
    params = pack_params(init_params(kp))

    B, T = 8, 4
    rt = jax.random.normal(k_rt, (B, 256), jnp.float32)
    audio = jax.random.normal(k_audio, (B, 1, 256), jnp.float32)
    s_rt = jax.random.normal(k_srt, (B, T, 256), jnp.float32)

    out = linear_decode(rt, s_rt, audio, params)
    jax.block_until_ready(out)
    assert out.shape == (B, 1, 6), out.shape
    print("KERNEL_OK")
</pallas_src>

<mosaic_0001>
module attributes {stable_mosaic.version = 11 : i64} {
  func.func @linear_decode_kernel(%arg0: i32, %arg1: memref<8x512xf32, #tpu.memory_space<vmem>>, %arg2: memref<8x256xf32, #tpu.memory_space<vmem>>, %arg3: memref<512x256xbf16, #tpu.memory_space<vmem>>, %arg4: memref<1x256xf32, #tpu.memory_space<vmem>>, %arg5: memref<256x1024xbf16, #tpu.memory_space<vmem>>, %arg6: memref<256x1024xbf16, #tpu.memory_space<vmem>>, %arg7: memref<1x1024xf32, #tpu.memory_space<vmem>>, %arg8: memref<256x128xbf16, #tpu.memory_space<vmem>>, %arg9: memref<256x128xbf16, #tpu.memory_space<vmem>>, %arg10: memref<1x128xf32, #tpu.memory_space<vmem>>, %arg11: memref<128x128xbf16, #tpu.memory_space<vmem>>, %arg12: memref<1x128xf32, #tpu.memory_space<vmem>>, %arg13: memref<8x128xf32, #tpu.memory_space<vmem>>, %arg14: memref<8x256xf32, #tpu.memory_space<vmem>>, %arg15: memref<8x1024xf32, #tpu.memory_space<vmem>>) attributes {dimension_semantics = [#tpu.dimension_semantics<arbitrary>], iteration_bounds = array<i64: 1>, scalar_prefetch = 0 : i64, scratch_operands = 2 : i64, tpu.core_type = #tpu.core_type<tc>, window_params = [{pipeline_mode = #tpu.pipeline_mode<synchronous>, transform_indices = @transform_0, window_bounds = array<i64: 8, 512>}, {pipeline_mode = #tpu.pipeline_mode<synchronous>, transform_indices = @transform_1, window_bounds = array<i64: 8, 256>}, {pipeline_mode = #tpu.pipeline_mode<synchronous>, transform_indices = @transform_2, window_bounds = array<i64: 512, 256>}, {pipeline_mode = #tpu.pipeline_mode<synchronous>, transform_indices = @transform_3, window_bounds = array<i64: 1, 256>}, {pipeline_mode = #tpu.pipeline_mode<synchronous>, transform_indices = @transform_4, window_bounds = array<i64: 256, 1024>}, {pipeline_mode = #tpu.pipeline_mode<synchronous>, transform_indices = @transform_5, window_bounds = array<i64: 256, 1024>}, {pipeline_mode = #tpu.pipeline_mode<synchronous>, transform_indices = @transform_6, window_bounds = array<i64: 1, 1024>}, {pipeline_mode = #tpu.pipeline_mode<synchronous>, transform_indices = @transform_7, window_bounds = array<i64: 256, 128>}, {pipeline_mode = #tpu.pipeline_mode<synchronous>, transform_indices = @transform_8, window_bounds = array<i64: 256, 128>}, {pipeline_mode = #tpu.pipeline_mode<synchronous>, transform_indices = @transform_9, window_bounds = array<i64: 1, 128>}, {pipeline_mode = #tpu.pipeline_mode<synchronous>, transform_indices = @transform_10, window_bounds = array<i64: 128, 128>}, {pipeline_mode = #tpu.pipeline_mode<synchronous>, transform_indices = @transform_11, window_bounds = array<i64: 1, 128>}, {pipeline_mode = #tpu.pipeline_mode<synchronous>, transform_indices = @transform_12, window_bounds = array<i64: 8, 128>}]} {
    %c0 = arith.constant 0 : index
    %c0_0 = arith.constant 0 : index
    %0 = vector.load %arg1[%c0, %c0_0] : memref<8x512xf32, #tpu.memory_space<vmem>>, vector<8x512xf32>
    %1 = arith.truncf %0 : vector<8x512xf32> to vector<8x512xbf16>
    %c0_1 = arith.constant 0 : index
    %c0_2 = arith.constant 0 : index
    %2 = vector.load %arg3[%c0_1, %c0_2] : memref<512x256xbf16, #tpu.memory_space<vmem>>, vector<512x256xbf16>
    %cst = arith.constant dense<0.000000e+00> : vector<8x256xf32>
    %3 = tpu.matmul %1, %2, %cst {dimension_numbers = #tpu.dot_dimension_numbers<[1], [0], [0], [1], [0, 0, 1, 1], [], []>} : vector<8x512xbf16>, vector<512x256xbf16>, vector<8x256xf32> -> vector<8x256xf32>
    %c0_3 = arith.constant 0 : index
    %c0_4 = arith.constant 0 : index
    %4 = vector.load %arg4[%c0_3, %c0_4] : memref<1x256xf32, #tpu.memory_space<vmem>>, vector<1x256xf32>
    %5 = vector.broadcast %4 : vector<1x256xf32> to vector<8x256xf32>
    %6 = arith.addf %3, %5 : vector<8x256xf32>
    %cst_5 = arith.constant 0.000000e+00 : f32
    %7 = vector.broadcast %cst_5 : f32 to vector<8x256xf32>
    %8 = arith.maximumf %6, %7 : vector<8x256xf32>
    %c0_6 = arith.constant 0 : index
    %c0_7 = arith.constant 0 : index
    %9 = vector.load %arg2[%c0_6, %c0_7] : memref<8x256xf32, #tpu.memory_space<vmem>>, vector<8x256xf32>
    %10 = arith.truncf %9 : vector<8x256xf32> to vector<8x256xbf16>
    %c0_8 = arith.constant 0 : index
    %c0_9 = arith.constant 0 : index
    %11 = vector.load %arg5[%c0_8, %c0_9] : memref<256x1024xbf16, #tpu.memory_space<vmem>>, vector<256x1024xbf16>
    %cst_10 = arith.constant dense<0.000000e+00> : vector<8x1024xf32>
    %12 = tpu.matmul %10, %11, %cst_10 {dimension_numbers = #tpu.dot_dimension_numbers<[1], [0], [0], [1], [0, 0, 1, 1], [], []>} : vector<8x256xbf16>, vector<256x1024xbf16>, vector<8x1024xf32> -> vector<8x1024xf32>
    %c0_11 = arith.constant 0 : index
    %c0_12 = arith.constant 0 : index
    %13 = vector.load %arg7[%c0_11, %c0_12] : memref<1x1024xf32, #tpu.memory_space<vmem>>, vector<1x1024xf32>
    %14 = vector.broadcast %13 : vector<1x1024xf32> to vector<8x1024xf32>
    %15 = arith.addf %12, %14 : vector<8x1024xf32>
    %c0_13 = arith.constant 0 : index
    %c0_14 = arith.constant 0 : index
    %16 = vector.load %arg15[%c0_13, %c0_14] : memref<8x1024xf32, #tpu.memory_space<vmem>>, vector<8x1024xf32>
    tpu.vector_store %arg15[%c0_13, %c0_14], %15 {strides = array<i32>} : memref<8x1024xf32, #tpu.memory_space<vmem>>, vector<8x1024xf32>,
    %cst_15 = arith.constant 0.000000e+00 : f32
    %17 = vector.broadcast %cst_15 : f32 to vector<1x256xf32>
    %cst_16 = arith.constant 0.000000e+00 : f32
    %18 = vector.broadcast %cst_16 : f32 to vector<1x256xf32>
    %c0_i32 = arith.constant 0 : i32
    %19 = arith.index_cast %c0_i32 : i32 to index
    %c0_17 = arith.constant 0 : index
    %20 = vector.load %arg15[%19, %c0_17] : memref<8x1024xf32, #tpu.memory_space<vmem>>, vector<1x1024xf32>
    %21 = arith.truncf %17 : vector<1x256xf32> to vector<1x256xbf16>
    %c0_18 = arith.constant 0 : index
    %c0_19 = arith.constant 0 : index
    %22 = vector.load %arg6[%c0_18, %c0_19] : memref<256x1024xbf16, #tpu.memory_space<vmem>>, vector<256x1024xbf16>
    %cst_20 = arith.constant dense<0.000000e+00> : vector<1x1024xf32>
    %23 = tpu.matmul %21, %22, %cst_20 {dimension_numbers = #tpu.dot_dimension_numbers<[1], [0], [0], [1], [0, 0, 1, 1], [], []>} : vector<1x256xbf16>, vector<256x1024xbf16>, vector<1x1024xf32> -> vector<1x1024xf32>
    %24 = arith.addf %20, %23 : vector<1x1024xf32>
    %25 = vector.extract_strided_slice %24 {offsets = [0, 0], sizes = [1, 256], strides = [1, 1]} : vector<1x1024xf32> to vector<1x256xf32>
    %cst_21 = arith.constant 5.000000e-01 : f32
    %26 = vector.broadcast %cst_21 : f32 to vector<1x256xf32>
    %27 = arith.mulf %26, %25 : vector<1x256xf32>
    %28 = math.tanh %27 : vector<1x256xf32>
    %cst_22 = arith.constant 5.000000e-01 : f32
    %29 = vector.broadcast %cst_22 : f32 to vector<1x256xf32>
    %30 = arith.mulf %29, %28 : vector<1x256xf32>
    %cst_23 = arith.constant 5.000000e-01 : f32
    %31 = vector.broadcast %cst_23 : f32 to vector<1x256xf32>
    %32 = arith.addf %30, %31 : vector<1x256xf32>
    %33 = vector.extract_strided_slice %24 {offsets = [0, 256], sizes = [1, 256], strides = [1, 1]} : vector<1x1024xf32> to vector<1x256xf32>
    %cst_24 = arith.constant 5.000000e-01 : f32
    %34 = vector.broadcast %cst_24 : f32 to vector<1x256xf32>
    %35 = arith.mulf %34, %33 : vector<1x256xf32>
    %36 = math.tanh %35 : vector<1x256xf32>
    %cst_25 = arith.constant 5.000000e-01 : f32
    %37 = vector.broadcast %cst_25 : f32 to vector<1x256xf32>
    %38 = arith.mulf %37, %36 : vector<1x256xf32>
    %cst_26 = arith.constant 5.000000e-01 : f32
    %39 = vector.broadcast %cst_26 : f32 to vector<1x256xf32>
    %40 = arith.addf %38, %39 : vector<1x256xf32>
    %41 = vector.extract_strided_slice %24 {offsets = [0, 512], sizes = [1, 256], strides = [1, 1]} : vector<1x1024xf32> to vector<1x256xf32>
    %42 = math.tanh %41 : vector<1x256xf32>
    %43 = vector.extract_strided_slice %24 {offsets = [0, 768], sizes = [1, 256], strides = [1, 1]} : vector<1x1024xf32> to vector<1x256xf32>
    %cst_27 = arith.constant 5.000000e-01 : f32
    %44 = vector.broadcast %cst_27 : f32 to vector<1x256xf32>
    %45 = arith.mulf %44, %43 : vector<1x256xf32>
    %46 = math.tanh %45 : vector<1x256xf32>
    %cst_28 = arith.constant 5.000000e-01 : f32
    %47 = vector.broadcast %cst_28 : f32 to vector<1x256xf32>
    %48 = arith.mulf %47, %46 : vector<1x256xf32>
    %cst_29 = arith.constant 5.000000e-01 : f32
    %49 = vector.broadcast %cst_29 : f32 to vector<1x256xf32>
    %50 = arith.addf %48, %49 : vector<1x256xf32>
    %51 = arith.mulf %40, %18 : vector<1x256xf32>
    %52 = arith.mulf %32, %42 : vector<1x256xf32>
    %53 = arith.addf %51, %52 : vector<1x256xf32>
    %54 = math.tanh %53 : vector<1x256xf32>
    %55 = arith.mulf %50, %54 : vector<1x256xf32>
    %56 = arith.index_cast %c0_i32 : i32 to index
    %c0_30 = arith.constant 0 : index
    %57 = vector.load %arg14[%56, %c0_30] : memref<8x256xf32, #tpu.memory_space<vmem>>, vector<1x256xf32>
    tpu.vector_store %arg14[%56, %c0_30], %55 {strides = array<i32>} : memref<8x256xf32, #tpu.memory_space<vmem>>, vector<1x256xf32>,
    %c1_i32 = arith.constant 1 : i32
    %58 = arith.index_cast %c1_i32 : i32 to index
    %c0_31 = arith.constant 0 : index
    %59 = vector.load %arg15[%58, %c0_31] : memref<8x1024xf32, #tpu.memory_space<vmem>>, vector<1x1024xf32>
    %60 = arith.truncf %55 : vector<1x256xf32> to vector<1x256xbf16>
    %c0_32 = arith.constant 0 : index
    %c0_33 = arith.constant 0 : index
    %61 = vector.load %arg6[%c0_32, %c0_33] : memref<256x1024xbf16, #tpu.memory_space<vmem>>, vector<256x1024xbf16>
    %cst_34 = arith.constant dense<0.000000e+00> : vector<1x1024xf32>
    %62 = tpu.matmul %60, %61, %cst_34 {dimension_numbers = #tpu.dot_dimension_numbers<[1], [0], [0], [1], [0, 0, 1, 1], [], []>} : vector<1x256xbf16>, vector<256x1024xbf16>, vector<1x1024xf32> -> vector<1x1024xf32>
    %63 = arith.addf %59, %62 : vector<1x1024xf32>
    %64 = vector.extract_strided_slice %63 {offsets = [0, 0], sizes = [1, 256], strides = [1, 1]} : vector<1x1024xf32> to vector<1x256xf32>
    %cst_35 = arith.constant 5.000000e-01 : f32
    %65 = vector.broadcast %cst_35 : f32 to vector<1x256xf32>
    %66 = arith.mulf %65, %64 : vector<1x256xf32>
    %67 = math.tanh %66 : vector<1x256xf32>
    %cst_36 = arith.constant 5.000000e-01 : f32
    %68 = vector.broadcast %cst_36 : f32 to vector<1x256xf32>
    %69 = arith.mulf %68, %67 : vector<1x256xf32>
    %cst_37 = arith.constant 5.000000e-01 : f32
    %70 = vector.broadcast %cst_37 : f32 to vector<1x256xf32>
    %71 = arith.addf %69, %70 : vector<1x256xf32>
    %72 = vector.extract_strided_slice %63 {offsets = [0, 256], sizes = [1, 256], strides = [1, 1]} : vector<1x1024xf32> to vector<1x256xf32>
    %cst_38 = arith.constant 5.000000e-01 : f32
    %73 = vector.broadcast %cst_38 : f32 to vector<1x256xf32>
    %74 = arith.mulf %73, %72 : vector<1x256xf32>
    %75 = math.tanh %74 : vector<1x256xf32>
    %cst_39 = arith.constant 5.000000e-01 : f32
    %76 = vector.broadcast %cst_39 : f32 to vector<1x256xf32>
    %77 = arith.mulf %76, %75 : vector<1x256xf32>
    %cst_40 = arith.constant 5.000000e-01 : f32
    %78 = vector.broadcast %cst_40 : f32 to vector<1x256xf32>
    %79 = arith.addf %77, %78 : vector<1x256xf32>
    %80 = vector.extract_strided_slice %63 {offsets = [0, 512], sizes = [1, 256], strides = [1, 1]} : vector<1x1024xf32> to vector<1x256xf32>
    %81 = math.tanh %80 : vector<1x256xf32>
    %82 = vector.extract_strided_slice %63 {offsets = [0, 768], sizes = [1, 256], strides = [1, 1]} : vector<1x1024xf32> to vector<1x256xf32>
    %cst_41 = arith.constant 5.000000e-01 : f32
    %83 = vector.broadcast %cst_41 : f32 to vector<1x256xf32>
    %84 = arith.mulf %83, %82 : vector<1x256xf32>
    %85 = math.tanh %84 : vector<1x256xf32>
    %cst_42 = arith.constant 5.000000e-01 : f32
    %86 = vector.broadcast %cst_42 : f32 to vector<1x256xf32>
    %87 = arith.mulf %86, %85 : vector<1x256xf32>
    %cst_43 = arith.constant 5.000000e-01 : f32
    %88 = vector.broadcast %cst_43 : f32 to vector<1x256xf32>
    %89 = arith.addf %87, %88 : vector<1x256xf32>
    %90 = arith.mulf %79, %53 : vector<1x256xf32>
    %91 = arith.mulf %71, %81 : vector<1x256xf32>
    %92 = arith.addf %90, %91 : vector<1x256xf32>
    %93 = math.tanh %92 : vector<1x256xf32>
    %94 = arith.mulf %89, %93 : vector<1x256xf32>
    %95 = arith.index_cast %c1_i32 : i32 to index
    %c0_44 = arith.constant 0 : index
    %96 = vector.load %arg14[%95, %c0_44] : memref<8x256xf32, #tpu.memory_space<vmem>>, vector<1x256xf32>
    tpu.vector_store %arg14[%95, %c0_44], %94 {strides = array<i32>} : memref<8x256xf32, #tpu.memory_space<vmem>>, vector<1x256xf32>,
    %c2_i32 = arith.constant 2 : i32
    %97 = arith.index_cast %c2_i32 : i32 to index
    %c0_45 = arith.constant 0 : index
    %98 = vector.load %arg15[%97, %c0_45] : memref<8x1024xf32, #tpu.memory_space<vmem>>, vector<1x1024xf32>
    %99 = arith.truncf %94 : vector<1x256xf32> to vector<1x256xbf16>
    %c0_46 = arith.constant 0 : index
    %c0_47 = arith.constant 0 : index
    %100 = vector.load %arg6[%c0_46, %c0_47] : memref<256x1024xbf16, #tpu.memory_space<vmem>>, vector<256x1024xbf16>
    %cst_48 = arith.constant dense<0.000000e+00> : vector<1x1024xf32>
    %101 = tpu.matmul %99, %100, %cst_48 {dimension_numbers = #tpu.dot_dimension_numbers<[1], [0], [0], [1], [0, 0, 1, 1], [], []>} : vector<1x256xbf16>, vector<256x1024xbf16>, vector<1x1024xf32> -> vector<1x1024xf32>
    %102 = arith.addf %98, %101 : vector<1x1024xf32>
    %103 = vector.extract_strided_slice %102 {offsets = [0, 0], sizes = [1, 256], strides = [1, 1]} : vector<1x1024xf32> to vector<1x256xf32>
    %cst_49 = arith.constant 5.000000e-01 : f32
    %104 = vector.broadcast %cst_49 : f32 to vector<1x256xf32>
    %105 = arith.mulf %104, %103 : vector<1x256xf32>
    %106 = math.tanh %105 : vector<1x256xf32>
    %cst_50 = arith.constant 5.000000e-01 : f32
    %107 = vector.broadcast %cst_50 : f32 to vector<1x256xf32>
    %108 = arith.mulf %107, %106 : vector<1x256xf32>
    %cst_51 = arith.constant 5.000000e-01 : f32
    %109 = vector.broadcast %cst_51 : f32 to vector<1x256xf32>
    %110 = arith.addf %108, %109 : vector<1x256xf32>
    %111 = vector.extract_strided_slice %102 {offsets = [0, 256], sizes = [1, 256], strides = [1, 1]} : vector<1x1024xf32> to vector<1x256xf32>
    %cst_52 = arith.constant 5.000000e-01 : f32
    %112 = vector.broadcast %cst_52 : f32 to vector<1x256xf32>
    %113 = arith.mulf %112, %111 : vector<1x256xf32>
    %114 = math.tanh %113 : vector<1x256xf32>
    %cst_53 = arith.constant 5.000000e-01 : f32
    %115 = vector.broadcast %cst_53 : f32 to vector<1x256xf32>
    %116 = arith.mulf %115, %114 : vector<1x256xf32>
    %cst_54 = arith.constant 5.000000e-01 : f32
    %117 = vector.broadcast %cst_54 : f32 to vector<1x256xf32>
    %118 = arith.addf %116, %117 : vector<1x256xf32>
    %119 = vector.extract_strided_slice %102 {offsets = [0, 512], sizes = [1, 256], strides = [1, 1]} : vector<1x1024xf32> to vector<1x256xf32>
    %120 = math.tanh %119 : vector<1x256xf32>
    %121 = vector.extract_strided_slice %102 {offsets = [0, 768], sizes = [1, 256], strides = [1, 1]} : vector<1x1024xf32> to vector<1x256xf32>
    %cst_55 = arith.constant 5.000000e-01 : f32
    %122 = vector.broadcast %cst_55 : f32 to vector<1x256xf32>
    %123 = arith.mulf %122, %121 : vector<1x256xf32>
    %124 = math.tanh %123 : vector<1x256xf32>
    %cst_56 = arith.constant 5.000000e-01 : f32
    %125 = vector.broadcast %cst_56 : f32 to vector<1x256xf32>
    %126 = arith.mulf %125, %124 : vector<1x256xf32>
    %cst_57 = arith.constant 5.000000e-01 : f32
    %127 = vector.broadcast %cst_57 : f32 to vector<1x256xf32>
    %128 = arith.addf %126, %127 : vector<1x256xf32>
    %129 = arith.mulf %118, %92 : vector<1x256xf32>
    %130 = arith.mulf %110, %120 : vector<1x256xf32>
    %131 = arith.addf %129, %130 : vector<1x256xf32>
    %132 = math.tanh %131 : vector<1x256xf32>
    %133 = arith.mulf %128, %132 : vector<1x256xf32>
    %134 = arith.index_cast %c2_i32 : i32 to index
    %c0_58 = arith.constant 0 : index
    %135 = vector.load %arg14[%134, %c0_58] : memref<8x256xf32, #tpu.memory_space<vmem>>, vector<1x256xf32>
    tpu.vector_store %arg14[%134, %c0_58], %133 {strides = array<i32>} : memref<8x256xf32, #tpu.memory_space<vmem>>, vector<1x256xf32>,
    %c3_i32 = arith.constant 3 : i32
    %136 = arith.index_cast %c3_i32 : i32 to index
    %c0_59 = arith.constant 0 : index
    %137 = vector.load %arg15[%136, %c0_59] : memref<8x1024xf32, #tpu.memory_space<vmem>>, vector<1x1024xf32>
    %138 = arith.truncf %133 : vector<1x256xf32> to vector<1x256xbf16>
    %c0_60 = arith.constant 0 : index
    %c0_61 = arith.constant 0 : index
    %139 = vector.load %arg6[%c0_60, %c0_61] : memref<256x1024xbf16, #tpu.memory_space<vmem>>, vector<256x1024xbf16>
    %cst_62 = arith.constant dense<0.000000e+00> : vector<1x1024xf32>
    %140 = tpu.matmul %138, %139, %cst_62 {dimension_numbers = #tpu.dot_dimension_numbers<[1], [0], [0], [1], [0, 0, 1, 1], [], []>} : vector<1x256xbf16>, vector<256x1024xbf16>, vector<1x1024xf32> -> vector<1x1024xf32>
    %141 = arith.addf %137, %140 : vector<1x1024xf32>
    %142 = vector.extract_strided_slice %141 {offsets = [0, 0], sizes = [1, 256], strides = [1, 1]} : vector<1x1024xf32> to vector<1x256xf32>
    %cst_63 = arith.constant 5.000000e-01 : f32
    %143 = vector.broadcast %cst_63 : f32 to vector<1x256xf32>
    %144 = arith.mulf %143, %142 : vector<1x256xf32>
    %145 = math.tanh %144 : vector<1x256xf32>
    %cst_64 = arith.constant 5.000000e-01 : f32
    %146 = vector.broadcast %cst_64 : f32 to vector<1x256xf32>
    %147 = arith.mulf %146, %145 : vector<1x256xf32>
    %cst_65 = arith.constant 5.000000e-01 : f32
    %148 = vector.broadcast %cst_65 : f32 to vector<1x256xf32>
    %149 = arith.addf %147, %148 : vector<1x256xf32>
    %150 = vector.extract_strided_slice %141 {offsets = [0, 256], sizes = [1, 256], strides = [1, 1]} : vector<1x1024xf32> to vector<1x256xf32>
    %cst_66 = arith.constant 5.000000e-01 : f32
    %151 = vector.broadcast %cst_66 : f32 to vector<1x256xf32>
    %152 = arith.mulf %151, %150 : vector<1x256xf32>
    %153 = math.tanh %152 : vector<1x256xf32>
    %cst_67 = arith.constant 5.000000e-01 : f32
    %154 = vector.broadcast %cst_67 : f32 to vector<1x256xf32>
    %155 = arith.mulf %154, %153 : vector<1x256xf32>
    %cst_68 = arith.constant 5.000000e-01 : f32
    %156 = vector.broadcast %cst_68 : f32 to vector<1x256xf32>
    %157 = arith.addf %155, %156 : vector<1x256xf32>
    %158 = vector.extract_strided_slice %141 {offsets = [0, 512], sizes = [1, 256], strides = [1, 1]} : vector<1x1024xf32> to vector<1x256xf32>
    %159 = math.tanh %158 : vector<1x256xf32>
    %160 = vector.extract_strided_slice %141 {offsets = [0, 768], sizes = [1, 256], strides = [1, 1]} : vector<1x1024xf32> to vector<1x256xf32>
    %cst_69 = arith.constant 5.000000e-01 : f32
    %161 = vector.broadcast %cst_69 : f32 to vector<1x256xf32>
    %162 = arith.mulf %161, %160 : vector<1x256xf32>
    %163 = math.tanh %162 : vector<1x256xf32>
    %cst_70 = arith.constant 5.000000e-01 : f32
    %164 = vector.broadcast %cst_70 : f32 to vector<1x256xf32>
    %165 = arith.mulf %164, %163 : vector<1x256xf32>
    %cst_71 = arith.constant 5.000000e-01 : f32
    %166 = vector.broadcast %cst_71 : f32 to vector<1x256xf32>
    %167 = arith.addf %165, %166 : vector<1x256xf32>
    %168 = arith.mulf %157, %131 : vector<1x256xf32>
    %169 = arith.mulf %149, %159 : vector<1x256xf32>
    %170 = arith.addf %168, %169 : vector<1x256xf32>
    %171 = math.tanh %170 : vector<1x256xf32>
    %172 = arith.mulf %167, %171 : vector<1x256xf32>
    %173 = arith.index_cast %c3_i32 : i32 to index
    %c0_72 = arith.constant 0 : index
    %174 = vector.load %arg14[%173, %c0_72] : memref<8x256xf32, #tpu.memory_space<vmem>>, vector<1x256xf32>
    tpu.vector_store %arg14[%173, %c0_72], %172 {strides = array<i32>} : memref<8x256xf32, #tpu.memory_space<vmem>>, vector<1x256xf32>,
    %c4_i32 = arith.constant 4 : i32
    %175 = arith.index_cast %c4_i32 : i32 to index
    %c0_73 = arith.constant 0 : index
    %176 = vector.load %arg15[%175, %c0_73] : memref<8x1024xf32, #tpu.memory_space<vmem>>, vector<1x1024xf32>
    %177 = arith.truncf %172 : vector<1x256xf32> to vector<1x256xbf16>
    %c0_74 = arith.constant 0 : index
    %c0_75 = arith.constant 0 : index
    %178 = vector.load %arg6[%c0_74, %c0_75] : memref<256x1024xbf16, #tpu.memory_space<vmem>>, vector<256x1024xbf16>
    %cst_76 = arith.constant dense<0.000000e+00> : vector<1x1024xf32>
    %179 = tpu.matmul %177, %178, %cst_76 {dimension_numbers = #tpu.dot_dimension_numbers<[1], [0], [0], [1], [0, 0, 1, 1], [], []>} : vector<1x256xbf16>, vector<256x1024xbf16>, vector<1x1024xf32> -> vector<1x1024xf32>
    %180 = arith.addf %176, %179 : vector<1x1024xf32>
    %181 = vector.extract_strided_slice %180 {offsets = [0, 0], sizes = [1, 256], strides = [1, 1]} : vector<1x1024xf32> to vector<1x256xf32>
    %cst_77 = arith.constant 5.000000e-01 : f32
    %182 = vector.broadcast %cst_77 : f32 to vector<1x256xf32>
    %183 = arith.mulf %182, %181 : vector<1x256xf32>
    %184 = math.tanh %183 : vector<1x256xf32>
    %cst_78 = arith.constant 5.000000e-01 : f32
    %185 = vector.broadcast %cst_78 : f32 to vector<1x256xf32>
    %186 = arith.mulf %185, %184 : vector<1x256xf32>
    %cst_79 = arith.constant 5.000000e-01 : f32
    %187 = vector.broadcast %cst_79 : f32 to vector<1x256xf32>
    %188 = arith.addf %186, %187 : vector<1x256xf32>
    %189 = vector.extract_strided_slice %180 {offsets = [0, 256], sizes = [1, 256], strides = [1, 1]} : vector<1x1024xf32> to vector<1x256xf32>
    %cst_80 = arith.constant 5.000000e-01 : f32
    %190 = vector.broadcast %cst_80 : f32 to vector<1x256xf32>
    %191 = arith.mulf %190, %189 : vector<1x256xf32>
    %192 = math.tanh %191 : vector<1x256xf32>
    %cst_81 = arith.constant 5.000000e-01 : f32
    %193 = vector.broadcast %cst_81 : f32 to vector<1x256xf32>
    %194 = arith.mulf %193, %192 : vector<1x256xf32>
    %cst_82 = arith.constant 5.000000e-01 : f32
    %195 = vector.broadcast %cst_82 : f32 to vector<1x256xf32>
    %196 = arith.addf %194, %195 : vector<1x256xf32>
    %197 = vector.extract_strided_slice %180 {offsets = [0, 512], sizes = [1, 256], strides = [1, 1]} : vector<1x1024xf32> to vector<1x256xf32>
    %198 = math.tanh %197 : vector<1x256xf32>
    %199 = vector.extract_strided_slice %180 {offsets = [0, 768], sizes = [1, 256], strides = [1, 1]} : vector<1x1024xf32> to vector<1x256xf32>
    %cst_83 = arith.constant 5.000000e-01 : f32
    %200 = vector.broadcast %cst_83 : f32 to vector<1x256xf32>
    %201 = arith.mulf %200, %199 : vector<1x256xf32>
    %202 = math.tanh %201 : vector<1x256xf32>
    %cst_84 = arith.constant 5.000000e-01 : f32
    %203 = vector.broadcast %cst_84 : f32 to vector<1x256xf32>
    %204 = arith.mulf %203, %202 : vector<1x256xf32>
    %cst_85 = arith.constant 5.000000e-01 : f32
    %205 = vector.broadcast %cst_85 : f32 to vector<1x256xf32>
    %206 = arith.addf %204, %205 : vector<1x256xf32>
    %207 = arith.mulf %196, %170 : vector<1x256xf32>
    %208 = arith.mulf %188, %198 : vector<1x256xf32>
    %209 = arith.addf %207, %208 : vector<1x256xf32>
    %210 = math.tanh %209 : vector<1x256xf32>
    %211 = arith.mulf %206, %210 : vector<1x256xf32>
    %212 = arith.index_cast %c4_i32 : i32 to index
    %c0_86 = arith.constant 0 : index
    %213 = vector.load %arg14[%212, %c0_86] : memref<8x256xf32, #tpu.memory_space<vmem>>, vector<1x256xf32>
    tpu.vector_store %arg14[%212, %c0_86], %211 {strides = array<i32>} : memref<8x256xf32, #tpu.memory_space<vmem>>, vector<1x256xf32>,
    %c5_i32 = arith.constant 5 : i32
    %214 = arith.index_cast %c5_i32 : i32 to index
    %c0_87 = arith.constant 0 : index
    %215 = vector.load %arg15[%214, %c0_87] : memref<8x1024xf32, #tpu.memory_space<vmem>>, vector<1x1024xf32>
    %216 = arith.truncf %211 : vector<1x256xf32> to vector<1x256xbf16>
    %c0_88 = arith.constant 0 : index
    %c0_89 = arith.constant 0 : index
    %217 = vector.load %arg6[%c0_88, %c0_89] : memref<256x1024xbf16, #tpu.memory_space<vmem>>, vector<256x1024xbf16>
    %cst_90 = arith.constant dense<0.000000e+00> : vector<1x1024xf32>
    %218 = tpu.matmul %216, %217, %cst_90 {dimension_numbers = #tpu.dot_dimension_numbers<[1], [0], [0], [1], [0, 0, 1, 1], [], []>} : vector<1x256xbf16>, vector<256x1024xbf16>, vector<1x1024xf32> -> vector<1x1024xf32>
    %219 = arith.addf %215, %218 : vector<1x1024xf32>
    %220 = vector.extract_strided_slice %219 {offsets = [0, 0], sizes = [1, 256], strides = [1, 1]} : vector<1x1024xf32> to vector<1x256xf32>
    %cst_91 = arith.constant 5.000000e-01 : f32
    %221 = vector.broadcast %cst_91 : f32 to vector<1x256xf32>
    %222 = arith.mulf %221, %220 : vector<1x256xf32>
    %223 = math.tanh %222 : vector<1x256xf32>
    %cst_92 = arith.constant 5.000000e-01 : f32
    %224 = vector.broadcast %cst_92 : f32 to vector<1x256xf32>
    %225 = arith.mulf %224, %223 : vector<1x256xf32>
    %cst_93 = arith.constant 5.000000e-01 : f32
    %226 = vector.broadcast %cst_93 : f32 to vector<1x256xf32>
    %227 = arith.addf %225, %226 : vector<1x256xf32>
    %228 = vector.extract_strided_slice %219 {offsets = [0, 256], sizes = [1, 256], strides = [1, 1]} : vector<1x1024xf32> to vector<1x256xf32>
    %cst_94 = arith.constant 5.000000e-01 : f32
    %229 = vector.broadcast %cst_94 : f32 to vector<1x256xf32>
    %230 = arith.mulf %229, %228 : vector<1x256xf32>
    %231 = math.tanh %230 : vector<1x256xf32>
    %cst_95 = arith.constant 5.000000e-01 : f32
    %232 = vector.broadcast %cst_95 : f32 to vector<1x256xf32>
    %233 = arith.mulf %232, %231 : vector<1x256xf32>
    %cst_96 = arith.constant 5.000000e-01 : f32
    %234 = vector.broadcast %cst_96 : f32 to vector<1x256xf32>
    %235 = arith.addf %233, %234 : vector<1x256xf32>
    %236 = vector.extract_strided_slice %219 {offsets = [0, 512], sizes = [1, 256], strides = [1, 1]} : vector<1x1024xf32> to vector<1x256xf32>
    %237 = math.tanh %236 : vector<1x256xf32>
    %238 = vector.extract_strided_slice %219 {offsets = [0, 768], sizes = [1, 256], strides = [1, 1]} : vector<1x1024xf32> to vector<1x256xf32>
    %cst_97 = arith.constant 5.000000e-01 : f32
    %239 = vector.broadcast %cst_97 : f32 to vector<1x256xf32>
    %240 = arith.mulf %239, %238 : vector<1x256xf32>
    %241 = math.tanh %240 : vector<1x256xf32>
    %cst_98 = arith.constant 5.000000e-01 : f32
    %242 = vector.broadcast %cst_98 : f32 to vector<1x256xf32>
    %243 = arith.mulf %242, %241 : vector<1x256xf32>
    %cst_99 = arith.constant 5.000000e-01 : f32
    %244 = vector.broadcast %cst_99 : f32 to vector<1x256xf32>
    %245 = arith.addf %243, %244 : vector<1x256xf32>
    %246 = arith.mulf %235, %209 : vector<1x256xf32>
    %247 = arith.mulf %227, %237 : vector<1x256xf32>
    %248 = arith.addf %246, %247 : vector<1x256xf32>
    %249 = math.tanh %248 : vector<1x256xf32>
    %250 = arith.mulf %245, %249 : vector<1x256xf32>
    %251 = arith.index_cast %c5_i32 : i32 to index
    %c0_100 = arith.constant 0 : index
    %252 = vector.load %arg14[%251, %c0_100] : memref<8x256xf32, #tpu.memory_space<vmem>>, vector<1x256xf32>
    tpu.vector_store %arg14[%251, %c0_100], %250 {strides = array<i32>} : memref<8x256xf32, #tpu.memory_space<vmem>>, vector<1x256xf32>,
    %c6_i32 = arith.constant 6 : i32
    %253 = arith.index_cast %c6_i32 : i32 to index
    %c0_101 = arith.constant 0 : index
    %254 = vector.load %arg15[%253, %c0_101] : memref<8x1024xf32, #tpu.memory_space<vmem>>, vector<1x1024xf32>
    %255 = arith.truncf %250 : vector<1x256xf32> to vector<1x256xbf16>
    %c0_102 = arith.constant 0 : index
    %c0_103 = arith.constant 0 : index
    %256 = vector.load %arg6[%c0_102, %c0_103] : memref<256x1024xbf16, #tpu.memory_space<vmem>>, vector<256x1024xbf16>
    %cst_104 = arith.constant dense<0.000000e+00> : vector<1x1024xf32>
    %257 = tpu.matmul %255, %256, %cst_104 {dimension_numbers = #tpu.dot_dimension_numbers<[1], [0], [0], [1], [0, 0, 1, 1], [], []>} : vector<1x256xbf16>, vector<256x1024xbf16>, vector<1x1024xf32> -> vector<1x1024xf32>
    %258 = arith.addf %254, %257 : vector<1x1024xf32>
    %259 = vector.extract_strided_slice %258 {offsets = [0, 0], sizes = [1, 256], strides = [1, 1]} : vector<1x1024xf32> to vector<1x256xf32>
    %cst_105 = arith.constant 5.000000e-01 : f32
    %260 = vector.broadcast %cst_105 : f32 to vector<1x256xf32>
    %261 = arith.mulf %260, %259 : vector<1x256xf32>
    %262 = math.tanh %261 : vector<1x256xf32>
    %cst_106 = arith.constant 5.000000e-01 : f32
    %263 = vector.broadcast %cst_106 : f32 to vector<1x256xf32>
    %264 = arith.mulf %263, %262 : vector<1x256xf32>
    %cst_107 = arith.constant 5.000000e-01 : f32
    %265 = vector.broadcast %cst_107 : f32 to vector<1x256xf32>
    %266 = arith.addf %264, %265 : vector<1x256xf32>
    %267 = vector.extract_strided_slice %258 {offsets = [0, 256], sizes = [1, 256], strides = [1, 1]} : vector<1x1024xf32> to vector<1x256xf32>
    %cst_108 = arith.constant 5.000000e-01 : f32
    %268 = vector.broadcast %cst_108 : f32 to vector<1x256xf32>
    %269 = arith.mulf %268, %267 : vector<1x256xf32>
    %270 = math.tanh %269 : vector<1x256xf32>
    %cst_109 = arith.constant 5.000000e-01 : f32
    %271 = vector.broadcast %cst_109 : f32 to vector<1x256xf32>
    %272 = arith.mulf %271, %270 : vector<1x256xf32>
    %cst_110 = arith.constant 5.000000e-01 : f32
    %273 = vector.broadcast %cst_110 : f32 to vector<1x256xf32>
    %274 = arith.addf %272, %273 : vector<1x256xf32>
    %275 = vector.extract_strided_slice %258 {offsets = [0, 512], sizes = [1, 256], strides = [1, 1]} : vector<1x1024xf32> to vector<1x256xf32>
    %276 = math.tanh %275 : vector<1x256xf32>
    %277 = vector.extract_strided_slice %258 {offsets = [0, 768], sizes = [1, 256], strides = [1, 1]} : vector<1x1024xf32> to vector<1x256xf32>
    %cst_111 = arith.constant 5.000000e-01 : f32
    %278 = vector.broadcast %cst_111 : f32 to vector<1x256xf32>
    %279 = arith.mulf %278, %277 : vector<1x256xf32>
    %280 = math.tanh %279 : vector<1x256xf32>
    %cst_112 = arith.constant 5.000000e-01 : f32
    %281 = vector.broadcast %cst_112 : f32 to vector<1x256xf32>
    %282 = arith.mulf %281, %280 : vector<1x256xf32>
    %cst_113 = arith.constant 5.000000e-01 : f32
    %283 = vector.broadcast %cst_113 : f32 to vector<1x256xf32>
    %284 = arith.addf %282, %283 : vector<1x256xf32>
    %285 = arith.mulf %274, %248 : vector<1x256xf32>
    %286 = arith.mulf %266, %276 : vector<1x256xf32>
    %287 = arith.addf %285, %286 : vector<1x256xf32>
    %288 = math.tanh %287 : vector<1x256xf32>
    %289 = arith.mulf %284, %288 : vector<1x256xf32>
    %290 = arith.index_cast %c6_i32 : i32 to index
    %c0_114 = arith.constant 0 : index
    %291 = vector.load %arg14[%290, %c0_114] : memref<8x256xf32, #tpu.memory_space<vmem>>, vector<1x256xf32>
    tpu.vector_store %arg14[%290, %c0_114], %289 {strides = array<i32>} : memref<8x256xf32, #tpu.memory_space<vmem>>, vector<1x256xf32>,
    %c7_i32 = arith.constant 7 : i32
    %292 = arith.index_cast %c7_i32 : i32 to index
    %c0_115 = arith.constant 0 : index
    %293 = vector.load %arg15[%292, %c0_115] : memref<8x1024xf32, #tpu.memory_space<vmem>>, vector<1x1024xf32>
    %294 = arith.truncf %289 : vector<1x256xf32> to vector<1x256xbf16>
    %c0_116 = arith.constant 0 : index
    %c0_117 = arith.constant 0 : index
    %295 = vector.load %arg6[%c0_116, %c0_117] : memref<256x1024xbf16, #tpu.memory_space<vmem>>, vector<256x1024xbf16>
    %cst_118 = arith.constant dense<0.000000e+00> : vector<1x1024xf32>
    %296 = tpu.matmul %294, %295, %cst_118 {dimension_numbers = #tpu.dot_dimension_numbers<[1], [0], [0], [1], [0, 0, 1, 1], [], []>} : vector<1x256xbf16>, vector<256x1024xbf16>, vector<1x1024xf32> -> vector<1x1024xf32>
    %297 = arith.addf %293, %296 : vector<1x1024xf32>
    %298 = vector.extract_strided_slice %297 {offsets = [0, 0], sizes = [1, 256], strides = [1, 1]} : vector<1x1024xf32> to vector<1x256xf32>
    %cst_119 = arith.constant 5.000000e-01 : f32
    %299 = vector.broadcast %cst_119 : f32 to vector<1x256xf32>
    %300 = arith.mulf %299, %298 : vector<1x256xf32>
    %301 = math.tanh %300 : vector<1x256xf32>
    %cst_120 = arith.constant 5.000000e-01 : f32
    %302 = vector.broadcast %cst_120 : f32 to vector<1x256xf32>
    %303 = arith.mulf %302, %301 : vector<1x256xf32>
    %cst_121 = arith.constant 5.000000e-01 : f32
    %304 = vector.broadcast %cst_121 : f32 to vector<1x256xf32>
    %305 = arith.addf %303, %304 : vector<1x256xf32>
    %306 = vector.extract_strided_slice %297 {offsets = [0, 256], sizes = [1, 256], strides = [1, 1]} : vector<1x1024xf32> to vector<1x256xf32>
    %cst_122 = arith.constant 5.000000e-01 : f32
    %307 = vector.broadcast %cst_122 : f32 to vector<1x256xf32>
    %308 = arith.mulf %307, %306 : vector<1x256xf32>
    %309 = math.tanh %308 : vector<1x256xf32>
    %cst_123 = arith.constant 5.000000e-01 : f32
    %310 = vector.broadcast %cst_123 : f32 to vector<1x256xf32>
    %311 = arith.mulf %310, %309 : vector<1x256xf32>
    %cst_124 = arith.constant 5.000000e-01 : f32
    %312 = vector.broadcast %cst_124 : f32 to vector<1x256xf32>
    %313 = arith.addf %311, %312 : vector<1x256xf32>
    %314 = vector.extract_strided_slice %297 {offsets = [0, 512], sizes = [1, 256], strides = [1, 1]} : vector<1x1024xf32> to vector<1x256xf32>
    %315 = math.tanh %314 : vector<1x256xf32>
    %316 = vector.extract_strided_slice %297 {offsets = [0, 768], sizes = [1, 256], strides = [1, 1]} : vector<1x1024xf32> to vector<1x256xf32>
    %cst_125 = arith.constant 5.000000e-01 : f32
    %317 = vector.broadcast %cst_125 : f32 to vector<1x256xf32>
    %318 = arith.mulf %317, %316 : vector<1x256xf32>
    %319 = math.tanh %318 : vector<1x256xf32>
    %cst_126 = arith.constant 5.000000e-01 : f32
    %320 = vector.broadcast %cst_126 : f32 to vector<1x256xf32>
    %321 = arith.mulf %320, %319 : vector<1x256xf32>
    %cst_127 = arith.constant 5.000000e-01 : f32
    %322 = vector.broadcast %cst_127 : f32 to vector<1x256xf32>
    %323 = arith.addf %321, %322 : vector<1x256xf32>
    %324 = arith.mulf %313, %287 : vector<1x256xf32>
    %325 = arith.mulf %305, %315 : vector<1x256xf32>
    %326 = arith.addf %324, %325 : vector<1x256xf32>
    %327 = math.tanh %326 : vector<1x256xf32>
    %328 = arith.mulf %323, %327 : vector<1x256xf32>
    %329 = arith.index_cast %c7_i32 : i32 to index
    %c0_128 = arith.constant 0 : index
    %330 = vector.load %arg14[%329, %c0_128] : memref<8x256xf32, #tpu.memory_space<vmem>>, vector<1x256xf32>
    tpu.vector_store %arg14[%329, %c0_128], %328 {strides = array<i32>} : memref<8x256xf32, #tpu.memory_space<vmem>>, vector<1x256xf32>,
    %c8_i32 = arith.constant 8 : i32
    %331 = arith.truncf %8 : vector<8x256xf32> to vector<8x256xbf16>
    %c0_129 = arith.constant 0 : index
    %c0_130 = arith.constant 0 : index
    %332 = vector.load %arg8[%c0_129, %c0_130] : memref<256x128xbf16, #tpu.memory_space<vmem>>, vector<256x128xbf16>
    %cst_131 = arith.constant dense<0.000000e+00> : vector<8x128xf32>
    %333 = tpu.matmul %331, %332, %cst_131 {dimension_numbers = #tpu.dot_dimension_numbers<[1], [0], [0], [1], [0, 0, 1, 1], [], []>} : vector<8x256xbf16>, vector<256x128xbf16>, vector<8x128xf32> -> vector<8x128xf32>
    %c0_132 = arith.constant 0 : index
    %c0_133 = arith.constant 0 : index
    %334 = vector.load %arg14[%c0_132, %c0_133] : memref<8x256xf32, #tpu.memory_space<vmem>>, vector<8x256xf32>
    %335 = arith.truncf %334 : vector<8x256xf32> to vector<8x256xbf16>
    %c0_134 = arith.constant 0 : index
    %c0_135 = arith.constant 0 : index
    %336 = vector.load %arg9[%c0_134, %c0_135] : memref<256x128xbf16, #tpu.memory_space<vmem>>, vector<256x128xbf16>
    %cst_136 = arith.constant dense<0.000000e+00> : vector<8x128xf32>
    %337 = tpu.matmul %335, %336, %cst_136 {dimension_numbers = #tpu.dot_dimension_numbers<[1], [0], [0], [1], [0, 0, 1, 1], [], []>} : vector<8x256xbf16>, vector<256x128xbf16>, vector<8x128xf32> -> vector<8x128xf32>
    %338 = arith.addf %333, %337 : vector<8x128xf32>
    %c0_137 = arith.constant 0 : index
    %c0_138 = arith.constant 0 : index
    %339 = vector.load %arg10[%c0_137, %c0_138] : memref<1x128xf32, #tpu.memory_space<vmem>>, vector<1x128xf32>
    %340 = vector.broadcast %339 : vector<1x128xf32> to vector<8x128xf32>
    %341 = arith.addf %338, %340 : vector<8x128xf32>
    %cst_139 = arith.constant 0.000000e+00 : f32
    %342 = vector.broadcast %cst_139 : f32 to vector<8x128xf32>
    %343 = arith.maximumf %341, %342 : vector<8x128xf32>
    %344 = arith.truncf %343 : vector<8x128xf32> to vector<8x128xbf16>
    %c0_140 = arith.constant 0 : index
    %c0_141 = arith.constant 0 : index
    %345 = vector.load %arg11[%c0_140, %c0_141] : memref<128x128xbf16, #tpu.memory_space<vmem>>, vector<128x128xbf16>
    %cst_142 = arith.constant dense<0.000000e+00> : vector<8x128xf32>
    %346 = tpu.matmul %344, %345, %cst_142 {dimension_numbers = #tpu.dot_dimension_numbers<[1], [0], [0], [1], [0, 0, 1, 1], [], []>} : vector<8x128xbf16>, vector<128x128xbf16>, vector<8x128xf32> -> vector<8x128xf32>
    %c0_143 = arith.constant 0 : index
    %c0_144 = arith.constant 0 : index
    %347 = vector.load %arg12[%c0_143, %c0_144] : memref<1x128xf32, #tpu.memory_space<vmem>>, vector<1x128xf32>
    %348 = vector.broadcast %347 : vector<1x128xf32> to vector<8x128xf32>
    %349 = arith.addf %346, %348 : vector<8x128xf32>
    %c0_145 = arith.constant 0 : index
    %c0_146 = arith.constant 0 : index
    %350 = vector.load %arg13[%c0_145, %c0_146] : memref<8x128xf32, #tpu.memory_space<vmem>>, vector<8x128xf32>
    tpu.vector_store %arg13[%c0_145, %c0_146], %349 {strides = array<i32>} : memref<8x128xf32, #tpu.memory_space<vmem>>, vector<8x128xf32>,
    return
  }
  func.func @transform_0(%arg0: i32) -> (i32, i32) {
    %c0_i32 = arith.constant 0 : i32
    %c0_i32_0 = arith.constant 0 : i32
    %c0_i32_1 = arith.constant 0 : i32
    return %c0_i32, %c0_i32_0 : i32, i32
  }
  func.func @transform_1(%arg0: i32) -> (i32, i32) {
    %c0_i32 = arith.constant 0 : i32
    %c0_i32_0 = arith.constant 0 : i32
    %c0_i32_1 = arith.constant 0 : i32
    return %c0_i32, %c0_i32_0 : i32, i32
  }
  func.func @transform_2(%arg0: i32) -> (i32, i32) {
    %c0_i32 = arith.constant 0 : i32
    %c0_i32_0 = arith.constant 0 : i32
    %c0_i32_1 = arith.constant 0 : i32
    return %c0_i32, %c0_i32_0 : i32, i32
  }
  func.func @transform_3(%arg0: i32) -> (i32, i32) {
    %c0_i32 = arith.constant 0 : i32
    %c0_i32_0 = arith.constant 0 : i32
    %c0_i32_1 = arith.constant 0 : i32
    return %c0_i32, %c0_i32_0 : i32, i32
  }
  func.func @transform_4(%arg0: i32) -> (i32, i32) {
    %c0_i32 = arith.constant 0 : i32
    %c0_i32_0 = arith.constant 0 : i32
    %c0_i32_1 = arith.constant 0 : i32
    return %c0_i32, %c0_i32_0 : i32, i32
  }
  func.func @transform_5(%arg0: i32) -> (i32, i32) {
    %c0_i32 = arith.constant 0 : i32
    %c0_i32_0 = arith.constant 0 : i32
    %c0_i32_1 = arith.constant 0 : i32
    return %c0_i32, %c0_i32_0 : i32, i32
  }
  func.func @transform_6(%arg0: i32) -> (i32, i32) {
    %c0_i32 = arith.constant 0 : i32
    %c0_i32_0 = arith.constant 0 : i32
    %c0_i32_1 = arith.constant 0 : i32
    return %c0_i32, %c0_i32_0 : i32, i32
  }
  func.func @transform_7(%arg0: i32) -> (i32, i32) {
    %c0_i32 = arith.constant 0 : i32
    %c0_i32_0 = arith.constant 0 : i32
    %c0_i32_1 = arith.constant 0 : i32
    return %c0_i32, %c0_i32_0 : i32, i32
  }
  func.func @transform_8(%arg0: i32) -> (i32, i32) {
    %c0_i32 = arith.constant 0 : i32
    %c0_i32_0 = arith.constant 0 : i32
    %c0_i32_1 = arith.constant 0 : i32
    return %c0_i32, %c0_i32_0 : i32, i32
  }
  func.func @transform_9(%arg0: i32) -> (i32, i32) {
    %c0_i32 = arith.constant 0 : i32
    %c0_i32_0 = arith.constant 0 : i32
    %c0_i32_1 = arith.constant 0 : i32
    return %c0_i32, %c0_i32_0 : i32, i32
  }
  func.func @transform_10(%arg0: i32) -> (i32, i32) {
    %c0_i32 = arith.constant 0 : i32
    %c0_i32_0 = arith.constant 0 : i32
    %c0_i32_1 = arith.constant 0 : i32
    return %c0_i32, %c0_i32_0 : i32, i32
  }
  func.func @transform_11(%arg0: i32) -> (i32, i32) {
    %c0_i32 = arith.constant 0 : i32
    %c0_i32_0 = arith.constant 0 : i32
    %c0_i32_1 = arith.constant 0 : i32
    return %c0_i32, %c0_i32_0 : i32, i32
  }
  func.func @transform_12(%arg0: i32) -> (i32, i32) {
    %c0_i32 = arith.constant 0 : i32
    %c0_i32_0 = arith.constant 0 : i32
    %c0_i32_1 = arith.constant 0 : i32
    return %c0_i32, %c0_i32_0 : i32, i32
  }
}

</mosaic_0001>

<bundles_post_ra>
// kernel: tpu_custom_call.1
= control target key start
LH: loop header
LB: loop body
LE: loop exit
PB: predicated region body
PF: predicated region fallthrough
CT: control target
= control target key end

     0   :  { %17 = vsyncpa [#allocation5], 0  ;;  %s17760_s0 = inlined_call_operand.hbm [shape: f32[8,512], index: 0, kind: input, shape index: {}]   ;;  %s17761_s1 = inlined_call_operand.hbm [shape: f32[8,256], index: 1, kind: input, shape index: {}]   ;;  %s17762_s2 = inlined_call_operand.hbm [shape: bf16[512,256], index: 2, kind: input, shape index: {}]   ;;  %s17763_s3 = inlined_call_operand.vmem [shape: f32[1,256], index: 3, kind: input, shape index: {}]   ;;  %s17764_s4 = inlined_call_operand.hbm [shape: bf16[256,1024], index: 4, kind: input, shape index: {}]   ;;  %s17765_s5 = inlined_call_operand.hbm [shape: bf16[256,1024], index: 5, kind: input, shape index: {}]   ;;  %s17766_s6 = inlined_call_operand.hbm [shape: f32[1,1024], index: 6, kind: input, shape index: {}]   ;;  %s17767_s7 = inlined_call_operand.hbm [shape: bf16[256,128], index: 7, kind: input, shape index: {}]   ;;  %s17768_s8 = inlined_call_operand.hbm [shape: bf16[256,128], index: 8, kind: input, shape index: {}]   ;;  %s17769_s9 = inlined_call_operand.vmem [shape: f32[1,128], index: 9, kind: input, shape index: {}]   ;;  %s17770_s10 = inlined_call_operand.hbm [shape: bf16[128,128], index: 10, kind: input, shape index: {}]   ;;  %s17771_s11 = inlined_call_operand.vmem [shape: f32[1,128], index: 11, kind: input, shape index: {}]   ;;  %s17772_s12 = inlined_call_operand.hbm [shape: f32[8,128], index: 12, kind: output, shape index: {}]  }
   0x1   :  { %18 = vsyncpa [#allocation8], 0 }
   0x2   :  { %19 = vsyncpa [#allocation11], 0 }
   0x3   :  { %20 = vsyncpa [#allocation14], 0 }
   0x4   :  { %21 = vsyncpa [#allocation17], 0  ;;  %s39_s23 = sshll.u32 %s17761_s1, 4  ;;  %s40_s23 = int_to_ptr.hbm [resolvable:$true] %s39_s23 }
   0x5   :  { %22 = vsyncpa [#allocation6], 0  ;;  %s17056_s24 = smov [#allocation7]   ;;  %s64_s28 = sshll.u32 %s17764_s4, 4  ;;  %s65_s28 = int_to_ptr.hbm [resolvable:$true] %s64_s28 }
   0x6   :  { %s41_s25 = sshll.u32 %s17056_s24, 4  ;;  %s17057_s29 = smov [#allocation10]   ;;  %s42_s25 = int_to_ptr.vmem [resolvable:$true] %s41_s25 }
   0x7   :  { %44 = dma.hbm_to_vmem [thread:$0]  %s40_s23, 256, %s42_s25, [#allocation8]  }
   0x8   :  { %s66_s30 = sshll.u32 %s17057_s29, 4  ;;  %s17058_s13 = smov 512   ;;  %s67_s30 = int_to_ptr.vmem [resolvable:$true] %s66_s30 }
   0x9   :  { %s17059_s14 = smov 32   ;;  %s91_s16 = sshll.u32 %s17766_s6, 4  ;;  %s92_s16 = int_to_ptr.hbm [resolvable:$true] %s91_s16 }
   0xa   :  { %72 = dma.hbm_to_vmem [thread:$0]  %s65_s28, 16384, %s67_s30, [#allocation11], %s17058_s13, %s17058_s13, %s17059_s14  }
   0xb   :  { %s17060_s17 = smov [#allocation13]   ;;  %s114_s20 = sshll.u32 %s17768_s8, 4  ;;  %s115_s20 = int_to_ptr.hbm [resolvable:$true] %s114_s20 }
   0xc   :  { %s93_s18 = sshll.u32 %s17060_s17, 4  ;;  %s17061_s21 = smov [#allocation16]   ;;  %s94_s18 = int_to_ptr.vmem [resolvable:$true] %s93_s18 }
   0xd   :  { %96 = dma.hbm_to_vmem [thread:$0]  %s92_s16, 128, %s94_s18, [#allocation14]  }
   0xe   :  { %s116_s22 = sshll.u32 %s17061_s21, 4  ;;  %s28_s25 = sshll.u32 %s17760_s0, 4  ;;  %s117_s22 = int_to_ptr.vmem [resolvable:$true] %s116_s22  ;;  %s29_s25 = int_to_ptr.hbm [resolvable:$true] %s28_s25 }
   0xf   :  { %s17062_s26 = smov 64   ;;  %s17063_s6 = smov 4  }
  0x10   :  { %122 = dma.hbm_to_vmem [thread:$0]  %s115_s20, 2048, %s117_s22, [#allocation17], %s17062_s26, %s17062_s26, %s17063_s6  }
  0x11   :  { %s49_s29 = sshll.u32 %s17762_s2, 4  ;;  %s17064_s8 = smov [#allocation4]   ;;  %s50_s29 = int_to_ptr.hbm [resolvable:$true] %s49_s29 }
  0x12   :  { %s30_s30 = sshll.u32 %s17064_s8, 4  ;;  %s17065_s1 = smov [#allocation9]   ;;  %s31_s30 = int_to_ptr.vmem [resolvable:$true] %s30_s30 }
  0x13   :  { %33 = dma.hbm_to_vmem [thread:$0]  %s29_s25, 512, %s31_s30, [#allocation5]  }
  0x14   :  { %s51_s15 = sshll.u32 %s17065_s1, 4  ;;  %s17066_s0 = smov 128   ;;  %s52_s15 = int_to_ptr.vmem [resolvable:$true] %s51_s15 }
  0x15   :  { %s17067_s16 = smov 8   ;;  %s77_s4 = sshll.u32 %s17765_s5, 4  ;;  %s78_s4 = int_to_ptr.hbm [resolvable:$true] %s77_s4 }
  0x16   :  { %57 = dma.hbm_to_vmem [thread:$0]  %s50_s29, 8192, %s52_s15, [#allocation8], %s17066_s0, %s17066_s0, %s17067_s16  }
  0x17   :  { %s17068_s19 = smov [#allocation12]   ;;  %s101_s22 = sshll.u32 %s17767_s7, 4  ;;  %s102_s22 = int_to_ptr.hbm [resolvable:$true] %s101_s22 }
  0x18   :  { %s79_s20 = sshll.u32 %s17068_s19, 4  ;;  %s17069_s23 = smov [#allocation15]   ;;  %s80_s20 = int_to_ptr.vmem [resolvable:$true] %s79_s20 }
  0x19   :  { %85 = dma.hbm_to_vmem [thread:$0]  %s78_s4, 16384, %s80_s20, [#allocation11], %s17058_s13, %s17058_s13, %s17059_s14  }
  0x1a   :  { %s103_s24 = sshll.u32 %s17069_s23, 4  ;;  %s129_s28 = sshll.u32 %s17770_s10, 4  ;;  %s104_s24 = int_to_ptr.vmem [resolvable:$true] %s103_s24  ;;  %s130_s28 = int_to_ptr.hbm [resolvable:$true] %s129_s28 }
  0x1b   :  { %109 = dma.hbm_to_vmem [thread:$0]  %s102_s22, 2048, %s104_s24, [#allocation14], %s17062_s26, %s17062_s26, %s17063_s6  }
  0x1c   :  { %s17070_s5 = smov [#allocation18]  }
  0x1d   :  { %s131_s29 = sshll.u32 %s17070_s5, 4  ;;  %s132_s29 = int_to_ptr.vmem [resolvable:$true] %s131_s29 }
  0x1e   :  { %137 = dma.hbm_to_vmem [thread:$0]  %s130_s28, 1024, %s132_s29, [#allocation17], %s17062_s26, %s17062_s26, %s17063_s6  }
  0x1f   :  { %17044 = dma.done.wait [#allocation5], 512  }
  0x20   :  { %17045 = vsyncadd [#allocation5], 4294966784 }
  0x21   :  { %17046 = dma.done.wait [#allocation8], 8448  }
  0x22   :  { %17047 = vsyncadd [#allocation8], 4294958848 }
  0x23   :  { %17048 = dma.done.wait [#allocation11], 32768  }
  0x24   :  { %17049 = vsyncadd [#allocation11], 4294934528 }
  0x25   :  { %17050 = dma.done.wait [#allocation14], 2176  }
  0x26   :  { %17051 = vsyncadd [#allocation14], 4294965120 }
  0x27   :  { %17052 = dma.done.wait [#allocation17], 3072  }
  0x28   :  { %17053 = vsyncadd [#allocation17], 4294964224  ;;  %v10483_v0 = vld [vmem:[#allocation9 + $0x70] sm:$0xf]  ;;  %v15464_v1 = vld [vmem:[#allocation9 + $0x74] sm:$0xf0] }
  0x29   :  { %v10547_v2 = vld [vmem:[#allocation9 + $0xf0] sm:$0xf]  ;;  %v10484_v3 = vor.u32 %v15464_v1, %v10483_v0  ;;  %v15480_v4 = vld [vmem:[#allocation9 + $0xf4] sm:$0xf0]  ;;  %v10475_v11 = vld [vmem:[#allocation9 + $0x60] sm:$0xf] }
  0x2a   :  { %v10611_v5 = vld [vmem:[#allocation9 + $0x170] sm:$0xf]  ;;  %v15496_v6 = vld [vmem:[#allocation9 + $0x174] sm:$0xf0]  ;;  %v10548_v7 = vor.u32 %v15480_v4, %v10547_v2  ;;  %v15462_v13 = vld [vmem:[#allocation9 + $0x64] sm:$0xf0] }
  0x2b   :  { %v10612_v8 = vor.u32 %v15496_v6, %v10611_v5  ;;  %v10675_v9 = vld [vmem:[#allocation9 + $0x1f0] sm:$0xf]  ;;  %v15512_v10 = vld [vmem:[#allocation9 + $0x1f4] sm:$0xf0]  ;;  %575 = vmatpush.bf16.msra.mxu0 %v10484_v3  ;;  %v10539_v14 = vld [vmem:[#allocation9 + $0xe0] sm:$0xf]  ;;  %v10476_v16 = vor.u32 %v15462_v13, %v10475_v11 }
  0x2c   :  { %v10676_v12 = vor.u32 %v15512_v10, %v10675_v9  ;;  %v15478_v15 = vld [vmem:[#allocation9 + $0xe4] sm:$0xf0]  ;;  %588 = vmatpush.bf16.msra.mxu1 %v10548_v7  ;;  %v10603_v18 = vld [vmem:[#allocation9 + $0x160] sm:$0xf]  ;;  %v10467_v23 = vld [vmem:[#allocation9 + $0x50] sm:$0xf] }
  0x2d   :  { %601 = vmatpush.bf16.msra.mxu2 %v10612_v8  ;;  %v10540_v17 = vor.u32 %v15478_v15, %v10539_v14  ;;  %v15494_v19 = vld [vmem:[#allocation9 + $0x164] sm:$0xf0]  ;;  %v10667_v20 = vld [vmem:[#allocation9 + $0x1e0] sm:$0xf]  ;;  %v15460_v24 = vld [vmem:[#allocation9 + $0x54] sm:$0xf0] }
  0x2e   :  { %614 = vmatpush.bf16.msra.mxu3 %v10676_v12  ;;  %v10604_v21 = vor.u32 %v15494_v19, %v10603_v18  ;;  %v15510_v22 = vld [vmem:[#allocation9 + $0x1e4] sm:$0xf0]  ;;  %v10531_v26 = vld [vmem:[#allocation9 + $0xd0] sm:$0xf]  ;;  %v15476_v27 = vld [vmem:[#allocation9 + $0xd4] sm:$0xf0]  ;;  %v10468_v29 = vor.u32 %v15460_v24, %v10467_v23 }
  0x2f   :  { %v10668_v25 = vor.u32 %v15510_v22, %v10667_v20  ;;  %v10595_v28 = vld [vmem:[#allocation9 + $0x150] sm:$0xf]  ;;  %576 = vmatpush.bf16.msra.mxu0 %v10476_v16  ;;  %v15492_v30 = vld [vmem:[#allocation9 + $0x154] sm:$0xf0]  ;;  %v10532_v33 = vor.u32 %v15476_v27, %v10531_v26  ;;  %v10459_v35 = vld [vmem:[#allocation9 + $0x40] sm:$0xf] }
  0x30   :  { %v10659_v31 = vld [vmem:[#allocation9 + $0x1d0] sm:$0xf]  ;;  %v15508_v32 = vld [vmem:[#allocation9 + $0x1d4] sm:$0xf0]  ;;  %589 = vmatpush.bf16.msra.mxu1 %v10540_v17  ;;  %v10596_v34 = vor.u32 %v15492_v30, %v10595_v28  ;;  %v15458_v36 = vld [vmem:[#allocation9 + $0x44] sm:$0xf0] }
  0x31   :  { %602 = vmatpush.bf16.msra.mxu2 %v10604_v21  ;;  %v10523_v37 = vld [vmem:[#allocation9 + $0xc0] sm:$0xf]  ;;  %v10660_v38 = vor.u32 %v15508_v32, %v10659_v31  ;;  %v15474_v39 = vld [vmem:[#allocation9 + $0xc4] sm:$0xf0]  ;;  %v10460_v44 = vor.u32 %v15458_v36, %v10459_v35  ;;  %v10451_v47 = vld [vmem:[#allocation9 + $0x30] sm:$0xf] }
  0x32   :  { %615 = vmatpush.bf16.msra.mxu3 %v10668_v25  ;;  %v10587_v40 = vld [vmem:[#allocation9 + $0x140] sm:$0xf]  ;;  %v15490_v41 = vld [vmem:[#allocation9 + $0x144] sm:$0xf0]  ;;  %v10524_v45 = vor.u32 %v15474_v39, %v10523_v37  ;;  %v15456_v48 = vld [vmem:[#allocation9 + $0x34] sm:$0xf0] }
  0x33   :  { %v10651_v42 = vld [vmem:[#allocation9 + $0x1c0] sm:$0xf]  ;;  %v15506_v43 = vld [vmem:[#allocation9 + $0x1c4] sm:$0xf0]  ;;  %577 = vmatpush.bf16.msra.mxu0 %v10468_v29  ;;  %v10588_v46 = vor.u32 %v15490_v41, %v10587_v40  ;;  %v10515_v49 = vld [vmem:[#allocation9 + $0xb0] sm:$0xf]  ;;  %v10452_v56 = vor.u32 %v15456_v48, %v10451_v47 }
  0x34   :  { %590 = vmatpush.bf16.msra.mxu1 %v10532_v33  ;;  %v10652_v50 = vor.u32 %v15506_v43, %v10651_v42  ;;  %v15472_v51 = vld [vmem:[#allocation9 + $0xb4] sm:$0xf0]  ;;  %v10579_v52 = vld [vmem:[#allocation9 + $0x130] sm:$0xf]  ;;  %v10443_v59 = vld [vmem:[#allocation9 + $0x20] sm:$0xf] }
  0x35   :  { %603 = vmatpush.bf16.msra.mxu2 %v10596_v34  ;;  %v15488_v53 = vld [vmem:[#allocation9 + $0x134] sm:$0xf0]  ;;  %v10643_v54 = vld [vmem:[#allocation9 + $0x1b0] sm:$0xf]  ;;  %v10516_v57 = vor.u32 %v15472_v51, %v10515_v49  ;;  %v15454_v60 = vld [vmem:[#allocation9 + $0x24] sm:$0xf0] }
  0x36   :  { %616 = vmatpush.bf16.msra.mxu3 %v10660_v38  ;;  %v15504_v55 = vld [vmem:[#allocation9 + $0x1b4] sm:$0xf0]  ;;  %v10580_v58 = vor.u32 %v15488_v53, %v10579_v52  ;;  %v10507_v61 = vld [vmem:[#allocation9 + $0xa0] sm:$0xf]  ;;  %v15470_v63 = vld [vmem:[#allocation9 + $0xa4] sm:$0xf0]  ;;  %v10444_v4 = vor.u32 %v15454_v60, %v10443_v59 }
  0x37   :  { %578 = vmatpush.bf16.msra.mxu0 %v10460_v44  ;;  %v10644_v62 = vor.u32 %v15504_v55, %v10643_v54  ;;  %v10571_v0 = vld [vmem:[#allocation9 + $0x120] sm:$0xf]  ;;  %v15486_v1 = vld [vmem:[#allocation9 + $0x124] sm:$0xf0]  ;;  %v10508_v5 = vor.u32 %v15470_v63, %v10507_v61  ;;  %v10435_v7 = vld [vmem:[#allocation9 + $0x10] sm:$0xf] }
  0x38   :  { %591 = vmatpush.bf16.msra.mxu1 %v10524_v45  ;;  %v10635_v2 = vld [vmem:[#allocation9 + $0x1a0] sm:$0xf]  ;;  %v15502_v3 = vld [vmem:[#allocation9 + $0x1a4] sm:$0xf0]  ;;  %v10572_v6 = vor.u32 %v15486_v1, %v10571_v0  ;;  %v15452_v8 = vld [vmem:[#allocation9 + $0x14] sm:$0xf0] }
  0x39   :  { %604 = vmatpush.bf16.msra.mxu2 %v10588_v46  ;;  %v10499_v9 = vld [vmem:[#allocation9 + $0x90] sm:$0xf]  ;;  %v10636_v10 = vor.u32 %v15502_v3, %v10635_v2  ;;  %v15468_v11 = vld [vmem:[#allocation9 + $0x94] sm:$0xf0]  ;;  %v10436_v16 = vor.u32 %v15452_v8, %v10435_v7  ;;  %v10427_v17 = vld [vmem:[#allocation9] sm:$0xf] }
  0x3a   :  { %617 = vmatpush.bf16.msra.mxu3 %v10652_v50  ;;  %v10563_v12 = vld [vmem:[#allocation9 + $0x110] sm:$0xf]  ;;  %v15484_v13 = vld [vmem:[#allocation9 + $0x114] sm:$0xf0]  ;;  %v15450_v18 = vld [vmem:[#allocation9 + $0x4] sm:$0xf0]  ;;  %v10500_v19 = vor.u32 %v15468_v11, %v10499_v9 }
  0x3b   :  { %579 = vmatpush.bf16.msra.mxu0 %v10452_v56  ;;  %v10627_v14 = vld [vmem:[#allocation9 + $0x190] sm:$0xf]  ;;  %v15500_v15 = vld [vmem:[#allocation9 + $0x194] sm:$0xf0]  ;;  %v10564_v20 = vor.u32 %v15484_v13, %v10563_v12  ;;  %v10491_v21 = vld [vmem:[#allocation9 + $0x80] sm:$0xf]  ;;  %v10428_v31 = vor.u32 %v15450_v18, %v10427_v17 }
  0x3c   :  { %592 = vmatpush.bf16.msra.mxu1 %v10516_v57  ;;  %v15466_v22 = vld [vmem:[#allocation9 + $0x84] sm:$0xf0]  ;;  %v10555_v23 = vld [vmem:[#allocation9 + $0x100] sm:$0xf]  ;;  %v10628_v24 = vor.u32 %v15500_v15, %v10627_v14  ;;  %v15463_v28 = vld [vmem:[#allocation9 + $0x74] sm:$0xf] }
  0x3d   :  { %605 = vmatpush.bf16.msra.mxu2 %v10580_v58  ;;  %v15482_v25 = vld [vmem:[#allocation9 + $0x104] sm:$0xf0]  ;;  %v10619_v26 = vld [vmem:[#allocation9 + $0x180] sm:$0xf]  ;;  %v10485_v29 = vld [vmem:[#allocation9 + $0x78] sm:$0xf0]  ;;  %v10492_v35 = vor.u32 %v15466_v22, %v10491_v21 }
  0x3e   :  { %618 = vmatpush.bf16.msra.mxu3 %v10644_v62  ;;  %v15498_v27 = vld [vmem:[#allocation9 + $0x184] sm:$0xf0]  ;;  %v15479_v30 = vld [vmem:[#allocation9 + $0xf4] sm:$0xf]  ;;  %v10549_v32 = vld [vmem:[#allocation9 + $0xf8] sm:$0xf0]  ;;  %v10556_v36 = vor.u32 %v15482_v25, %v10555_v23  ;;  %v10488_v40 = vor.u32 %v15463_v28, %v10485_v29 }
  0x3f   :  { %580 = vmatpush.bf16.msra.mxu0 %v10444_v4  ;;  %v15495_v33 = vld [vmem:[#allocation9 + $0x174] sm:$0xf]  ;;  %v10613_v34 = vld [vmem:[#allocation9 + $0x178] sm:$0xf0]  ;;  %v10620_v39 = vor.u32 %v15498_v27, %v10619_v26  ;;  %v10552_v41 = vor.u32 %v15479_v30, %v10549_v32  ;;  %v15461_v43 = vld [vmem:[#allocation9 + $0x64] sm:$0xf] }
  0x40   :  { %593 = vmatpush.bf16.msra.mxu1 %v10508_v5  ;;  %v15511_v37 = vld [vmem:[#allocation9 + $0x1f4] sm:$0xf]  ;;  %v10677_v38 = vld [vmem:[#allocation9 + $0x1f8] sm:$0xf0]  ;;  %v10616_v42 = vor.u32 %v15495_v33, %v10613_v34  ;;  %v10477_v44 = vld [vmem:[#allocation9 + $0x68] sm:$0xf0] }
  0x41   :  { %606 = vmatpush.bf16.msra.mxu2 %v10572_v6  ;;  %v15477_v45 = vld [vmem:[#allocation9 + $0xe4] sm:$0xf]  ;;  %v10680_v46 = vor.u32 %v15511_v37, %v10677_v38  ;;  %v10541_v47 = vld [vmem:[#allocation9 + $0xe8] sm:$0xf0]  ;;  %v10480_v52 = vor.u32 %v15461_v43, %v10477_v44  ;;  %v15459_v53 = vld [vmem:[#allocation9 + $0x54] sm:$0xf] }
  0x42   :  { %619 = vmatpush.bf16.msra.mxu3 %v10636_v10  ;;  %v15493_v48 = vld [vmem:[#allocation9 + $0x164] sm:$0xf]  ;;  %v10605_v49 = vld [vmem:[#allocation9 + $0x168] sm:$0xf0]  ;;  %v10544_v54 = vor.u32 %v15477_v45, %v10541_v47  ;;  %v10469_v56 = vld [vmem:[#allocation9 + $0x58] sm:$0xf0] }
  0x43   :  { %581 = vmatpush.bf16.msra.mxu0 %v10436_v16  ;;  %v15509_v50 = vld [vmem:[#allocation9 + $0x1e4] sm:$0xf]  ;;  %v10669_v51 = vld [vmem:[#allocation9 + $0x1e8] sm:$0xf0]  ;;  %v10608_v55 = vor.u32 %v15493_v48, %v10605_v49  ;;  %v15475_v57 = vld [vmem:[#allocation9 + $0xd4] sm:$0xf]  ;;  %v10472_v0 = vor.u32 %v15459_v53, %v10469_v56 }
  0x44   :  { %594 = vmatpush.bf16.msra.mxu1 %v10500_v19  ;;  %v10533_v58 = vld [vmem:[#allocation9 + $0xd8] sm:$0xf0]  ;;  %v10672_v59 = vor.u32 %v15509_v50, %v10669_v51  ;;  %v15491_v60 = vld [vmem:[#allocation9 + $0x154] sm:$0xf]  ;;  %v179_v2 = vld [vmem:[#allocation4 + $0x10] sm:$0xff]  ;;  %vm2681_vm0 = vcmask 1040384  }
  0x45   :  { %607 = vmatpush.bf16.msra.mxu2 %v10564_v20  ;;  %v10597_v61 = vld [vmem:[#allocation9 + $0x158] sm:$0xf0]  ;;  %v15507_v62 = vld [vmem:[#allocation9 + $0x1d4] sm:$0xf]  ;;  %v10536_v1 = vor.u32 %v15475_v57, %v10533_v58  ;;  %v180_v3 = vld [vmem:[#allocation4 + $0x18] sm:$0xff]  ;;  %v17180_v8 = vpack.c.bf16 %v179_v2, %v179_v2  ;;  %vm2683_vm1 = vcmask 1042434  }
  0x46   :  { %620 = vmatpush.bf16.msra.mxu3 %v10628_v24  ;;  %v10661_v63 = vld [vmem:[#allocation9 + $0x1d8] sm:$0xf0]  ;;  %v10600_v4 = vor.u32 %v15491_v60, %v10597_v61  ;;  %v15457_v5 = vld [vmem:[#allocation9 + $0x44] sm:$0xf]  ;;  %v10461_v6 = vld [vmem:[#allocation9 + $0x48] sm:$0xf0]  ;;  %v17182_v9 = vpack.c.bf16 %v180_v3, %v180_v3 }
  0x47   :  { %582 = vmatpush.bf16.msra.mxu0 %v10428_v31  ;;  %v15473_v7 = vld [vmem:[#allocation9 + $0xc4] sm:$0xf]  ;;  %v10664_v10 = vor.u32 %v15507_v62, %v10661_v63  ;;  %v10525_v11 = vld [vmem:[#allocation9 + $0xc8] sm:$0xf0]  ;;  %v177_v16 = vld [vmem:[#allocation4] sm:$0xff]  ;;  %v10464_v17 = vor.u32 %v15457_v5, %v10461_v6  ;;  %vm2685_vm2 = vcmask 1041408  }
  0x48   :  { %595 = vmatpush.bf16.msra.mxu1 %v10492_v35  ;;  %v15489_v12 = vld [vmem:[#allocation9 + $0x144] sm:$0xf]  ;;  %v10589_v13 = vld [vmem:[#allocation9 + $0x148] sm:$0xf0]  ;;  %v17186_v18 = vpack.c.bf16 %v177_v16, %v177_v16  ;;  %v178_v19 = vld [vmem:[#allocation4 + $0x8] sm:$0xff]  ;;  %v10528_v20 = vor.u32 %v15473_v7, %v10525_v11  ;;  %vm2687_vm3 = vcmask 1044484  }
  0x49   :  { %608 = vmatpush.bf16.msra.mxu2 %v10556_v36  ;;  %v15505_v14 = vld [vmem:[#allocation9 + $0x1c4] sm:$0xf]  ;;  %v10653_v15 = vld [vmem:[#allocation9 + $0x1c8] sm:$0xf0]  ;;  %v10592_v21 = vor.u32 %v15489_v12, %v10589_v13  ;;  %v15455_v22 = vld [vmem:[#allocation9 + $0x34] sm:$0xf]  ;;  %v17188_v25 = vpack.c.bf16 %v178_v19, %v178_v19 }
  0x4a   :  { %621 = vmatpush.bf16.msra.mxu3 %v10620_v39  ;;  %v10453_v23 = vld [vmem:[#allocation9 + $0x38] sm:$0xf0]  ;;  %v15471_v24 = vld [vmem:[#allocation9 + $0xb4] sm:$0xf]  ;;  %v10656_v26 = vor.u32 %v15505_v14, %v10653_v15  ;;  %583 = vmatmul.bf16.vlgmr.msra.gmra.mxu0 %v17186_v18  ;;  %v15453_v35 = vld [vmem:[#allocation9 + $0x24] sm:$0xf] }
  0x4b   :  { %627 = vmatpush.bf16.msrb.mxu0 %v10488_v40  ;;  %v10517_v27 = vld [vmem:[#allocation9 + $0xb8] sm:$0xf0]  ;;  %v15487_v28 = vld [vmem:[#allocation9 + $0x134] sm:$0xf]  ;;  %596 = vmatmul.bf16.vlgmr.msra.gmra.mxu1 %v17188_v25  ;;  %v10456_v32 = vor.u32 %v15455_v22, %v10453_v23  ;;  %v10445_v36 = vld [vmem:[#allocation9 + $0x28] sm:$0xf0] }
  0x4c   :  { %640 = vmatpush.bf16.msrb.mxu1 %v10552_v41  ;;  %609 = vmatmul.bf16.vlgmr.msra.gmra.mxu2 %v17180_v8  ;;  %v10581_v29 = vld [vmem:[#allocation9 + $0x138] sm:$0xf0]  ;;  %v15503_v30 = vld [vmem:[#allocation9 + $0x1b4] sm:$0xf]  ;;  %v10520_v33 = vor.u32 %v15471_v24, %v10517_v27  ;;  %v15469_v37 = vld [vmem:[#allocation9 + $0xa4] sm:$0xf]  ;;  %v10448_v44 = vor.u32 %v15453_v35, %v10445_v36 }
  0x4d   :  { %653 = vmatpush.bf16.msrb.mxu2 %v10616_v42  ;;  %622 = vmatmul.bf16.vlgmr.msra.gmra.mxu3 %v17182_v9  ;;  %v10645_v31 = vld [vmem:[#allocation9 + $0x1b8] sm:$0xf0]  ;;  %v10584_v34 = vor.u32 %v15487_v28, %v10581_v29  ;;  %v10509_v39 = vld [vmem:[#allocation9 + $0xa8] sm:$0xf0]  ;;  %v15485_v40 = vld [vmem:[#allocation9 + $0x124] sm:$0xf] }
  0x4e   :  { %666 = vmatpush.bf16.msrb.mxu3 %v10680_v46  ;;  %v10648_v38 = vor.u32 %v15503_v30, %v10645_v31  ;;  %v10573_v41 = vld [vmem:[#allocation9 + $0x128] sm:$0xf0]  ;;  %v15501_v42 = vld [vmem:[#allocation9 + $0x1a4] sm:$0xf]  ;;  %v10512_v45 = vor.u32 %v15469_v37, %v10509_v39  ;;  %v15451_v47 = vld [vmem:[#allocation9 + $0x14] sm:$0xf] }
  0x4f   :  { %628 = vmatpush.bf16.msrb.mxu0 %v10480_v52  ;;  %v10637_v43 = vld [vmem:[#allocation9 + $0x1a8] sm:$0xf0]  ;;  %v10576_v46 = vor.u32 %v15485_v40, %v10573_v41  ;;  %v10437_v48 = vld [vmem:[#allocation9 + $0x18] sm:$0xf0]  ;;  %v15467_v49 = vld [vmem:[#allocation9 + $0x94] sm:$0xf] }
  0x50   :  { %641 = vmatpush.bf16.msrb.mxu1 %v10544_v54  ;;  %v10640_v50 = vor.u32 %v15501_v42, %v10637_v43  ;;  %v10501_v51 = vld [vmem:[#allocation9 + $0x98] sm:$0xf0]  ;;  %v15483_v52 = vld [vmem:[#allocation9 + $0x114] sm:$0xf]  ;;  %v10440_v56 = vor.u32 %v15451_v47, %v10437_v48  ;;  %v15449_v57 = vld [vmem:[#allocation9 + $0x4] sm:$0xf] }
  0x51   :  { %654 = vmatpush.bf16.msrb.mxu2 %v10608_v55  ;;  %v10565_v53 = vld [vmem:[#allocation9 + $0x118] sm:$0xf0]  ;;  %v15499_v54 = vld [vmem:[#allocation9 + $0x194] sm:$0xf]  ;;  %v10429_v58 = vld [vmem:[#allocation9 + $0x8] sm:$0xf0] }
  0x52   :  { %667 = vmatpush.bf16.msrb.mxu3 %v10672_v59  ;;  %v10629_v55 = vld [vmem:[#allocation9 + $0x198] sm:$0xf0]  ;;  %v10504_v59 = vor.u32 %v15467_v49, %v10501_v51  ;;  %v10568_v60 = vor.u32 %v15483_v52, %v10565_v53  ;;  %v15465_v61 = vld [vmem:[#allocation9 + $0x84] sm:$0xf]  ;;  %v10493_v62 = vld [vmem:[#allocation9 + $0x88] sm:$0xf0]  ;;  %v10432_v7 = vor.u32 %v15449_v57, %v10429_v58 }
  0x53   :  { %629 = vmatpush.bf16.msrb.mxu0 %v10472_v0  ;;  %v15481_v63 = vld [vmem:[#allocation9 + $0x104] sm:$0xf]  ;;  %v10632_v0 = vor.u32 %v15499_v54, %v10629_v55  ;;  %v10621_v3 = vld [vmem:[#allocation9 + $0x188] sm:$0xf0]  ;;  %v15573_v5 = vld [vmem:[#allocation10 + $0x1dc] sm:$0xf0]  ;;  %v10496_v13 = vor.u32 %v15465_v61, %v10493_v62 }
  0x54   :  { %642 = vmatpush.bf16.msrb.mxu1 %v10536_v1  ;;  %v10557_v1 = vld [vmem:[#allocation9 + $0x108] sm:$0xf0]  ;;  %v15497_v2 = vld [vmem:[#allocation9 + $0x184] sm:$0xf]  ;;  %v11163_v6 = vld [vmem:[#allocation10 + $0x3c0] sm:$0xf] }
  0x55   :  { %655 = vmatpush.bf16.msrb.mxu2 %v10600_v4  ;;  %v10907_v4 = vld [vmem:[#allocation10 + $0x1c0] sm:$0xf]  ;;  %v15569_v11 = vld [vmem:[#allocation10 + $0x1c4] sm:$0xf]  ;;  %v10560_v14 = vor.u32 %v15481_v63, %v10557_v1  ;;  %vm2689_vm4 = vcmask 1046534   ;;  %vm2691_vm5 = vcmask 1045508  }
  0x56   :  { %668 = vmatpush.bf16.msrb.mxu3 %v10664_v10  ;;  %v15637_v10 = vld [vmem:[#allocation10 + $0x3dc] sm:$0xf0]  ;;  %v10909_v12 = vld [vmem:[#allocation10 + $0x1e0] sm:$0xf0]  ;;  %v10908_v19 = vor.u32 %v15573_v5, %v10907_v4  ;;  %vm2693_vm6 = vcmask 1043456   ;;  %s17072_s6 = smov [#allocation19]  }
  0x57   :  { %630 = vmatpush.bf16.msrb.mxu0 %v10464_v17  ;;  %v15633_v15 = vld [vmem:[#allocation10 + $0x3c4] sm:$0xf]  ;;  %v10624_v17 = vor.u32 %v15497_v2, %v10621_v3  ;;  %v10875_v22 = vld [vmem:[#allocation10 + $0x180] sm:$0xf]  ;;  %s10409_s8 = sshll.u32 %s17072_s6, 4  ;;  %s10411_s15 = sshll.u32 %s17772_s12, 4  ;;  %s10410_s8 = int_to_ptr.vmem [resolvable:$true] %s10409_s8  ;;  %s10412_s15 = int_to_ptr.hbm [resolvable:$true] %s10411_s15 }
  0x58   :  { %643 = vmatpush.bf16.msrb.mxu1 %v10528_v20  ;;  %v11165_v16 = vld [vmem:[#allocation10 + $0x3e0] sm:$0xf0]  ;;  %v11164_v20 = vor.u32 %v15637_v10, %v11163_v6  ;;  %v15565_v23 = vld [vmem:[#allocation10 + $0x19c] sm:$0xf0] }
  0x59   :  { %656 = vmatpush.bf16.msrb.mxu2 %v10592_v21  ;;  %v10912_v21 = vor.u32 %v15569_v11, %v10909_v12  ;;  %v11131_v24 = vld [vmem:[#allocation10 + $0x380] sm:$0xf]  ;;  %v15561_v28 = vld [vmem:[#allocation10 + $0x184] sm:$0xf] }
  0x5a   :  { %669 = vmatpush.bf16.msrb.mxu3 %v10656_v26  ;;  %v11168_v26 = vor.u32 %v15633_v15, %v11165_v16  ;;  %v15629_v27 = vld [vmem:[#allocation10 + $0x39c] sm:$0xf0]  ;;  %v10877_v29 = vld [vmem:[#allocation10 + $0x1a0] sm:$0xf0] }
  0x5b   :  { %631 = vmatpush.bf16.msrb.mxu0 %v10456_v32  ;;  %v15625_v30 = vld [vmem:[#allocation10 + $0x384] sm:$0xf]  ;;  %v10876_v32 = vor.u32 %v15565_v23, %v10875_v22  ;;  %v10843_v35 = vld [vmem:[#allocation10 + $0x140] sm:$0xf] }
  0x5c   :  { %644 = vmatpush.bf16.msrb.mxu1 %v10520_v33  ;;  %v11133_v31 = vld [vmem:[#allocation10 + $0x3a0] sm:$0xf0]  ;;  %v11132_v33 = vor.u32 %v15629_v27, %v11131_v24  ;;  %v15557_v36 = vld [vmem:[#allocation10 + $0x15c] sm:$0xf0] }
  0x5d   :  { %657 = vmatpush.bf16.msrb.mxu2 %v10584_v34  ;;  %v10880_v34 = vor.u32 %v15561_v28, %v10877_v29  ;;  %v11099_v37 = vld [vmem:[#allocation10 + $0x340] sm:$0xf]  ;;  %v15553_v40 = vld [vmem:[#allocation10 + $0x144] sm:$0xf] }
  0x5e   :  { %670 = vmatpush.bf16.msrb.mxu3 %v10648_v38  ;;  %v11136_v38 = vor.u32 %v15625_v30, %v11133_v31  ;;  %v15621_v39 = vld [vmem:[#allocation10 + $0x35c] sm:$0xf0]  ;;  %v10845_v41 = vld [vmem:[#allocation10 + $0x160] sm:$0xf0] }
  0x5f   :  { %632 = vmatpush.bf16.msrb.mxu0 %v10448_v44  ;;  %v15617_v42 = vld [vmem:[#allocation10 + $0x344] sm:$0xf]  ;;  %v10844_v44 = vor.u32 %v15557_v36, %v10843_v35  ;;  %v10811_v47 = vld [vmem:[#allocation10 + $0x100] sm:$0xf] }
  0x60   :  { %645 = vmatpush.bf16.msrb.mxu1 %v10512_v45  ;;  %v11101_v43 = vld [vmem:[#allocation10 + $0x360] sm:$0xf0]  ;;  %v11100_v45 = vor.u32 %v15621_v39, %v11099_v37  ;;  %v15549_v48 = vld [vmem:[#allocation10 + $0x11c] sm:$0xf0] }
  0x61   :  { %658 = vmatpush.bf16.msrb.mxu2 %v10576_v46  ;;  %v10848_v46 = vor.u32 %v15553_v40, %v10845_v41  ;;  %v11067_v49 = vld [vmem:[#allocation10 + $0x300] sm:$0xf]  ;;  %v15545_v51 = vld [vmem:[#allocation10 + $0x104] sm:$0xf]  ;;  %v10915_v40 = vld [vmem:[#allocation10 + $0x1c8] sm:$0xf] }
  0x62   :  { %671 = vmatpush.bf16.msrb.mxu3 %v10640_v50  ;;  %v11104_v50 = vor.u32 %v15617_v42, %v11101_v43  ;;  %v10813_v52 = vld [vmem:[#allocation10 + $0x120] sm:$0xf0]  ;;  %v10779_v55 = vld [vmem:[#allocation10 + $0xc0] sm:$0xf]  ;;  %v15574_v41 = vld [vmem:[#allocation10 + $0x1e4] sm:$0xf0] }
  0x63   :  { %633 = vmatpush.bf16.msrb.mxu0 %v10440_v56  ;;  %v15609_v53 = vld [vmem:[#allocation10 + $0x304] sm:$0xf]  ;;  %v15541_v56 = vld [vmem:[#allocation10 + $0xdc] sm:$0xf0]  ;;  %v11171_v42 = vld [vmem:[#allocation10 + $0x3c8] sm:$0xf] }
  0x64   :  { %646 = vmatpush.bf16.msrb.mxu1 %v10504_v59  ;;  %v11035_v57 = vld [vmem:[#allocation10 + $0x2c0] sm:$0xf]  ;;  %v10781_v61 = vld [vmem:[#allocation10 + $0xe0] sm:$0xf0] }
  0x65   :  { %659 = vmatpush.bf16.msrb.mxu2 %v10568_v60  ;;  %v15605_v59 = vld [vmem:[#allocation10 + $0x2dc] sm:$0xf0]  ;;  %v15537_v60 = vld [vmem:[#allocation10 + $0xc4] sm:$0xf] }
  0x66   :  { %672 = vmatpush.bf16.msrb.mxu3 %v10632_v0  ;;  %v15601_v62 = vld [vmem:[#allocation10 + $0x2c4] sm:$0xf]  ;;  %v10780_v0 = vor.u32 %v15541_v56, %v10779_v55  ;;  %v11036_v1 = vor.u32 %v15605_v59, %v11035_v57  ;;  %v10784_v2 = vor.u32 %v15537_v60, %v10781_v61  ;;  %v10747_v3 = vld [vmem:[#allocation10 + $0x80] sm:$0xf]  ;;  %v11139_v55 = vld [vmem:[#allocation10 + $0x388] sm:$0xf] }
  0x67   :  { %634 = vmatpush.bf16.msrb.mxu0 %v10432_v7  ;;  %v11037_v63 = vld [vmem:[#allocation10 + $0x2e0] sm:$0xf0]  ;;  %v15533_v4 = vld [vmem:[#allocation10 + $0x9c] sm:$0xf0]  ;;  %v15630_v57 = vld [vmem:[#allocation10 + $0x3a4] sm:$0xf0] }
  0x68   :  { %647 = vmatpush.bf16.msrb.mxu1 %v10496_v13  ;;  %v11003_v5 = vld [vmem:[#allocation10 + $0x280] sm:$0xf]  ;;  %v11040_v6 = vor.u32 %v15601_v62, %v11037_v63  ;;  %v15529_v10 = vld [vmem:[#allocation10 + $0x84] sm:$0xf]  ;;  %v10885_v59 = vld [vmem:[#allocation10 + $0x1a8] sm:$0xf0] }
  0x69   :  { %660 = vmatpush.bf16.msrb.mxu2 %v10560_v14  ;;  %v15597_v7 = vld [vmem:[#allocation10 + $0x29c] sm:$0xf0]  ;;  %v10749_v11 = vld [vmem:[#allocation10 + $0xa0] sm:$0xf0]  ;;  %v10748_v14 = vor.u32 %v15533_v4, %v10747_v3  ;;  %v15626_v61 = vld [vmem:[#allocation10 + $0x38c] sm:$0xf] }
  0x6a   :  { %673 = vmatpush.bf16.msrb.mxu3 %v10624_v17  ;;  %635 = vmatmul.bf16.vlgmr.msrb.gmra.mxu0 %v17186_v18  ;;  %v10812_v18 = vor.u32 %v15549_v48, %v10811_v47  ;;  %v15593_v12 = vld [vmem:[#allocation10 + $0x284] sm:$0xf]  ;;  %v10715_v15 = vld [vmem:[#allocation10 + $0x40] sm:$0xf]  ;;  %v11004_v16 = vor.u32 %v15597_v7, %v11003_v5  ;;  %v10752_v17 = vor.u32 %v15529_v10, %v10749_v11  ;;  %v11141_v62 = vld [vmem:[#allocation10 + $0x3a8] sm:$0xf0] }
  0x6b   :  { %1471 = vmatpush.bf16.msra.mxu0 %v10908_v19  ;;  %648 = vmatmul.bf16.vlgmr.msrb.gmra.mxu1 %v17188_v25  ;;  %v10816_v25 = vor.u32 %v15545_v51, %v10813_v52  ;;  %v11005_v13 = vld [vmem:[#allocation10 + $0x2a0] sm:$0xf0]  ;;  %v15525_v19 = vld [vmem:[#allocation10 + $0x5c] sm:$0xf0]  ;;  %v10916_v52 = vor.u32 %v15574_v41, %v10915_v40  ;;  %v10851_v3 = vld [vmem:[#allocation10 + $0x148] sm:$0xf] }
  0x6c   :  { %1484 = vmatpush.bf16.msra.mxu1 %v11164_v20  ;;  %661 = vmatmul.bf16.vlgmr.msrb.gmra.mxu2 %v17180_v8  ;;  %v15613_v8 = vld [vmem:[#allocation10 + $0x31c] sm:$0xf0]  ;;  %v11008_v22 = vor.u32 %v15593_v12, %v11005_v13  ;;  %v15521_v23 = vld [vmem:[#allocation10 + $0x44] sm:$0xf]  ;;  %v10716_v28 = vor.u32 %v15525_v19, %v10715_v15  ;;  %v15558_v4 = vld [vmem:[#allocation10 + $0x164] sm:$0xf0] }
  0x6d   :  { %1497 = vmatpush.bf16.msra.mxu2 %v10912_v21  ;;  %674 = vmatmul.bf16.vlgmr.msrb.gmra.mxu3 %v17182_v9  ;;  %v11069_v9 = vld [vmem:[#allocation10 + $0x320] sm:$0xf0]  ;;  %v11068_v54 = vor.u32 %v15613_v8, %v11067_v49  ;;  %v10971_v20 = vld [vmem:[#allocation10 + $0x240] sm:$0xf]  ;;  %v15634_v49 = vld [vmem:[#allocation10 + $0x3cc] sm:$0xf] }
  0x6e   :  { %1510 = vmatpush.bf16.msra.mxu3 %v11168_v26  ;;  %v11072_v58 = vor.u32 %v15609_v53, %v11069_v9  ;;  %v15589_v21 = vld [vmem:[#allocation10 + $0x25c] sm:$0xf0]  ;;  %v10717_v24 = vld [vmem:[#allocation10 + $0x60] sm:$0xf0]  ;;  %v681_v8 = vld [vmem:[#allocation7] sm:$0xff] }
  0x6f   :  { %1472 = vmatpush.bf16.msra.mxu0 %v10876_v32  ;;  %v15585_v26 = vld [vmem:[#allocation10 + $0x244] sm:$0xf]  ;;  %v10683_v29 = vld [vmem:[#allocation10] sm:$0xf]  ;;  %v10972_v31 = vor.u32 %v15589_v21, %v10971_v20  ;;  %v10720_v32 = vor.u32 %v15521_v23, %v10717_v24  ;;  %v682_v53 = vld [vmem:[#allocation7 + $0x8] sm:$0xff]  ;;  %v17196_v60 = vpack.c.bf16 %v681_v8, %v681_v8 }
  0x70   :  { %1485 = vmatpush.bf16.msra.mxu1 %v11132_v33  ;;  %v10973_v27 = vld [vmem:[#allocation10 + $0x260] sm:$0xf0]  ;;  %v15517_v30 = vld [vmem:[#allocation10 + $0x1c] sm:$0xf0]  ;;  %v17198_v63 = vpack.c.bf16 %v682_v53, %v682_v53  ;;  %v11107_v5 = vld [vmem:[#allocation10 + $0x348] sm:$0xf] }
  0x71   :  { %1498 = vmatpush.bf16.msra.mxu2 %v10880_v34  ;;  %v10939_v33 = vld [vmem:[#allocation10 + $0x200] sm:$0xf]  ;;  %v15513_v35 = vld [vmem:[#allocation10 + $0x4] sm:$0xf]  ;;  %v10976_v36 = vor.u32 %v15585_v26, %v10973_v27  ;;  %v10684_v43 = vor.u32 %v15517_v30, %v10683_v29  ;;  %v15622_v7 = vld [vmem:[#allocation10 + $0x364] sm:$0xf0] }
  0x72   :  { %1511 = vmatpush.bf16.msra.mxu3 %v11136_v38  ;;  %v15581_v34 = vld [vmem:[#allocation10 + $0x21c] sm:$0xf0]  ;;  %v10685_v37 = vld [vmem:[#allocation10 + $0x20] sm:$0xf0]  ;;  %v15554_v10 = vld [vmem:[#allocation10 + $0x14c] sm:$0xf]  ;;  %v11108_v15 = vor.u32 %v15622_v7, %v11107_v5 }
  0x73   :  { %1473 = vmatpush.bf16.msra.mxu0 %v10844_v44  ;;  %v15577_v38 = vld [vmem:[#allocation10 + $0x204] sm:$0xf]  ;;  %v15638_v44 = vld [vmem:[#allocation10 + $0x3e4] sm:$0xf0]  ;;  %v10940_v47 = vor.u32 %v15581_v34, %v10939_v33  ;;  %v10688_v48 = vor.u32 %v15513_v35, %v10685_v37  ;;  %v10853_v11 = vld [vmem:[#allocation10 + $0x168] sm:$0xf0] }
  0x74   :  { %1486 = vmatpush.bf16.msra.mxu1 %v11100_v45  ;;  %v10941_v39 = vld [vmem:[#allocation10 + $0x220] sm:$0xf0]  ;;  %v15570_v45 = vld [vmem:[#allocation10 + $0x1cc] sm:$0xf]  ;;  %v11172_v9 = vor.u32 %v15638_v44, %v11171_v42  ;;  %v15550_v19 = vld [vmem:[#allocation10 + $0x124] sm:$0xf0] }
  0x75   :  { %1499 = vmatpush.bf16.msra.mxu2 %v10848_v46  ;;  %v10917_v46 = vld [vmem:[#allocation10 + $0x1e8] sm:$0xf0]  ;;  %v10944_v51 = vor.u32 %v15577_v38, %v10941_v39  ;;  %v11075_v20 = vld [vmem:[#allocation10 + $0x308] sm:$0xf] }
  0x76   :  { %1512 = vmatpush.bf16.msra.mxu3 %v11104_v50  ;;  %v11173_v50 = vld [vmem:[#allocation10 + $0x3e8] sm:$0xf0]  ;;  %v11043_v33 = vld [vmem:[#allocation10 + $0x2c8] sm:$0xf] }
  0x77   :  { %1474 = vmatpush.bf16.msra.mxu0 %v10812_v18  ;;  %v10920_v18 = vor.u32 %v15570_v45, %v10917_v46  ;;  %v11176_v56 = vor.u32 %v15634_v49, %v11173_v50  ;;  %v15618_v12 = vld [vmem:[#allocation10 + $0x34c] sm:$0xf]  ;;  %v15606_v35 = vld [vmem:[#allocation10 + $0x2e4] sm:$0xf0] }
  0x78   :  { %1487 = vmatpush.bf16.msra.mxu1 %v11068_v54  ;;  %v10883_v54 = vld [vmem:[#allocation10 + $0x188] sm:$0xf]  ;;  %v11109_v13 = vld [vmem:[#allocation10 + $0x368] sm:$0xf0]  ;;  %v11044_v41 = vor.u32 %v15606_v35, %v11043_v33  ;;  %v15631_v33 = vld [vmem:[#allocation10 + $0x3ac] sm:$0xf0] }
  0x79   :  { %1500 = vmatpush.bf16.msra.mxu2 %v10816_v25  ;;  %v15566_v25 = vld [vmem:[#allocation10 + $0x1a4] sm:$0xf0]  ;;  %v11112_v21 = vor.u32 %v15618_v12, %v11109_v13  ;;  %v15546_v23 = vld [vmem:[#allocation10 + $0x10c] sm:$0xf]  ;;  %v10923_v12 = vld [vmem:[#allocation10 + $0x1d0] sm:$0xf] }
  0x7a   :  { %1513 = vmatpush.bf16.msra.mxu3 %v11072_v58  ;;  %v15562_v58 = vld [vmem:[#allocation10 + $0x18c] sm:$0xf]  ;;  %v15534_v44 = vld [vmem:[#allocation10 + $0xa4] sm:$0xf0]  ;;  %v15575_v13 = vld [vmem:[#allocation10 + $0x1ec] sm:$0xf0] }
  0x7b   :  { %1475 = vmatpush.bf16.msra.mxu0 %v10780_v0  ;;  %v10884_v0 = vor.u32 %v15566_v25, %v10883_v54  ;;  %v10821_v24 = vld [vmem:[#allocation10 + $0x128] sm:$0xf0]  ;;  %v11011_v45 = vld [vmem:[#allocation10 + $0x288] sm:$0xf]  ;;  %v10893_v35 = vld [vmem:[#allocation10 + $0x1b0] sm:$0xf0] }
  0x7c   :  { %1488 = vmatpush.bf16.msra.mxu1 %v11036_v1  ;;  %v11140_v1 = vor.u32 %v15630_v57, %v11139_v55  ;;  %v15610_v26 = vld [vmem:[#allocation10 + $0x30c] sm:$0xf]  ;;  %v10824_v30 = vor.u32 %v15546_v23, %v10821_v24  ;;  %v10979_v54 = vld [vmem:[#allocation10 + $0x248] sm:$0xf]  ;;  %v11181_v23 = vld [vmem:[#allocation10 + $0x3f0] sm:$0xf0] }
  0x7d   :  { %1501 = vmatpush.bf16.msra.mxu2 %v10784_v2  ;;  %v10888_v2 = vor.u32 %v15562_v58, %v10885_v59  ;;  %v11077_v27 = vld [vmem:[#allocation10 + $0x328] sm:$0xf0]  ;;  %v15590_v55 = vld [vmem:[#allocation10 + $0x264] sm:$0xf0] }
  0x7e   :  { %1514 = vmatpush.bf16.msra.mxu3 %v11040_v6  ;;  %v11144_v6 = vor.u32 %v15626_v61, %v11141_v62  ;;  %v11080_v34 = vor.u32 %v15610_v26, %v11077_v27  ;;  %v10789_v37 = vld [vmem:[#allocation10 + $0xe8] sm:$0xf0]  ;;  %v10691_v62 = vld [vmem:[#allocation10 + $0x8] sm:$0xf]  ;;  %v10924_v26 = vor.u32 %v15575_v13, %v10923_v12  ;;  %v10763_v13 = vld [vmem:[#allocation10 + $0x90] sm:$0xf] }
  0x7f   :  { %1476 = vmatpush.bf16.msra.mxu0 %v10748_v14  ;;  %v10852_v14 = vor.u32 %v15558_v4, %v10851_v3  ;;  %v15602_v38 = vld [vmem:[#allocation10 + $0x2cc] sm:$0xf]  ;;  %v10947_v3 = vld [vmem:[#allocation10 + $0x208] sm:$0xf] }
  0x80   :  { %1489 = vmatpush.bf16.msra.mxu1 %v11004_v16  ;;  %v10856_v16 = vor.u32 %v15554_v10, %v10853_v11  ;;  %v11045_v39 = vld [vmem:[#allocation10 + $0x2e8] sm:$0xf0]  ;;  %v15582_v4 = vld [vmem:[#allocation10 + $0x224] sm:$0xf0] }
  0x81   :  { %1502 = vmatpush.bf16.msra.mxu2 %v10752_v17  ;;  %v10819_v17 = vld [vmem:[#allocation10 + $0x108] sm:$0xf]  ;;  %v11048_v46 = vor.u32 %v15602_v38, %v11045_v39  ;;  %v10757_v49 = vld [vmem:[#allocation10 + $0xa8] sm:$0xf0] }
  0x82   :  { %1515 = vmatpush.bf16.msra.mxu3 %v11008_v22  ;;  %v15614_v22 = vld [vmem:[#allocation10 + $0x324] sm:$0xf0]  ;;  %v15594_v50 = vld [vmem:[#allocation10 + $0x28c] sm:$0xf] }
  0x83   :  { %1477 = vmatpush.bf16.msra.mxu0 %v10716_v28  ;;  %v10820_v28 = vor.u32 %v15550_v19, %v10819_v17  ;;  %v11076_v29 = vor.u32 %v15614_v22, %v11075_v20  ;;  %v11013_v8 = vld [vmem:[#allocation10 + $0x2a8] sm:$0xf0]  ;;  %v15571_v17 = vld [vmem:[#allocation10 + $0x1d4] sm:$0xf]  ;;  %v10948_v20 = vor.u32 %v15582_v4, %v10947_v3  ;;  %v15607_v3 = vld [vmem:[#allocation10 + $0x2ec] sm:$0xf0] }
  0x84   :  { %1490 = vmatpush.bf16.msra.mxu1 %v10972_v31  ;;  %v10787_v31 = vld [vmem:[#allocation10 + $0xc8] sm:$0xf]  ;;  %v11016_v25 = vor.u32 %v15594_v50, %v11013_v8  ;;  %v10725_v57 = vld [vmem:[#allocation10 + $0x68] sm:$0xf0]  ;;  %v10925_v19 = vld [vmem:[#allocation10 + $0x1f0] sm:$0xf0] }
  0x85   :  { %1503 = vmatpush.bf16.msra.mxu2 %v10720_v32  ;;  %v15542_v32 = vld [vmem:[#allocation10 + $0xe4] sm:$0xf0]  ;;  %v15586_v58 = vld [vmem:[#allocation10 + $0x24c] sm:$0xf]  ;;  %v15635_v22 = vld [vmem:[#allocation10 + $0x3d4] sm:$0xf] }
  0x86   :  { %1516 = vmatpush.bf16.msra.mxu3 %v10976_v36  ;;  %v15538_v36 = vld [vmem:[#allocation10 + $0xcc] sm:$0xf]  ;;  %v10788_v40 = vor.u32 %v15542_v32, %v10787_v31  ;;  %v11147_v31 = vld [vmem:[#allocation10 + $0x390] sm:$0xf]  ;;  %v11184_v32 = vor.u32 %v15635_v22, %v11181_v23  ;;  %v15539_v4 = vld [vmem:[#allocation10 + $0xd4] sm:$0xf] }
  0x87   :  { %1478 = vmatpush.bf16.msra.mxu0 %v10684_v43  ;;  %v10792_v42 = vor.u32 %v15538_v36, %v10789_v37  ;;  %v10755_v43 = vld [vmem:[#allocation10 + $0x88] sm:$0xf]  ;;  %v10981_v59 = vld [vmem:[#allocation10 + $0x268] sm:$0xf0]  ;;  %v15627_v36 = vld [vmem:[#allocation10 + $0x394] sm:$0xf]  ;;  %v11148_v39 = vor.u32 %v15631_v33, %v11147_v31 }
  0x88   :  { %1491 = vmatpush.bf16.msra.mxu1 %v10940_v47  ;;  %v15598_v47 = vld [vmem:[#allocation10 + $0x2a4] sm:$0xf0]  ;;  %v15514_v5 = vld [vmem:[#allocation10 + $0xc] sm:$0xf]  ;;  %v11149_v37 = vld [vmem:[#allocation10 + $0x3b0] sm:$0xf0] }
  0x89   :  { %1504 = vmatpush.bf16.msra.mxu2 %v10688_v48  ;;  %v15530_v48 = vld [vmem:[#allocation10 + $0x8c] sm:$0xf]  ;;  %v11021_v22 = vld [vmem:[#allocation10 + $0x2b0] sm:$0xf0]  ;;  %v15591_v31 = vld [vmem:[#allocation10 + $0x26c] sm:$0xf0] }
  0x8a   :  { %1517 = vmatpush.bf16.msra.mxu3 %v10944_v51  ;;  %1479 = vmatmul.bf16.vlgmr.msra.gmra.mxu0 %v17196_v60  ;;  %v10756_v51 = vor.u32 %v15534_v44, %v10755_v43  ;;  %v10760_v53 = vor.u32 %v15530_v48, %v10757_v49  ;;  %v10693_v7 = vld [vmem:[#allocation10 + $0x28] sm:$0xf0]  ;;  %v11115_v43 = vld [vmem:[#allocation10 + $0x350] sm:$0xf]  ;;  %v11152_v44 = vor.u32 %v15627_v36, %v11149_v37  ;;  %v15619_v48 = vld [vmem:[#allocation10 + $0x354] sm:$0xf] }
  0x8b   :  { %1523 = vmatpush.bf16.msrb.mxu0 %v10916_v52  ;;  %1492 = vmatmul.bf16.vlgmr.msra.gmra.mxu1 %v17198_v63  ;;  %v11012_v52 = vor.u32 %v15598_v47, %v11011_v45  ;;  %v15578_v10 = vld [vmem:[#allocation10 + $0x20c] sm:$0xf]  ;;  %v15623_v45 = vld [vmem:[#allocation10 + $0x36c] sm:$0xf0]  ;;  %v10861_v47 = vld [vmem:[#allocation10 + $0x170] sm:$0xf0] }
  0x8c   :  { %1536 = vmatpush.bf16.msrb.mxu1 %v11172_v9  ;;  %1505 = vmatmul.bf16.vlgmr.msra.gmra.mxu2 %v17196_v60  ;;  %v10723_v9 = vld [vmem:[#allocation10 + $0x48] sm:$0xf]  ;;  %v10949_v11 = vld [vmem:[#allocation10 + $0x228] sm:$0xf0]  ;;  %v11117_v49 = vld [vmem:[#allocation10 + $0x370] sm:$0xf0]  ;;  %v11116_v8 = vor.u32 %v15623_v45, %v11115_v43 }
  0x8d   :  { %1549 = vmatpush.bf16.msrb.mxu2 %v10920_v18  ;;  %1518 = vmatmul.bf16.vlgmr.msra.gmra.mxu3 %v17198_v63  ;;  %v15526_v18 = vld [vmem:[#allocation10 + $0x64] sm:$0xf0]  ;;  %v10952_v24 = vor.u32 %v15578_v10, %v10949_v11  ;;  %v10733_v33 = vld [vmem:[#allocation10 + $0x70] sm:$0xf0]  ;;  %v10699_v37 = vld [vmem:[#allocation10 + $0x10] sm:$0xf] }
  0x8e   :  { %1562 = vmatpush.bf16.msrb.mxu3 %v11176_v56  ;;  %v15522_v56 = vld [vmem:[#allocation10 + $0x4c] sm:$0xf]  ;;  %v10724_v61 = vor.u32 %v15526_v18, %v10723_v9  ;;  %v11083_v9 = vld [vmem:[#allocation10 + $0x310] sm:$0xf]  ;;  %v11120_v18 = vor.u32 %v15619_v48, %v11117_v49  ;;  %v15515_v43 = vld [vmem:[#allocation10 + $0x14] sm:$0xf] }
  0x8f   :  { %1524 = vmatpush.bf16.msrb.mxu0 %v10884_v0  ;;  %v15518_v0 = vld [vmem:[#allocation10 + $0x24] sm:$0xf0]  ;;  %v10701_v45 = vld [vmem:[#allocation10 + $0x30] sm:$0xf0]  ;;  %v10931_v48 = vld [vmem:[#allocation10 + $0x1d8] sm:$0xf] }
  0x90   :  { %1537 = vmatpush.bf16.msrb.mxu1 %v11140_v1  ;;  %v10980_v1 = vor.u32 %v15590_v55, %v10979_v54  ;;  %v15615_v54 = vld [vmem:[#allocation10 + $0x32c] sm:$0xf0]  ;;  %v10829_v55 = vld [vmem:[#allocation10 + $0x130] sm:$0xf0]  ;;  %v15576_v49 = vld [vmem:[#allocation10 + $0x1f4] sm:$0xf0] }
  0x91   :  { %1550 = vmatpush.bf16.msrb.mxu2 %v10888_v2  ;;  %v10728_v2 = vor.u32 %v15522_v56, %v10725_v57  ;;  %v15611_v56 = vld [vmem:[#allocation10 + $0x314] sm:$0xf] }
  0x92   :  { %1563 = vmatpush.bf16.msrb.mxu3 %v11144_v6  ;;  %v10984_v6 = vor.u32 %v15586_v58, %v10981_v59  ;;  %v11085_v57 = vld [vmem:[#allocation10 + $0x330] sm:$0xf0]  ;;  %v11084_v59 = vor.u32 %v15615_v54, %v11083_v9  ;;  %v15636_v54 = vld [vmem:[#allocation10 + $0x3dc] sm:$0xf] }
  0x93   :  { %1525 = vmatpush.bf16.msrb.mxu0 %v10852_v14  ;;  %v11179_v14 = vld [vmem:[#allocation10 + $0x3d0] sm:$0xf] }
  0x94   :  { %1538 = vmatpush.bf16.msrb.mxu1 %v11108_v15  ;;  %v10692_v15 = vor.u32 %v15518_v0, %v10691_v62  ;;  %v10795_v62 = vld [vmem:[#allocation10 + $0xd0] sm:$0xf] }
  0x95   :  { %1551 = vmatpush.bf16.msrb.mxu2 %v10856_v16  ;;  %v15639_v16 = vld [vmem:[#allocation10 + $0x3ec] sm:$0xf0] }
  0x96   :  { %1564 = vmatpush.bf16.msrb.mxu3 %v11112_v21  ;;  %v10696_v21 = vor.u32 %v15514_v5, %v10693_v7  ;;  %v11180_v27 = vor.u32 %v15639_v16, %v11179_v14  ;;  %v15543_v0 = vld [vmem:[#allocation10 + $0xec] sm:$0xf0]  ;;  %v10797_v5 = vld [vmem:[#allocation10 + $0xf0] sm:$0xf0] }
  0x97   :  { %1526 = vmatpush.bf16.msrb.mxu0 %v10820_v28  ;;  %v10928_v28 = vor.u32 %v15571_v17, %v10925_v19  ;;  %v11053_v7 = vld [vmem:[#allocation10 + $0x2f0] sm:$0xf0]  ;;  %v10796_v10 = vor.u32 %v15543_v0, %v10795_v62  ;;  %v10800_v12 = vor.u32 %v15539_v4, %v10797_v5  ;;  %v15535_v14 = vld [vmem:[#allocation10 + $0xac] sm:$0xf0]  ;;  %v11155_v62 = vld [vmem:[#allocation10 + $0x398] sm:$0xf] }
  0x98   :  { %1539 = vmatpush.bf16.msrb.mxu1 %v11076_v29  ;;  %v10891_v29 = vld [vmem:[#allocation10 + $0x190] sm:$0xf]  ;;  %v15531_v19 = vld [vmem:[#allocation10 + $0x94] sm:$0xf]  ;;  %v10764_v23 = vor.u32 %v15535_v14, %v10763_v13  ;;  %v15628_v4 = vld [vmem:[#allocation10 + $0x39c] sm:$0xf] }
  0x99   :  { %1552 = vmatpush.bf16.msrb.mxu2 %v10824_v30  ;;  %v15567_v30 = vld [vmem:[#allocation10 + $0x1ac] sm:$0xf0]  ;;  %v11157_v5 = vld [vmem:[#allocation10 + $0x3b8] sm:$0xf0]  ;;  %v11123_v13 = vld [vmem:[#allocation10 + $0x358] sm:$0xf] }
  0x9a   :  { %1565 = vmatpush.bf16.msrb.mxu3 %v11080_v34  ;;  %v15563_v34 = vld [vmem:[#allocation10 + $0x194] sm:$0xf]  ;;  %v10892_v38 = vor.u32 %v15567_v30, %v10891_v29  ;;  %v15599_v17 = vld [vmem:[#allocation10 + $0x2ac] sm:$0xf0]  ;;  %v11160_v14 = vor.u32 %v15628_v4, %v11157_v5  ;;  %v15592_v4 = vld [vmem:[#allocation10 + $0x274] sm:$0xf0] }
  0x9b   :  { %1527 = vmatpush.bf16.msrb.mxu0 %v10788_v40  ;;  %v10896_v40 = vor.u32 %v15563_v34, %v10893_v35  ;;  %v10987_v29 = vld [vmem:[#allocation10 + $0x250] sm:$0xf]  ;;  %v15587_v34 = vld [vmem:[#allocation10 + $0x254] sm:$0xf]  ;;  %v15524_v5 = vld [vmem:[#allocation10 + $0x5c] sm:$0xf] }
  0x9c   :  { %1540 = vmatpush.bf16.msrb.mxu1 %v11044_v41  ;;  %v10859_v41 = vld [vmem:[#allocation10 + $0x150] sm:$0xf]  ;;  %v10989_v35 = vld [vmem:[#allocation10 + $0x270] sm:$0xf0] }
  0x9d   :  { %1553 = vmatpush.bf16.msrb.mxu2 %v10792_v42  ;;  %v15559_v42 = vld [vmem:[#allocation10 + $0x16c] sm:$0xf0] }
  0x9e   :  { %1566 = vmatpush.bf16.msrb.mxu3 %v11048_v46  ;;  %v15555_v46 = vld [vmem:[#allocation10 + $0x154] sm:$0xf]  ;;  %v10860_v50 = vor.u32 %v15559_v42, %v10859_v41  ;;  %v10955_v41 = vld [vmem:[#allocation10 + $0x210] sm:$0xf] }
  0x9f   :  { %1528 = vmatpush.bf16.msrb.mxu0 %v10756_v51  ;;  %v10864_v51 = vor.u32 %v15555_v46, %v10861_v47  ;;  %v15583_v42 = vld [vmem:[#allocation10 + $0x22c] sm:$0xf0]  ;;  %v15579_v46 = vld [vmem:[#allocation10 + $0x214] sm:$0xf] }
  0xa0   :  { %1541 = vmatpush.bf16.msrb.mxu1 %v11012_v52  ;;  %v10827_v52 = vld [vmem:[#allocation10 + $0x110] sm:$0xf]  ;;  %v10957_v47 = vld [vmem:[#allocation10 + $0x230] sm:$0xf0]  ;;  %v10956_v9 = vor.u32 %v15583_v42, %v10955_v41  ;;  %v15608_v42 = vld [vmem:[#allocation10 + $0x2f4] sm:$0xf0] }
  0xa1   :  { %1554 = vmatpush.bf16.msrb.mxu2 %v10760_v53  ;;  %v15551_v53 = vld [vmem:[#allocation10 + $0x12c] sm:$0xf0] }
  0xa2   :  { %1567 = vmatpush.bf16.msrb.mxu3 %v11016_v25  ;;  %v15547_v25 = vld [vmem:[#allocation10 + $0x114] sm:$0xf]  ;;  %v10828_v58 = vor.u32 %v15551_v53, %v10827_v52  ;;  %v15572_v52 = vld [vmem:[#allocation10 + $0x1dc] sm:$0xf] }
  0xa3   :  { %1529 = vmatpush.bf16.msrb.mxu0 %v10724_v61  ;;  %v10832_v61 = vor.u32 %v15547_v25, %v10829_v55  ;;  %v10933_v53 = vld [vmem:[#allocation10 + $0x1f8] sm:$0xf0]  ;;  %v10960_v55 = vor.u32 %v15579_v46, %v10957_v47 }
  0xa4   :  { %1542 = vmatpush.bf16.msrb.mxu1 %v10980_v1  ;;  %v11051_v1 = vld [vmem:[#allocation10 + $0x2d0] sm:$0xf]  ;;  %v11189_v25 = vld [vmem:[#allocation10 + $0x3f8] sm:$0xf0] }
  0xa5   :  { %1555 = vmatpush.bf16.msrb.mxu2 %v10728_v2  ;;  %v11088_v2 = vor.u32 %v15611_v56, %v11085_v57  ;;  %v11052_v11 = vor.u32 %v15607_v3, %v11051_v1  ;;  %v10932_v56 = vor.u32 %v15576_v49, %v10931_v48  ;;  %v11192_v0 = vor.u32 %v15636_v54, %v11189_v25  ;;  %v15632_v1 = vld [vmem:[#allocation10 + $0x3b4] sm:$0xf0]  ;;  %v10901_v3 = vld [vmem:[#allocation10 + $0x1b8] sm:$0xf0] }
  0xa6   :  { %1568 = vmatpush.bf16.msrb.mxu3 %v10984_v6  ;;  %v15603_v6 = vld [vmem:[#allocation10 + $0x2d4] sm:$0xf]  ;;  %v11061_v46 = vld [vmem:[#allocation10 + $0x2f8] sm:$0xf0] }
  0xa7   :  { %1530 = vmatpush.bf16.msrb.mxu0 %v10692_v15  ;;  %v11019_v15 = vld [vmem:[#allocation10 + $0x290] sm:$0xf]  ;;  %v11056_v16 = vor.u32 %v15603_v6, %v11053_v7  ;;  %v11156_v7 = vor.u32 %v15632_v1, %v11155_v62  ;;  %v10773_v54 = vld [vmem:[#allocation10 + $0xb8] sm:$0xf0]  ;;  %v15528_v1 = vld [vmem:[#allocation10 + $0x74] sm:$0xf0] }
  0xa8   :  { %1543 = vmatpush.bf16.msrb.mxu1 %v10948_v20  ;;  %v10765_v20 = vld [vmem:[#allocation10 + $0xb0] sm:$0xf0]  ;;  %v15596_v25 = vld [vmem:[#allocation10 + $0x29c] sm:$0xf] }
  0xa9   :  { %1556 = vmatpush.bf16.msrb.mxu2 %v10696_v21  ;;  %v15595_v21 = vld [vmem:[#allocation10 + $0x294] sm:$0xf] }
  0xaa   :  { %1569 = vmatpush.bf16.msrb.mxu3 %v10952_v24  ;;  %1531 = vmatmul.bf16.vlgmr.msrb.gmra.mxu0 %v17196_v60  ;;  %v11020_v24 = vor.u32 %v15599_v17, %v11019_v15  ;;  %v11024_v30 = vor.u32 %v15595_v21, %v11021_v22  ;;  %v15624_v15 = vld [vmem:[#allocation10 + $0x374] sm:$0xf0]  ;;  %v10869_v17 = vld [vmem:[#allocation10 + $0x178] sm:$0xf0] }
  0xab   :  { %1575 = vmatpush.bf16.msra.mxu0 %v10924_v26  ;;  %1544 = vmatmul.bf16.vlgmr.msrb.gmra.mxu1 %v17198_v63  ;;  %v10768_v26 = vor.u32 %v15531_v19, %v10765_v20  ;;  %v15620_v19 = vld [vmem:[#allocation10 + $0x35c] sm:$0xf]  ;;  %v11124_v22 = vor.u32 %v15624_v15, %v11123_v13  ;;  %v10707_v15 = vld [vmem:[#allocation10 + $0x18] sm:$0xf] }
  0xac   :  { %1588 = vmatpush.bf16.msra.mxu1 %v11180_v27  ;;  %1557 = vmatmul.bf16.vlgmr.msrb.gmra.mxu2 %v17196_v60  ;;  %v10731_v27 = vld [vmem:[#allocation10 + $0x50] sm:$0xf]  ;;  %v11125_v20 = vld [vmem:[#allocation10 + $0x378] sm:$0xf0] }
  0xad   :  { %1601 = vmatpush.bf16.msra.mxu2 %v10928_v28  ;;  %1570 = vmatmul.bf16.vlgmr.msrb.gmra.mxu3 %v17198_v63  ;;  %v15527_v28 = vld [vmem:[#allocation10 + $0x6c] sm:$0xf0]  ;;  %v10997_v13 = vld [vmem:[#allocation10 + $0x278] sm:$0xf0] }
  0xae   :  { %1614 = vmatpush.bf16.msra.mxu3 %v11184_v32  ;;  %v15523_v32 = vld [vmem:[#allocation10 + $0x54] sm:$0xf]  ;;  %v10732_v36 = vor.u32 %v15527_v28, %v10731_v27  ;;  %v11091_v27 = vld [vmem:[#allocation10 + $0x318] sm:$0xf]  ;;  %v11128_v28 = vor.u32 %v15620_v19, %v11125_v20 }
  0xaf   :  { %1576 = vmatpush.bf16.msra.mxu0 %v10892_v38  ;;  %v15519_v38 = vld [vmem:[#allocation10 + $0x2c] sm:$0xf0] }
  0xb0   :  { %1589 = vmatpush.bf16.msra.mxu1 %v11148_v39  ;;  %v10988_v39 = vor.u32 %v15591_v31, %v10987_v29  ;;  %v15616_v29 = vld [vmem:[#allocation10 + $0x334] sm:$0xf0]  ;;  %v10837_v31 = vld [vmem:[#allocation10 + $0x138] sm:$0xf0] }
  0xb1   :  { %1602 = vmatpush.bf16.msra.mxu2 %v10896_v40  ;;  %v10736_v40 = vor.u32 %v15523_v32, %v10733_v33  ;;  %v15612_v32 = vld [vmem:[#allocation10 + $0x31c] sm:$0xf] }
  0xb2   :  { %1615 = vmatpush.bf16.msra.mxu3 %v11152_v44  ;;  %v10992_v44 = vor.u32 %v15587_v34, %v10989_v35  ;;  %v11093_v33 = vld [vmem:[#allocation10 + $0x338] sm:$0xf0]  ;;  %v10803_v35 = vld [vmem:[#allocation10 + $0xd8] sm:$0xf] }
  0xb3   :  { %1577 = vmatpush.bf16.msra.mxu0 %v10860_v50  ;;  %v11187_v50 = vld [vmem:[#allocation10 + $0x3d8] sm:$0xf]  ;;  %v11096_v41 = vor.u32 %v15612_v32, %v11093_v33  ;;  %v11675_v32 = vld [vmem:[#allocation12 + $0x3c0] sm:$0xf] }
  0xb4   :  { %1590 = vmatpush.bf16.msra.mxu1 %v11116_v8  ;;  %v10700_v8 = vor.u32 %v15519_v38, %v10699_v37  ;;  %v15544_v38 = vld [vmem:[#allocation10 + $0xf4] sm:$0xf0] }
  0xb5   :  { %1603 = vmatpush.bf16.msra.mxu2 %v10864_v51  ;;  %v15640_v51 = vld [vmem:[#allocation10 + $0x3f4] sm:$0xf0]  ;;  %v10804_v47 = vor.u32 %v15544_v38, %v10803_v35  ;;  %v15765_v35 = vld [vmem:[#allocation12 + $0x3dc] sm:$0xf0] }
  0xb6   :  { %1616 = vmatpush.bf16.msra.mxu3 %v11120_v18  ;;  %v10704_v18 = vor.u32 %v15515_v43, %v10701_v45  ;;  %v11188_v57 = vor.u32 %v15640_v51, %v11187_v50  ;;  %v15540_v43 = vld [vmem:[#allocation10 + $0xdc] sm:$0xf]  ;;  %v15536_v51 = vld [vmem:[#allocation10 + $0xb4] sm:$0xf0] }
  0xb7   :  { %1578 = vmatpush.bf16.msra.mxu0 %v10828_v58  ;;  %v10936_v58 = vor.u32 %v15572_v52, %v10933_v53  ;;  %v15604_v45 = vld [vmem:[#allocation10 + $0x2dc] sm:$0xf]  ;;  %v11027_v52 = vld [vmem:[#allocation10 + $0x298] sm:$0xf] }
  0xb8   :  { %1591 = vmatpush.bf16.msra.mxu1 %v11084_v59  ;;  %v10899_v59 = vld [vmem:[#allocation10 + $0x198] sm:$0xf]  ;;  %v11064_v53 = vor.u32 %v15604_v45, %v11061_v46 }
  0xb9   :  { %1604 = vmatpush.bf16.msra.mxu2 %v10832_v61  ;;  %v15568_v61 = vld [vmem:[#allocation10 + $0x1b4] sm:$0xf0] }
  0xba   :  { %1617 = vmatpush.bf16.msra.mxu3 %v11088_v2  ;;  %v15564_v2 = vld [vmem:[#allocation10 + $0x19c] sm:$0xf]  ;;  %v10900_v6 = vor.u32 %v15568_v61, %v10899_v59 }
  0xbb   :  { %1579 = vmatpush.bf16.msra.mxu0 %v10796_v10  ;;  %v10904_v10 = vor.u32 %v15564_v2, %v10901_v3  ;;  %v10995_v2 = vld [vmem:[#allocation10 + $0x258] sm:$0xf] }
  0xbc   :  { %1592 = vmatpush.bf16.msra.mxu1 %v11052_v11  ;;  %v10867_v11 = vld [vmem:[#allocation10 + $0x158] sm:$0xf]  ;;  %v10996_v19 = vor.u32 %v15592_v4, %v10995_v2  ;;  %v11357_v2 = vld [vmem:[#allocation12 + $0x160] sm:$0xf0] }
  0xbd   :  { %1605 = vmatpush.bf16.msra.mxu2 %v10800_v12  ;;  %v15560_v12 = vld [vmem:[#allocation10 + $0x174] sm:$0xf0]  ;;  %v11613_v4 = vld [vmem:[#allocation12 + $0x360] sm:$0xf0] }
  0xbe   :  { %1618 = vmatpush.bf16.msra.mxu3 %v11056_v16  ;;  %v15556_v16 = vld [vmem:[#allocation10 + $0x15c] sm:$0xf]  ;;  %v10868_v21 = vor.u32 %v15560_v12, %v10867_v11 }
  0xbf   :  { %1580 = vmatpush.bf16.msra.mxu0 %v10764_v23  ;;  %v10872_v23 = vor.u32 %v15556_v16, %v10869_v17  ;;  %v15588_v12 = vld [vmem:[#allocation10 + $0x25c] sm:$0xf]  ;;  %v15520_v16 = vld [vmem:[#allocation10 + $0x34] sm:$0xf0] }
  0xc0   :  { %1593 = vmatpush.bf16.msra.mxu1 %v11020_v24  ;;  %v10835_v24 = vld [vmem:[#allocation10 + $0x118] sm:$0xf] }
  0xc1   :  { %1606 = vmatpush.bf16.msra.mxu2 %v10768_v26  ;;  %v15552_v26 = vld [vmem:[#allocation10 + $0x134] sm:$0xf0] }
  0xc2   :  { %1619 = vmatpush.bf16.msra.mxu3 %v11024_v30  ;;  %v15548_v30 = vld [vmem:[#allocation10 + $0x11c] sm:$0xf]  ;;  %v10836_v34 = vor.u32 %v15552_v26, %v10835_v24  ;;  %v11000_v24 = vor.u32 %v15588_v12, %v10997_v13  ;;  %v11579_v12 = vld [vmem:[#allocation12 + $0x300] sm:$0xf] }
  0xc3   :  { %1581 = vmatpush.bf16.msra.mxu0 %v10732_v36  ;;  %v11092_v36 = vor.u32 %v15616_v29, %v11091_v27  ;;  %v10840_v37 = vor.u32 %v15548_v30, %v10837_v31  ;;  %v10709_v26 = vld [vmem:[#allocation10 + $0x38] sm:$0xf0]  ;;  %v11419_v30 = vld [vmem:[#allocation12 + $0x1c0] sm:$0xf] }
  0xc4   :  { %1594 = vmatpush.bf16.msra.mxu1 %v10988_v39  ;;  %v11059_v39 = vld [vmem:[#allocation10 + $0x2d8] sm:$0xf]  ;;  %v15580_v27 = vld [vmem:[#allocation10 + $0x21c] sm:$0xf]  ;;  %v15701_v31 = vld [vmem:[#allocation12 + $0x1dc] sm:$0xf0] }
  0xc5   :  { %1607 = vmatpush.bf16.msra.mxu2 %v10736_v40  ;;  %v17215_v40 = vld [vmem:[%s17763_s3] sm:$0x3]  ;;  %v11060_v49 = vor.u32 %v15608_v42, %v11059_v39  ;;  %v15761_v42 = vld [vmem:[#allocation12 + $0x3c4] sm:$0xf]  ;;  %v11420_v45 = vor.u32 %v15701_v31, %v11419_v30 }
  0xc6   :  { %1620 = vmatpush.bf16.msra.mxu3 %v10992_v44  ;;  %v10805_v44 = vld [vmem:[#allocation10 + $0xf8] sm:$0xf0]  ;;  %v251_v48 = vperm.slane %v17215_v40, 0  ;;  %v252_v13 = vperm.slane %v17215_v40, 1  ;;  %v15733_v30 = vld [vmem:[#allocation12 + $0x2dc] sm:$0xf0] }
  0xc7   :  { %1582 = vmatpush.bf16.msra.mxu0 %v10700_v8  ;;  %v10808_v50 = vor.u32 %v15540_v43, %v10805_v44  ;;  %v10771_v8 = vld [vmem:[#allocation10 + $0x98] sm:$0xf]  ;;  %v11677_v43 = vld [vmem:[#allocation12 + $0x3e0] sm:$0xf0] }
  0xc8   :  { %1595 = vmatpush.bf16.msra.mxu1 %v10956_v9  ;;  %v15600_v9 = vld [vmem:[#allocation10 + $0x2b4] sm:$0xf0]  ;;  %v597_v59 = vpop.f32.mrf.mxu1  ;;  %v15665_v31 = vld [vmem:[#allocation12 + $0xc4] sm:$0xf] }
  0xc9   :  { %1608 = vmatpush.bf16.msra.mxu2 %v10704_v18  ;;  %v15532_v18 = vld [vmem:[#allocation10 + $0x9c] sm:$0xf]  ;;  %v11028_v61 = vor.u32 %v15600_v9, %v11027_v52  ;;  %v11680_v52 = vor.u32 %v15761_v42, %v11677_v43  ;;  %v15689_v9 = vld [vmem:[#allocation12 + $0x184] sm:$0xf]  ;;  %v11515_v42 = vld [vmem:[#allocation12 + $0x280] sm:$0xf] }
  0xca   :  { %1621 = vmatpush.bf16.msra.mxu3 %v10960_v55  ;;  %1583 = vmatmul.bf16.vlgmr.msra.gmra.mxu0 %v17196_v60  ;;  %v11029_v55 = vld [vmem:[#allocation10 + $0x2b8] sm:$0xf0]  ;;  %v10776_v62 = vor.u32 %v15532_v18, %v10773_v54  ;;  %v11389_v18 = vld [vmem:[#allocation12 + $0x1a0] sm:$0xf0] }
  0xcb   :  { %1627 = vmatpush.bf16.msrb.mxu0 %v10932_v56  ;;  %1596 = vmatmul.bf16.vlgmr.msra.gmra.mxu1 %v17198_v63  ;;  %v584_v56 = vpop.f32.mrf.mxu0  ;;  %v11032_v3 = vor.u32 %v15596_v25, %v11029_v55  ;;  %v15753_v54 = vld [vmem:[#allocation12 + $0x384] sm:$0xf] }
  0xcc   :  { %1640 = vmatpush.bf16.msrb.mxu1 %v11188_v57  ;;  %1609 = vmatmul.bf16.vlgmr.msra.gmra.mxu2 %v17196_v60  ;;  %v10772_v57 = vor.u32 %v15536_v51, %v10771_v8  ;;  %v15693_v8 = vld [vmem:[#allocation12 + $0x19c] sm:$0xf0]  ;;  %v11645_v25 = vld [vmem:[#allocation12 + $0x3a0] sm:$0xf0] }
  0xcd   :  { %1653 = vmatpush.bf16.msrb.mxu2 %v10936_v58  ;;  %1622 = vmatmul.bf16.vlgmr.msra.gmra.mxu3 %v17198_v63  ;;  %v585_v58 = vadd.f32 %v584_v56, %v251_v48  ;;  %v11676_v48 = vor.u32 %v15765_v35, %v11675_v32  ;;  %v11643_v51 = vld [vmem:[#allocation12 + $0x380] sm:$0xf]  ;;  %v11293_v32 = vld [vmem:[#allocation12 + $0xe0] sm:$0xf0] }
  0xce   :  { %1666 = vmatpush.bf16.msrb.mxu3 %v11192_v0  ;;  %v10739_v0 = vld [vmem:[#allocation10 + $0x58] sm:$0xf] }
  0xcf   :  { %1628 = vmatpush.bf16.msrb.mxu0 %v10900_v6  ;;  %v10741_v6 = vld [vmem:[#allocation10 + $0x78] sm:$0xf0] }
  0xd0   :  { %1641 = vmatpush.bf16.msrb.mxu1 %v11156_v7  ;;  %v598_v7 = vadd.f32 %v597_v59, %v585_v58  ;;  %v623_v11 = vpop.f32.mrf.mxu3  ;;  %v10744_v20 = vor.u32 %v15524_v5, %v10741_v6  ;;  %v599_v38 = vpop.f32.mrf.mxu1  ;;  %v11355_v58 = vld [vmem:[#allocation12 + $0x140] sm:$0xf] }
  0xd1   :  { %1654 = vmatpush.bf16.msrb.mxu2 %v10904_v10  ;;  %v610_v10 = vpop.f32.mrf.mxu2  ;;  %v15685_v59 = vld [vmem:[#allocation12 + $0x15c] sm:$0xf0]  ;;  %v11296_v38 = vor.u32 %v15665_v31, %v11293_v32  ;;  %v11395_v32 = vld [vmem:[#allocation12 + $0x188] sm:$0xf] }
  0xd2   :  { %1667 = vmatpush.bf16.msrb.mxu3 %v11160_v14  ;;  %v10740_v14 = vor.u32 %v15528_v1, %v10739_v0  ;;  %v611_v17 = vadd.f32 %v610_v10, %v598_v7  ;;  %v15749_v0 = vld [vmem:[#allocation12 + $0x35c] sm:$0xf0]  ;;  %v15681_v1 = vld [vmem:[#allocation12 + $0x144] sm:$0xf]  ;;  %v11356_v5 = vor.u32 %v15685_v59, %v11355_v58 }
  0xd3   :  { %1629 = vmatpush.bf16.msrb.mxu0 %v10868_v21  ;;  %v10963_v21 = vld [vmem:[#allocation10 + $0x218] sm:$0xf]  ;;  %v586_v33 = vpop.f32.mrf.mxu0  ;;  %v11323_v6 = vld [vmem:[#allocation12 + $0x100] sm:$0xf]  ;;  %v11360_v10 = vor.u32 %v15681_v1, %v11357_v2  ;;  %v15649_v59 = vld [vmem:[#allocation12 + $0x44] sm:$0xf] }
  0xd4   :  { %1642 = vmatpush.bf16.msrb.mxu1 %v11124_v22  ;;  %v15584_v22 = vld [vmem:[#allocation10 + $0x234] sm:$0xf0]  ;;  %v17218_v29 = vadd.f32 %v623_v11, %v611_v17  ;;  %v15677_v11 = vld [vmem:[#allocation12 + $0x11c] sm:$0xf0]  ;;  %v15737_v17 = vld [vmem:[#allocation12 + $0x304] sm:$0xf] }
  0xd5   :  { %1655 = vmatpush.bf16.msrb.mxu2 %v10872_v23  ;;  %v15516_v23 = vld [vmem:[#allocation10 + $0x1c] sm:$0xf]  ;;  %v10964_v39 = vor.u32 %v15584_v22, %v10963_v21  ;;  %v15729_v33 = vld [vmem:[#allocation12 + $0x2c4] sm:$0xf]  ;;  %v15717_v58 = vld [vmem:[#allocation12 + $0x25c] sm:$0xf0] }
  0xd6   :  { %1668 = vmatpush.bf16.msrb.mxu3 %v11128_v28  ;;  %v10965_v28 = vld [vmem:[#allocation10 + $0x238] sm:$0xf0]  ;;  %v11195_v2 = vld [vmem:[#allocation12] sm:$0xf] }
  0xd7   :  { %1630 = vmatpush.bf16.msrb.mxu0 %v10836_v34  ;;  %v10708_v34 = vor.u32 %v15520_v16, %v10707_v15  ;;  %v10968_v44 = vor.u32 %v15580_v27, %v10965_v28  ;;  %v15741_v15 = vld [vmem:[#allocation12 + $0x31c] sm:$0xf0]  ;;  %v15673_v16 = vld [vmem:[#allocation12 + $0x104] sm:$0xf] }
  0xd8   :  { %1643 = vmatpush.bf16.msrb.mxu1 %v11092_v36  ;;  %v15697_v36 = vld [vmem:[#allocation12 + $0x1c4] sm:$0xf] }
  0xd9   :  { %1656 = vmatpush.bf16.msrb.mxu2 %v10840_v37  ;;  %v11421_v37 = vld [vmem:[#allocation12 + $0x1e0] sm:$0xf0]  ;;  %v612_v46 = vpop.f32.mrf.mxu2 }
  0xda   :  { %1669 = vmatpush.bf16.msrb.mxu3 %v11096_v41  ;;  %v10712_v41 = vor.u32 %v15516_v23, %v10709_v26  ;;  %v11291_v23 = vld [vmem:[#allocation12 + $0xc0] sm:$0xf]  ;;  %v15657_v46 = vld [vmem:[#allocation12 + $0x84] sm:$0xf] }
  0xdb   :  { %1631 = vmatpush.bf16.msrb.mxu0 %v10804_v47  ;;  %v625_v47 = vpop.f32.mrf.mxu3  ;;  %v11547_v26 = vld [vmem:[#allocation12 + $0x2c0] sm:$0xf] }
  0xdc   :  { %1644 = vmatpush.bf16.msrb.mxu1 %v11060_v49  ;;  %v11424_v49 = vor.u32 %v15697_v36, %v11421_v37  ;;  %v11548_v37 = vor.u32 %v15733_v30, %v11547_v26  ;;  %v11261_v47 = vld [vmem:[#allocation12 + $0xa0] sm:$0xf0]  ;;  %v15762_v26 = vld [vmem:[#allocation12 + $0x3cc] sm:$0xf] }
  0xdd   :  { %1657 = vmatpush.bf16.msrb.mxu2 %v10808_v50  ;;  %v11387_v50 = vld [vmem:[#allocation12 + $0x180] sm:$0xf] }
  0xde   :  { %1670 = vmatpush.bf16.msrb.mxu3 %v11064_v53  ;;  %v15757_v53 = vld [vmem:[#allocation12 + $0x39c] sm:$0xf0]  ;;  %v11388_v55 = vor.u32 %v15693_v8, %v11387_v50  ;;  %v15721_v50 = vld [vmem:[#allocation12 + $0x284] sm:$0xf] }
  0xdf   :  { %1632 = vmatpush.bf16.msrb.mxu0 %v10772_v57  ;;  %v11644_v56 = vor.u32 %v15757_v53, %v11643_v51  ;;  %v11392_v57 = vor.u32 %v15689_v9, %v11389_v18  ;;  %v11517_v8 = vld [vmem:[#allocation12 + $0x2a0] sm:$0xf0]  ;;  %v11264_v18 = vor.u32 %v15657_v46, %v11261_v47  ;;  %v15686_v46 = vld [vmem:[#allocation12 + $0x164] sm:$0xf0] }
  0xe0   :  { %1645 = vmatpush.bf16.msrb.mxu1 %v11028_v61  ;;  %v11611_v61 = vld [vmem:[#allocation12 + $0x340] sm:$0xf]  ;;  %v11619_v47 = vld [vmem:[#allocation12 + $0x348] sm:$0xf] }
  0xe1   :  { %1658 = vmatpush.bf16.msrb.mxu2 %v10776_v62  ;;  %v11648_v62 = vor.u32 %v15753_v54, %v11645_v25  ;;  %v11612_v7 = vor.u32 %v15749_v0, %v11611_v61  ;;  %v11227_v54 = vld [vmem:[#allocation12 + $0x40] sm:$0xf]  ;;  %v11229_v61 = vld [vmem:[#allocation12 + $0x60] sm:$0xf0] }
  0xe2   :  { %1671 = vmatpush.bf16.msrb.mxu3 %v11032_v3  ;;  %v15745_v3 = vld [vmem:[#allocation12 + $0x344] sm:$0xf]  ;;  %v15653_v25 = vld [vmem:[#allocation12 + $0x5c] sm:$0xf0] }
  0xe3   :  { %1633 = vmatpush.bf16.msrb.mxu0 %v10740_v14  ;;  %v11616_v14 = vor.u32 %v15745_v3, %v11613_v4  ;;  %v11485_v0 = vld [vmem:[#allocation12 + $0x260] sm:$0xf0]  ;;  %v11228_v1 = vor.u32 %v15653_v25, %v11227_v54  ;;  %v15645_v3 = vld [vmem:[#allocation12 + $0x1c] sm:$0xf0]  ;;  %v11331_v25 = vld [vmem:[#allocation12 + $0x108] sm:$0xf] }
  0xe4   :  { %1646 = vmatpush.bf16.msrb.mxu1 %v10996_v19  ;;  %v11581_v19 = vld [vmem:[#allocation12 + $0x320] sm:$0xf0] }
  0xe5   :  { %1659 = vmatpush.bf16.msrb.mxu2 %v10744_v20  ;;  %v11324_v20 = vor.u32 %v15677_v11, %v11323_v6  ;;  %v11584_v40 = vor.u32 %v15737_v17, %v11581_v19  ;;  %v11451_v6 = vld [vmem:[#allocation12 + $0x200] sm:$0xf]  ;;  %v15702_v17 = vld [vmem:[#allocation12 + $0x1e4] sm:$0xf0] }
  0xe6   :  { %1672 = vmatpush.bf16.msrb.mxu3 %v11000_v24  ;;  %v15669_v24 = vld [vmem:[#allocation12 + $0xdc] sm:$0xf0]  ;;  %v11683_v19 = vld [vmem:[#allocation12 + $0x3c8] sm:$0xf] }
  0xe7   :  { %1634 = vmatpush.bf16.msrb.mxu0 %v10708_v34  ;;  %v636_v21 = vpop.f32.mrf.mxu0  ;;  %v11549_v34 = vld [vmem:[#allocation12 + $0x2e0] sm:$0xf0]  ;;  %v11292_v36 = vor.u32 %v15669_v24, %v11291_v23 }
  0xe8   :  { %1647 = vmatpush.bf16.msrb.mxu1 %v10964_v39  ;;  %v637_v27 = vadd.f32 %v636_v21, %v252_v13  ;;  %v649_v28 = vpop.f32.mrf.mxu1  ;;  %v11259_v39 = vld [vmem:[#allocation12 + $0x80] sm:$0xf]  ;;  %v11197_v13 = vld [vmem:[#allocation12 + $0x20] sm:$0xf0]  ;;  %v15766_v21 = vld [vmem:[#allocation12 + $0x3e4] sm:$0xf0] }
  0xe9   :  { %1660 = vmatpush.bf16.msrb.mxu2 %v10712_v41  ;;  %v15661_v41 = vld [vmem:[#allocation12 + $0x9c] sm:$0xf0]  ;;  %v11684_v30 = vor.u32 %v15766_v21, %v11683_v19  ;;  %v11557_v21 = vld [vmem:[#allocation12 + $0x2e8] sm:$0xf0] }
  0xea   :  { %1673 = vmatpush.bf16.msrb.mxu3 %v10968_v44  ;;  %1635 = vmatmul.bf16.vlgmr.msrb.gmra.mxu0 %v17196_v60  ;;  %v650_v35 = vadd.f32 %v649_v28, %v637_v27  ;;  %v11552_v44 = vor.u32 %v15729_v33, %v11549_v34  ;;  %v11260_v51 = vor.u32 %v15661_v41, %v11259_v39  ;;  %v11685_v27 = vld [vmem:[#allocation12 + $0x3e8] sm:$0xf0]  ;;  %v15694_v33 = vld [vmem:[#allocation12 + $0x1a4] sm:$0xf0] }
  0xeb   :  { %2458 = vmatpush.bf16.msra.mxu0 %v11420_v45  ;;  %1648 = vmatmul.bf16.vlgmr.msrb.gmra.mxu1 %v17198_v63  ;;  %v15725_v45 = vld [vmem:[#allocation12 + $0x29c] sm:$0xf0]  ;;  %v11651_v34 = vld [vmem:[#allocation12 + $0x388] sm:$0xf]  ;;  %v15754_v39 = vld [vmem:[#allocation12 + $0x38c] sm:$0xf] }
  0xec   :  { %2471 = vmatpush.bf16.msra.mxu1 %v11676_v48  ;;  %1661 = vmatmul.bf16.vlgmr.msrb.gmra.mxu2 %v17196_v60  ;;  %v11325_v60 = vld [vmem:[#allocation12 + $0x120] sm:$0xf0]  ;;  %v11516_v9 = vor.u32 %v15725_v45, %v11515_v42  ;;  %v11653_v41 = vld [vmem:[#allocation12 + $0x3a8] sm:$0xf0]  ;;  %v11396_v42 = vor.u32 %v15694_v33, %v11395_v32 }
  0xed   :  { %2484 = vmatpush.bf16.msra.mxu2 %v11424_v49  ;;  %1674 = vmatmul.bf16.vlgmr.msrb.gmra.mxu3 %v17198_v63  ;;  %v11580_v63 = vor.u32 %v15741_v15, %v11579_v12  ;;  %v11328_v22 = vor.u32 %v15673_v16, %v11325_v60  ;;  %v11453_v15 = vld [vmem:[#allocation12 + $0x220] sm:$0xf0]  ;;  %v11427_v60 = vld [vmem:[#allocation12 + $0x1c8] sm:$0xf]  ;;  %v15658_v32 = vld [vmem:[#allocation12 + $0x8c] sm:$0xf] }
  0xee   :  { %2497 = vmatpush.bf16.msra.mxu3 %v11680_v52  ;;  %v11269_v33 = vld [vmem:[#allocation12 + $0xa8] sm:$0xf0] }
  0xef   :  { %2459 = vmatpush.bf16.msra.mxu0 %v11388_v55  ;;  %v662_v43 = vpop.f32.mrf.mxu2  ;;  %v638_v53 = vpop.f32.mrf.mxu0  ;;  %v11483_v55 = vld [vmem:[#allocation12 + $0x240] sm:$0xf] }
  0xf0   :  { %2472 = vmatpush.bf16.msra.mxu1 %v11644_v56  ;;  %v663_v48 = vadd.f32 %v662_v43, %v650_v35  ;;  %v675_v49 = vpop.f32.mrf.mxu3  ;;  %v651_v56 = vpop.f32.mrf.mxu1  ;;  %v11484_v4 = vor.u32 %v15717_v58, %v11483_v55  ;;  %v11688_v35 = vor.u32 %v15762_v26, %v11685_v27  ;;  %v11363_v43 = vld [vmem:[#allocation12 + $0x148] sm:$0xf]  ;;  %v17228_v53 = vld [vmem:[#allocation13] sm:$0xff] }
  0xf1   :  { %2485 = vmatpush.bf16.msra.mxu2 %v11392_v57  ;;  %v11520_v57 = vor.u32 %v15721_v50, %v11517_v8  ;;  %v15682_v50 = vld [vmem:[#allocation12 + $0x14c] sm:$0xf]  ;;  %v11364_v54 = vor.u32 %v15686_v46, %v11363_v43  ;;  %v11587_v58 = vld [vmem:[#allocation12 + $0x308] sm:$0xf]  ;;  %v816_v19 = vperm.slane %v17228_v53, 1 }
  0xf2   :  { %2498 = vmatpush.bf16.msra.mxu3 %v11648_v62  ;;  %v17225_v52 = vadd.f32 %v675_v49, %v663_v48  ;;  %v15713_v62 = vld [vmem:[#allocation12 + $0x244] sm:$0xf]  ;;  %v15750_v48 = vld [vmem:[#allocation12 + $0x364] sm:$0xf0]  ;;  %v11656_v49 = vor.u32 %v15754_v39, %v11653_v41  ;;  %v11365_v8 = vld [vmem:[#allocation12 + $0x168] sm:$0xf0] }
  0xf3   :  { %2460 = vmatpush.bf16.msra.mxu0 %v11356_v5  ;;  %v11232_v5 = vor.u32 %v15649_v59, %v11229_v61  ;;  %v11488_v12 = vor.u32 %v15713_v62, %v11485_v0  ;;  %v11620_v55 = vor.u32 %v15750_v48, %v11619_v47  ;;  %v11368_v56 = vor.u32 %v15682_v50, %v11365_v8  ;;  %v15742_v62 = vld [vmem:[#allocation12 + $0x324] sm:$0xf0]  ;;  %v15674_v0 = vld [vmem:[#allocation12 + $0x10c] sm:$0xf] }
  0xf4   :  { %2473 = vmatpush.bf16.msra.mxu1 %v11612_v7  ;;  %v15709_v7 = vld [vmem:[#allocation12 + $0x21c] sm:$0xf0]  ;;  %v815_v59 = vperm.slane %v17228_v53, 0  ;;  %v15662_v27 = vld [vmem:[#allocation12 + $0xa4] sm:$0xf0] }
  0xf5   :  { %2486 = vmatpush.bf16.msra.mxu2 %v11360_v10  ;;  %v15641_v10 = vld [vmem:[#allocation12 + $0x4] sm:$0xf]  ;;  %v11452_v23 = vor.u32 %v15709_v7, %v11451_v6  ;;  %v11588_v7 = vor.u32 %v15742_v62, %v11587_v58  ;;  %v11235_v39 = vld [vmem:[#allocation12 + $0x48] sm:$0xf]  ;;  %v15650_v50 = vld [vmem:[#allocation12 + $0x4c] sm:$0xf] }
  0xf6   :  { %2499 = vmatpush.bf16.msra.mxu3 %v11616_v14  ;;  %v15705_v14 = vld [vmem:[#allocation12 + $0x204] sm:$0xf]  ;;  %v11200_v24 = vor.u32 %v15641_v10, %v11197_v13  ;;  %v15734_v13 = vld [vmem:[#allocation12 + $0x2e4] sm:$0xf0]  ;;  %v11237_v8 = vld [vmem:[#allocation12 + $0x68] sm:$0xf0] }
  0xf7   :  { %2461 = vmatpush.bf16.msra.mxu0 %v11324_v20  ;;  %v664_v11 = vpop.f32.mrf.mxu2  ;;  %v11196_v20 = vor.u32 %v15645_v3, %v11195_v2  ;;  %v11456_v28 = vor.u32 %v15705_v14, %v11453_v15  ;;  %v15738_v2 = vld [vmem:[#allocation12 + $0x30c] sm:$0xf]  ;;  %v11491_v46 = vld [vmem:[#allocation12 + $0x248] sm:$0xf] }
  0xf8   :  { %2474 = vmatpush.bf16.msra.mxu1 %v11580_v63  ;;  %v677_v16 = vpop.f32.mrf.mxu3  ;;  %v15698_v63 = vld [vmem:[#allocation12 + $0x1cc] sm:$0xf]  ;;  %v15670_v11 = vld [vmem:[#allocation12 + $0xe4] sm:$0xf0] }
  0xf9   :  { %2487 = vmatpush.bf16.msra.mxu2 %v11328_v22  ;;  %v11429_v22 = vld [vmem:[#allocation12 + $0x1e8] sm:$0xf0]  ;;  %v15718_v47 = vld [vmem:[#allocation12 + $0x264] sm:$0xf0] }
  0xfa   :  { %2500 = vmatpush.bf16.msra.mxu3 %v11584_v40  ;;  %v11428_v40 = vor.u32 %v15702_v17, %v11427_v60  ;;  %v11432_v31 = vor.u32 %v15698_v63, %v11429_v22  ;;  %v11589_v3 = vld [vmem:[#allocation12 + $0x328] sm:$0xf0]  ;;  %v11459_v58 = vld [vmem:[#allocation12 + $0x208] sm:$0xf] }
  0xfb   :  { %2462 = vmatpush.bf16.msra.mxu0 %v11292_v36  ;;  %v15758_v36 = vld [vmem:[#allocation12 + $0x3a4] sm:$0xf0]  ;;  %v11592_v16 = vor.u32 %v15738_v2, %v11589_v3  ;;  %v15666_v60 = vld [vmem:[#allocation12 + $0xcc] sm:$0xf] }
  0xfc   :  { %2475 = vmatpush.bf16.msra.mxu1 %v11548_v37  ;;  %v15690_v37 = vld [vmem:[#allocation12 + $0x18c] sm:$0xf] }
  0xfd   :  { %2488 = vmatpush.bf16.msra.mxu2 %v11296_v38  ;;  %v11397_v38 = vld [vmem:[#allocation12 + $0x1a8] sm:$0xf0] }
  0xfe   :  { %2501 = vmatpush.bf16.msra.mxu3 %v11552_v44  ;;  %v11652_v44 = vor.u32 %v15758_v36, %v11651_v34  ;;  %v11400_v45 = vor.u32 %v15690_v37, %v11397_v38  ;;  %v11301_v17 = vld [vmem:[#allocation12 + $0xe8] sm:$0xf0] }
  0xff   :  { %2463 = vmatpush.bf16.msra.mxu0 %v11260_v51  ;;  %v17071_v51 = vmov 0   ;;  %v11304_v26 = vor.u32 %v15666_v60, %v11301_v17  ;;  %v15722_v36 = vld [vmem:[#allocation12 + $0x28c] sm:$0xf]  ;;  %v11693_v60 = vld [vmem:[#allocation12 + $0x3f0] sm:$0xf0] }
 0x100   :  { %2476 = vmatpush.bf16.msra.mxu1 %v11516_v9  ;;  %v15746_v9 = vld [vmem:[#allocation12 + $0x34c] sm:$0xf] }
 0x101   :  { %2489 = vmatpush.bf16.msra.mxu2 %v11264_v18  ;;  %v11621_v18 = vld [vmem:[#allocation12 + $0x368] sm:$0xf0] }
 0x102   :  { %2502 = vmatpush.bf16.msra.mxu3 %v11520_v57  ;;  %v15678_v57 = vld [vmem:[#allocation12 + $0x124] sm:$0xf0]  ;;  %v11624_v61 = vor.u32 %v15746_v9, %v11621_v18  ;;  %v11525_v37 = vld [vmem:[#allocation12 + $0x2a8] sm:$0xf0] }
 0x103   :  { %2464 = vmatpush.bf16.msra.mxu0 %v11228_v1  ;;  %v11333_v1 = vld [vmem:[#allocation12 + $0x128] sm:$0xf0] }
 0x104   :  { %2477 = vmatpush.bf16.msra.mxu1 %v11484_v4  ;;  %v11332_v4 = vor.u32 %v15678_v57, %v11331_v25  ;;  %v11336_v10 = vor.u32 %v15674_v0, %v11333_v1  ;;  %v15714_v9 = vld [vmem:[#allocation12 + $0x24c] sm:$0xf]  ;;  %v11203_v25 = vld [vmem:[#allocation12 + $0x8] sm:$0xf]  ;;  %v11240_v57 = vor.u32 %v15650_v50, %v11237_v8  ;;  %v817_v50 = vperm.slane %v17228_v53, 2 }
 0x105   :  { %2490 = vmatpush.bf16.msra.mxu2 %v11232_v5  ;;  %v11299_v5 = vld [vmem:[#allocation12 + $0xc8] sm:$0xf]  ;;  %v11493_v18 = vld [vmem:[#allocation12 + $0x268] sm:$0xf0] }
 0x106   :  { %2503 = vmatpush.bf16.msra.mxu3 %v11488_v12  ;;  %v11555_v12 = vld [vmem:[#allocation12 + $0x2c8] sm:$0xf]  ;;  %v11300_v22 = vor.u32 %v15670_v11, %v11299_v5  ;;  %v11496_v0 = vor.u32 %v15714_v9, %v11493_v18  ;;  %v11205_v1 = vld [vmem:[#allocation12 + $0x28] sm:$0xf0]  ;;  %v11435_v5 = vld [vmem:[#allocation12 + $0x1d0] sm:$0xf] }
 0x107   :  { %2465 = vmatpush.bf16.msra.mxu0 %v11196_v20  ;;  %v1480_v6 = vpop.f32.mrf.mxu0  ;;  %v15730_v20 = vld [vmem:[#allocation12 + $0x2cc] sm:$0xf]  ;;  %v15767_v11 = vld [vmem:[#allocation12 + $0x3ec] sm:$0xf0]  ;;  %v15675_v18 = vld [vmem:[#allocation12 + $0x114] sm:$0xf] }
 0x108   :  { %2478 = vmatpush.bf16.msra.mxu1 %v11452_v23  ;;  %v1481_v14 = vadd.f32 %v1480_v6, %v815_v59  ;;  %v1493_v15 = vpop.f32.mrf.mxu1  ;;  %v11267_v23 = vld [vmem:[#allocation12 + $0x88] sm:$0xf]  ;;  %v15706_v2 = vld [vmem:[#allocation12 + $0x20c] sm:$0xf]  ;;  %v15703_v6 = vld [vmem:[#allocation12 + $0x1ec] sm:$0xf0] }
 0x109   :  { %2491 = vmatpush.bf16.msra.mxu2 %v11200_v24  ;;  %v11556_v24 = vor.u32 %v15734_v13, %v11555_v12  ;;  %v11268_v38 = vor.u32 %v15662_v27, %v11267_v23  ;;  %v15710_v59 = vld [vmem:[#allocation12 + $0x224] sm:$0xf0]  ;;  %v11461_v3 = vld [vmem:[#allocation12 + $0x228] sm:$0xf0]  ;;  %v15699_v12 = vld [vmem:[#allocation12 + $0x1d4] sm:$0xf] }
 0x10a   :  { %2504 = vmatpush.bf16.msra.mxu3 %v11456_v28  ;;  %2466 = vmatmul.bf16.vlgmr.msra.gmra.mxu0 %v17071_v51  ;;  %v1494_v63 = vadd.f32 %v1493_v15, %v1481_v14  ;;  %v11523_v28 = vld [vmem:[#allocation12 + $0x288] sm:$0xf]  ;;  %v11437_v13 = vld [vmem:[#allocation12 + $0x1f0] sm:$0xf0]  ;;  %v11460_v14 = vor.u32 %v15710_v59, %v11459_v58  ;;  %v11464_v17 = vor.u32 %v15706_v2, %v11461_v3  ;;  %v11659_v23 = vld [vmem:[#allocation12 + $0x390] sm:$0xf] }
 0x10b   :  { %2510 = vmatpush.bf16.msrb.mxu0 %v11428_v40  ;;  %2479 = vmatmul.bf16.vlgmr.msra.gmra.mxu1 %v17071_v51  ;;  %v15691_v27 = vld [vmem:[#allocation12 + $0x194] sm:$0xf]  ;;  %v15743_v9 = vld [vmem:[#allocation12 + $0x32c] sm:$0xf0] }
 0x10c   :  { %2523 = vmatpush.bf16.msrb.mxu1 %v11684_v30  ;;  %2492 = vmatmul.bf16.vlgmr.msra.gmra.mxu2 %v17071_v51  ;;  %1679 = vst [vmem:[#allocation3] sm:$0xff] %v1494_v63  ;;  %v11560_v30 = vor.u32 %v15730_v20, %v11557_v21  ;;  %v11440_v21 = vor.u32 %v15699_v12, %v11437_v13  ;;  %v11403_v63 = vld [vmem:[#allocation12 + $0x190] sm:$0xf] }
 0x10d   :  { %2536 = vmatpush.bf16.msrb.mxu2 %v11432_v31  ;;  %2505 = vmatmul.bf16.vlgmr.msra.gmra.mxu3 %v17071_v51  ;;  %v15726_v31 = vld [vmem:[#allocation12 + $0x2a4] sm:$0xf0] }
 0x10e   :  { %2549 = vmatpush.bf16.msrb.mxu3 %v11688_v35  ;;  %v11524_v43 = vor.u32 %v15726_v31, %v11523_v28  ;;  %v11405_v28 = vld [vmem:[#allocation12 + $0x1b0] sm:$0xf0] }
 0x10f   :  { %2511 = vmatpush.bf16.msrb.mxu0 %v11396_v42  ;;  %v1506_v40 = vpop.f32.mrf.mxu2  ;;  %v1482_v42 = vpop.f32.mrf.mxu0 }
 0x110   :  { %2524 = vmatpush.bf16.msrb.mxu1 %v11652_v44  ;;  %v1507_v34 = vadd.f32 %v1506_v40, %v816_v19  ;;  %v1519_v35 = vpop.f32.mrf.mxu3  ;;  %v11272_v44 = vor.u32 %v15658_v32, %v11269_v33  ;;  %v1495_v48 = vpop.f32.mrf.mxu1  ;;  %v11436_v19 = vor.u32 %v15703_v6, %v11435_v5  ;;  %v15755_v40 = vld [vmem:[#allocation12 + $0x394] sm:$0xf]  ;;  %v11408_v33 = vor.u32 %v15691_v27, %v11405_v28 }
 0x111   :  { %2537 = vmatpush.bf16.msrb.mxu2 %v11400_v45  ;;  %v15654_v45 = vld [vmem:[#allocation12 + $0x64] sm:$0xf0]  ;;  %v15747_v42 = vld [vmem:[#allocation12 + $0x354] sm:$0xf]  ;;  %v15679_v48 = vld [vmem:[#allocation12 + $0x12c] sm:$0xf0] }
 0x112   :  { %2550 = vmatpush.bf16.msrb.mxu3 %v11656_v49  ;;  %v1520_v41 = vadd.f32 %v1519_v35, %v1507_v34  ;;  %v11528_v49 = vor.u32 %v15722_v36, %v11525_v37  ;;  %v11371_v34 = vld [vmem:[#allocation12 + $0x150] sm:$0xf]  ;;  %v15667_v5 = vld [vmem:[#allocation12 + $0xd4] sm:$0xf] }
 0x113   :  { %2512 = vmatpush.bf16.msrb.mxu0 %v11364_v54  ;;  %v11236_v54 = vor.u32 %v15654_v45, %v11235_v39  ;;  %v15687_v35 = vld [vmem:[#allocation12 + $0x16c] sm:$0xf0]  ;;  %v15683_v39 = vld [vmem:[#allocation12 + $0x154] sm:$0xf] }
 0x114   :  { %2525 = vmatpush.bf16.msrb.mxu1 %v11620_v55  ;;  %1680 = vst [vmem:[#allocation3 + $0x8] sm:$0xff] %v1520_v41  ;;  %v15646_v55 = vld [vmem:[#allocation12 + $0x24] sm:$0xf0]  ;;  %v11627_v36 = vld [vmem:[#allocation12 + $0x350] sm:$0xf] }
 0x115   :  { %2538 = vmatpush.bf16.msrb.mxu2 %v11368_v56  ;;  %v11492_v56 = vor.u32 %v15718_v47, %v11491_v46  ;;  %v11373_v41 = vld [vmem:[#allocation12 + $0x170] sm:$0xf0]  ;;  %v11339_v45 = vld [vmem:[#allocation12 + $0x110] sm:$0xf] }
 0x116   :  { %2551 = vmatpush.bf16.msrb.mxu3 %v11624_v61  ;;  %v15642_v61 = vld [vmem:[#allocation12 + $0xc] sm:$0xf]  ;;  %v11376_v47 = vor.u32 %v15683_v39, %v11373_v41  ;;  %v11309_v6 = vld [vmem:[#allocation12 + $0xf0] sm:$0xf0] }
 0x117   :  { %2513 = vmatpush.bf16.msrb.mxu0 %v11332_v4  ;;  %v1508_v62 = vpop.f32.mrf.mxu2  ;;  %v11208_v15 = vor.u32 %v15642_v61, %v11205_v1  ;;  %v15735_v1 = vld [vmem:[#allocation12 + $0x2ec] sm:$0xf0]  ;;  %v11533_v27 = vld [vmem:[#allocation12 + $0x2b0] sm:$0xf0] }
 0x118   :  { %2526 = vmatpush.bf16.msrb.mxu1 %v11588_v7  ;;  %v1521_v4 = vpop.f32.mrf.mxu3  ;;  %v11691_v7 = vld [vmem:[#allocation12 + $0x3d0] sm:$0xf]  ;;  %v15651_v39 = vld [vmem:[#allocation12 + $0x54] sm:$0xf] }
 0x119   :  { %2539 = vmatpush.bf16.msrb.mxu2 %v11336_v10  ;;  %v11204_v10 = vor.u32 %v15646_v55, %v11203_v25  ;;  %v11692_v20 = vor.u32 %v15767_v11, %v11691_v7  ;;  %v15739_v25 = vld [vmem:[#allocation12 + $0x314] sm:$0xf]  ;;  %v15671_v62 = vld [vmem:[#allocation12 + $0xec] sm:$0xf0]  ;;  %v818_v7 = vperm.slane %v17228_v53, 3 }
 0x11a   :  { %2552 = vmatpush.bf16.msrb.mxu3 %v11592_v16  ;;  %v15763_v16 = vld [vmem:[#allocation12 + $0x3d4] sm:$0xf] }
 0x11b   :  { %2514 = vmatpush.bf16.msrb.mxu0 %v11300_v22  ;;  %v15695_v22 = vld [vmem:[#allocation12 + $0x1ac] sm:$0xf0]  ;;  %v11597_v55 = vld [vmem:[#allocation12 + $0x330] sm:$0xf0] }
 0x11c   :  { %2527 = vmatpush.bf16.msrb.mxu1 %v11556_v24  ;;  %v11696_v24 = vor.u32 %v15763_v16, %v11693_v60  ;;  %v11404_v31 = vor.u32 %v15695_v22, %v11403_v63  ;;  %v11600_v4 = vor.u32 %v15739_v25, %v11597_v55  ;;  %v11565_v11 = vld [vmem:[#allocation12 + $0x2f0] sm:$0xf0]  ;;  %v11312_v16 = vor.u32 %v15667_v5, %v11309_v6  ;;  %v15727_v22 = vld [vmem:[#allocation12 + $0x2ac] sm:$0xf0]  ;;  %v11701_v5 = vld [vmem:[#allocation12 + $0x3f8] sm:$0xf0] }
 0x11d   :  { %2540 = vmatpush.bf16.msrb.mxu2 %v11304_v26  ;;  %v15759_v26 = vld [vmem:[#allocation12 + $0x3ac] sm:$0xf0]  ;;  %v11245_v41 = vld [vmem:[#allocation12 + $0x70] sm:$0xf0] }
 0x11e   :  { %2553 = vmatpush.bf16.msrb.mxu3 %v11560_v30  ;;  %v11661_v30 = vld [vmem:[#allocation12 + $0x3b0] sm:$0xf0]  ;;  %v11660_v32 = vor.u32 %v15759_v26, %v11659_v23 }
 0x11f   :  { %2515 = vmatpush.bf16.msrb.mxu0 %v11268_v38  ;;  %v11664_v37 = vor.u32 %v15755_v40, %v11661_v30  ;;  %v15751_v38 = vld [vmem:[#allocation12 + $0x36c] sm:$0xf0]  ;;  %v15659_v23 = vld [vmem:[#allocation12 + $0x94] sm:$0xf] }
 0x120   :  { %2528 = vmatpush.bf16.msrb.mxu1 %v11524_v43  ;;  %v11629_v43 = vld [vmem:[#allocation12 + $0x370] sm:$0xf0]  ;;  %v11628_v46 = vor.u32 %v15751_v38, %v11627_v36  ;;  %v11243_v30 = vld [vmem:[#allocation12 + $0x50] sm:$0xf] }
 0x121   :  { %2541 = vmatpush.bf16.msrb.mxu2 %v11272_v44  ;;  %v11372_v44 = vor.u32 %v15687_v35, %v11371_v34  ;;  %v11632_v8 = vor.u32 %v15747_v42, %v11629_v43  ;;  %v15723_v26 = vld [vmem:[#allocation12 + $0x294] sm:$0xf]  ;;  %v15655_v34 = vld [vmem:[#allocation12 + $0x6c] sm:$0xf0] }
 0x122   :  { %2554 = vmatpush.bf16.msrb.mxu3 %v11528_v49  ;;  %v11595_v49 = vld [vmem:[#allocation12 + $0x310] sm:$0xf]  ;;  %v11536_v38 = vor.u32 %v15723_v26, %v11533_v27  ;;  %v15715_v42 = vld [vmem:[#allocation12 + $0x254] sm:$0xf]  ;;  %v11635_v26 = vld [vmem:[#allocation12 + $0x358] sm:$0xf] }
 0x123   :  { %2516 = vmatpush.bf16.msrb.mxu0 %v11236_v54  ;;  %v11341_v54 = vld [vmem:[#allocation12 + $0x130] sm:$0xf0]  ;;  %v11596_v59 = vor.u32 %v15743_v9, %v11595_v49  ;;  %v11499_v35 = vld [vmem:[#allocation12 + $0x250] sm:$0xf] }
 0x124   :  { %2529 = vmatpush.bf16.msrb.mxu1 %v11492_v56  ;;  %v11340_v56 = vor.u32 %v15679_v48, %v11339_v45  ;;  %v11344_v61 = vor.u32 %v15675_v18, %v11341_v54  ;;  %v15719_v36 = vld [vmem:[#allocation12 + $0x26c] sm:$0xf0]  ;;  %v11501_v43 = vld [vmem:[#allocation12 + $0x270] sm:$0xf0]  ;;  %v11248_v48 = vor.u32 %v15651_v39, %v11245_v41  ;;  %v819_v39 = vperm.slane %v17228_v53, 4 }
 0x125   :  { %2542 = vmatpush.bf16.msrb.mxu2 %v11240_v57  ;;  %v11307_v57 = vld [vmem:[#allocation12 + $0xd0] sm:$0xf]  ;;  %v11504_v18 = vor.u32 %v15715_v42, %v11501_v43  ;;  %v11213_v54 = vld [vmem:[#allocation12 + $0x30] sm:$0xf0]  ;;  %v15744_v42 = vld [vmem:[#allocation12 + $0x334] sm:$0xf0] }
 0x126   :  { %2555 = vmatpush.bf16.msrb.mxu3 %v11496_v0  ;;  %v11563_v0 = vld [vmem:[#allocation12 + $0x2d0] sm:$0xf]  ;;  %v11308_v13 = vor.u32 %v15671_v62, %v11307_v57  ;;  %v15707_v25 = vld [vmem:[#allocation12 + $0x214] sm:$0xf]  ;;  %v11443_v57 = vld [vmem:[#allocation12 + $0x1d8] sm:$0xf] }
 0x127   :  { %2517 = vmatpush.bf16.msrb.mxu0 %v11204_v10  ;;  %v1532_v58 = vpop.f32.mrf.mxu0  ;;  %v15731_v10 = vld [vmem:[#allocation12 + $0x2d4] sm:$0xf]  ;;  %v11211_v45 = vld [vmem:[#allocation12 + $0x10] sm:$0xf]  ;;  %v15768_v62 = vld [vmem:[#allocation12 + $0x3f4] sm:$0xf0] }
 0x128   :  { %2530 = vmatpush.bf16.msrb.mxu1 %v11460_v14  ;;  %v1533_v2 = vadd.f32 %v1532_v58, %v817_v50  ;;  %v1545_v3 = vpop.f32.mrf.mxu1  ;;  %v11275_v14 = vld [vmem:[#allocation12 + $0x90] sm:$0xf]  ;;  %v11469_v55 = vld [vmem:[#allocation12 + $0x230] sm:$0xf0]  ;;  %v15704_v58 = vld [vmem:[#allocation12 + $0x1f4] sm:$0xf0] }
 0x129   :  { %2543 = vmatpush.bf16.msrb.mxu2 %v11208_v15  ;;  %v11564_v15 = vor.u32 %v15735_v1, %v11563_v0  ;;  %v11467_v49 = vld [vmem:[#allocation12 + $0x210] sm:$0xf]  ;;  %v15700_v0 = vld [vmem:[#allocation12 + $0x1dc] sm:$0xf]  ;;  %v11472_v6 = vor.u32 %v15707_v25, %v11469_v55 }
 0x12a   :  { %2556 = vmatpush.bf16.msrb.mxu3 %v11464_v17  ;;  %2518 = vmatmul.bf16.vlgmr.msrb.gmra.mxu0 %v17071_v51  ;;  %v1546_v12 = vadd.f32 %v1545_v3, %v1533_v2  ;;  %v15663_v17 = vld [vmem:[#allocation12 + $0xac] sm:$0xf0]  ;;  %v11445_v1 = vld [vmem:[#allocation12 + $0x1f8] sm:$0xf0] }
 0x12b   :  { %2562 = vmatpush.bf16.msra.mxu0 %v11436_v19  ;;  %2531 = vmatmul.bf16.vlgmr.msrb.gmra.mxu1 %v17071_v51  ;;  %v11531_v19 = vld [vmem:[#allocation12 + $0x290] sm:$0xf]  ;;  %v11276_v40 = vor.u32 %v15663_v17, %v11275_v14  ;;  %v11667_v14 = vld [vmem:[#allocation12 + $0x398] sm:$0xf]  ;;  %v11413_v17 = vld [vmem:[#allocation12 + $0x1b8] sm:$0xf0] }
 0x12c   :  { %2575 = vmatpush.bf16.msra.mxu1 %v11692_v20  ;;  %2544 = vmatmul.bf16.vlgmr.msrb.gmra.mxu2 %v17071_v51  ;;  %1681 = vst [vmem:[#allocation3 + $0x10] sm:$0xff] %v1546_v12  ;;  %v11568_v20 = vor.u32 %v15731_v10, %v11565_v11  ;;  %v15711_v50 = vld [vmem:[#allocation12 + $0x22c] sm:$0xf0]  ;;  %v11448_v11 = vor.u32 %v15700_v0, %v11445_v1  ;;  %v11411_v12 = vld [vmem:[#allocation12 + $0x198] sm:$0xf] }
 0x12d   :  { %2588 = vmatpush.bf16.msra.mxu2 %v11440_v21  ;;  %2557 = vmatmul.bf16.vlgmr.msrb.gmra.mxu3 %v17071_v51  ;;  %v11468_v2 = vor.u32 %v15711_v50, %v11467_v49  ;;  %v15676_v43 = vld [vmem:[#allocation12 + $0x11c] sm:$0xf] }
 0x12e   :  { %2601 = vmatpush.bf16.msra.mxu3 %v11696_v24  ;;  %v11277_v24 = vld [vmem:[#allocation12 + $0xb0] sm:$0xf0] }
 0x12f   :  { %2563 = vmatpush.bf16.msra.mxu0 %v11404_v31  ;;  %v1558_v60 = vpop.f32.mrf.mxu2  ;;  %v1534_v31 = vpop.f32.mrf.mxu0 }
 0x130   :  { %2576 = vmatpush.bf16.msra.mxu1 %v11660_v32  ;;  %v1559_v21 = vadd.f32 %v1558_v60, %v818_v7  ;;  %v1571_v63 = vpop.f32.mrf.mxu3  ;;  %v11532_v32 = vor.u32 %v15727_v22, %v11531_v19  ;;  %v11444_v7 = vor.u32 %v15704_v58, %v11443_v57  ;;  %v15692_v60 = vld [vmem:[#allocation12 + $0x19c] sm:$0xf] }
 0x131   :  { %2589 = vmatpush.bf16.msra.mxu2 %v11408_v33  ;;  %v11280_v33 = vor.u32 %v15659_v23, %v11277_v24  ;;  %v15756_v19 = vld [vmem:[#allocation12 + $0x39c] sm:$0xf]  ;;  %v11416_v22 = vor.u32 %v15692_v60, %v11413_v17  ;;  %v11379_v23 = vld [vmem:[#allocation12 + $0x158] sm:$0xf] }
 0x132   :  { %2602 = vmatpush.bf16.msra.mxu3 %v11664_v37  ;;  %v1572_v28 = vadd.f32 %v1571_v63, %v1559_v21  ;;  %v1547_v37 = vpop.f32.mrf.mxu1  ;;  %v15688_v24 = vld [vmem:[#allocation12 + $0x174] sm:$0xf0]  ;;  %v15748_v31 = vld [vmem:[#allocation12 + $0x35c] sm:$0xf] }
 0x133   :  { %2564 = vmatpush.bf16.msra.mxu0 %v11372_v44  ;;  %v11244_v44 = vor.u32 %v15655_v34, %v11243_v30  ;;  %v11381_v30 = vld [vmem:[#allocation12 + $0x178] sm:$0xf0]  ;;  %v11347_v34 = vld [vmem:[#allocation12 + $0x118] sm:$0xf] }
 0x134   :  { %2577 = vmatpush.bf16.msra.mxu1 %v11628_v46  ;;  %1682 = vst [vmem:[#allocation3 + $0x18] sm:$0xff] %v1572_v28  ;;  %v15647_v46 = vld [vmem:[#allocation12 + $0x2c] sm:$0xf0]  ;;  %v15752_v28 = vld [vmem:[#allocation12 + $0x374] sm:$0xf0] }
 0x135   :  { %2590 = vmatpush.bf16.msra.mxu2 %v11376_v47  ;;  %v11500_v47 = vor.u32 %v15719_v36, %v11499_v35  ;;  %v11636_v35 = vor.u32 %v15752_v28, %v11635_v26  ;;  %v15680_v37 = vld [vmem:[#allocation12 + $0x134] sm:$0xf0]  ;;  %v15668_v57 = vld [vmem:[#allocation12 + $0xdc] sm:$0xf] }
 0x136   :  { %2603 = vmatpush.bf16.msra.mxu3 %v11632_v8  ;;  %v15643_v8 = vld [vmem:[#allocation12 + $0x14] sm:$0xf]  ;;  %v11317_v58 = vld [vmem:[#allocation12 + $0xf8] sm:$0xf0]  ;;  %v15720_v26 = vld [vmem:[#allocation12 + $0x274] sm:$0xf0] }
 0x137   :  { %2565 = vmatpush.bf16.msra.mxu0 %v11340_v56  ;;  %v1560_v9 = vpop.f32.mrf.mxu2  ;;  %v11216_v3 = vor.u32 %v15643_v8, %v11213_v54  ;;  %v15736_v54 = vld [vmem:[#allocation12 + $0x2f4] sm:$0xf0]  ;;  %v11541_v60 = vld [vmem:[#allocation12 + $0x2b8] sm:$0xf0] }
 0x138   :  { %2578 = vmatpush.bf16.msra.mxu1 %v11596_v59  ;;  %v1573_v56 = vpop.f32.mrf.mxu3  ;;  %v11699_v59 = vld [vmem:[#allocation12 + $0x3d8] sm:$0xf] }
 0x139   :  { %2591 = vmatpush.bf16.msra.mxu2 %v11344_v61  ;;  %v11212_v61 = vor.u32 %v15647_v46, %v11211_v45  ;;  %v11700_v10 = vor.u32 %v15768_v62, %v11699_v59  ;;  %v15740_v45 = vld [vmem:[#allocation12 + $0x31c] sm:$0xf]  ;;  %v15672_v9 = vld [vmem:[#allocation12 + $0xf4] sm:$0xf0]  ;;  %v820_v59 = vperm.slane %v17228_v53, 5 }
 0x13a   :  { %2604 = vmatpush.bf16.msra.mxu3 %v11600_v4  ;;  %v15764_v4 = vld [vmem:[#allocation12 + $0x3dc] sm:$0xf] }
 0x13b   :  { %2566 = vmatpush.bf16.msra.mxu0 %v11308_v13  ;;  %v15696_v13 = vld [vmem:[#allocation12 + $0x1b4] sm:$0xf0]  ;;  %v11605_v46 = vld [vmem:[#allocation12 + $0x338] sm:$0xf0] }
 0x13c   :  { %2579 = vmatpush.bf16.msra.mxu1 %v11564_v15  ;;  %v11704_v15 = vor.u32 %v15764_v4, %v11701_v5  ;;  %v11412_v21 = vor.u32 %v15696_v13, %v11411_v12  ;;  %v11608_v56 = vor.u32 %v15740_v45, %v11605_v46  ;;  %v11573_v62 = vld [vmem:[#allocation12 + $0x2f8] sm:$0xf0]  ;;  %v11320_v4 = vor.u32 %v15668_v57, %v11317_v58  ;;  %v15664_v5 = vld [vmem:[#allocation12 + $0xb4] sm:$0xf0] }
 0x13d   :  { %2592 = vmatpush.bf16.msra.mxu2 %v11312_v16  ;;  %v15760_v16 = vld [vmem:[#allocation12 + $0x3b4] sm:$0xf0]  ;;  %v15660_v12 = vld [vmem:[#allocation12 + $0x9c] sm:$0xf] }
 0x13e   :  { %2605 = vmatpush.bf16.msra.mxu3 %v11568_v20  ;;  %v11669_v20 = vld [vmem:[#allocation12 + $0x3b8] sm:$0xf0]  ;;  %v11668_v63 = vor.u32 %v15760_v16, %v11667_v14 }
 0x13f   :  { %2567 = vmatpush.bf16.msra.mxu0 %v11276_v40  ;;  %v11672_v27 = vor.u32 %v15756_v19, %v11669_v20  ;;  %v15684_v40 = vld [vmem:[#allocation12 + $0x15c] sm:$0xf]  ;;  %v11251_v19 = vld [vmem:[#allocation12 + $0x58] sm:$0xf] }
 0x140   :  { %2580 = vmatpush.bf16.msra.mxu1 %v11532_v32  ;;  %v11637_v32 = vld [vmem:[#allocation12 + $0x378] sm:$0xf0]  ;;  %v11384_v36 = vor.u32 %v15684_v40, %v11381_v30 }
 0x141   :  { %2593 = vmatpush.bf16.msra.mxu2 %v11280_v33  ;;  %v11380_v33 = vor.u32 %v15688_v24, %v11379_v23  ;;  %v11640_v41 = vor.u32 %v15748_v31, %v11637_v32  ;;  %v11285_v13 = vld [vmem:[#allocation12 + $0xb8] sm:$0xf0]  ;;  %v15656_v23 = vld [vmem:[#allocation12 + $0x74] sm:$0xf0] }
 0x142   :  { %2606 = vmatpush.bf16.msra.mxu3 %v11536_v38  ;;  %v11603_v38 = vld [vmem:[#allocation12 + $0x318] sm:$0xf]  ;;  %v15724_v16 = vld [vmem:[#allocation12 + $0x29c] sm:$0xf] }
 0x143   :  { %2568 = vmatpush.bf16.msra.mxu0 %v11244_v44  ;;  %v11349_v44 = vld [vmem:[#allocation12 + $0x138] sm:$0xf0]  ;;  %v11604_v50 = vor.u32 %v15744_v42, %v11603_v38  ;;  %v11507_v24 = vld [vmem:[#allocation12 + $0x258] sm:$0xf]  ;;  %v11544_v28 = vor.u32 %v15724_v16, %v11541_v60 }
 0x144   :  { %2581 = vmatpush.bf16.msra.mxu1 %v11500_v47  ;;  %v11348_v47 = vor.u32 %v15680_v37, %v11347_v34  ;;  %v11352_v8 = vor.u32 %v15676_v43, %v11349_v44  ;;  %v15652_v40 = vld [vmem:[#allocation12 + $0x5c] sm:$0xf]  ;;  %v11508_v34 = vor.u32 %v15720_v26, %v11507_v24  ;;  %v15648_v37 = vld [vmem:[#allocation12 + $0x34] sm:$0xf0] }
 0x145   :  { %2594 = vmatpush.bf16.msra.mxu2 %v11248_v48  ;;  %v11315_v48 = vld [vmem:[#allocation12 + $0xd8] sm:$0xf]  ;;  %v11253_v30 = vld [vmem:[#allocation12 + $0x78] sm:$0xf0] }
 0x146   :  { %2607 = vmatpush.bf16.msra.mxu3 %v11504_v18  ;;  %v11571_v18 = vld [vmem:[#allocation12 + $0x2d8] sm:$0xf]  ;;  %v11316_v1 = vor.u32 %v15672_v9, %v11315_v48  ;;  %v15716_v31 = vld [vmem:[#allocation12 + $0x25c] sm:$0xf]  ;;  %v821_v9 = vperm.slane %v17228_v53, 6 }
 0x147   :  { %2569 = vmatpush.bf16.msra.mxu0 %v11212_v61  ;;  %v1584_v49 = vpop.f32.mrf.mxu0  ;;  %v15732_v61 = vld [vmem:[#allocation12 + $0x2dc] sm:$0xf]  ;;  %v11475_v38 = vld [vmem:[#allocation12 + $0x218] sm:$0xf] }
 0x148   :  { %2582 = vmatpush.bf16.msra.mxu1 %v11468_v2  ;;  %v1585_v25 = vadd.f32 %v1584_v49, %v819_v39  ;;  %v1597_v55 = vpop.f32.mrf.mxu1  ;;  %v11283_v2 = vld [vmem:[#allocation12 + $0x98] sm:$0xf]  ;;  %v11509_v32 = vld [vmem:[#allocation12 + $0x278] sm:$0xf0] }
 0x149   :  { %2595 = vmatpush.bf16.msra.mxu2 %v11216_v3  ;;  %v11572_v3 = vor.u32 %v15736_v54, %v11571_v18  ;;  %v11284_v17 = vor.u32 %v15664_v5, %v11283_v2  ;;  %v15712_v42 = vld [vmem:[#allocation12 + $0x234] sm:$0xf0]  ;;  %v15644_v43 = vld [vmem:[#allocation12 + $0x1c] sm:$0xf] }
 0x14a   :  { %2608 = vmatpush.bf16.msra.mxu3 %v11472_v6  ;;  %2570 = vmatmul.bf16.vlgmr.msra.gmra.mxu0 %v17071_v51  ;;  %v1598_v0 = vadd.f32 %v1597_v55, %v1585_v25  ;;  %v11539_v6 = vld [vmem:[#allocation12 + $0x298] sm:$0xf]  ;;  %v11221_v44 = vld [vmem:[#allocation12 + $0x38] sm:$0xf0]  ;;  %v11476_v49 = vor.u32 %v15712_v42, %v11475_v38  ;;  %v822_v55 = vperm.slane %v17228_v53, 7 }
 0x14b   :  { %2614 = vmatpush.bf16.msrb.mxu0 %v11444_v7  ;;  %2583 = vmatmul.bf16.vlgmr.msra.gmra.mxu1 %v17071_v51  ;;  %v15708_v46 = vld [vmem:[#allocation12 + $0x21c] sm:$0xf]  ;;  %v15889_v38 = vld [vmem:[#allocation12 + $0x3c4] sm:$0xf] }
 0x14c   :  { %2627 = vmatpush.bf16.msrb.mxu1 %v11700_v10  ;;  %2596 = vmatmul.bf16.vlgmr.msra.gmra.mxu2 %v17071_v51  ;;  %1683 = vst [vmem:[#allocation3 + $0x20] sm:$0xff] %v1598_v0  ;;  %v11576_v10 = vor.u32 %v15732_v61, %v11573_v62 }
 0x14d   :  { %2640 = vmatpush.bf16.msrb.mxu2 %v11448_v11  ;;  %2609 = vmatmul.bf16.vlgmr.msra.gmra.mxu3 %v17071_v51  ;;  %v15728_v11 = vld [vmem:[#allocation12 + $0x2b4] sm:$0xf0] }
 0x14e   :  { %2653 = vmatpush.bf16.msrb.mxu3 %v11704_v15 }
 0x14f   :  { %2615 = vmatpush.bf16.msrb.mxu0 %v11412_v21  ;;  %v1610_v7 = vpop.f32.mrf.mxu2  ;;  %v1586_v21 = vpop.f32.mrf.mxu0 }
 0x150   :  { %2628 = vmatpush.bf16.msrb.mxu1 %v11668_v63  ;;  %v1611_v14 = vadd.f32 %v1610_v7, %v820_v59  ;;  %v1623_v15 = vpop.f32.mrf.mxu3  ;;  %v11540_v63 = vor.u32 %v15728_v11, %v11539_v6 }
 0x151   :  { %2641 = vmatpush.bf16.msrb.mxu2 %v11416_v22  ;;  %v11288_v22 = vor.u32 %v15660_v12, %v11285_v13 }
 0x152   :  { %2654 = vmatpush.bf16.msrb.mxu3 %v11672_v27  ;;  %v1624_v20 = vadd.f32 %v1623_v15, %v1611_v14  ;;  %v1599_v27 = vpop.f32.mrf.mxu1 }
 0x153   :  { %2616 = vmatpush.bf16.msrb.mxu0 %v11380_v33  ;;  %v11252_v33 = vor.u32 %v15656_v23, %v11251_v19  ;;  %v11931_v27 = vld [vmem:[#allocation12 + $0x1c0] sm:$0xf] }
 0x154   :  { %2629 = vmatpush.bf16.msrb.mxu1 %v11636_v35  ;;  %1684 = vst [vmem:[#allocation3 + $0x28] sm:$0xff] %v1624_v20  ;;  %v11256_v35 = vor.u32 %v15652_v40, %v11253_v30  ;;  %v12187_v40 = vld [vmem:[#allocation12 + $0x3c0] sm:$0xf] }
 0x155   :  { %2642 = vmatpush.bf16.msrb.mxu2 %v11384_v36  ;;  %v11219_v36 = vld [vmem:[#allocation12 + $0x18] sm:$0xf] }
 0x156   :  { %2655 = vmatpush.bf16.msrb.mxu3 %v11640_v41  ;;  %v11512_v41 = vor.u32 %v15716_v31, %v11509_v32  ;;  %v11220_v48 = vor.u32 %v15648_v37, %v11219_v36  ;;  %v15893_v32 = vld [vmem:[#allocation12 + $0x3dc] sm:$0xf0] }
 0x157   :  { %2617 = vmatpush.bf16.msrb.mxu0 %v11348_v47  ;;  %v1612_v39 = vpop.f32.mrf.mxu2  ;;  %v11477_v47 = vld [vmem:[#allocation12 + $0x238] sm:$0xf0]  ;;  %v12188_v36 = vor.u32 %v15893_v32, %v12187_v40  ;;  %v11771_v32 = vld [vmem:[#allocation12 + $0x80] sm:$0xf] }
 0x158   :  { %2630 = vmatpush.bf16.msrb.mxu1 %v11604_v50  ;;  %v1625_v45 = vpop.f32.mrf.mxu3  ;;  %v11224_v50 = vor.u32 %v15644_v43, %v11221_v44  ;;  %v12189_v39 = vld [vmem:[#allocation12 + $0x3e0] sm:$0xf0]  ;;  %v15821_v43 = vld [vmem:[#allocation12 + $0x19c] sm:$0xf0] }
 0x159   :  { %2643 = vmatpush.bf16.msrb.mxu2 %v11352_v8  ;;  %v11480_v8 = vor.u32 %v15708_v46, %v11477_v47  ;;  %v12192_v42 = vor.u32 %v15889_v38, %v12189_v39  ;;  %v12155_v44 = vld [vmem:[#allocation12 + $0x380] sm:$0xf] }
 0x15a   :  { %2656 = vmatpush.bf16.msrb.mxu3 %v11608_v56  ;;  %v15885_v45 = vld [vmem:[#allocation12 + $0x39c] sm:$0xf0] }
 0x15b   :  { %2618 = vmatpush.bf16.msrb.mxu0 %v11316_v1  ;;  %v12156_v47 = vor.u32 %v15885_v45, %v12155_v44 }
 0x15c   :  { %2631 = vmatpush.bf16.msrb.mxu1 %v11572_v3 }
 0x15d   :  { %2644 = vmatpush.bf16.msrb.mxu2 %v11320_v4 }
 0x15e   :  { %2657 = vmatpush.bf16.msrb.mxu3 %v11576_v10 }
 0x15f   :  { %2619 = vmatpush.bf16.msrb.mxu0 %v11284_v17 }
 0x160   :  { %2632 = vmatpush.bf16.msrb.mxu1 %v11540_v63 }
 0x161   :  { %2645 = vmatpush.bf16.msrb.mxu2 %v11288_v22 }
 0x162   :  { %2658 = vmatpush.bf16.msrb.mxu3 %v11544_v28  ;;  %v15829_v28 = vld [vmem:[#allocation12 + $0x1dc] sm:$0xf0] }
 0x163   :  { %2620 = vmatpush.bf16.msrb.mxu0 %v11252_v33  ;;  %v11932_v31 = vor.u32 %v15829_v28, %v11931_v27  ;;  %v15825_v33 = vld [vmem:[#allocation12 + $0x1c4] sm:$0xf] }
 0x164   :  { %2633 = vmatpush.bf16.msrb.mxu1 %v11508_v34  ;;  %v11933_v34 = vld [vmem:[#allocation12 + $0x1e0] sm:$0xf0] }
 0x165   :  { %2646 = vmatpush.bf16.msrb.mxu2 %v11256_v35  ;;  %v11936_v37 = vor.u32 %v15825_v33, %v11933_v34  ;;  %v15857_v27 = vld [vmem:[#allocation12 + $0x2c4] sm:$0xf]  ;;  %v15789_v33 = vld [vmem:[#allocation12 + $0x9c] sm:$0xf0] }
 0x166   :  { %2659 = vmatpush.bf16.msrb.mxu3 %v11512_v41  ;;  %v11899_v41 = vld [vmem:[#allocation12 + $0x180] sm:$0xf]  ;;  %v12061_v28 = vld [vmem:[#allocation12 + $0x2e0] sm:$0xf0] }
 0x167   :  { %2621 = vmatpush.bf16.msrb.mxu0 %v11220_v48  ;;  %v1636_v18 = vpop.f32.mrf.mxu0  ;;  %v11900_v46 = vor.u32 %v15821_v43, %v11899_v41  ;;  %v15817_v48 = vld [vmem:[#allocation12 + $0x184] sm:$0xf]  ;;  %v12027_v34 = vld [vmem:[#allocation12 + $0x280] sm:$0xf] }
 0x168   :  { %2634 = vmatpush.bf16.msrb.mxu1 %v11476_v49  ;;  %v1637_v54 = vadd.f32 %v1636_v18, %v821_v9  ;;  %v1649_v25 = vpop.f32.mrf.mxu1  ;;  %v11901_v49 = vld [vmem:[#allocation12 + $0x1a0] sm:$0xf0]  ;;  %v11867_v18 = vld [vmem:[#allocation12 + $0x140] sm:$0xf] }
 0x169   :  { %2647 = vmatpush.bf16.msrb.mxu2 %v11224_v50  ;;  %v15881_v50 = vld [vmem:[#allocation12 + $0x384] sm:$0xf] }
 0x16a   :  { %2660 = vmatpush.bf16.msrb.mxu3 %v11480_v8  ;;  %2622 = vmatmul.bf16.vlgmr.msrb.gmra.mxu0 %v17071_v51  ;;  %v1650_v56 = vadd.f32 %v1649_v25, %v1637_v54  ;;  %v11904_v8 = vor.u32 %v15817_v48, %v11901_v49  ;;  %v12157_v9 = vld [vmem:[#allocation12 + $0x3a0] sm:$0xf0]  ;;  %v15813_v54 = vld [vmem:[#allocation12 + $0x15c] sm:$0xf0] }
 0x16b   :  { %2635 = vmatmul.bf16.vlgmr.msrb.gmra.mxu1 %v17071_v51  ;;  %3507 = vmatpush.bf16.msra.mxu0 %v11932_v31  ;;  %v12160_v25 = vor.u32 %v15881_v50, %v12157_v9  ;;  %v11773_v41 = vld [vmem:[#allocation12 + $0xa0] sm:$0xf0]  ;;  %v15781_v48 = vld [vmem:[#allocation12 + $0x5c] sm:$0xf0] }
 0x16c   :  { %2648 = vmatmul.bf16.vlgmr.msrb.gmra.mxu2 %v17071_v51  ;;  %1685 = vst [vmem:[#allocation3 + $0x30] sm:$0xff] %v1650_v56  ;;  %3520 = vmatpush.bf16.msra.mxu1 %v12188_v36  ;;  %v15877_v56 = vld [vmem:[#allocation12 + $0x35c] sm:$0xf0]  ;;  %v12029_v43 = vld [vmem:[#allocation12 + $0x2a0] sm:$0xf0] }
 0x16d   :  { %2661 = vmatmul.bf16.vlgmr.msrb.gmra.mxu3 %v17071_v51  ;;  %3533 = vmatpush.bf16.msra.mxu2 %v11936_v37  ;;  %v15853_v36 = vld [vmem:[#allocation12 + $0x29c] sm:$0xf0]  ;;  %v15785_v37 = vld [vmem:[#allocation12 + $0x84] sm:$0xf] }
 0x16e   :  { %3546 = vmatpush.bf16.msra.mxu3 %v12192_v42  ;;  %v12028_v39 = vor.u32 %v15853_v36, %v12027_v34  ;;  %v15849_v42 = vld [vmem:[#allocation12 + $0x284] sm:$0xf]  ;;  %v11776_v45 = vor.u32 %v15785_v37, %v11773_v41  ;;  %v11995_v50 = vld [vmem:[#allocation12 + $0x240] sm:$0xf]  ;;  %v11909_v34 = vld [vmem:[#allocation12 + $0x1a8] sm:$0xf0] }
 0x16f   :  { %v1662_v57 = vpop.f32.mrf.mxu2  ;;  %v1638_v62 = vpop.f32.mrf.mxu0  ;;  %3508 = vmatpush.bf16.msra.mxu0 %v11900_v46  ;;  %v12032_v46 = vor.u32 %v15849_v42, %v12029_v43  ;;  %v15777_v9 = vld [vmem:[#allocation12 + $0x44] sm:$0xf]  ;;  %v12165_v36 = vld [vmem:[#allocation12 + $0x3a8] sm:$0xf0]  ;;  %v15814_v41 = vld [vmem:[#allocation12 + $0x164] sm:$0xf0] }
 0x170   :  { %v1663_v58 = vadd.f32 %v1662_v57, %v822_v55  ;;  %v1675_v59 = vpop.f32.mrf.mxu3  ;;  %v1651_v0 = vpop.f32.mrf.mxu1  ;;  %v12123_v55 = vld [vmem:[#allocation12 + $0x340] sm:$0xf]  ;;  %v15809_v57 = vld [vmem:[#allocation12 + $0x144] sm:$0xf]  ;;  %3521 = vmatpush.bf16.msra.mxu1 %v12156_v47  ;;  %v12131_v42 = vld [vmem:[#allocation12 + $0x348] sm:$0xf] }
 0x171   :  { %v12125_v62 = vld [vmem:[#allocation12 + $0x360] sm:$0xf0]  ;;  %3534 = vmatpush.bf16.msra.mxu2 %v11904_v8  ;;  %v12124_v0 = vor.u32 %v15877_v56, %v12123_v55  ;;  %v11739_v47 = vld [vmem:[#allocation12 + $0x40] sm:$0xf] }
 0x172   :  { %v1676_v61 = vadd.f32 %v1675_v59, %v1663_v58  ;;  %v11868_v58 = vor.u32 %v15813_v54, %v11867_v18  ;;  %v11869_v59 = vld [vmem:[#allocation12 + $0x160] sm:$0xf0]  ;;  %3547 = vmatpush.bf16.msra.mxu3 %v12160_v25  ;;  %v11740_v49 = vor.u32 %v15781_v48, %v11739_v47  ;;  %v15845_v8 = vld [vmem:[#allocation12 + $0x25c] sm:$0xf0] }
 0x173   :  { %v11996_v18 = vor.u32 %v15845_v8, %v11995_v50  ;;  %v11741_v54 = vld [vmem:[#allocation12 + $0x60] sm:$0xf0]  ;;  %v12133_v50 = vld [vmem:[#allocation12 + $0x368] sm:$0xf0] }
 0x174   :  { %1686 = vst [vmem:[#allocation3 + $0x38] sm:$0xff] %v1676_v61  ;;  %v15873_v61 = vld [vmem:[#allocation12 + $0x344] sm:$0xf]  ;;  %3509 = vmatpush.bf16.msra.mxu0 %v11868_v58  ;;  %3522 = vmatpush.bf16.msra.mxu1 %v12124_v0  ;;  %v11963_v0 = vld [vmem:[#allocation12 + $0x200] sm:$0xf] }
 0x175   :  { %v15841_v25 = vld [vmem:[#allocation12 + $0x244] sm:$0xf] }
 0x176   :  { %v11997_v55 = vld [vmem:[#allocation12 + $0x260] sm:$0xf0] }
 0x177   :  { %v1664_v1 = vpop.f32.mrf.mxu2  ;;  %v12000_v58 = vor.u32 %v15841_v25, %v11997_v55 }
 0x178   :  { %v1677_v2 = vpop.f32.mrf.mxu3  ;;  %v11872_v1 = vor.u32 %v15809_v57, %v11869_v59  ;;  %v11744_v57 = vor.u32 %v15777_v9, %v11741_v54  ;;  %v11843_v9 = vld [vmem:[#allocation12 + $0x108] sm:$0xf] }
 0x179   :  { %v12128_v2 = vor.u32 %v15873_v61, %v12125_v62  ;;  %v11707_v61 = vld [vmem:[#allocation12] sm:$0xf]  ;;  %v12099_v54 = vld [vmem:[#allocation12 + $0x308] sm:$0xf] }
 0x17a   :  { %3535 = vmatpush.bf16.msra.mxu2 %v11872_v1  ;;  %v15773_v62 = vld [vmem:[#allocation12 + $0x1c] sm:$0xf0] }
 0x17b   :  { %3548 = vmatpush.bf16.msra.mxu3 %v12128_v2  ;;  %v11708_v1 = vor.u32 %v15773_v62, %v11707_v61  ;;  %v15837_v2 = vld [vmem:[#allocation12 + $0x21c] sm:$0xf0] }
 0x187   :  { %v2467_v3 = vpop.f32.mrf.mxu0 }
 0x188   :  { %v2480_v51 = vpop.f32.mrf.mxu1 }
 0x189   :  { %v2481_v4 = vadd.f32 %v2480_v51, %v2467_v3  ;;  %v11835_v3 = vld [vmem:[#allocation12 + $0x100] sm:$0xf] }
 0x18a   :  { %v15805_v51 = vld [vmem:[#allocation12 + $0x11c] sm:$0xf0] }
 0x18f   :  { %v2493_v5 = vpop.f32.mrf.mxu2  ;;  %v2469_v10 = vpop.f32.mrf.mxu0 }
 0x190   :  { %v2506_v6 = vpop.f32.mrf.mxu3  ;;  %v2482_v11 = vpop.f32.mrf.mxu1  ;;  %v11837_v10 = vld [vmem:[#allocation12 + $0x120] sm:$0xf0] }
 0x191   :  { %v2507_v7 = vadd.f32 %v2506_v6, %v2493_v5  ;;  %v11836_v5 = vor.u32 %v15805_v51, %v11835_v3  ;;  %v15869_v6 = vld [vmem:[#allocation12 + $0x31c] sm:$0xf0]  ;;  %v15769_v3 = vld [vmem:[#allocation12 + $0x4] sm:$0xf] }
 0x192   :  { %v11709_v51 = vld [vmem:[#allocation12 + $0x20] sm:$0xf0] }
 0x193   :  { %v2674_v53 = vrot.slane %v2507_v7, 7  ;;  %v15801_v7 = vld [vmem:[#allocation12 + $0x104] sm:$0xf]  ;;  %3510 = vmatpush.bf16.msra.mxu0 %v11836_v5  ;;  %v11712_v5 = vor.u32 %v15769_v3, %v11709_v51 }
 0x194   :  { %v11840_v11 = vor.u32 %v15801_v7, %v11837_v10  ;;  %v11965_v7 = vld [vmem:[#allocation12 + $0x220] sm:$0xf0]  ;;  %v11939_v10 = vld [vmem:[#allocation12 + $0x1c8] sm:$0xf] }
 0x195   :  { %v2682_v12 = vsel %vm2681_vm0, %v2481_v4, %v2674_v53  ;;  %v12091_v4 = vld [vmem:[#allocation12 + $0x300] sm:$0xf] }
 0x196   :  { %v12092_v53 = vor.u32 %v15869_v6, %v12091_v4  ;;  %3536 = vmatpush.bf16.msra.mxu2 %v11840_v11  ;;  %v11964_v4 = vor.u32 %v15837_v2, %v11963_v0  ;;  %v15833_v6 = vld [vmem:[#allocation12 + $0x204] sm:$0xf]  ;;  %v15830_v11 = vld [vmem:[#allocation12 + $0x1e4] sm:$0xf0]  ;;  %v15866_v0 = vld [vmem:[#allocation12 + $0x30c] sm:$0xf] }
 0x197   :  { %v2495_v13 = vpop.f32.mrf.mxu2 }
 0x198   :  { %v2508_v14 = vpop.f32.mrf.mxu3  ;;  %v12093_v13 = vld [vmem:[#allocation12 + $0x320] sm:$0xf0]  ;;  %3523 = vmatpush.bf16.msra.mxu1 %v12092_v53  ;;  %v11968_v53 = vor.u32 %v15833_v6, %v11965_v7  ;;  %v12067_v6 = vld [vmem:[#allocation12 + $0x2c8] sm:$0xf] }
 0x1a7   :  { %v2519_v15 = vpop.f32.mrf.mxu0 }
 0x1a8   :  { %v2532_v16 = vpop.f32.mrf.mxu1 }
 0x1a9   :  { %v2533_v60 = vadd.f32 %v2532_v16, %v2519_v15 }
 0x1ab   :  { %v2675_v20 = vrot.slane %v2533_v60, 6  ;;  %v11803_v60 = vld [vmem:[#allocation12 + $0xc0] sm:$0xf] }
 0x1af   :  { %v2545_v17 = vpop.f32.mrf.mxu2  ;;  %v2521_v63 = vpop.f32.mrf.mxu0 }
 0x1b0   :  { %v2558_v19 = vpop.f32.mrf.mxu3  ;;  %v2534_v23 = vpop.f32.mrf.mxu1  ;;  %v15793_v63 = vld [vmem:[#allocation12 + $0xc4] sm:$0xf] }
 0x1b1   :  { %v2559_v21 = vadd.f32 %v2558_v19, %v2545_v17  ;;  %v15797_v17 = vld [vmem:[#allocation12 + $0xdc] sm:$0xf0] }
 0x1b2   :  { %v12059_v19 = vld [vmem:[#allocation12 + $0x2c0] sm:$0xf] }
 0x1b3   :  { %v2676_v22 = vrot.slane %v2559_v21, 5  ;;  %v15861_v21 = vld [vmem:[#allocation12 + $0x2dc] sm:$0xf0] }
 0x1b4   :  { %v12060_v23 = vor.u32 %v15861_v21, %v12059_v19  ;;  %v11941_v19 = vld [vmem:[#allocation12 + $0x1e8] sm:$0xf0] }
 0x1b5   :  { %v2684_v24 = vsel %vm2683_vm1, %v2675_v20, %v2676_v22  ;;  %v11804_v20 = vor.u32 %v15797_v17, %v11803_v60  ;;  %v11805_v22 = vld [vmem:[#allocation12 + $0xe0] sm:$0xf0]  ;;  %v15826_v17 = vld [vmem:[#allocation12 + $0x1cc] sm:$0xf] }
 0x1b6   :  { %v17256_v26 = vsel %vm2685_vm2, %v2682_v12, %v2684_v24  ;;  %v15865_v12 = vld [vmem:[#allocation12 + $0x304] sm:$0xf]  ;;  %v11808_v24 = vor.u32 %v15793_v63, %v11805_v22  ;;  %3524 = vmatpush.bf16.msra.mxu1 %v12060_v23  ;;  %v11944_v21 = vor.u32 %v15826_v17, %v11941_v19  ;;  %v12197_v63 = vld [vmem:[#allocation12 + $0x3e8] sm:$0xf0]  ;;  %v11907_v22 = vld [vmem:[#allocation12 + $0x188] sm:$0xf] }
 0x1b7   :  { %v2547_v30 = vpop.f32.mrf.mxu2  ;;  %v12096_v15 = vor.u32 %v15865_v12, %v12093_v13  ;;  %3511 = vmatpush.bf16.msra.mxu0 %v11804_v20  ;;  %v12195_v12 = vld [vmem:[#allocation12 + $0x3c8] sm:$0xf]  ;;  %v15890_v20 = vld [vmem:[#allocation12 + $0x3cc] sm:$0xf] }
 0x1b8   :  { %v2560_v35 = vpop.f32.mrf.mxu3  ;;  %v12064_v30 = vor.u32 %v15857_v27, %v12061_v28  ;;  %3537 = vmatpush.bf16.msra.mxu2 %v11808_v24  ;;  %v15894_v13 = vld [vmem:[#allocation12 + $0x3e4] sm:$0xf0]  ;;  %v12200_v24 = vor.u32 %v15890_v20, %v12197_v63 }
 0x1b9   :  { %3549 = vmatpush.bf16.msra.mxu3 %v12096_v15  ;;  %v11772_v35 = vor.u32 %v15789_v33, %v11771_v32  ;;  %v11940_v15 = vor.u32 %v15830_v11, %v11939_v10  ;;  %v12196_v60 = vor.u32 %v15894_v13, %v12195_v12  ;;  %v15822_v23 = vld [vmem:[#allocation12 + $0x1a4] sm:$0xf0]  ;;  %v15818_v32 = vld [vmem:[#allocation12 + $0x18c] sm:$0xf] }
 0x1ba   :  { %3525 = vmatpush.bf16.msra.mxu1 %v12028_v39  ;;  %v11908_v27 = vor.u32 %v15822_v23, %v11907_v22  ;;  %v12163_v28 = vld [vmem:[#allocation12 + $0x388] sm:$0xf]  ;;  %v11912_v37 = vor.u32 %v15818_v32, %v11909_v34  ;;  %v11813_v13 = vld [vmem:[#allocation12 + $0xe8] sm:$0xf0] }
 0x1bb   :  { %3512 = vmatpush.bf16.msra.mxu0 %v11772_v35  ;;  %v15882_v35 = vld [vmem:[#allocation12 + $0x38c] sm:$0xf]  ;;  %v11875_v39 = vld [vmem:[#allocation12 + $0x148] sm:$0xf] }
 0x1bc   :  { %3538 = vmatpush.bf16.msra.mxu2 %v11776_v45  ;;  %v11876_v43 = vor.u32 %v15814_v41, %v11875_v39  ;;  %v15810_v45 = vld [vmem:[#allocation12 + $0x14c] sm:$0xf]  ;;  %v15862_v10 = vld [vmem:[#allocation12 + $0x2e4] sm:$0xf0] }
 0x1bd   :  { %3550 = vmatpush.bf16.msra.mxu3 %v12064_v30  ;;  %v15886_v30 = vld [vmem:[#allocation12 + $0x3a4] sm:$0xf0]  ;;  %v12068_v12 = vor.u32 %v15862_v10, %v12067_v6  ;;  %v15834_v10 = vld [vmem:[#allocation12 + $0x20c] sm:$0xf] }
 0x1be   :  { %3526 = vmatpush.bf16.msra.mxu1 %v11996_v18  ;;  %v12164_v33 = vor.u32 %v15886_v30, %v12163_v28  ;;  %v15806_v18 = vld [vmem:[#allocation12 + $0x124] sm:$0xf0]  ;;  %v11781_v28 = vld [vmem:[#allocation12 + $0xa8] sm:$0xf0] }
 0x1bf   :  { %3513 = vmatpush.bf16.msra.mxu0 %v11740_v49  ;;  %v15874_v49 = vld [vmem:[#allocation12 + $0x34c] sm:$0xf]  ;;  %v11844_v55 = vor.u32 %v15806_v18, %v11843_v9  ;;  %v11779_v19 = vld [vmem:[#allocation12 + $0x88] sm:$0xf] }
 0x1c0   :  { %3539 = vmatpush.bf16.msra.mxu2 %v11744_v57  ;;  %v12136_v8 = vor.u32 %v15874_v49, %v12133_v50  ;;  %v15802_v57 = vld [vmem:[#allocation12 + $0x10c] sm:$0xf]  ;;  %v15790_v20 = vld [vmem:[#allocation12 + $0xa4] sm:$0xf0] }
 0x1c1   :  { %3551 = vmatpush.bf16.msra.mxu3 %v12032_v46  ;;  %v11877_v46 = vld [vmem:[#allocation12 + $0x168] sm:$0xf0]  ;;  %v11780_v23 = vor.u32 %v15790_v20, %v11779_v19  ;;  %v1687_v41 = vld [vmem:[#allocation3] ss:$8 sm:$0xf] }
 0x1c2   :  { %3527 = vmatpush.bf16.msra.mxu1 %v11964_v4  ;;  %v11880_v48 = vor.u32 %v15810_v45, %v11877_v46  ;;  %v11811_v4 = vld [vmem:[#allocation12 + $0xc8] sm:$0xf]  ;;  %v11749_v9 = vld [vmem:[#allocation12 + $0x68] sm:$0xf0] }
 0x1c3   :  { %3514 = vmatpush.bf16.msra.mxu0 %v11708_v1  ;;  %v12101_v1 = vld [vmem:[#allocation12 + $0x328] sm:$0xf0]  ;;  %v12003_v46 = vld [vmem:[#allocation12 + $0x248] sm:$0xf] }
 0x1c4   :  { %3540 = vmatpush.bf16.msra.mxu2 %v11712_v5  ;;  %v12104_v51 = vor.u32 %v15866_v0, %v12101_v1  ;;  %v15798_v5 = vld [vmem:[#allocation12 + $0xe4] sm:$0xf0]  ;;  %v15842_v18 = vld [vmem:[#allocation12 + $0x24c] sm:$0xf] }
 0x1c5   :  { %3552 = vmatpush.bf16.msra.mxu3 %v12000_v58  ;;  %v11845_v58 = vld [vmem:[#allocation12 + $0x128] sm:$0xf0]  ;;  %v11812_v7 = vor.u32 %v15798_v5, %v11811_v4  ;;  %v11971_v0 = vld [vmem:[#allocation12 + $0x208] sm:$0xf] }
 0x1c6   :  { %3572 = vmatpush.bf16.msrb.mxu1 %v12196_v60  ;;  %v11848_v62 = vor.u32 %v15802_v57, %v11845_v58  ;;  %v12069_v60 = vld [vmem:[#allocation12 + $0x2e8] sm:$0xf0] }
 0x1c7   :  { %v17258_v14 = vpop.f32.mrf.mxu0  ;;  %3559 = vmatpush.bf16.msrb.mxu0 %v11940_v15  ;;  %v15858_v15 = vld [vmem:[#allocation12 + $0x2cc] sm:$0xf] }
 0x1c8   :  { %v17260_v16 = vpop.f32.mrf.mxu1  ;;  %3585 = vmatpush.bf16.msrb.mxu2 %v11944_v21  ;;  %v12035_v21 = vld [vmem:[#allocation12 + $0x288] sm:$0xf]  ;;  %v15770_v4 = vld [vmem:[#allocation12 + $0xc] sm:$0xf] }
 0x1c9   :  { %3553 = vmatpush.bf16.msra.mxu3 %v11968_v53  ;;  %v2585_v2 = vadd.f32 %v17260_v16, %v17258_v14  ;;  %v15794_v53 = vld [vmem:[#allocation12 + $0xcc] sm:$0xf] }
 0x1ca   :  { %3573 = vmatpush.bf16.msrb.mxu1 %v12164_v33  ;;  %v11717_v5 = vld [vmem:[#allocation12 + $0x28] sm:$0xf0] }
 0x1cb   :  { %3560 = vmatpush.bf16.msrb.mxu0 %v11908_v27  ;;  %v2677_v14 = vrot.slane %v2585_v2, 4  ;;  %v15786_v27 = vld [vmem:[#allocation12 + $0x8c] sm:$0xf] }
 0x1cc   :  { %3586 = vmatpush.bf16.msrb.mxu2 %v11912_v37  ;;  %v12037_v37 = vld [vmem:[#allocation12 + $0x2a8] sm:$0xf0] }
 0x1cd   :  { %3598 = vmatpush.bf16.msrb.mxu3 %v12200_v24  ;;  %v15854_v24 = vld [vmem:[#allocation12 + $0x2a4] sm:$0xf0] }
 0x1ce   :  { %v12036_v34 = vor.u32 %v15854_v24, %v12035_v21 }
 0x1cf   :  { %v17262_v40 = vpop.f32.mrf.mxu2  ;;  %v2573_v38 = vpop.f32.mrf.mxu0  ;;  %3561 = vmatpush.bf16.msrb.mxu0 %v11876_v43  ;;  %v11747_v43 = vld [vmem:[#allocation12 + $0x48] sm:$0xf] }
 0x1d0   :  { %v17264_v31 = vpop.f32.mrf.mxu3  ;;  %v2586_v44 = vpop.f32.mrf.mxu1  ;;  %v12168_v38 = vor.u32 %v15882_v35, %v12165_v36  ;;  %3587 = vmatpush.bf16.msrb.mxu2 %v11880_v48  ;;  %v11784_v35 = vor.u32 %v15786_v27, %v11781_v28  ;;  %v15850_v36 = vld [vmem:[#allocation12 + $0x28c] sm:$0xf]  ;;  %v2722_v28 = vlaneseq }
 0x1d1   :  { %v15878_v44 = vld [vmem:[#allocation12 + $0x364] sm:$0xf0]  ;;  %v2611_v3 = vadd.f32 %v17264_v31, %v17262_v40  ;;  %v11816_v40 = vor.u32 %v15794_v53, %v11813_v13  ;;  %v12072_v31 = vor.u32 %v15858_v15, %v12069_v60  ;;  %v12040_v39 = vor.u32 %v15850_v36, %v12037_v37  ;;  %v15778_v48 = vld [vmem:[#allocation12 + $0x4c] sm:$0xf]  ;;  %v12203_v37 = vld [vmem:[#allocation12 + $0x3d0] sm:$0xf] }
 0x1d2   :  { %v12132_v47 = vor.u32 %v15878_v44, %v12131_v42  ;;  %3599 = vmatpush.bf16.msrb.mxu3 %v12168_v38  ;;  %v1688_v38 = vld [vmem:[#allocation3] ss:$8 sm:$0xf0]  ;;  %v11973_v53 = vld [vmem:[#allocation12 + $0x228] sm:$0xf0]  ;;  %vm17278_vm7 = vcmp.lt.s32.totalorder %v2722_v28, 256 }
 0x1d3   :  { %3562 = vmatpush.bf16.msrb.mxu0 %v11844_v55  ;;  %v2678_v16 = vrot.slane %v2611_v3, 3  ;;  %v15782_v44 = vld [vmem:[#allocation12 + $0x64] sm:$0xf0]  ;;  %v15795_v28 = vld [vmem:[#allocation12 + $0xd4] sm:$0xf] }
 0x1d4   :  { %3574 = vmatpush.bf16.msrb.mxu1 %v12132_v47  ;;  %3588 = vmatpush.bf16.msrb.mxu2 %v11848_v62  ;;  %v11748_v45 = vor.u32 %v15782_v44, %v11747_v43  ;;  %v15846_v47 = vld [vmem:[#allocation12 + $0x264] sm:$0xf0]  ;;  %v12205_v43 = vld [vmem:[#allocation12 + $0x3f0] sm:$0xf0] }
 0x1d5   :  { %v2688_v49 = vsel %vm2687_vm3, %v2677_v14, %v2678_v16  ;;  %v15774_v62 = vld [vmem:[#allocation12 + $0x24] sm:$0xf0] }
 0x1d6   :  { %3600 = vmatpush.bf16.msrb.mxu3 %v12136_v8  ;;  %v12004_v8 = vor.u32 %v15846_v47, %v12003_v46 }
 0x1d7   :  { %v2599_v56 = vpop.f32.mrf.mxu2  ;;  %3563 = vmatpush.bf16.msrb.mxu0 %v11812_v7  ;;  %v11720_v7 = vor.u32 %v15770_v4, %v11717_v5  ;;  %v15811_v4 = vld [vmem:[#allocation12 + $0x154] sm:$0xf] }
 0x1d8   :  { %v2612_v59 = vpop.f32.mrf.mxu3  ;;  %v15870_v56 = vld [vmem:[#allocation12 + $0x324] sm:$0xf0]  ;;  %3589 = vmatpush.bf16.msrb.mxu2 %v11816_v40  ;;  %v11885_v5 = vld [vmem:[#allocation12 + $0x170] sm:$0xf0] }
 0x1d9   :  { %v12100_v61 = vor.u32 %v15870_v56, %v12099_v54  ;;  %v12005_v54 = vld [vmem:[#allocation12 + $0x268] sm:$0xf0]  ;;  %v11752_v56 = vor.u32 %v15778_v48, %v11749_v9 }
 0x1da   :  { %3601 = vmatpush.bf16.msrb.mxu3 %v12104_v51  ;;  %v12008_v57 = vor.u32 %v15842_v18, %v12005_v54  ;;  %v15838_v51 = vld [vmem:[#allocation12 + $0x224] sm:$0xf0]  ;;  %v12171_v54 = vld [vmem:[#allocation12 + $0x390] sm:$0xf] }
 0x1db   :  { %3575 = vmatpush.bf16.msrb.mxu1 %v12100_v61  ;;  %3564 = vmatpush.bf16.msrb.mxu0 %v11780_v23  ;;  %v11715_v61 = vld [vmem:[#allocation12 + $0x8] sm:$0xf]  ;;  %v11972_v6 = vor.u32 %v15838_v51, %v11971_v0  ;;  %v15815_v0 = vld [vmem:[#allocation12 + $0x16c] sm:$0xf0] }
 0x1dc   :  { %3590 = vmatpush.bf16.msrb.mxu2 %v11784_v35  ;;  %v11716_v3 = vor.u32 %v15774_v62, %v11715_v61  ;;  %v15831_v35 = vld [vmem:[#allocation12 + $0x1ec] sm:$0xf0] }
 0x1dd   :  { %v11883_v62 = vld [vmem:[#allocation12 + $0x150] sm:$0xf] }
 0x1de   :  { %3602 = vmatpush.bf16.msrb.mxu3 %v12072_v31  ;;  %v15879_v51 = vld [vmem:[#allocation12 + $0x36c] sm:$0xf0] }
 0x1df   :  { %3576 = vmatpush.bf16.msrb.mxu1 %v12068_v12  ;;  %3565 = vmatpush.bf16.msrb.mxu0 %v11748_v45 }
 0x1e0   :  { %3591 = vmatpush.bf16.msrb.mxu2 %v11752_v56  ;;  %v11917_v56 = vld [vmem:[#allocation12 + $0x1b0] sm:$0xf0] }
 0x1e2   :  { %3603 = vmatpush.bf16.msrb.mxu3 %v12040_v39  ;;  %v15827_v39 = vld [vmem:[#allocation12 + $0x1d4] sm:$0xf] }
 0x1e3   :  { %3577 = vmatpush.bf16.msrb.mxu1 %v12036_v34  ;;  %3566 = vmatpush.bf16.msrb.mxu0 %v11716_v3  ;;  %v11947_v34 = vld [vmem:[#allocation12 + $0x1d0] sm:$0xf] }
 0x1e4   :  { %3592 = vmatpush.bf16.msrb.mxu2 %v11720_v7  ;;  %v11948_v48 = vor.u32 %v15831_v35, %v11947_v34  ;;  %v12139_v3 = vld [vmem:[#allocation12 + $0x350] sm:$0xf]  ;;  %v12141_v7 = vld [vmem:[#allocation12 + $0x370] sm:$0xf0] }
 0x1e5   :  { %v12077_v34 = vld [vmem:[#allocation12 + $0x2f0] sm:$0xf0] }
 0x1e6   :  { %3604 = vmatpush.bf16.msrb.mxu3 %v12008_v57  ;;  %v15883_v57 = vld [vmem:[#allocation12 + $0x394] sm:$0xf] }
 0x1e7   :  { %v2623_v25 = vpop.f32.mrf.mxu0  ;;  %3578 = vmatpush.bf16.msrb.mxu1 %v12004_v8  ;;  %v15823_v8 = vld [vmem:[#allocation12 + $0x1ac] sm:$0xf0] }
 0x1e8   :  { %v2636_v59 = vpop.f32.mrf.mxu1 }
 0x1e9   :  { %v2637_v11 = vadd.f32 %v2636_v59, %v2623_v25  ;;  %v1689_v25 = vor.u32 %v1688_v38, %v1687_v41  ;;  %v15895_v38 = vld [vmem:[#allocation12 + $0x3ec] sm:$0xf0]  ;;  %v11949_v41 = vld [vmem:[#allocation12 + $0x1f0] sm:$0xf0] }
 0x1ea   :  { %v11952_v9 = vor.u32 %v15827_v39, %v11949_v41 }
 0x1eb   :  { %v2679_v30 = vrot.slane %v2637_v11, 2  ;;  %3579 = vmatpush.bf16.msrb.mxu1 %v11972_v6  ;;  %v15875_v6 = vld [vmem:[#allocation12 + $0x354] sm:$0xf] }
 0x1ef   :  { %v2649_v17 = vpop.f32.mrf.mxu2  ;;  %v2625_v22 = vpop.f32.mrf.mxu0 }
 0x1f0   :  { %v2662_v63 = vpop.f32.mrf.mxu3  ;;  %v2638_v33 = vpop.f32.mrf.mxu1 }
 0x1f1   :  { %v2663_v32 = vadd.f32 %v2662_v63, %v2649_v17  ;;  %v16722_v33 = vld [vmem:[%s17769_s9] ss:$0 sm:$0xff] }
 0x1f3   :  { %v2680_v42 = vrot.slane %v2663_v32, 1 }
 0x1f5   :  { %v2690_v50 = vsel %vm2689_vm4, %v2679_v30, %v2680_v42  ;;  %v15891_v42 = vld [vmem:[#allocation12 + $0x3d4] sm:$0xf] }
 0x1f6   :  { %v2692_v55 = vsel %vm2691_vm5, %v2688_v49, %v2690_v50  ;;  %v12204_v49 = vor.u32 %v15895_v38, %v12203_v37  ;;  %v11915_v50 = vld [vmem:[#allocation12 + $0x190] sm:$0xf]  ;;  %v12208_v18 = vor.u32 %v15891_v42, %v12205_v43 }
 0x1f7   :  { %v2694_v58 = vsel %vm2693_vm6, %v17256_v26, %v2692_v55  ;;  %v2651_v59 = vpop.f32.mrf.mxu2  ;;  %v11976_v26 = vor.u32 %v15834_v10, %v11973_v53  ;;  %v15819_v55 = vld [vmem:[#allocation12 + $0x194] sm:$0xf]  ;;  %v11884_v10 = vor.u32 %v15815_v0, %v11883_v62  ;;  %v12140_v53 = vor.u32 %v15879_v51, %v12139_v3  ;;  %v11787_v37 = vld [vmem:[#allocation12 + $0x90] sm:$0xf] }
 0x1f8   :  { %v2696_v1 = vadd.f32 %v2694_v58, %v1689_v25  ;;  %v2664_v2 = vpop.f32.mrf.mxu3  ;;  %v15887_v25 = vld [vmem:[#allocation12 + $0x3ac] sm:$0xf0]  ;;  %v12173_v58 = vld [vmem:[#allocation12 + $0x3b0] sm:$0xf0]  ;;  %v11916_v59 = vor.u32 %v15823_v8, %v11915_v50 }
 0x1f9   :  { %3605 = vmatpush.bf16.msrb.mxu3 %v11976_v26  ;;  %v12172_v61 = vor.u32 %v15887_v25, %v12171_v54  ;;  %v12176_v2 = vor.u32 %v15883_v57, %v12173_v58  ;;  %v11888_v26 = vor.u32 %v15811_v4, %v11885_v5  ;;  %v15791_v38 = vld [vmem:[#allocation12 + $0xac] sm:$0xf0]  ;;  %v15779_v57 = vld [vmem:[#allocation12 + $0x54] sm:$0xf] }
 0x1fa   :  { %v2697_v11 = vmul.f32 0.5, %v2696_v1  ;;  %v2702_v12 = vrot.slane %v2696_v1, 2  ;;  %v2711_v15 = vrot.slane %v2696_v1, 6  ;;  %v2708_v60 = vrot.slane %v2696_v1, 4  ;;  %v12043_v42 = vld [vmem:[#allocation12 + $0x290] sm:$0xf] }
 0x1fb   :  { %v11920_v1 = vor.u32 %v15819_v55, %v11917_v56  ;;  %v15855_v43 = vld [vmem:[#allocation12 + $0x2ac] sm:$0xf0]  ;;  %v11788_v50 = vor.u32 %v15791_v38, %v11787_v37  ;;  %v11757_v58 = vld [vmem:[#allocation12 + $0x70] sm:$0xf0] }
 0x1fc   :  { %16724 = vtanh.f32 %v2697_v11  ;;  %v2704_v13 = vmul.f32 0.5, %v2702_v12  ;;  %v2713_v14 = vmul.f32 0.5, %v2711_v15  ;;  %v11851_v11 = vld [vmem:[#allocation12 + $0x110] sm:$0xf]  ;;  %v12044_v8 = vor.u32 %v15855_v43, %v12043_v42 }
 0x1fd   :  { %v15807_v12 = vld [vmem:[#allocation12 + $0x12c] sm:$0xf0]  ;;  %v11760_v4 = vor.u32 %v15779_v57, %v11757_v58  ;;  %v12115_v57 = vld [vmem:[#allocation12 + $0x318] sm:$0xf] }
 0x1fe   :  { %16726 = vtanh.f32 %v2704_v13  ;;  %v12144_v13 = vor.u32 %v15875_v6, %v12141_v7  ;;  %v12107_v15 = vld [vmem:[#allocation12 + $0x310] sm:$0xf]  ;;  %v15771_v6 = vld [vmem:[#allocation12 + $0x14] sm:$0xf]  ;;  %v15872_v58 = vld [vmem:[#allocation12 + $0x334] sm:$0xf0] }
 0x1ff   :  { %16728 = vtanh.f32 %v2708_v60  ;;  %v15871_v60 = vld [vmem:[#allocation12 + $0x32c] sm:$0xf0]  ;;  %v11725_v7 = vld [vmem:[#allocation12 + $0x30] sm:$0xf0] }
 0x200   :  { %16730 = vtanh.f32 %v2713_v14  ;;  %v15803_v14 = vld [vmem:[#allocation12 + $0x114] sm:$0xf]  ;;  %v12011_v55 = vld [vmem:[#allocation12 + $0x250] sm:$0xf] }
 0x201   :  { %v15847_v56 = vld [vmem:[#allocation12 + $0x26c] sm:$0xf0] }
 0x202   :  { %v16725_v16 = vpop.eup %16724  ;;  %v11723_v62 = vld [vmem:[#allocation12 + $0x10] sm:$0xf] }
 0x203   :  { %v2699_v40 = vmul.f32 0.5, %v16725_v16  ;;  %v11853_v16 = vld [vmem:[#allocation12 + $0x130] sm:$0xf0]  ;;  %v11979_v3 = vld [vmem:[#allocation12 + $0x210] sm:$0xf] }
 0x204   :  { %v16727_v31 = vpop.eup %16726  ;;  %v15839_v51 = vld [vmem:[#allocation12 + $0x22c] sm:$0xf0] }
 0x205   :  { %v2700_v17 = vadd.f32 0.5, %v2699_v40  ;;  %v2706_v19 = vmul.f32 0.5, %v16727_v31  ;;  %v16729_v21 = vpop.eup %16728  ;;  %v15867_v40 = vld [vmem:[#allocation12 + $0x314] sm:$0xf] }
 0x206   :  { %v16731_v23 = vpop.eup %16730  ;;  %v12109_v31 = vld [vmem:[#allocation12 + $0x330] sm:$0xf0] }
 0x207   :  { %v2707_v20 = vadd.f32 0.5, %v2706_v19  ;;  %v2718_v22 = vmul.f32 %v16729_v21, %v2700_v17  ;;  %v2715_v27 = vmul.f32 0.5, %v16731_v23  ;;  %v11852_v17 = vor.u32 %v15807_v12, %v11851_v11  ;;  %v15799_v21 = vld [vmem:[#allocation12 + $0xec] sm:$0xf0]  ;;  %v11955_v11 = vld [vmem:[#allocation12 + $0x1d8] sm:$0xf] }
 0x208   :  { %v12108_v19 = vor.u32 %v15871_v60, %v12107_v15  ;;  %v12075_v23 = vld [vmem:[#allocation12 + $0x2d0] sm:$0xf]  ;;  %v15832_v12 = vld [vmem:[#allocation12 + $0x1f4] sm:$0xf0]  ;;  %v15828_v15 = vld [vmem:[#allocation12 + $0x1dc] sm:$0xf] }
 0x209   :  { %v2717_v63 = vmul.f32 0.0, %v2707_v20  ;;  %v2716_v30 = vadd.f32 0.5, %v2715_v27  ;;  %v11819_v20 = vld [vmem:[#allocation12 + $0xd0] sm:$0xf] }
 0x20a   :  { %v15863_v27 = vld [vmem:[#allocation12 + $0x2ec] sm:$0xf0]  ;;  %v11820_v35 = vor.u32 %v15799_v21, %v11819_v20  ;;  %v11956_v20 = vor.u32 %v15832_v12, %v11955_v11  ;;  %v15860_v11 = vld [vmem:[#allocation12 + $0x2dc] sm:$0xf] }
 0x20b   :  { %v17275_v24 = vadd.f32 %v2718_v22, %v2717_v63  ;;  %v11856_v63 = vor.u32 %v15803_v14, %v11853_v16  ;;  %v12112_v22 = vor.u32 %v15867_v40, %v12109_v31  ;;  %v11980_v14 = vor.u32 %v15839_v51, %v11979_v3  ;;  %v11957_v16 = vld [vmem:[#allocation12 + $0x1f8] sm:$0xf0]  ;;  %v11827_v3 = vld [vmem:[#allocation12 + $0xd8] sm:$0xf] }
 0x20c   :  { %v15892_v40 = vld [vmem:[#allocation12 + $0x3dc] sm:$0xf]  ;;  %v15800_v51 = vld [vmem:[#allocation12 + $0xf4] sm:$0xf0] }
 0x20d   :  { %16732 = vtanh.f32 %v17275_v24  ;;  %v12213_v31 = vld [vmem:[#allocation12 + $0x3f8] sm:$0xf0] }
 0x20e   :  { %v12085_v12 = vld [vmem:[#allocation12 + $0x2f8] sm:$0xf0] }
 0x213   :  { %v16733_v32 = vpop.eup %16732 }
 0x214   :  { %v2721_v36 = vmul.f32 %v16733_v32, %v2716_v30  ;;  %v11821_v30 = vld [vmem:[#allocation12 + $0xf0] sm:$0xf0] }
 0x215   :  { %v15859_v32 = vld [vmem:[#allocation12 + $0x2d4] sm:$0xf]  ;;  %v11824_v39 = vor.u32 %v15795_v28, %v11821_v30  ;;  %v12179_v28 = vld [vmem:[#allocation12 + $0x398] sm:$0xf] }
 0x216   :  { %2726 = vst.msk [vmem:[#allocation2] ss:$8 sm:$0x3] %vm17278_vm7, %v2721_v36  ;;  %v2733_v44 = vperm.slane %v2721_v36, 0  ;;  %v2734_v45 = vperm.slane %v2721_v36, 1  ;;  %v12076_v36 = vor.u32 %v15863_v27, %v12075_v23  ;;  %v12080_v41 = vor.u32 %v15859_v32, %v12077_v34 }
 0x217   :  { %v11960_v23 = vor.u32 %v15828_v15, %v11957_v16  ;;  %v12216_v27 = vor.u32 %v15892_v40, %v12213_v31  ;;  %v15888_v30 = vld [vmem:[#allocation12 + $0x3b4] sm:$0xf0]  ;;  %v15820_v32 = vld [vmem:[#allocation12 + $0x19c] sm:$0xf]  ;;  %v12088_v16 = vor.u32 %v15860_v11, %v12085_v12 }
 0x218   :  { %v17284_v46 = vpack.c.bf16 %v2733_v44, %v2733_v44  ;;  %v17286_v47 = vpack.c.bf16 %v2734_v45, %v2734_v45  ;;  %v15787_v44 = vld [vmem:[#allocation12 + $0x94] sm:$0xf]  ;;  %v11925_v34 = vld [vmem:[#allocation12 + $0x1b8] sm:$0xf0]  ;;  %v12180_v38 = vor.u32 %v15888_v30, %v12179_v28  ;;  %v11795_v15 = vld [vmem:[#allocation12 + $0x98] sm:$0xf] }
 0x219   :  { %v11789_v45 = vld [vmem:[#allocation12 + $0xb0] sm:$0xf0]  ;;  %v11928_v42 = vor.u32 %v15820_v32, %v11925_v34  ;;  %v12051_v40 = vld [vmem:[#allocation12 + $0x298] sm:$0xf] }
 0x21a   :  { %3515 = vmatmul.bf16.vlgmr.msra.gmra.mxu0 %v17284_v46  ;;  %3528 = vmatmul.bf16.vlgmr.msra.gmra.mxu1 %v17286_v47  ;;  %v11792_v54 = vor.u32 %v15787_v44, %v11789_v45  ;;  %v12147_v44 = vld [vmem:[#allocation12 + $0x358] sm:$0xf] }
 0x21b   :  { %3541 = vmatmul.bf16.vlgmr.msra.gmra.mxu2 %v17284_v46  ;;  %3554 = vmatmul.bf16.vlgmr.msra.gmra.mxu3 %v17286_v47  ;;  %v15880_v45 = vld [vmem:[#allocation12 + $0x374] sm:$0xf0] }
 0x21c   :  { %3611 = vmatpush.bf16.msra.mxu0 %v11948_v48  ;;  %3624 = vmatpush.bf16.msra.mxu1 %v12204_v49  ;;  %v15851_v48 = vld [vmem:[#allocation12 + $0x294] sm:$0xf]  ;;  %v15856_v31 = vld [vmem:[#allocation12 + $0x2b4] sm:$0xf0] }
 0x21d   :  { %3637 = vmatpush.bf16.msra.mxu2 %v11952_v9  ;;  %3650 = vmatpush.bf16.msra.mxu3 %v12208_v18  ;;  %v12045_v49 = vld [vmem:[#allocation12 + $0x2b0] sm:$0xf0]  ;;  %v11755_v9 = vld [vmem:[#allocation12 + $0x50] sm:$0xf]  ;;  %v12019_v32 = vld [vmem:[#allocation12 + $0x258] sm:$0xf] }
 0x21e   :  { %v15783_v18 = vld [vmem:[#allocation12 + $0x6c] sm:$0xf0]  ;;  %v12048_v25 = vor.u32 %v15851_v48, %v12045_v49  ;;  %v15812_v48 = vld [vmem:[#allocation12 + $0x15c] sm:$0xf]  ;;  %v15848_v34 = vld [vmem:[#allocation12 + $0x274] sm:$0xf0] }
 0x21f   :  { %v11756_v0 = vor.u32 %v15783_v18, %v11755_v9  ;;  %v11893_v49 = vld [vmem:[#allocation12 + $0x178] sm:$0xf0]  ;;  %v12148_v18 = vor.u32 %v15880_v45, %v12147_v44 }
 0x220   :  { %3612 = vmatpush.bf16.msra.mxu0 %v11916_v59  ;;  %3625 = vmatpush.bf16.msra.mxu1 %v12172_v61  ;;  %v15843_v59 = vld [vmem:[#allocation12 + $0x254] sm:$0xf] }
 0x221   :  { %3638 = vmatpush.bf16.msra.mxu2 %v11920_v1  ;;  %3651 = vmatpush.bf16.msra.mxu3 %v12176_v2  ;;  %v12013_v61 = vld [vmem:[#allocation12 + $0x270] sm:$0xf0]  ;;  %v12012_v1 = vor.u32 %v15847_v56, %v12011_v55  ;;  %v15775_v2 = vld [vmem:[#allocation12 + $0x2c] sm:$0xf0]  ;;  %v11896_v55 = vor.u32 %v15812_v48, %v11893_v49  ;;  %v11987_v48 = vld [vmem:[#allocation12 + $0x218] sm:$0xf] }
 0x222   :  { %v12016_v5 = vor.u32 %v15843_v59, %v12013_v61  ;;  %v11724_v60 = vor.u32 %v15775_v2, %v11723_v62  ;;  %v15804_v59 = vld [vmem:[#allocation12 + $0x11c] sm:$0xf]  ;;  %v12116_v2 = vor.u32 %v15872_v58, %v12115_v57  ;;  %v15840_v49 = vld [vmem:[#allocation12 + $0x234] sm:$0xf0] }
 0x223   :  { %v11861_v61 = vld [vmem:[#allocation12 + $0x138] sm:$0xf0] }
 0x224   :  { %3613 = vmatpush.bf16.msra.mxu0 %v11884_v10  ;;  %3626 = vmatpush.bf16.msra.mxu1 %v12140_v53  ;;  %v15835_v10 = vld [vmem:[#allocation12 + $0x214] sm:$0xf]  ;;  %v15868_v62 = vld [vmem:[#allocation12 + $0x31c] sm:$0xf] }
 0x225   :  { %3639 = vmatpush.bf16.msra.mxu2 %v11888_v26  ;;  %3652 = vmatpush.bf16.msra.mxu3 %v12144_v13  ;;  %v11981_v53 = vld [vmem:[#allocation12 + $0x230] sm:$0xf0]  ;;  %v12211_v26 = vld [vmem:[#allocation12 + $0x3d8] sm:$0xf] }
 0x226   :  { %v15896_v13 = vld [vmem:[#allocation12 + $0x3f4] sm:$0xf0] }
 0x227   :  { %v12212_v21 = vor.u32 %v15896_v13, %v12211_v26  ;;  %v11828_v26 = vor.u32 %v15800_v51, %v11827_v3 }
 0x228   :  { %3614 = vmatpush.bf16.msra.mxu0 %v11852_v17  ;;  %3627 = vmatpush.bf16.msra.mxu1 %v12108_v19  ;;  %v11728_v17 = vor.u32 %v15771_v6, %v11725_v7  ;;  %v11984_v19 = vor.u32 %v15835_v10, %v11981_v53  ;;  %v12083_v6 = vld [vmem:[#allocation12 + $0x2d8] sm:$0xf]  ;;  %v15796_v10 = vld [vmem:[#allocation12 + $0xdc] sm:$0xf] }
 0x229   :  { %3640 = vmatpush.bf16.msra.mxu2 %v11856_v63  ;;  %3653 = vmatpush.bf16.msra.mxu3 %v12112_v22  ;;  %v11923_v63 = vld [vmem:[#allocation12 + $0x198] sm:$0xf]  ;;  %v11829_v53 = vld [vmem:[#allocation12 + $0xf8] sm:$0xf0] }
 0x22a   :  { %3567 = vmatmul.bf16.vlgmr.msrb.gmra.mxu0 %v17284_v46  ;;  %3580 = vmatmul.bf16.vlgmr.msrb.gmra.mxu1 %v17286_v47  ;;  %v15824_v22 = vld [vmem:[#allocation12 + $0x1b4] sm:$0xf0] }
 0x22b   :  { %3593 = vmatmul.bf16.vlgmr.msrb.gmra.mxu2 %v17284_v46  ;;  %3606 = vmatmul.bf16.vlgmr.msrb.gmra.mxu3 %v17286_v47  ;;  %v11924_v37 = vor.u32 %v15824_v22, %v11923_v63  ;;  %v15864_v7 = vld [vmem:[#allocation12 + $0x2f4] sm:$0xf0]  ;;  %v12052_v22 = vor.u32 %v15856_v31, %v12051_v40  ;;  %v16013_v31 = vld [vmem:[#allocation12 + $0x39c] sm:$0xf0] }
 0x22c   :  { %3615 = vmatpush.bf16.msra.mxu0 %v11820_v35  ;;  %3628 = vmatpush.bf16.msra.mxu1 %v12076_v36  ;;  %v15884_v35 = vld [vmem:[#allocation12 + $0x39c] sm:$0xf]  ;;  %v12084_v13 = vor.u32 %v15864_v7, %v12083_v6  ;;  %v12699_v6 = vld [vmem:[#allocation12 + $0x3c0] sm:$0xf] }
 0x22d   :  { %3641 = vmatpush.bf16.msra.mxu2 %v11824_v39  ;;  %3654 = vmatpush.bf16.msra.mxu3 %v12080_v41  ;;  %v12181_v36 = vld [vmem:[#allocation12 + $0x3b8] sm:$0xf0]  ;;  %v11891_v39 = vld [vmem:[#allocation12 + $0x158] sm:$0xf]  ;;  %v16021_v7 = vld [vmem:[#allocation12 + $0x3dc] sm:$0xf0] }
 0x22e   :  { %v15816_v41 = vld [vmem:[#allocation12 + $0x174] sm:$0xf0]  ;;  %v12184_v43 = vor.u32 %v15884_v35, %v12181_v36  ;;  %v15780_v35 = vld [vmem:[#allocation12 + $0x5c] sm:$0xf]  ;;  %v12700_v11 = vor.u32 %v16021_v7, %v12699_v6  ;;  %v15925_v6 = vld [vmem:[#allocation12 + $0xdc] sm:$0xf0] }
 0x22f   :  { %v11892_v9 = vor.u32 %v15816_v41, %v11891_v39  ;;  %v11765_v36 = vld [vmem:[#allocation12 + $0x78] sm:$0xf0]  ;;  %v12020_v41 = vor.u32 %v15848_v34, %v12019_v32  ;;  %v15941_v32 = vld [vmem:[#allocation12 + $0x15c] sm:$0xf0] }
 0x230   :  { %3616 = vmatpush.bf16.msra.mxu0 %v11788_v50  ;;  %3629 = vmatpush.bf16.msra.mxu1 %v12044_v8  ;;  %v15876_v50 = vld [vmem:[#allocation12 + $0x35c] sm:$0xf]  ;;  %v11768_v44 = vor.u32 %v15780_v35, %v11765_v36  ;;  %v12635_v34 = vld [vmem:[#allocation12 + $0x340] sm:$0xf] }
 0x231   :  { %3642 = vmatpush.bf16.msra.mxu2 %v11792_v54  ;;  %3655 = vmatpush.bf16.msra.mxu3 %v12048_v25  ;;  %v12149_v8 = vld [vmem:[#allocation12 + $0x378] sm:$0xf0]  ;;  %v11859_v54 = vld [vmem:[#allocation12 + $0x118] sm:$0xf]  ;;  %v16005_v35 = vld [vmem:[#allocation12 + $0x35c] sm:$0xf0] }
 0x232   :  { %v15808_v25 = vld [vmem:[#allocation12 + $0x134] sm:$0xf0]  ;;  %v12152_v56 = vor.u32 %v15876_v50, %v12149_v8  ;;  %v15772_v50 = vld [vmem:[#allocation12 + $0x1c] sm:$0xf] }
 0x233   :  { %v11733_v8 = vld [vmem:[#allocation12 + $0x38] sm:$0xf0] }
 0x234   :  { %3617 = vmatpush.bf16.msra.mxu0 %v11756_v0  ;;  %3630 = vmatpush.bf16.msra.mxu1 %v12012_v1  ;;  %v12117_v0 = vld [vmem:[#allocation12 + $0x338] sm:$0xf0]  ;;  %v11860_v1 = vor.u32 %v15808_v25, %v11859_v54  ;;  %v11988_v25 = vor.u32 %v15840_v49, %v11987_v48 }
 0x235   :  { %3643 = vmatpush.bf16.msra.mxu2 %v11760_v4  ;;  %3656 = vmatpush.bf16.msra.mxu3 %v12016_v5  ;;  %v11864_v4 = vor.u32 %v15804_v59, %v11861_v61  ;;  %v12120_v5 = vor.u32 %v15868_v62, %v12117_v0 }
 0x238   :  { %3618 = vmatpush.bf16.msra.mxu0 %v11724_v60  ;;  %3631 = vmatpush.bf16.msra.mxu1 %v11980_v14  ;;  %v15792_v60 = vld [vmem:[#allocation12 + $0xb4] sm:$0xf0]  ;;  %v11832_v14 = vor.u32 %v15796_v10, %v11829_v53  ;;  %v15953_v10 = vld [vmem:[#allocation12 + $0x1c4] sm:$0xf] }
 0x239   :  { %3644 = vmatpush.bf16.msra.mxu2 %v11728_v17  ;;  %3657 = vmatpush.bf16.msra.mxu3 %v11984_v19  ;;  %v15788_v17 = vld [vmem:[#allocation12 + $0x9c] sm:$0xf]  ;;  %v11796_v63 = vor.u32 %v15792_v60, %v11795_v15  ;;  %v12445_v53 = vld [vmem:[#allocation12 + $0x1e0] sm:$0xf0]  ;;  %v12411_v60 = vld [vmem:[#allocation12 + $0x180] sm:$0xf] }
 0x23a   :  { %v11797_v19 = vld [vmem:[#allocation12 + $0xb8] sm:$0xf0]  ;;  %v12448_v12 = vor.u32 %v15953_v10, %v12445_v53  ;;  %v15989_v10 = vld [vmem:[#allocation12 + $0x2dc] sm:$0xf0]  ;;  %v15921_v53 = vld [vmem:[#allocation12 + $0xc4] sm:$0xf] }
 0x23b   :  { %3619 = vmatmul.bf16.vlgmr.msra.gmra.mxu0 %v17284_v46  ;;  %3632 = vmatmul.bf16.vlgmr.msra.gmra.mxu1 %v17286_v47  ;;  %v11800_v28 = vor.u32 %v15788_v17, %v11797_v19  ;;  %v15945_v17 = vld [vmem:[#allocation12 + $0x184] sm:$0xf] }
 0x23c   :  { %3663 = vmatpush.bf16.msrb.mxu0 %v11956_v20  ;;  %3676 = vmatpush.bf16.msrb.mxu1 %v12212_v21  ;;  %v15852_v20 = vld [vmem:[#allocation12 + $0x29c] sm:$0xf]  ;;  %v12413_v19 = vld [vmem:[#allocation12 + $0x1a0] sm:$0xf0] }
 0x23d   :  { %3689 = vmatpush.bf16.msrb.mxu2 %v11960_v23  ;;  %3702 = vmatpush.bf16.msrb.mxu3 %v12216_v27  ;;  %v12053_v21 = vld [vmem:[#allocation12 + $0x2b8] sm:$0xf0]  ;;  %v11763_v23 = vld [vmem:[#allocation12 + $0x58] sm:$0xf] }
 0x23e   :  { %3645 = vmatmul.bf16.vlgmr.msra.gmra.mxu2 %v17284_v46  ;;  %3658 = vmatmul.bf16.vlgmr.msra.gmra.mxu3 %v17286_v47  ;;  %v15784_v27 = vld [vmem:[#allocation12 + $0x74] sm:$0xf0]  ;;  %v12056_v30 = vor.u32 %v15852_v20, %v12053_v21  ;;  %v12416_v21 = vor.u32 %v15945_v17, %v12413_v19 }
 0x23f   :  { %v11764_v39 = vor.u32 %v15784_v27, %v11763_v23  ;;  %v12379_v23 = vld [vmem:[#allocation12 + $0x140] sm:$0xf] }
 0x240   :  { %3664 = vmatpush.bf16.msrb.mxu0 %v11924_v37  ;;  %3677 = vmatpush.bf16.msrb.mxu1 %v12180_v38  ;;  %v15844_v37 = vld [vmem:[#allocation12 + $0x25c] sm:$0xf] }
 0x241   :  { %3690 = vmatpush.bf16.msrb.mxu2 %v11928_v42  ;;  %3703 = vmatpush.bf16.msrb.mxu3 %v12184_v43  ;;  %v12021_v38 = vld [vmem:[#allocation12 + $0x278] sm:$0xf0]  ;;  %v11731_v42 = vld [vmem:[#allocation12 + $0x18] sm:$0xf] }
 0x242   :  { %v15776_v43 = vld [vmem:[#allocation12 + $0x34] sm:$0xf0]  ;;  %v12024_v45 = vor.u32 %v15844_v37, %v12021_v38  ;;  %v12380_v38 = vor.u32 %v15941_v32, %v12379_v23 }
 0x243   :  { %v11732_v54 = vor.u32 %v15776_v43, %v11731_v42  ;;  %v16001_v42 = vld [vmem:[#allocation12 + $0x344] sm:$0xf]  ;;  %v12636_v43 = vor.u32 %v16005_v35, %v12635_v34 }
 0x244   :  { %3665 = vmatpush.bf16.msrb.mxu0 %v11892_v9  ;;  %3678 = vmatpush.bf16.msrb.mxu1 %v12148_v18  ;;  %v15836_v9 = vld [vmem:[#allocation12 + $0x21c] sm:$0xf]  ;;  %v15977_v34 = vld [vmem:[#allocation12 + $0x284] sm:$0xf] }
 0x245   :  { %3691 = vmatpush.bf16.msrb.mxu2 %v11896_v55  ;;  %3704 = vmatpush.bf16.msrb.mxu3 %v12152_v56  ;;  %v11989_v18 = vld [vmem:[#allocation12 + $0x238] sm:$0xf0]  ;;  %v11736_v55 = vor.u32 %v15772_v50, %v11733_v8  ;;  %v12347_v8 = vld [vmem:[#allocation12 + $0x100] sm:$0xf]  ;;  %v12541_v35 = vld [vmem:[#allocation12 + $0x2a0] sm:$0xf0] }
 0x246   :  { %v11992_v56 = vor.u32 %v15836_v9, %v11989_v18  ;;  %v15933_v9 = vld [vmem:[#allocation12 + $0x11c] sm:$0xf0] }
 0x247   :  { %v12603_v18 = vld [vmem:[#allocation12 + $0x300] sm:$0xf] }
 0x248   :  { %3666 = vmatpush.bf16.msrb.mxu0 %v11860_v1  ;;  %3679 = vmatpush.bf16.msrb.mxu1 %v12116_v2 }
 0x249   :  { %3692 = vmatpush.bf16.msrb.mxu2 %v11864_v4  ;;  %3705 = vmatpush.bf16.msrb.mxu3 %v12120_v5  ;;  %v12443_v5 = vld [vmem:[#allocation12 + $0x1c0] sm:$0xf] }
 0x24c   :  { %3667 = vmatpush.bf16.msrb.mxu0 %v11828_v26  ;;  %3680 = vmatpush.bf16.msrb.mxu1 %v12084_v13  ;;  %v16017_v26 = vld [vmem:[#allocation12 + $0x3c4] sm:$0xf] }
 0x24d   :  { %3693 = vmatpush.bf16.msrb.mxu2 %v11832_v14  ;;  %3706 = vmatpush.bf16.msrb.mxu3 %v12088_v16  ;;  %v12701_v13 = vld [vmem:[#allocation12 + $0x3e0] sm:$0xf0]  ;;  %v15949_v14 = vld [vmem:[#allocation12 + $0x19c] sm:$0xf0] }
 0x24e   :  { %v12704_v15 = vor.u32 %v16017_v26, %v12701_v13  ;;  %v12667_v16 = vld [vmem:[#allocation12 + $0x380] sm:$0xf]  ;;  %v12412_v40 = vor.u32 %v15949_v14, %v12411_v60  ;;  %v15985_v26 = vld [vmem:[#allocation12 + $0x2c4] sm:$0xf] }
 0x24f   :  { %v12668_v20 = vor.u32 %v16013_v31, %v12667_v16  ;;  %v12573_v13 = vld [vmem:[#allocation12 + $0x2e0] sm:$0xf0]  ;;  %v12283_v14 = vld [vmem:[#allocation12 + $0x80] sm:$0xf] }
 0x250   :  { %3668 = vmatpush.bf16.msrb.mxu0 %v11796_v63  ;;  %3681 = vmatpush.bf16.msrb.mxu1 %v12052_v22  ;;  %v16009_v63 = vld [vmem:[#allocation12 + $0x384] sm:$0xf]  ;;  %v12576_v60 = vor.u32 %v15985_v26, %v12573_v13  ;;  %v15917_v16 = vld [vmem:[#allocation12 + $0x9c] sm:$0xf0]  ;;  %v15954_v13 = vld [vmem:[#allocation12 + $0x1cc] sm:$0xf] }
 0x251   :  { %3694 = vmatpush.bf16.msrb.mxu2 %v11800_v28  ;;  %3707 = vmatpush.bf16.msrb.mxu3 %v12056_v30  ;;  %v12669_v22 = vld [vmem:[#allocation12 + $0x3a0] sm:$0xf0]  ;;  %v12284_v19 = vor.u32 %v15917_v16, %v12283_v14  ;;  %v12709_v16 = vld [vmem:[#allocation12 + $0x3e8] sm:$0xf0] }
 0x252   :  { %v12672_v30 = vor.u32 %v16009_v63, %v12669_v22  ;;  %v12285_v63 = vld [vmem:[#allocation12 + $0xa0] sm:$0xf0] }
 0x254   :  { %3669 = vmatpush.bf16.msrb.mxu0 %v11764_v39  ;;  %3682 = vmatpush.bf16.msrb.mxu1 %v12020_v41  ;;  %v15937_v39 = vld [vmem:[#allocation12 + $0x144] sm:$0xf] }
 0x255   :  { %3695 = vmatpush.bf16.msrb.mxu2 %v11768_v44  ;;  %3708 = vmatpush.bf16.msrb.mxu3 %v12024_v45  ;;  %v12381_v41 = vld [vmem:[#allocation12 + $0x160] sm:$0xf0] }
 0x256   :  { %v12384_v44 = vor.u32 %v15937_v39, %v12381_v41  ;;  %v12637_v45 = vld [vmem:[#allocation12 + $0x360] sm:$0xf0]  ;;  %v12507_v41 = vld [vmem:[#allocation12 + $0x240] sm:$0xf] }
 0x257   :  { %v12640_v48 = vor.u32 %v16001_v42, %v12637_v45  ;;  %v15973_v42 = vld [vmem:[#allocation12 + $0x25c] sm:$0xf0]  ;;  %v12253_v45 = vld [vmem:[#allocation12 + $0x60] sm:$0xf0] }
 0x258   :  { %3670 = vmatpush.bf16.msrb.mxu0 %v11732_v54  ;;  %3683 = vmatpush.bf16.msrb.mxu1 %v11988_v25  ;;  %v12348_v54 = vor.u32 %v15933_v9, %v12347_v8  ;;  %v15997_v25 = vld [vmem:[#allocation12 + $0x31c] sm:$0xf0] }
 0x259   :  { %3696 = vmatpush.bf16.msrb.mxu2 %v11736_v55  ;;  %3709 = vmatpush.bf16.msrb.mxu3 %v11992_v56  ;;  %v15929_v55 = vld [vmem:[#allocation12 + $0x104] sm:$0xf]  ;;  %v12219_v9 = vld [vmem:[#allocation12] sm:$0xf] }
 0x25a   :  { %v12349_v56 = vld [vmem:[#allocation12 + $0x120] sm:$0xf0] }
 0x25b   :  { %3671 = vmatmul.bf16.vlgmr.msrb.gmra.mxu0 %v17284_v46  ;;  %3684 = vmatmul.bf16.vlgmr.msrb.gmra.mxu1 %v17286_v47 }
 0x25c   :  { %3697 = vmatmul.bf16.vlgmr.msrb.gmra.mxu2 %v17284_v46  ;;  %3710 = vmatmul.bf16.vlgmr.msrb.gmra.mxu3 %v17286_v47  ;;  %v15957_v46 = vld [vmem:[#allocation12 + $0x1dc] sm:$0xf0] }
 0x25d   :  { %v12444_v47 = vor.u32 %v15957_v46, %v12443_v5  ;;  %4559 = vmatpush.bf16.msra.mxu1 %v12700_v11  ;;  %4572 = vmatpush.bf16.msra.mxu2 %v12448_v12  ;;  %v12315_v46 = vld [vmem:[#allocation12 + $0xc0] sm:$0xf]  ;;  %v12317_v12 = vld [vmem:[#allocation12 + $0xe0] sm:$0xf0] }
 0x25e   :  { %4585 = vmatpush.bf16.msra.mxu3 %v12704_v15  ;;  %v12316_v7 = vor.u32 %v15925_v6, %v12315_v46  ;;  %v12320_v15 = vor.u32 %v15921_v53, %v12317_v12  ;;  %v15961_v46 = vld [vmem:[#allocation12 + $0x204] sm:$0xf]  ;;  %v12707_v53 = vld [vmem:[#allocation12 + $0x3c8] sm:$0xf] }
 0x25f   :  { %4546 = vmatpush.bf16.msra.mxu0 %v12444_v47  ;;  %v12571_v47 = vld [vmem:[#allocation12 + $0x2c0] sm:$0xf]  ;;  %v12477_v6 = vld [vmem:[#allocation12 + $0x220] sm:$0xf0] }
 0x260   :  { %v12572_v11 = vor.u32 %v15989_v10, %v12571_v47  ;;  %v12451_v47 = vld [vmem:[#allocation12 + $0x1c8] sm:$0xf] }
 0x261   :  { %4560 = vmatpush.bf16.msra.mxu1 %v12668_v20  ;;  %4573 = vmatpush.bf16.msra.mxu2 %v12416_v21  ;;  %v15981_v20 = vld [vmem:[#allocation12 + $0x29c] sm:$0xf0]  ;;  %v15913_v21 = vld [vmem:[#allocation12 + $0x84] sm:$0xf]  ;;  %v15958_v10 = vld [vmem:[#allocation12 + $0x1e4] sm:$0xf0] }
 0x262   :  { %4586 = vmatpush.bf16.msra.mxu3 %v12672_v30  ;;  %v12288_v32 = vor.u32 %v15913_v21, %v12285_v63  ;;  %v12452_v12 = vor.u32 %v15958_v10, %v12451_v47  ;;  %v12675_v63 = vld [vmem:[#allocation12 + $0x388] sm:$0xf]  ;;  %v12613_v10 = vld [vmem:[#allocation12 + $0x328] sm:$0xf0] }
 0x263   :  { %4547 = vmatpush.bf16.msra.mxu0 %v12412_v40  ;;  %v12539_v40 = vld [vmem:[#allocation12 + $0x280] sm:$0xf] }
 0x264   :  { %v12540_v30 = vor.u32 %v15981_v20, %v12539_v40  ;;  %v12419_v40 = vld [vmem:[#allocation12 + $0x188] sm:$0xf] }
 0x265   :  { %4561 = vmatpush.bf16.msra.mxu1 %v12636_v43  ;;  %4574 = vmatpush.bf16.msra.mxu2 %v12384_v44  ;;  %v15905_v43 = vld [vmem:[#allocation12 + $0x44] sm:$0xf]  ;;  %v12508_v44 = vor.u32 %v15973_v42, %v12507_v41  ;;  %v12643_v41 = vld [vmem:[#allocation12 + $0x348] sm:$0xf] }
 0x266   :  { %4587 = vmatpush.bf16.msra.mxu3 %v12640_v48  ;;  %v15969_v48 = vld [vmem:[#allocation12 + $0x244] sm:$0xf] }
 0x267   :  { %4548 = vmatpush.bf16.msra.mxu0 %v12380_v38  ;;  %v15909_v38 = vld [vmem:[#allocation12 + $0x5c] sm:$0xf0] }
 0x26b   :  { %4549 = vmatpush.bf16.msra.mxu0 %v12348_v54  ;;  %v12475_v54 = vld [vmem:[#allocation12 + $0x200] sm:$0xf] }
 0x26f   :  { %4550 = vmatpush.bf16.msra.mxu0 %v12316_v7  ;;  %v12480_v7 = vor.u32 %v15961_v46, %v12477_v6 }
 0x273   :  { %4551 = vmatpush.bf16.msra.mxu0 %v12284_v19  ;;  %v15950_v19 = vld [vmem:[#allocation12 + $0x1a4] sm:$0xf0] }
 0x274   :  { %v12420_v21 = vor.u32 %v15950_v19, %v12419_v40 }
 0x297   :  { %v3516_v57 = vpop.f32.mrf.mxu0  ;;  %v3529_v58 = vpop.f32.mrf.mxu1 }
 0x298   :  { %v17304_v59 = vadd.f32 %v3529_v58, %v3516_v57  ;;  %v12604_v57 = vor.u32 %v15997_v25, %v12603_v18  ;;  %v12352_v58 = vor.u32 %v15929_v55, %v12349_v56  ;;  %v15901_v18 = vld [vmem:[#allocation12 + $0x1c] sm:$0xf0] }
 0x299   :  { %v12220_v56 = vor.u32 %v15901_v18, %v12219_v9  ;;  %v12355_v18 = vld [vmem:[#allocation12 + $0x108] sm:$0xf] }
 0x29a   :  { %4562 = vmatpush.bf16.msra.mxu1 %v12604_v57  ;;  %4575 = vmatpush.bf16.msra.mxu2 %v12352_v58  ;;  %v15965_v57 = vld [vmem:[#allocation12 + $0x21c] sm:$0xf0]  ;;  %v15897_v58 = vld [vmem:[#allocation12 + $0x4] sm:$0xf] }
 0x29e   :  { %v17306_v61 = vpop.f32.mrf.mxu2  ;;  %v17308_v62 = vpop.f32.mrf.mxu3  ;;  %4563 = vmatpush.bf16.msra.mxu1 %v12572_v11  ;;  %4576 = vmatpush.bf16.msra.mxu2 %v12320_v15  ;;  %v16022_v11 = vld [vmem:[#allocation12 + $0x3e4] sm:$0xf0]  ;;  %v12453_v15 = vld [vmem:[#allocation12 + $0x1e8] sm:$0xf0] }
 0x29f   :  { %v3518_v0 = vpop.f32.mrf.mxu0  ;;  %v3531_v1 = vpop.f32.mrf.mxu1  ;;  %v12708_v26 = vor.u32 %v16022_v11, %v12707_v53  ;;  %v12456_v14 = vor.u32 %v15954_v13, %v12453_v15  ;;  %v12579_v53 = vld [vmem:[#allocation12 + $0x2c8] sm:$0xf]  ;;  %v15922_v15 = vld [vmem:[#allocation12 + $0xcc] sm:$0xf] }
 0x2a0   :  { %v15993_v0 = vld [vmem:[#allocation12 + $0x304] sm:$0xf]  ;;  %v15990_v13 = vld [vmem:[#allocation12 + $0x2e4] sm:$0xf0] }
 0x2a1   :  { %v12605_v1 = vld [vmem:[#allocation12 + $0x320] sm:$0xf0] }
 0x2a2   :  { %v12608_v5 = vor.u32 %v15993_v0, %v12605_v1  ;;  %4564 = vmatpush.bf16.msra.mxu1 %v12540_v30  ;;  %4577 = vmatpush.bf16.msra.mxu2 %v12288_v32  ;;  %v12221_v0 = vld [vmem:[#allocation12 + $0x20] sm:$0xf0]  ;;  %v12476_v1 = vor.u32 %v15965_v57, %v12475_v54  ;;  %v12421_v32 = vld [vmem:[#allocation12 + $0x1a8] sm:$0xf0]  ;;  %v15934_v54 = vld [vmem:[#allocation12 + $0x124] sm:$0xf0] }
 0x2a3   :  { %v12356_v57 = vor.u32 %v15934_v54, %v12355_v18  ;;  %v12259_v18 = vld [vmem:[#allocation12 + $0x48] sm:$0xf] }
 0x2a4   :  { %4588 = vmatpush.bf16.msra.mxu3 %v12608_v5  ;;  %v12224_v5 = vor.u32 %v15897_v58, %v12221_v0  ;;  %v15998_v58 = vld [vmem:[#allocation12 + $0x324] sm:$0xf0]  ;;  %v15930_v0 = vld [vmem:[#allocation12 + $0x10c] sm:$0xf] }
 0x2a5   :  { %v15910_v54 = vld [vmem:[#allocation12 + $0x64] sm:$0xf0] }
 0x2a6   :  { %v3544_v2 = vpop.f32.mrf.mxu2  ;;  %v3557_v3 = vpop.f32.mrf.mxu3  ;;  %4565 = vmatpush.bf16.msra.mxu1 %v12508_v44  ;;  %v15938_v44 = vld [vmem:[#allocation12 + $0x14c] sm:$0xf] }
 0x2a7   :  { %v17310_v51 = vpop.f32.mrf.mxu0  ;;  %v17312_v4 = vpop.f32.mrf.mxu1 }
 0x2a8   :  { %4589 = vmatpush.bf16.msra.mxu3 %v12576_v60  ;;  %v16018_v60 = vld [vmem:[#allocation12 + $0x3cc] sm:$0xf] }
 0x2a9   :  { %v12712_v20 = vor.u32 %v16018_v60, %v12709_v16  ;;  %v12581_v16 = vld [vmem:[#allocation12 + $0x2e8] sm:$0xf0] }
 0x2aa   :  { %4566 = vmatpush.bf16.msra.mxu1 %v12476_v1  ;;  %v12357_v1 = vld [vmem:[#allocation12 + $0x128] sm:$0xf0] }
 0x2ab   :  { %v12360_v47 = vor.u32 %v15930_v0, %v12357_v1 }
 0x2ae   :  { %v17314_v27 = vpop.f32.mrf.mxu2  ;;  %v17316_v28 = vpop.f32.mrf.mxu3  ;;  %4611 = vmatpush.bf16.msrb.mxu1 %v12708_v26 }
 0x2af   :  { %v3570_v36 = vpop.f32.mrf.mxu0  ;;  %v3583_v37 = vpop.f32.mrf.mxu1 }
 0x2b0   :  { %v12544_v36 = vor.u32 %v15977_v34, %v12541_v35  ;;  %v12251_v37 = vld [vmem:[#allocation12 + $0x40] sm:$0xf]  ;;  %v16010_v34 = vld [vmem:[#allocation12 + $0x38c] sm:$0xf] }
 0x2b1   :  { %v12252_v39 = vor.u32 %v15909_v38, %v12251_v37  ;;  %v12677_v35 = vld [vmem:[#allocation12 + $0x3a8] sm:$0xf0]  ;;  %v12387_v38 = vld [vmem:[#allocation12 + $0x148] sm:$0xf] }
 0x2b2   :  { %4590 = vmatpush.bf16.msra.mxu3 %v12544_v36  ;;  %v12680_v37 = vor.u32 %v16010_v34, %v12677_v35 }
 0x2b3   :  { %4552 = vmatpush.bf16.msra.mxu0 %v12252_v39  ;;  %v15942_v39 = vld [vmem:[#allocation12 + $0x164] sm:$0xf0] }
 0x2b4   :  { %v12388_v42 = vor.u32 %v15942_v39, %v12387_v38 }
 0x2b6   :  { %v3596_v49 = vpop.f32.mrf.mxu2  ;;  %v3609_v50 = vpop.f32.mrf.mxu3 }
 0x2b7   :  { %v12509_v49 = vld [vmem:[#allocation12 + $0x260] sm:$0xf0]  ;;  %v12256_v50 = vor.u32 %v15905_v43, %v12253_v45  ;;  %4553 = vmatpush.bf16.msra.mxu0 %v12220_v56  ;;  %v16006_v43 = vld [vmem:[#allocation12 + $0x364] sm:$0xf0]  ;;  %v12389_v45 = vld [vmem:[#allocation12 + $0x168] sm:$0xf0]  ;;  %v17332_v56 = vadd.f32 %v17312_v4, %v17310_v51 }
 0x2b8   :  { %v17318_v2 = vpop.f32.mrf.mxu0  ;;  %v17320_v3 = vpop.f32.mrf.mxu1  ;;  %v12512_v8 = vor.u32 %v15969_v48, %v12509_v49  ;;  %v12644_v48 = vor.u32 %v16006_v43, %v12643_v41  ;;  %v12392_v49 = vor.u32 %v15938_v44, %v12389_v45  ;;  %v12323_v51 = vld [vmem:[#allocation12 + $0xc8] sm:$0xf]  ;;  %v15978_v43 = vld [vmem:[#allocation12 + $0x28c] sm:$0xf] }
 0x2b9   :  { %4578 = vmatpush.bf16.msra.mxu2 %v12256_v50  ;;  %v16002_v50 = vld [vmem:[#allocation12 + $0x34c] sm:$0xf]  ;;  %v15926_v4 = vld [vmem:[#allocation12 + $0xe4] sm:$0xf0]  ;;  %v3634_v19 = vadd.f32 %v17320_v3, %v17318_v2 }
 0x2ba   :  { %4591 = vmatpush.bf16.msra.mxu3 %v12512_v8  ;;  %v12645_v8 = vld [vmem:[#allocation12 + $0x368] sm:$0xf0]  ;;  %v12324_v26 = vor.u32 %v15926_v4, %v12323_v51 }
 0x2bb   :  { %4598 = vmatpush.bf16.msrb.mxu0 %v12452_v12  ;;  %v12648_v9 = vor.u32 %v16002_v50, %v12645_v8  ;;  %v3724_v12 = vrot.slane %v17332_v56, 6  ;;  %v12549_v44 = vld [vmem:[#allocation12 + $0x2a8] sm:$0xf0]  ;;  %v3726_v45 = vrot.slane %v3634_v19, 4  ;;  %v12515_v56 = vld [vmem:[#allocation12 + $0x248] sm:$0xf] }
 0x2bc   :  { %v12485_v19 = vld [vmem:[#allocation12 + $0x228] sm:$0xf0] }
 0x2bd   :  { %4579 = vmatpush.bf16.msra.mxu2 %v12224_v5 }
 0x2be   :  { %4592 = vmatpush.bf16.msra.mxu3 %v12480_v7  ;;  %v15994_v7 = vld [vmem:[#allocation12 + $0x30c] sm:$0xf] }
 0x2bf   :  { %4599 = vmatpush.bf16.msrb.mxu0 %v12420_v21 }
 0x2c0   :  { %v3622_v22 = vpop.f32.mrf.mxu0  ;;  %v3635_v23 = vpop.f32.mrf.mxu1 }
 0x2c1   :  { %v17322_v31 = vpop.f32.mrf.mxu2  ;;  %v17324_v17 = vpop.f32.mrf.mxu3  ;;  %v16014_v22 = vld [vmem:[#allocation12 + $0x3a4] sm:$0xf0]  ;;  %v15946_v23 = vld [vmem:[#allocation12 + $0x18c] sm:$0xf]  ;;  %4624 = vmatpush.bf16.msrb.mxu2 %v12456_v14  ;;  %v12580_v14 = vor.u32 %v15990_v13, %v12579_v53 }
 0x2c2   :  { %v12676_v30 = vor.u32 %v16014_v22, %v12675_v63  ;;  %4637 = vmatpush.bf16.msrb.mxu3 %v12712_v20  ;;  %v12424_v36 = vor.u32 %v15946_v23, %v12421_v32  ;;  %v3660_v60 = vadd.f32 %v17324_v17, %v17322_v31  ;;  %v2730_v22 = vld [vmem:[#allocation3 + $0x1] ss:$8 sm:$0xf0] }
 0x2c3   :  { %4600 = vmatpush.bf16.msrb.mxu0 %v12388_v42  ;;  %v12291_v23 = vld [vmem:[#allocation12 + $0x88] sm:$0xf] }
 0x2c4   :  { %4612 = vmatpush.bf16.msrb.mxu1 %v12676_v30  ;;  %v15918_v30 = vld [vmem:[#allocation12 + $0xa4] sm:$0xf0]  ;;  %v3727_v38 = vrot.slane %v3660_v60, 3 }
 0x2c5   :  { %4625 = vmatpush.bf16.msrb.mxu2 %v12424_v36  ;;  %v12547_v32 = vld [vmem:[#allocation12 + $0x288] sm:$0xf]  ;;  %v12292_v31 = vor.u32 %v15918_v30, %v12291_v23  ;;  %v15914_v36 = vld [vmem:[#allocation12 + $0x8c] sm:$0xf] }
 0x2c6   :  { %4638 = vmatpush.bf16.msrb.mxu3 %v12680_v37  ;;  %v15982_v17 = vld [vmem:[#allocation12 + $0x2a4] sm:$0xf0]  ;;  %v12293_v37 = vld [vmem:[#allocation12 + $0xa8] sm:$0xf0]  ;;  %v3733_v1 = vsel %vm2687_vm3, %v3726_v45, %v3727_v38  ;;  %v12459_v45 = vld [vmem:[#allocation12 + $0x1d0] sm:$0xf] }
 0x2c7   :  { %4601 = vmatpush.bf16.msrb.mxu0 %v12356_v57  ;;  %v12548_v3 = vor.u32 %v15982_v17, %v12547_v32  ;;  %v12296_v42 = vor.u32 %v15914_v36, %v12293_v37  ;;  %v15974_v57 = vld [vmem:[#allocation12 + $0x264] sm:$0xf0] }
 0x2c8   :  { %4613 = vmatpush.bf16.msrb.mxu1 %v12644_v48  ;;  %v2729_v48 = vld [vmem:[#allocation3 + $0x1] ss:$8 sm:$0xf] }
 0x2c9   :  { %v3648_v25 = vpop.f32.mrf.mxu2  ;;  %v3661_v55 = vpop.f32.mrf.mxu3  ;;  %4626 = vmatpush.bf16.msrb.mxu2 %v12392_v49  ;;  %v12552_v49 = vor.u32 %v15978_v43, %v12549_v44  ;;  %v12227_v53 = vld [vmem:[#allocation12 + $0x8] sm:$0xf] }
 0x2ca   :  { %v12611_v25 = vld [vmem:[#allocation12 + $0x308] sm:$0xf]  ;;  %v17328_v55 = vadd.f32 %v17308_v62, %v17306_v61  ;;  %v3608_v61 = vadd.f32 %v17316_v28, %v17314_v27  ;;  %4639 = vmatpush.bf16.msrb.mxu3 %v12648_v9  ;;  %v12616_v62 = vor.u32 %v15994_v7, %v12613_v10  ;;  %v12325_v27 = vld [vmem:[#allocation12 + $0xe8] sm:$0xf0] }
 0x2cb   :  { %v12612_v6 = vor.u32 %v15998_v58, %v12611_v25  ;;  %v15986_v28 = vld [vmem:[#allocation12 + $0x2cc] sm:$0xf]  ;;  %v12328_v20 = vor.u32 %v15922_v15, %v12325_v27  ;;  %4602 = vmatpush.bf16.msrb.mxu0 %v12324_v26  ;;  %v2731_v25 = vor.u32 %v2730_v22, %v2729_v48  ;;  %v15966_v60 = vld [vmem:[#allocation12 + $0x224] sm:$0xf0]  ;;  %v15959_v48 = vld [vmem:[#allocation12 + $0x1ec] sm:$0xf0] }
 0x2cc   :  { %v3723_v11 = vrot.slane %v17328_v55, 7  ;;  %v3725_v40 = vrot.slane %v3608_v61, 5  ;;  %v12584_v21 = vor.u32 %v15986_v28, %v12581_v16  ;;  %v12260_v55 = vor.u32 %v15910_v54, %v12259_v18  ;;  %v15906_v58 = vld [vmem:[#allocation12 + $0x4c] sm:$0xf]  ;;  %v12461_v18 = vld [vmem:[#allocation12 + $0x1f0] sm:$0xf0] }
 0x2cd   :  { %4614 = vmatpush.bf16.msrb.mxu1 %v12612_v6  ;;  %4627 = vmatpush.bf16.msrb.mxu2 %v12360_v47  ;;  %v12261_v6 = vld [vmem:[#allocation12 + $0x68] sm:$0xf0]  ;;  %v16019_v54 = vld [vmem:[#allocation12 + $0x3d4] sm:$0xf] }
 0x2ce   :  { %4640 = vmatpush.bf16.msrb.mxu3 %v12616_v62  ;;  %v3731_v50 = vsel %vm2683_vm1, %v3724_v12, %v3725_v40  ;;  %v3730_v0 = vsel %vm2681_vm0, %v17304_v59, %v3723_v11  ;;  %v15970_v47 = vld [vmem:[#allocation12 + $0x24c] sm:$0xf]  ;;  %v12264_v62 = vor.u32 %v15906_v58, %v12261_v6  ;;  %v15902_v59 = vld [vmem:[#allocation12 + $0x24] sm:$0xf0]  ;;  %v12460_v58 = vor.u32 %v15959_v48, %v12459_v45  ;;  %v12589_v45 = vld [vmem:[#allocation12 + $0x2f0] sm:$0xf0] }
 0x2cf   :  { %4603 = vmatpush.bf16.msrb.mxu0 %v12292_v31  ;;  %v12517_v7 = vld [vmem:[#allocation12 + $0x268] sm:$0xf0]  ;;  %v3732_v10 = vsel %vm2685_vm2, %v3730_v0, %v3731_v50  ;;  %v12483_v11 = vld [vmem:[#allocation12 + $0x208] sm:$0xf]  ;;  %v12228_v15 = vor.u32 %v15902_v59, %v12227_v53  ;;  %v12715_v50 = vld [vmem:[#allocation12 + $0x3d0] sm:$0xf] }
 0x2d0   :  { %v12520_v51 = vor.u32 %v15970_v47, %v12517_v7  ;;  %v12229_v27 = vld [vmem:[#allocation12 + $0x28] sm:$0xf0]  ;;  %v12484_v28 = vor.u32 %v15966_v60, %v12483_v11  ;;  %v12683_v47 = vld [vmem:[#allocation12 + $0x390] sm:$0xf]  ;;  %v15939_v60 = vld [vmem:[#allocation12 + $0x154] sm:$0xf] }
 0x2d1   :  { %4615 = vmatpush.bf16.msrb.mxu1 %v12580_v14  ;;  %4628 = vmatpush.bf16.msrb.mxu2 %v12328_v20  ;;  %v15898_v14 = vld [vmem:[#allocation12 + $0xc] sm:$0xf]  ;;  %v16015_v7 = vld [vmem:[#allocation12 + $0x3ac] sm:$0xf0] }
 0x2d2   :  { %4641 = vmatpush.bf16.msrb.mxu3 %v12584_v21  ;;  %v12232_v16 = vor.u32 %v15898_v14, %v12229_v27  ;;  %v15962_v40 = vld [vmem:[#allocation12 + $0x20c] sm:$0xf]  ;;  %v12684_v53 = vor.u32 %v16015_v7, %v12683_v47  ;;  %v12395_v59 = vld [vmem:[#allocation12 + $0x150] sm:$0xf]  ;;  %v12397_v14 = vld [vmem:[#allocation12 + $0x170] sm:$0xf0] }
 0x2d3   :  { %4604 = vmatpush.bf16.msrb.mxu0 %v12260_v55  ;;  %v15943_v11 = vld [vmem:[#allocation12 + $0x16c] sm:$0xf0]  ;;  %v16003_v27 = vld [vmem:[#allocation12 + $0x354] sm:$0xf] }
 0x2d5   :  { %4616 = vmatpush.bf16.msrb.mxu1 %v12548_v3  ;;  %4629 = vmatpush.bf16.msrb.mxu2 %v12296_v42 }
 0x2d6   :  { %4642 = vmatpush.bf16.msrb.mxu3 %v12552_v49 }
 0x2d7   :  { %4605 = vmatpush.bf16.msrb.mxu0 %v12228_v15  ;;  %v16007_v15 = vld [vmem:[#allocation12 + $0x36c] sm:$0xf0] }
 0x2d8   :  { %v3672_v5 = vpop.f32.mrf.mxu0  ;;  %v3685_v46 = vpop.f32.mrf.mxu1 }
 0x2d9   :  { %v3686_v63 = vadd.f32 %v3685_v46, %v3672_v5  ;;  %v12516_v46 = vor.u32 %v15974_v57, %v12515_v56  ;;  %4630 = vmatpush.bf16.msrb.mxu2 %v12264_v62  ;;  %v16011_v62 = vld [vmem:[#allocation12 + $0x394] sm:$0xf] }
 0x2da   :  { %4643 = vmatpush.bf16.msrb.mxu3 %v12520_v51  ;;  %v12685_v51 = vld [vmem:[#allocation12 + $0x3b0] sm:$0xf0] }
 0x2db   :  { %v3728_v8 = vrot.slane %v3686_v63, 2  ;;  %4617 = vmatpush.bf16.msrb.mxu1 %v12516_v46  ;;  %v12488_v63 = vor.u32 %v15962_v40, %v12485_v19  ;;  %v12363_v19 = vld [vmem:[#allocation12 + $0x110] sm:$0xf] }
 0x2dd   :  { %4631 = vmatpush.bf16.msrb.mxu2 %v12232_v16  ;;  %v12396_v16 = vor.u32 %v15943_v11, %v12395_v59  ;;  %v12235_v59 = vld [vmem:[#allocation12 + $0x10] sm:$0xf] }
 0x2de   :  { %4644 = vmatpush.bf16.msrb.mxu3 %v12488_v63 }
 0x2df   :  { %v3698_v34 = vpop.f32.mrf.mxu2  ;;  %v3711_v35 = vpop.f32.mrf.mxu3  ;;  %4618 = vmatpush.bf16.msrb.mxu1 %v12484_v28  ;;  %v12653_v28 = vld [vmem:[#allocation12 + $0x370] sm:$0xf0] }
 0x2e0   :  { %v3712_v39 = vadd.f32 %v3711_v35, %v3698_v34  ;;  %v3674_v41 = vpop.f32.mrf.mxu0  ;;  %v3687_v2 = vpop.f32.mrf.mxu1  ;;  %v12656_v63 = vor.u32 %v16003_v27, %v12653_v28  ;;  %v15899_v27 = vld [vmem:[#allocation12 + $0x14] sm:$0xf] }
 0x2e1   :  { %v12237_v28 = vld [vmem:[#allocation12 + $0x30] sm:$0xf0] }
 0x2e2   :  { %v3729_v9 = vrot.slane %v3712_v39, 1 }
 0x2e4   :  { %v3734_v5 = vsel %vm2689_vm4, %v3728_v8, %v3729_v9  ;;  %v16023_v8 = vld [vmem:[#allocation12 + $0x3ec] sm:$0xf0]  ;;  %v15955_v9 = vld [vmem:[#allocation12 + $0x1d4] sm:$0xf] }
 0x2e5   :  { %v3735_v61 = vsel %vm2691_vm5, %v3733_v1, %v3734_v5  ;;  %v12716_v0 = vor.u32 %v16023_v8, %v12715_v50  ;;  %v12427_v1 = vld [vmem:[#allocation12 + $0x190] sm:$0xf]  ;;  %v12464_v46 = vor.u32 %v15955_v9, %v12461_v18 }
 0x2e6   :  { %v3736_v4 = vsel %vm2693_vm6, %v3732_v10, %v3735_v61  ;;  %v15951_v5 = vld [vmem:[#allocation12 + $0x1ac] sm:$0xf0]  ;;  %v15947_v10 = vld [vmem:[#allocation12 + $0x194] sm:$0xf] }
 0x2e7   :  { %v3738_v12 = vadd.f32 %v3736_v4, %v2731_v25  ;;  %v3700_v26 = vpop.f32.mrf.mxu2  ;;  %v3713_v13 = vpop.f32.mrf.mxu3  ;;  %v12717_v25 = vld [vmem:[#allocation12 + $0x3f0] sm:$0xf0]  ;;  %v12428_v4 = vor.u32 %v15951_v5, %v12427_v1  ;;  %v12299_v50 = vld [vmem:[#allocation12 + $0x90] sm:$0xf] }
 0x2e8   :  { %v12720_v6 = vor.u32 %v16019_v54, %v12717_v25  ;;  %v12429_v61 = vld [vmem:[#allocation12 + $0x1b0] sm:$0xf0]  ;;  %v12688_v26 = vor.u32 %v16011_v62, %v12685_v51  ;;  %v12651_v13 = vld [vmem:[#allocation12 + $0x350] sm:$0xf] }
 0x2e9   :  { %v3739_v20 = vmul.f32 0.5, %v3738_v12  ;;  %v3744_v21 = vrot.slane %v3738_v12, 2  ;;  %v3753_v23 = vrot.slane %v3738_v12, 6  ;;  %v3750_v30 = vrot.slane %v3738_v12, 4  ;;  %v15919_v8 = vld [vmem:[#allocation12 + $0xac] sm:$0xf0] }
 0x2ea   :  { %v12432_v12 = vor.u32 %v15947_v10, %v12429_v61  ;;  %v12652_v40 = vor.u32 %v16007_v15, %v12651_v13  ;;  %v12555_v54 = vld [vmem:[#allocation12 + $0x290] sm:$0xf]  ;;  %v12300_v1 = vor.u32 %v15919_v8, %v12299_v50  ;;  %v15907_v62 = vld [vmem:[#allocation12 + $0x54] sm:$0xf] }
 0x2eb   :  { %16734 = vtanh.f32 %v3739_v20  ;;  %v3746_v22 = vmul.f32 0.5, %v3744_v21  ;;  %v3755_v32 = vmul.f32 0.5, %v3753_v23  ;;  %v15935_v20 = vld [vmem:[#allocation12 + $0x12c] sm:$0xf0]  ;;  %v12400_v21 = vor.u32 %v15939_v60, %v12397_v14  ;;  %v12269_v51 = vld [vmem:[#allocation12 + $0x70] sm:$0xf0] }
 0x2ec   :  { %v15999_v23 = vld [vmem:[#allocation12 + $0x32c] sm:$0xf0]  ;;  %v12272_v60 = vor.u32 %v15907_v62, %v12269_v51  ;;  %v12627_v62 = vld [vmem:[#allocation12 + $0x318] sm:$0xf] }
 0x2ed   :  { %16736 = vtanh.f32 %v3746_v22  ;;  %v12619_v22 = vld [vmem:[#allocation12 + $0x310] sm:$0xf]  ;;  %v16000_v51 = vld [vmem:[#allocation12 + $0x334] sm:$0xf0] }
 0x2ee   :  { %16738 = vtanh.f32 %v3750_v30  ;;  %v15931_v30 = vld [vmem:[#allocation12 + $0x114] sm:$0xf]  ;;  %v15983_v25 = vld [vmem:[#allocation12 + $0x2ac] sm:$0xf0] }
 0x2ef   :  { %16740 = vtanh.f32 %v3755_v32  ;;  %v12365_v32 = vld [vmem:[#allocation12 + $0x130] sm:$0xf0]  ;;  %v12556_v5 = vor.u32 %v15983_v25, %v12555_v54  ;;  %v12523_v10 = vld [vmem:[#allocation12 + $0x250] sm:$0xf] }
 0x2f0   :  { %v15975_v61 = vld [vmem:[#allocation12 + $0x26c] sm:$0xf0] }
 0x2f1   :  { %v16735_v34 = vpop.eup %16734  ;;  %v12491_v13 = vld [vmem:[#allocation12 + $0x210] sm:$0xf] }
 0x2f2   :  { %v3741_v35 = vmul.f32 0.5, %v16735_v34  ;;  %v15995_v34 = vld [vmem:[#allocation12 + $0x314] sm:$0xf]  ;;  %v15967_v15 = vld [vmem:[#allocation12 + $0x22c] sm:$0xf0] }
 0x2f3   :  { %v16737_v31 = vpop.eup %16736 }
 0x2f4   :  { %v3742_v17 = vadd.f32 0.5, %v3741_v35  ;;  %v3748_v36 = vmul.f32 0.5, %v16737_v31  ;;  %v16739_v38 = vpop.eup %16738  ;;  %v12621_v35 = vld [vmem:[#allocation12 + $0x330] sm:$0xf0]  ;;  %v12364_v31 = vor.u32 %v15935_v20, %v12363_v19  ;;  %v12467_v19 = vld [vmem:[#allocation12 + $0x1d8] sm:$0xf] }
 0x2f5   :  { %v16741_v2 = vpop.eup %16740  ;;  %v15960_v20 = vld [vmem:[#allocation12 + $0x1f4] sm:$0xf0] }
 0x2f6   :  { %v3749_v37 = vadd.f32 0.5, %v3748_v36  ;;  %v3760_v41 = vmul.f32 %v16739_v38, %v3742_v17  ;;  %v3757_v42 = vmul.f32 0.5, %v16741_v2  ;;  %v12620_v17 = vor.u32 %v15999_v23, %v12619_v22  ;;  %v12331_v36 = vld [vmem:[#allocation12 + $0xd0] sm:$0xf]  ;;  %v15956_v22 = vld [vmem:[#allocation12 + $0x1dc] sm:$0xf] }
 0x2f7   :  { %v12368_v38 = vor.u32 %v15931_v30, %v12365_v32  ;;  %v15991_v2 = vld [vmem:[#allocation12 + $0x2ec] sm:$0xf0]  ;;  %v12492_v30 = vor.u32 %v15967_v15, %v12491_v13  ;;  %v12469_v32 = vld [vmem:[#allocation12 + $0x1f8] sm:$0xf0]  ;;  %v12339_v13 = vld [vmem:[#allocation12 + $0xd8] sm:$0xf] }
 0x2f8   :  { %v3759_v39 = vmul.f32 %v3749_v37, %v17275_v24  ;;  %v3758_v43 = vadd.f32 0.5, %v3757_v42  ;;  %v15927_v37 = vld [vmem:[#allocation12 + $0xec] sm:$0xf0]  ;;  %v15923_v42 = vld [vmem:[#allocation12 + $0xd4] sm:$0xf] }
 0x2f9   :  { %v12332_v48 = vor.u32 %v15927_v37, %v12331_v36  ;;  %v12468_v36 = vor.u32 %v15960_v20, %v12467_v19  ;;  %v15928_v15 = vld [vmem:[#allocation12 + $0xf4] sm:$0xf0]  ;;  %v15988_v19 = vld [vmem:[#allocation12 + $0x2dc] sm:$0xf] }
 0x2fa   :  { %v17351_v3 = vadd.f32 %v3760_v41, %v3759_v39  ;;  %v12624_v39 = vor.u32 %v15995_v34, %v12621_v35  ;;  %v12587_v41 = vld [vmem:[#allocation12 + $0x2d0] sm:$0xf]  ;;  %v16020_v34 = vld [vmem:[#allocation12 + $0x3dc] sm:$0xf] }
 0x2fb   :  { %v12725_v35 = vld [vmem:[#allocation12 + $0x3f8] sm:$0xf0] }
 0x2fc   :  { %16742 = vtanh.f32 %v17351_v3  ;;  %v12597_v20 = vld [vmem:[#allocation12 + $0x2f8] sm:$0xf0] }
 0x302   :  { %v16743_v44 = vpop.eup %16742 }
 0x303   :  { %v3763_v49 = vmul.f32 %v16743_v44, %v3758_v43  ;;  %v12333_v43 = vld [vmem:[#allocation12 + $0xf0] sm:$0xf0] }
 0x304   :  { %v15987_v44 = vld [vmem:[#allocation12 + $0x2d4] sm:$0xf]  ;;  %v12336_v9 = vor.u32 %v15923_v42, %v12333_v43  ;;  %v12691_v42 = vld [vmem:[#allocation12 + $0x398] sm:$0xf] }
 0x305   :  { %3765 = vst.msk [vmem:[#allocation2 + $0x1] ss:$8 sm:$0x3] %vm17278_vm7, %v3763_v49  ;;  %v3772_v24 = vperm.slane %v3763_v49, 0  ;;  %v3773_v55 = vperm.slane %v3763_v49, 1  ;;  %v12588_v49 = vor.u32 %v15991_v2, %v12587_v41  ;;  %v12592_v18 = vor.u32 %v15987_v44, %v12589_v45 }
 0x306   :  { %v12472_v41 = vor.u32 %v15956_v22, %v12469_v32  ;;  %v12728_v2 = vor.u32 %v16020_v34, %v12725_v35  ;;  %v16016_v43 = vld [vmem:[#allocation12 + $0x3b4] sm:$0xf0]  ;;  %v15948_v44 = vld [vmem:[#allocation12 + $0x19c] sm:$0xf]  ;;  %v12600_v32 = vor.u32 %v15988_v19, %v12597_v20 }
 0x307   :  { %v17356_v56 = vpack.c.bf16 %v3772_v24, %v3772_v24  ;;  %v17358_v57 = vpack.c.bf16 %v3773_v55, %v3773_v55  ;;  %v15915_v24 = vld [vmem:[#allocation12 + $0x94] sm:$0xf]  ;;  %v12437_v45 = vld [vmem:[#allocation12 + $0x1b8] sm:$0xf0]  ;;  %v12692_v8 = vor.u32 %v16016_v43, %v12691_v42  ;;  %v12307_v22 = vld [vmem:[#allocation12 + $0x98] sm:$0xf] }
 0x308   :  { %v12301_v55 = vld [vmem:[#allocation12 + $0xb0] sm:$0xf0]  ;;  %v12440_v54 = vor.u32 %v15948_v44, %v12437_v45  ;;  %v12563_v34 = vld [vmem:[#allocation12 + $0x298] sm:$0xf] }
 0x309   :  { %4554 = vmatmul.bf16.vlgmr.msra.gmra.mxu0 %v17356_v56  ;;  %4567 = vmatmul.bf16.vlgmr.msra.gmra.mxu1 %v17358_v57  ;;  %v12304_v47 = vor.u32 %v15915_v24, %v12301_v55  ;;  %v12659_v24 = vld [vmem:[#allocation12 + $0x358] sm:$0xf] }
 0x30a   :  { %4580 = vmatmul.bf16.vlgmr.msra.gmra.mxu2 %v17356_v56  ;;  %4593 = vmatmul.bf16.vlgmr.msra.gmra.mxu3 %v17358_v57  ;;  %v16008_v55 = vld [vmem:[#allocation12 + $0x374] sm:$0xf0] }
 0x30b   :  { %4650 = vmatpush.bf16.msra.mxu0 %v12460_v58  ;;  %4663 = vmatpush.bf16.msra.mxu1 %v12716_v0  ;;  %v15979_v58 = vld [vmem:[#allocation12 + $0x294] sm:$0xf]  ;;  %v15984_v35 = vld [vmem:[#allocation12 + $0x2b4] sm:$0xf0] }
 0x30c   :  { %4676 = vmatpush.bf16.msra.mxu2 %v12464_v46  ;;  %4689 = vmatpush.bf16.msra.mxu3 %v12720_v6  ;;  %v12557_v0 = vld [vmem:[#allocation12 + $0x2b0] sm:$0xf0]  ;;  %v12267_v46 = vld [vmem:[#allocation12 + $0x50] sm:$0xf]  ;;  %v12531_v44 = vld [vmem:[#allocation12 + $0x258] sm:$0xf] }
 0x30d   :  { %v15911_v6 = vld [vmem:[#allocation12 + $0x6c] sm:$0xf0]  ;;  %v12560_v7 = vor.u32 %v15979_v58, %v12557_v0  ;;  %v15940_v58 = vld [vmem:[#allocation12 + $0x15c] sm:$0xf]  ;;  %v15976_v45 = vld [vmem:[#allocation12 + $0x274] sm:$0xf0] }
 0x30e   :  { %v12268_v11 = vor.u32 %v15911_v6, %v12267_v46  ;;  %v12405_v0 = vld [vmem:[#allocation12 + $0x178] sm:$0xf0]  ;;  %v12660_v6 = vor.u32 %v16008_v55, %v12659_v24 }
 0x30f   :  { %4651 = vmatpush.bf16.msra.mxu0 %v12428_v4  ;;  %4664 = vmatpush.bf16.msra.mxu1 %v12684_v53  ;;  %v15971_v4 = vld [vmem:[#allocation12 + $0x254] sm:$0xf] }
 0x310   :  { %4677 = vmatpush.bf16.msra.mxu2 %v12432_v12  ;;  %4690 = vmatpush.bf16.msra.mxu3 %v12688_v26  ;;  %v12525_v53 = vld [vmem:[#allocation12 + $0x270] sm:$0xf0]  ;;  %v12524_v12 = vor.u32 %v15975_v61, %v12523_v10  ;;  %v15903_v26 = vld [vmem:[#allocation12 + $0x2c] sm:$0xf0]  ;;  %v12408_v10 = vor.u32 %v15940_v58, %v12405_v0  ;;  %v12499_v58 = vld [vmem:[#allocation12 + $0x218] sm:$0xf] }
 0x311   :  { %v12528_v14 = vor.u32 %v15971_v4, %v12525_v53  ;;  %v12236_v23 = vor.u32 %v15903_v26, %v12235_v59  ;;  %v15932_v4 = vld [vmem:[#allocation12 + $0x11c] sm:$0xf]  ;;  %v12628_v26 = vor.u32 %v16000_v51, %v12627_v62  ;;  %v15968_v0 = vld [vmem:[#allocation12 + $0x234] sm:$0xf0] }
 0x312   :  { %v12373_v53 = vld [vmem:[#allocation12 + $0x138] sm:$0xf0] }
 0x313   :  { %4652 = vmatpush.bf16.msra.mxu0 %v12396_v16  ;;  %4665 = vmatpush.bf16.msra.mxu1 %v12652_v40  ;;  %v15963_v16 = vld [vmem:[#allocation12 + $0x214] sm:$0xf]  ;;  %v15996_v59 = vld [vmem:[#allocation12 + $0x31c] sm:$0xf] }
 0x314   :  { %4678 = vmatpush.bf16.msra.mxu2 %v12400_v21  ;;  %4691 = vmatpush.bf16.msra.mxu3 %v12656_v63  ;;  %v12493_v40 = vld [vmem:[#allocation12 + $0x230] sm:$0xf0]  ;;  %v12723_v21 = vld [vmem:[#allocation12 + $0x3d8] sm:$0xf] }
 0x315   :  { %v16024_v63 = vld [vmem:[#allocation12 + $0x3f4] sm:$0xf0] }
 0x316   :  { %v12724_v37 = vor.u32 %v16024_v63, %v12723_v21  ;;  %v12340_v21 = vor.u32 %v15928_v15, %v12339_v13 }
 0x317   :  { %4653 = vmatpush.bf16.msra.mxu0 %v12364_v31  ;;  %4666 = vmatpush.bf16.msra.mxu1 %v12620_v17  ;;  %v12240_v31 = vor.u32 %v15899_v27, %v12237_v28  ;;  %v12496_v17 = vor.u32 %v15963_v16, %v12493_v40  ;;  %v12595_v27 = vld [vmem:[#allocation12 + $0x2d8] sm:$0xf]  ;;  %v15924_v16 = vld [vmem:[#allocation12 + $0xdc] sm:$0xf] }
 0x318   :  { %4679 = vmatpush.bf16.msra.mxu2 %v12368_v38  ;;  %4692 = vmatpush.bf16.msra.mxu3 %v12624_v39  ;;  %v12435_v38 = vld [vmem:[#allocation12 + $0x198] sm:$0xf]  ;;  %v12341_v40 = vld [vmem:[#allocation12 + $0xf8] sm:$0xf0] }
 0x319   :  { %4606 = vmatmul.bf16.vlgmr.msrb.gmra.mxu0 %v17356_v56  ;;  %4619 = vmatmul.bf16.vlgmr.msrb.gmra.mxu1 %v17358_v57  ;;  %v15952_v39 = vld [vmem:[#allocation12 + $0x1b4] sm:$0xf0] }
 0x31a   :  { %4632 = vmatmul.bf16.vlgmr.msrb.gmra.mxu2 %v17356_v56  ;;  %4645 = vmatmul.bf16.vlgmr.msrb.gmra.mxu3 %v17358_v57  ;;  %v12436_v50 = vor.u32 %v15952_v39, %v12435_v38  ;;  %v15992_v28 = vld [vmem:[#allocation12 + $0x2f4] sm:$0xf0]  ;;  %v12564_v39 = vor.u32 %v15984_v35, %v12563_v34  ;;  %v16141_v35 = vld [vmem:[#allocation12 + $0x39c] sm:$0xf0] }
 0x31b   :  { %4654 = vmatpush.bf16.msra.mxu0 %v12332_v48  ;;  %4667 = vmatpush.bf16.msra.mxu1 %v12588_v49  ;;  %v16012_v48 = vld [vmem:[#allocation12 + $0x39c] sm:$0xf]  ;;  %v12596_v63 = vor.u32 %v15992_v28, %v12595_v27  ;;  %v13211_v27 = vld [vmem:[#allocation12 + $0x3c0] sm:$0xf] }
 0x31c   :  { %4680 = vmatpush.bf16.msra.mxu2 %v12336_v9  ;;  %4693 = vmatpush.bf16.msra.mxu3 %v12592_v18  ;;  %v12693_v49 = vld [vmem:[#allocation12 + $0x3b8] sm:$0xf0]  ;;  %v12403_v9 = vld [vmem:[#allocation12 + $0x158] sm:$0xf]  ;;  %v16149_v28 = vld [vmem:[#allocation12 + $0x3dc] sm:$0xf0] }
 0x31d   :  { %v15944_v18 = vld [vmem:[#allocation12 + $0x174] sm:$0xf0]  ;;  %v12696_v25 = vor.u32 %v16012_v48, %v12693_v49  ;;  %v15908_v48 = vld [vmem:[#allocation12 + $0x5c] sm:$0xf]  ;;  %v13212_v19 = vor.u32 %v16149_v28, %v13211_v27  ;;  %v16053_v27 = vld [vmem:[#allocation12 + $0xdc] sm:$0xf0] }
 0x31e   :  { %v12404_v46 = vor.u32 %v15944_v18, %v12403_v9  ;;  %v12277_v49 = vld [vmem:[#allocation12 + $0x78] sm:$0xf0]  ;;  %v12532_v18 = vor.u32 %v15976_v45, %v12531_v44  ;;  %v16069_v44 = vld [vmem:[#allocation12 + $0x15c] sm:$0xf0] }
 0x31f   :  { %4655 = vmatpush.bf16.msra.mxu0 %v12300_v1  ;;  %4668 = vmatpush.bf16.msra.mxu1 %v12556_v5  ;;  %v16004_v1 = vld [vmem:[#allocation12 + $0x35c] sm:$0xf]  ;;  %v12280_v24 = vor.u32 %v15908_v48, %v12277_v49  ;;  %v13147_v45 = vld [vmem:[#allocation12 + $0x340] sm:$0xf] }
 0x320   :  { %4681 = vmatpush.bf16.msra.mxu2 %v12304_v47  ;;  %4694 = vmatpush.bf16.msra.mxu3 %v12560_v7  ;;  %v12661_v5 = vld [vmem:[#allocation12 + $0x378] sm:$0xf0]  ;;  %v12371_v47 = vld [vmem:[#allocation12 + $0x118] sm:$0xf]  ;;  %v16133_v48 = vld [vmem:[#allocation12 + $0x35c] sm:$0xf0] }
 0x321   :  { %v15936_v7 = vld [vmem:[#allocation12 + $0x134] sm:$0xf0]  ;;  %v12664_v61 = vor.u32 %v16004_v1, %v12661_v5  ;;  %v15900_v1 = vld [vmem:[#allocation12 + $0x1c] sm:$0xf] }
 0x322   :  { %v12245_v5 = vld [vmem:[#allocation12 + $0x38] sm:$0xf0] }
 0x323   :  { %4656 = vmatpush.bf16.msra.mxu0 %v12268_v11  ;;  %4669 = vmatpush.bf16.msra.mxu1 %v12524_v12  ;;  %v12629_v11 = vld [vmem:[#allocation12 + $0x338] sm:$0xf0]  ;;  %v12372_v12 = vor.u32 %v15936_v7, %v12371_v47  ;;  %v12500_v7 = vor.u32 %v15968_v0, %v12499_v58 }
 0x324   :  { %4682 = vmatpush.bf16.msra.mxu2 %v12272_v60  ;;  %4695 = vmatpush.bf16.msra.mxu3 %v12528_v14  ;;  %v12376_v60 = vor.u32 %v15932_v4, %v12373_v53  ;;  %v12632_v14 = vor.u32 %v15996_v59, %v12629_v11 }
 0x327   :  { %4657 = vmatpush.bf16.msra.mxu0 %v12236_v23  ;;  %4670 = vmatpush.bf16.msra.mxu1 %v12492_v30  ;;  %v15920_v23 = vld [vmem:[#allocation12 + $0xb4] sm:$0xf0]  ;;  %v12344_v30 = vor.u32 %v15924_v16, %v12341_v40  ;;  %v16081_v16 = vld [vmem:[#allocation12 + $0x1c4] sm:$0xf] }
 0x328   :  { %4683 = vmatpush.bf16.msra.mxu2 %v12240_v31  ;;  %4696 = vmatpush.bf16.msra.mxu3 %v12496_v17  ;;  %v15916_v31 = vld [vmem:[#allocation12 + $0x9c] sm:$0xf]  ;;  %v12308_v38 = vor.u32 %v15920_v23, %v12307_v22  ;;  %v12957_v40 = vld [vmem:[#allocation12 + $0x1e0] sm:$0xf0]  ;;  %v12923_v23 = vld [vmem:[#allocation12 + $0x180] sm:$0xf] }
 0x329   :  { %v12309_v17 = vld [vmem:[#allocation12 + $0xb8] sm:$0xf0]  ;;  %v12960_v20 = vor.u32 %v16081_v16, %v12957_v40  ;;  %v16117_v16 = vld [vmem:[#allocation12 + $0x2dc] sm:$0xf0]  ;;  %v16049_v40 = vld [vmem:[#allocation12 + $0xc4] sm:$0xf] }
 0x32a   :  { %4658 = vmatmul.bf16.vlgmr.msra.gmra.mxu0 %v17356_v56  ;;  %4671 = vmatmul.bf16.vlgmr.msra.gmra.mxu1 %v17358_v57  ;;  %v12312_v42 = vor.u32 %v15916_v31, %v12309_v17  ;;  %v16073_v31 = vld [vmem:[#allocation12 + $0x184] sm:$0xf] }
 0x32b   :  { %4702 = vmatpush.bf16.msrb.mxu0 %v12468_v36  ;;  %4715 = vmatpush.bf16.msrb.mxu1 %v12724_v37  ;;  %v15980_v36 = vld [vmem:[#allocation12 + $0x29c] sm:$0xf]  ;;  %v12925_v17 = vld [vmem:[#allocation12 + $0x1a0] sm:$0xf0] }
 0x32c   :  { %4728 = vmatpush.bf16.msrb.mxu2 %v12472_v41  ;;  %4741 = vmatpush.bf16.msrb.mxu3 %v12728_v2  ;;  %v12565_v37 = vld [vmem:[#allocation12 + $0x2b8] sm:$0xf0]  ;;  %v12275_v41 = vld [vmem:[#allocation12 + $0x58] sm:$0xf] }
 0x32d   :  { %4684 = vmatmul.bf16.vlgmr.msra.gmra.mxu2 %v17356_v56  ;;  %4697 = vmatmul.bf16.vlgmr.msra.gmra.mxu3 %v17358_v57  ;;  %v15912_v2 = vld [vmem:[#allocation12 + $0x74] sm:$0xf0]  ;;  %v12568_v43 = vor.u32 %v15980_v36, %v12565_v37  ;;  %v12928_v37 = vor.u32 %v16073_v31, %v12925_v17 }
 0x32e   :  { %v12276_v9 = vor.u32 %v15912_v2, %v12275_v41  ;;  %v12891_v41 = vld [vmem:[#allocation12 + $0x140] sm:$0xf] }
 0x32f   :  { %4703 = vmatpush.bf16.msrb.mxu0 %v12436_v50  ;;  %4716 = vmatpush.bf16.msrb.mxu1 %v12692_v8  ;;  %v15972_v50 = vld [vmem:[#allocation12 + $0x25c] sm:$0xf] }
 0x330   :  { %4729 = vmatpush.bf16.msrb.mxu2 %v12440_v54  ;;  %4742 = vmatpush.bf16.msrb.mxu3 %v12696_v25  ;;  %v12533_v8 = vld [vmem:[#allocation12 + $0x278] sm:$0xf0]  ;;  %v12243_v54 = vld [vmem:[#allocation12 + $0x18] sm:$0xf] }
 0x331   :  { %v15904_v25 = vld [vmem:[#allocation12 + $0x34] sm:$0xf0]  ;;  %v12536_v55 = vor.u32 %v15972_v50, %v12533_v8  ;;  %v12892_v8 = vor.u32 %v16069_v44, %v12891_v41 }
 0x332   :  { %v12244_v47 = vor.u32 %v15904_v25, %v12243_v54  ;;  %v16129_v54 = vld [vmem:[#allocation12 + $0x344] sm:$0xf]  ;;  %v13148_v25 = vor.u32 %v16133_v48, %v13147_v45 }
 0x333   :  { %4704 = vmatpush.bf16.msrb.mxu0 %v12404_v46  ;;  %4717 = vmatpush.bf16.msrb.mxu1 %v12660_v6  ;;  %v15964_v46 = vld [vmem:[#allocation12 + $0x21c] sm:$0xf]  ;;  %v16105_v45 = vld [vmem:[#allocation12 + $0x284] sm:$0xf] }
 0x334   :  { %4730 = vmatpush.bf16.msrb.mxu2 %v12408_v10  ;;  %4743 = vmatpush.bf16.msrb.mxu3 %v12664_v61  ;;  %v12501_v6 = vld [vmem:[#allocation12 + $0x238] sm:$0xf0]  ;;  %v12248_v10 = vor.u32 %v15900_v1, %v12245_v5  ;;  %v12859_v5 = vld [vmem:[#allocation12 + $0x100] sm:$0xf]  ;;  %v13053_v48 = vld [vmem:[#allocation12 + $0x2a0] sm:$0xf0] }
 0x335   :  { %v12504_v61 = vor.u32 %v15964_v46, %v12501_v6  ;;  %v16061_v46 = vld [vmem:[#allocation12 + $0x11c] sm:$0xf0] }
 0x336   :  { %v13115_v6 = vld [vmem:[#allocation12 + $0x300] sm:$0xf] }
 0x337   :  { %4705 = vmatpush.bf16.msrb.mxu0 %v12372_v12  ;;  %4718 = vmatpush.bf16.msrb.mxu1 %v12628_v26 }
 0x338   :  { %4731 = vmatpush.bf16.msrb.mxu2 %v12376_v60  ;;  %4744 = vmatpush.bf16.msrb.mxu3 %v12632_v14  ;;  %v12955_v14 = vld [vmem:[#allocation12 + $0x1c0] sm:$0xf] }
 0x33b   :  { %4706 = vmatpush.bf16.msrb.mxu0 %v12340_v21  ;;  %4719 = vmatpush.bf16.msrb.mxu1 %v12596_v63  ;;  %v16145_v21 = vld [vmem:[#allocation12 + $0x3c4] sm:$0xf] }
 0x33c   :  { %4732 = vmatpush.bf16.msrb.mxu2 %v12344_v30  ;;  %4745 = vmatpush.bf16.msrb.mxu3 %v12600_v32  ;;  %v13213_v63 = vld [vmem:[#allocation12 + $0x3e0] sm:$0xf0]  ;;  %v16077_v30 = vld [vmem:[#allocation12 + $0x19c] sm:$0xf0] }
 0x33d   :  { %v13216_v22 = vor.u32 %v16145_v21, %v13213_v63  ;;  %v13179_v32 = vld [vmem:[#allocation12 + $0x380] sm:$0xf]  ;;  %v12924_v34 = vor.u32 %v16077_v30, %v12923_v23  ;;  %v16113_v21 = vld [vmem:[#allocation12 + $0x2c4] sm:$0xf] }
 0x33e   :  { %v13180_v36 = vor.u32 %v16141_v35, %v13179_v32  ;;  %v13085_v63 = vld [vmem:[#allocation12 + $0x2e0] sm:$0xf0]  ;;  %v12795_v30 = vld [vmem:[#allocation12 + $0x80] sm:$0xf] }
 0x33f   :  { %4707 = vmatpush.bf16.msrb.mxu0 %v12308_v38  ;;  %4720 = vmatpush.bf16.msrb.mxu1 %v12564_v39  ;;  %v16137_v38 = vld [vmem:[#allocation12 + $0x384] sm:$0xf]  ;;  %v13088_v23 = vor.u32 %v16113_v21, %v13085_v63  ;;  %v16045_v32 = vld [vmem:[#allocation12 + $0x9c] sm:$0xf0]  ;;  %v16082_v63 = vld [vmem:[#allocation12 + $0x1cc] sm:$0xf] }
 0x340   :  { %4733 = vmatpush.bf16.msrb.mxu2 %v12312_v42  ;;  %4746 = vmatpush.bf16.msrb.mxu3 %v12568_v43  ;;  %v13181_v39 = vld [vmem:[#allocation12 + $0x3a0] sm:$0xf0]  ;;  %v12796_v17 = vor.u32 %v16045_v32, %v12795_v30  ;;  %v13221_v32 = vld [vmem:[#allocation12 + $0x3e8] sm:$0xf0] }
 0x341   :  { %v13184_v43 = vor.u32 %v16137_v38, %v13181_v39  ;;  %v12797_v38 = vld [vmem:[#allocation12 + $0xa0] sm:$0xf0] }
 0x343   :  { %4708 = vmatpush.bf16.msrb.mxu0 %v12276_v9  ;;  %4721 = vmatpush.bf16.msrb.mxu1 %v12532_v18  ;;  %v16065_v9 = vld [vmem:[#allocation12 + $0x144] sm:$0xf] }
 0x344   :  { %4734 = vmatpush.bf16.msrb.mxu2 %v12280_v24  ;;  %4747 = vmatpush.bf16.msrb.mxu3 %v12536_v55  ;;  %v12893_v18 = vld [vmem:[#allocation12 + $0x160] sm:$0xf0] }
 0x345   :  { %v12896_v24 = vor.u32 %v16065_v9, %v12893_v18  ;;  %v13149_v55 = vld [vmem:[#allocation12 + $0x360] sm:$0xf0]  ;;  %v13019_v18 = vld [vmem:[#allocation12 + $0x240] sm:$0xf] }
 0x346   :  { %v13152_v58 = vor.u32 %v16129_v54, %v13149_v55  ;;  %v16101_v54 = vld [vmem:[#allocation12 + $0x25c] sm:$0xf0]  ;;  %v12765_v55 = vld [vmem:[#allocation12 + $0x60] sm:$0xf0] }
 0x347   :  { %4709 = vmatpush.bf16.msrb.mxu0 %v12244_v47  ;;  %4722 = vmatpush.bf16.msrb.mxu1 %v12500_v7  ;;  %v12860_v47 = vor.u32 %v16061_v46, %v12859_v5  ;;  %v16125_v7 = vld [vmem:[#allocation12 + $0x31c] sm:$0xf0] }
 0x348   :  { %4735 = vmatpush.bf16.msrb.mxu2 %v12248_v10  ;;  %4748 = vmatpush.bf16.msrb.mxu3 %v12504_v61  ;;  %v16057_v10 = vld [vmem:[#allocation12 + $0x104] sm:$0xf]  ;;  %v12731_v46 = vld [vmem:[#allocation12] sm:$0xf] }
 0x349   :  { %v12861_v61 = vld [vmem:[#allocation12 + $0x120] sm:$0xf0] }
 0x34a   :  { %4710 = vmatmul.bf16.vlgmr.msrb.gmra.mxu0 %v17356_v56  ;;  %4723 = vmatmul.bf16.vlgmr.msrb.gmra.mxu1 %v17358_v57 }
 0x34b   :  { %4736 = vmatmul.bf16.vlgmr.msrb.gmra.mxu2 %v17356_v56  ;;  %4749 = vmatmul.bf16.vlgmr.msrb.gmra.mxu3 %v17358_v57  ;;  %v16085_v56 = vld [vmem:[#allocation12 + $0x1dc] sm:$0xf0] }
 0x34c   :  { %v12956_v57 = vor.u32 %v16085_v56, %v12955_v14  ;;  %5598 = vmatpush.bf16.msra.mxu1 %v13212_v19  ;;  %5611 = vmatpush.bf16.msra.mxu2 %v12960_v20  ;;  %v12827_v56 = vld [vmem:[#allocation12 + $0xc0] sm:$0xf]  ;;  %v12829_v20 = vld [vmem:[#allocation12 + $0xe0] sm:$0xf0] }
 0x34d   :  { %5624 = vmatpush.bf16.msra.mxu3 %v13216_v22  ;;  %v12828_v28 = vor.u32 %v16053_v27, %v12827_v56  ;;  %v12832_v22 = vor.u32 %v16049_v40, %v12829_v20  ;;  %v16089_v56 = vld [vmem:[#allocation12 + $0x204] sm:$0xf]  ;;  %v13219_v40 = vld [vmem:[#allocation12 + $0x3c8] sm:$0xf] }
 0x34e   :  { %5585 = vmatpush.bf16.msra.mxu0 %v12956_v57  ;;  %v13083_v57 = vld [vmem:[#allocation12 + $0x2c0] sm:$0xf]  ;;  %v12989_v27 = vld [vmem:[#allocation12 + $0x220] sm:$0xf0] }
 0x34f   :  { %v13084_v19 = vor.u32 %v16117_v16, %v13083_v57  ;;  %v12963_v57 = vld [vmem:[#allocation12 + $0x1c8] sm:$0xf] }
 0x350   :  { %5599 = vmatpush.bf16.msra.mxu1 %v13180_v36  ;;  %5612 = vmatpush.bf16.msra.mxu2 %v12928_v37  ;;  %v16109_v36 = vld [vmem:[#allocation12 + $0x29c] sm:$0xf0]  ;;  %v16041_v37 = vld [vmem:[#allocation12 + $0x84] sm:$0xf]  ;;  %v16086_v16 = vld [vmem:[#allocation12 + $0x1e4] sm:$0xf0] }
 0x351   :  { %5625 = vmatpush.bf16.msra.mxu3 %v13184_v43  ;;  %v12800_v44 = vor.u32 %v16041_v37, %v12797_v38  ;;  %v12964_v20 = vor.u32 %v16086_v16, %v12963_v57  ;;  %v13187_v38 = vld [vmem:[#allocation12 + $0x388] sm:$0xf]  ;;  %v13125_v16 = vld [vmem:[#allocation12 + $0x328] sm:$0xf0] }
 0x352   :  { %5586 = vmatpush.bf16.msra.mxu0 %v12924_v34  ;;  %v13051_v34 = vld [vmem:[#allocation12 + $0x280] sm:$0xf] }
 0x353   :  { %v13052_v43 = vor.u32 %v16109_v36, %v13051_v34  ;;  %v12931_v34 = vld [vmem:[#allocation12 + $0x188] sm:$0xf] }
 0x354   :  { %5600 = vmatpush.bf16.msra.mxu1 %v13148_v25  ;;  %5613 = vmatpush.bf16.msra.mxu2 %v12896_v24  ;;  %v16033_v25 = vld [vmem:[#allocation12 + $0x44] sm:$0xf]  ;;  %v13020_v24 = vor.u32 %v16101_v54, %v13019_v18  ;;  %v13155_v18 = vld [vmem:[#allocation12 + $0x348] sm:$0xf] }
 0x355   :  { %5626 = vmatpush.bf16.msra.mxu3 %v13152_v58  ;;  %v16097_v58 = vld [vmem:[#allocation12 + $0x244] sm:$0xf] }
 0x356   :  { %5587 = vmatpush.bf16.msra.mxu0 %v12892_v8  ;;  %v16037_v8 = vld [vmem:[#allocation12 + $0x5c] sm:$0xf0] }
 0x35a   :  { %5588 = vmatpush.bf16.msra.mxu0 %v12860_v47  ;;  %v12987_v47 = vld [vmem:[#allocation12 + $0x200] sm:$0xf] }
 0x35e   :  { %5589 = vmatpush.bf16.msra.mxu0 %v12828_v28  ;;  %v12992_v28 = vor.u32 %v16089_v56, %v12989_v27 }
 0x362   :  { %5590 = vmatpush.bf16.msra.mxu0 %v12796_v17  ;;  %v16078_v17 = vld [vmem:[#allocation12 + $0x1a4] sm:$0xf0] }
 0x363   :  { %v12932_v37 = vor.u32 %v16078_v17, %v12931_v34 }
 0x386   :  { %v4555_v62 = vpop.f32.mrf.mxu0  ;;  %v4568_v51 = vpop.f32.mrf.mxu1 }
 0x387   :  { %v17376_v4 = vadd.f32 %v4568_v51, %v4555_v62  ;;  %v13116_v62 = vor.u32 %v16125_v7, %v13115_v6  ;;  %v12864_v51 = vor.u32 %v16057_v10, %v12861_v61  ;;  %v16029_v6 = vld [vmem:[#allocation12 + $0x1c] sm:$0xf0] }
 0x388   :  { %v12732_v61 = vor.u32 %v16029_v6, %v12731_v46  ;;  %v12867_v6 = vld [vmem:[#allocation12 + $0x108] sm:$0xf] }
 0x389   :  { %5601 = vmatpush.bf16.msra.mxu1 %v13116_v62  ;;  %5614 = vmatpush.bf16.msra.mxu2 %v12864_v51  ;;  %v16093_v62 = vld [vmem:[#allocation12 + $0x21c] sm:$0xf0]  ;;  %v16025_v51 = vld [vmem:[#allocation12 + $0x4] sm:$0xf] }
 0x38d   :  { %v17378_v53 = vpop.f32.mrf.mxu2  ;;  %v17380_v59 = vpop.f32.mrf.mxu3  ;;  %5602 = vmatpush.bf16.msra.mxu1 %v13084_v19  ;;  %5615 = vmatpush.bf16.msra.mxu2 %v12832_v22  ;;  %v16150_v19 = vld [vmem:[#allocation12 + $0x3e4] sm:$0xf0]  ;;  %v12965_v22 = vld [vmem:[#allocation12 + $0x1e8] sm:$0xf0] }
 0x38e   :  { %v4557_v11 = vpop.f32.mrf.mxu0  ;;  %v4570_v12 = vpop.f32.mrf.mxu1  ;;  %v13220_v21 = vor.u32 %v16150_v19, %v13219_v40  ;;  %v12968_v30 = vor.u32 %v16082_v63, %v12965_v22  ;;  %v13091_v40 = vld [vmem:[#allocation12 + $0x2c8] sm:$0xf]  ;;  %v16050_v22 = vld [vmem:[#allocation12 + $0xcc] sm:$0xf] }
 0x38f   :  { %v16121_v11 = vld [vmem:[#allocation12 + $0x304] sm:$0xf]  ;;  %v16118_v63 = vld [vmem:[#allocation12 + $0x2e4] sm:$0xf0] }
 0x390   :  { %v13117_v12 = vld [vmem:[#allocation12 + $0x320] sm:$0xf0] }
 0x391   :  { %v13120_v14 = vor.u32 %v16121_v11, %v13117_v12  ;;  %5603 = vmatpush.bf16.msra.mxu1 %v13052_v43  ;;  %5616 = vmatpush.bf16.msra.mxu2 %v12800_v44  ;;  %v12733_v11 = vld [vmem:[#allocation12 + $0x20] sm:$0xf0]  ;;  %v12988_v12 = vor.u32 %v16093_v62, %v12987_v47  ;;  %v12933_v44 = vld [vmem:[#allocation12 + $0x1a8] sm:$0xf0]  ;;  %v16062_v47 = vld [vmem:[#allocation12 + $0x124] sm:$0xf0] }
 0x392   :  { %v12868_v62 = vor.u32 %v16062_v47, %v12867_v6  ;;  %v12771_v6 = vld [vmem:[#allocation12 + $0x48] sm:$0xf] }
 0x393   :  { %5627 = vmatpush.bf16.msra.mxu3 %v13120_v14  ;;  %v12736_v14 = vor.u32 %v16025_v51, %v12733_v11  ;;  %v16126_v51 = vld [vmem:[#allocation12 + $0x324] sm:$0xf0]  ;;  %v16058_v11 = vld [vmem:[#allocation12 + $0x10c] sm:$0xf] }
 0x394   :  { %v16038_v47 = vld [vmem:[#allocation12 + $0x64] sm:$0xf0] }
 0x395   :  { %v4583_v26 = vpop.f32.mrf.mxu2  ;;  %v4596_v13 = vpop.f32.mrf.mxu3  ;;  %5604 = vmatpush.bf16.msra.mxu1 %v13020_v24  ;;  %v16066_v24 = vld [vmem:[#allocation12 + $0x14c] sm:$0xf] }
 0x396   :  { %v17382_v15 = vpop.f32.mrf.mxu0  ;;  %v17384_v60 = vpop.f32.mrf.mxu1 }
 0x397   :  { %5628 = vmatpush.bf16.msra.mxu3 %v13088_v23  ;;  %v16146_v23 = vld [vmem:[#allocation12 + $0x3cc] sm:$0xf] }
 0x398   :  { %v13224_v36 = vor.u32 %v16146_v23, %v13221_v32  ;;  %v13093_v32 = vld [vmem:[#allocation12 + $0x2e8] sm:$0xf0] }
 0x399   :  { %5605 = vmatpush.bf16.msra.mxu1 %v12988_v12  ;;  %v12869_v12 = vld [vmem:[#allocation12 + $0x128] sm:$0xf0] }
 0x39a   :  { %v12872_v57 = vor.u32 %v16058_v11, %v12869_v12 }
 0x39d   :  { %v17386_v2 = vpop.f32.mrf.mxu2  ;;  %v17388_v42 = vpop.f32.mrf.mxu3  ;;  %5650 = vmatpush.bf16.msrb.mxu1 %v13220_v21 }
 0x39e   :  { %v4609_v49 = vpop.f32.mrf.mxu0  ;;  %v4622_v50 = vpop.f32.mrf.mxu1 }
 0x39f   :  { %v13056_v49 = vor.u32 %v16105_v45, %v13053_v48  ;;  %v12763_v50 = vld [vmem:[#allocation12 + $0x40] sm:$0xf]  ;;  %v16138_v45 = vld [vmem:[#allocation12 + $0x38c] sm:$0xf] }
 0x3a0   :  { %v12764_v9 = vor.u32 %v16037_v8, %v12763_v50  ;;  %v13189_v48 = vld [vmem:[#allocation12 + $0x3a8] sm:$0xf0]  ;;  %v12899_v8 = vld [vmem:[#allocation12 + $0x148] sm:$0xf] }
 0x3a1   :  { %5629 = vmatpush.bf16.msra.mxu3 %v13056_v49  ;;  %v13192_v50 = vor.u32 %v16138_v45, %v13189_v48 }
 0x3a2   :  { %5591 = vmatpush.bf16.msra.mxu0 %v12764_v9  ;;  %v16070_v9 = vld [vmem:[#allocation12 + $0x164] sm:$0xf0] }
 0x3a3   :  { %v12900_v54 = vor.u32 %v16070_v9, %v12899_v8 }
 0x3a5   :  { %v4635_v0 = vpop.f32.mrf.mxu2  ;;  %v4648_v1 = vpop.f32.mrf.mxu3 }
 0x3a6   :  { %v13021_v0 = vld [vmem:[#allocation12 + $0x260] sm:$0xf0]  ;;  %v12768_v1 = vor.u32 %v16033_v25, %v12765_v55  ;;  %5592 = vmatpush.bf16.msra.mxu0 %v12732_v61  ;;  %v16134_v25 = vld [vmem:[#allocation12 + $0x364] sm:$0xf0]  ;;  %v12901_v55 = vld [vmem:[#allocation12 + $0x168] sm:$0xf0]  ;;  %v17404_v61 = vadd.f32 %v17384_v60, %v17382_v15 }
 0x3a7   :  { %v17390_v26 = vpop.f32.mrf.mxu0  ;;  %v17392_v13 = vpop.f32.mrf.mxu1  ;;  %v13024_v5 = vor.u32 %v16097_v58, %v13021_v0  ;;  %v13156_v58 = vor.u32 %v16134_v25, %v13155_v18  ;;  %v12904_v0 = vor.u32 %v16066_v24, %v12901_v55  ;;  %v12835_v15 = vld [vmem:[#allocation12 + $0xc8] sm:$0xf]  ;;  %v16106_v25 = vld [vmem:[#allocation12 + $0x28c] sm:$0xf] }
 0x3a8   :  { %5617 = vmatpush.bf16.msra.mxu2 %v12768_v1  ;;  %v16130_v1 = vld [vmem:[#allocation12 + $0x34c] sm:$0xf]  ;;  %v16054_v60 = vld [vmem:[#allocation12 + $0xe4] sm:$0xf0]  ;;  %v4673_v17 = vadd.f32 %v17392_v13, %v17390_v26 }
 0x3a9   :  { %5630 = vmatpush.bf16.msra.mxu3 %v13024_v5  ;;  %v13157_v5 = vld [vmem:[#allocation12 + $0x368] sm:$0xf0]  ;;  %v12836_v21 = vor.u32 %v16054_v60, %v12835_v15 }
 0x3aa   :  { %5637 = vmatpush.bf16.msrb.mxu0 %v12964_v20  ;;  %v13160_v46 = vor.u32 %v16130_v1, %v13157_v5  ;;  %v4763_v20 = vrot.slane %v17404_v61, 6  ;;  %v13061_v24 = vld [vmem:[#allocation12 + $0x2a8] sm:$0xf0]  ;;  %v4765_v55 = vrot.slane %v4673_v17, 4  ;;  %v13027_v61 = vld [vmem:[#allocation12 + $0x248] sm:$0xf] }
 0x3ab   :  { %v12997_v17 = vld [vmem:[#allocation12 + $0x228] sm:$0xf0] }
 0x3ac   :  { %5618 = vmatpush.bf16.msra.mxu2 %v12736_v14 }
 0x3ad   :  { %5631 = vmatpush.bf16.msra.mxu3 %v12992_v28  ;;  %v16122_v28 = vld [vmem:[#allocation12 + $0x30c] sm:$0xf] }
 0x3ae   :  { %5638 = vmatpush.bf16.msrb.mxu0 %v12932_v37 }
 0x3af   :  { %v4661_v39 = vpop.f32.mrf.mxu0  ;;  %v4674_v41 = vpop.f32.mrf.mxu1 }
 0x3b0   :  { %v17394_v35 = vpop.f32.mrf.mxu2  ;;  %v17396_v31 = vpop.f32.mrf.mxu3  ;;  %v16142_v39 = vld [vmem:[#allocation12 + $0x3a4] sm:$0xf0]  ;;  %v16074_v41 = vld [vmem:[#allocation12 + $0x18c] sm:$0xf]  ;;  %5663 = vmatpush.bf16.msrb.mxu2 %v12968_v30  ;;  %v13092_v30 = vor.u32 %v16118_v63, %v13091_v40 }
 0x3b1   :  { %v13188_v43 = vor.u32 %v16142_v39, %v13187_v38  ;;  %5676 = vmatpush.bf16.msrb.mxu3 %v13224_v36  ;;  %v12936_v49 = vor.u32 %v16074_v41, %v12933_v44  ;;  %v4699_v23 = vadd.f32 %v17396_v31, %v17394_v35  ;;  %v3769_v39 = vld [vmem:[#allocation3 + $0x2] ss:$8 sm:$0xf0] }
 0x3b2   :  { %5639 = vmatpush.bf16.msrb.mxu0 %v12900_v54  ;;  %v12803_v41 = vld [vmem:[#allocation12 + $0x88] sm:$0xf] }
 0x3b3   :  { %5651 = vmatpush.bf16.msrb.mxu1 %v13188_v43  ;;  %v16046_v43 = vld [vmem:[#allocation12 + $0xa4] sm:$0xf0]  ;;  %v4766_v8 = vrot.slane %v4699_v23, 3 }
 0x3b4   :  { %5664 = vmatpush.bf16.msrb.mxu2 %v12936_v49  ;;  %v13059_v44 = vld [vmem:[#allocation12 + $0x288] sm:$0xf]  ;;  %v12804_v35 = vor.u32 %v16046_v43, %v12803_v41  ;;  %v16042_v49 = vld [vmem:[#allocation12 + $0x8c] sm:$0xf] }
 0x3b5   :  { %5677 = vmatpush.bf16.msrb.mxu3 %v13192_v50  ;;  %v16110_v31 = vld [vmem:[#allocation12 + $0x2a4] sm:$0xf0]  ;;  %v12805_v50 = vld [vmem:[#allocation12 + $0xa8] sm:$0xf0]  ;;  %v4772_v12 = vsel %vm2687_vm3, %v4765_v55, %v4766_v8  ;;  %v12971_v55 = vld [vmem:[#allocation12 + $0x1d0] sm:$0xf] }
 0x3b6   :  { %5640 = vmatpush.bf16.msrb.mxu0 %v12868_v62  ;;  %v13060_v13 = vor.u32 %v16110_v31, %v13059_v44  ;;  %v12808_v54 = vor.u32 %v16042_v49, %v12805_v50  ;;  %v16102_v62 = vld [vmem:[#allocation12 + $0x264] sm:$0xf0] }
 0x3b7   :  { %5652 = vmatpush.bf16.msrb.mxu1 %v13156_v58  ;;  %v3768_v58 = vld [vmem:[#allocation3 + $0x2] ss:$8 sm:$0xf] }
 0x3b8   :  { %v4687_v7 = vpop.f32.mrf.mxu2  ;;  %v4700_v10 = vpop.f32.mrf.mxu3  ;;  %5665 = vmatpush.bf16.msrb.mxu2 %v12904_v0  ;;  %v13064_v0 = vor.u32 %v16106_v25, %v13061_v24  ;;  %v12739_v40 = vld [vmem:[#allocation12 + $0x8] sm:$0xf] }
 0x3b9   :  { %v13123_v7 = vld [vmem:[#allocation12 + $0x308] sm:$0xf]  ;;  %v17400_v10 = vadd.f32 %v17380_v59, %v17378_v53  ;;  %v4647_v53 = vadd.f32 %v17388_v42, %v17386_v2  ;;  %5678 = vmatpush.bf16.msrb.mxu3 %v13160_v46  ;;  %v13128_v59 = vor.u32 %v16122_v28, %v13125_v16  ;;  %v12837_v2 = vld [vmem:[#allocation12 + $0xe8] sm:$0xf0] }
 0x3ba   :  { %v13124_v27 = vor.u32 %v16126_v51, %v13123_v7  ;;  %v16114_v42 = vld [vmem:[#allocation12 + $0x2cc] sm:$0xf]  ;;  %v12840_v36 = vor.u32 %v16050_v22, %v12837_v2  ;;  %5641 = vmatpush.bf16.msrb.mxu0 %v12836_v21  ;;  %v3770_v7 = vor.u32 %v3769_v39, %v3768_v58  ;;  %v16094_v23 = vld [vmem:[#allocation12 + $0x224] sm:$0xf0]  ;;  %v16087_v58 = vld [vmem:[#allocation12 + $0x1ec] sm:$0xf0] }
 0x3bb   :  { %v4762_v19 = vrot.slane %v17400_v10, 7  ;;  %v4764_v34 = vrot.slane %v4647_v53, 5  ;;  %v13096_v37 = vor.u32 %v16114_v42, %v13093_v32  ;;  %v12772_v10 = vor.u32 %v16038_v47, %v12771_v6  ;;  %v16034_v51 = vld [vmem:[#allocation12 + $0x4c] sm:$0xf]  ;;  %v12973_v6 = vld [vmem:[#allocation12 + $0x1f0] sm:$0xf0] }
 0x3bc   :  { %5653 = vmatpush.bf16.msrb.mxu1 %v13124_v27  ;;  %5666 = vmatpush.bf16.msrb.mxu2 %v12872_v57  ;;  %v12773_v27 = vld [vmem:[#allocation12 + $0x68] sm:$0xf0]  ;;  %v16147_v47 = vld [vmem:[#allocation12 + $0x3d4] sm:$0xf] }
 0x3bd   :  { %5679 = vmatpush.bf16.msrb.mxu3 %v13128_v59  ;;  %v4770_v1 = vsel %vm2683_vm1, %v4763_v20, %v4764_v34  ;;  %v4769_v11 = vsel %vm2681_vm0, %v17376_v4, %v4762_v19  ;;  %v16098_v57 = vld [vmem:[#allocation12 + $0x24c] sm:$0xf]  ;;  %v12776_v59 = vor.u32 %v16034_v51, %v12773_v27  ;;  %v16030_v4 = vld [vmem:[#allocation12 + $0x24] sm:$0xf0]  ;;  %v12972_v51 = vor.u32 %v16087_v58, %v12971_v55  ;;  %v13101_v55 = vld [vmem:[#allocation12 + $0x2f0] sm:$0xf0] }
 0x3be   :  { %5642 = vmatpush.bf16.msrb.mxu0 %v12804_v35  ;;  %v13029_v28 = vld [vmem:[#allocation12 + $0x268] sm:$0xf0]  ;;  %v4771_v16 = vsel %vm2685_vm2, %v4769_v11, %v4770_v1  ;;  %v12995_v19 = vld [vmem:[#allocation12 + $0x208] sm:$0xf]  ;;  %v12740_v22 = vor.u32 %v16030_v4, %v12739_v40  ;;  %v13227_v1 = vld [vmem:[#allocation12 + $0x3d0] sm:$0xf] }
 0x3bf   :  { %v13032_v15 = vor.u32 %v16098_v57, %v13029_v28  ;;  %v12741_v2 = vld [vmem:[#allocation12 + $0x28] sm:$0xf0]  ;;  %v12996_v42 = vor.u32 %v16094_v23, %v12995_v19  ;;  %v13195_v57 = vld [vmem:[#allocation12 + $0x390] sm:$0xf]  ;;  %v16067_v23 = vld [vmem:[#allocation12 + $0x154] sm:$0xf] }
 0x3c0   :  { %5654 = vmatpush.bf16.msrb.mxu1 %v13092_v30  ;;  %5667 = vmatpush.bf16.msrb.mxu2 %v12840_v36  ;;  %v16026_v30 = vld [vmem:[#allocation12 + $0xc] sm:$0xf]  ;;  %v16143_v28 = vld [vmem:[#allocation12 + $0x3ac] sm:$0xf0] }
 0x3c1   :  { %5680 = vmatpush.bf16.msrb.mxu3 %v13096_v37  ;;  %v12744_v32 = vor.u32 %v16026_v30, %v12741_v2  ;;  %v16090_v34 = vld [vmem:[#allocation12 + $0x20c] sm:$0xf]  ;;  %v13196_v40 = vor.u32 %v16143_v28, %v13195_v57  ;;  %v12907_v4 = vld [vmem:[#allocation12 + $0x150] sm:$0xf]  ;;  %v12909_v30 = vld [vmem:[#allocation12 + $0x170] sm:$0xf0] }
 0x3c2   :  { %5643 = vmatpush.bf16.msrb.mxu0 %v12772_v10  ;;  %v16071_v19 = vld [vmem:[#allocation12 + $0x16c] sm:$0xf0]  ;;  %v16131_v2 = vld [vmem:[#allocation12 + $0x354] sm:$0xf] }
 0x3c4   :  { %5655 = vmatpush.bf16.msrb.mxu1 %v13060_v13  ;;  %5668 = vmatpush.bf16.msrb.mxu2 %v12808_v54 }
 0x3c5   :  { %5681 = vmatpush.bf16.msrb.mxu3 %v13064_v0 }
 0x3c6   :  { %5644 = vmatpush.bf16.msrb.mxu0 %v12740_v22  ;;  %v16135_v22 = vld [vmem:[#allocation12 + $0x36c] sm:$0xf0] }
 0x3c7   :  { %v4711_v14 = vpop.f32.mrf.mxu0  ;;  %v4724_v56 = vpop.f32.mrf.mxu1 }
 0x3c8   :  { %v4725_v38 = vadd.f32 %v4724_v56, %v4711_v14  ;;  %v13028_v56 = vor.u32 %v16102_v62, %v13027_v61  ;;  %5669 = vmatpush.bf16.msrb.mxu2 %v12776_v59  ;;  %v16139_v59 = vld [vmem:[#allocation12 + $0x394] sm:$0xf] }
 0x3c9   :  { %5682 = vmatpush.bf16.msrb.mxu3 %v13032_v15  ;;  %v13197_v15 = vld [vmem:[#allocation12 + $0x3b0] sm:$0xf0] }
 0x3ca   :  { %v4767_v5 = vrot.slane %v4725_v38, 2  ;;  %5656 = vmatpush.bf16.msrb.mxu1 %v13028_v56  ;;  %v13000_v38 = vor.u32 %v16090_v34, %v12997_v17  ;;  %v12875_v17 = vld [vmem:[#allocation12 + $0x110] sm:$0xf] }
 0x3cc   :  { %5670 = vmatpush.bf16.msrb.mxu2 %v12744_v32  ;;  %v12908_v32 = vor.u32 %v16071_v19, %v12907_v4  ;;  %v12747_v4 = vld [vmem:[#allocation12 + $0x10] sm:$0xf] }
 0x3cd   :  { %5683 = vmatpush.bf16.msrb.mxu3 %v13000_v38 }
 0x3ce   :  { %v4737_v45 = vpop.f32.mrf.mxu2  ;;  %v4750_v48 = vpop.f32.mrf.mxu3  ;;  %5657 = vmatpush.bf16.msrb.mxu1 %v12996_v42  ;;  %v13165_v42 = vld [vmem:[#allocation12 + $0x370] sm:$0xf0] }
 0x3cf   :  { %v4751_v9 = vadd.f32 %v4750_v48, %v4737_v45  ;;  %v4713_v18 = vpop.f32.mrf.mxu0  ;;  %v4726_v26 = vpop.f32.mrf.mxu1  ;;  %v13168_v38 = vor.u32 %v16131_v2, %v13165_v42  ;;  %v16027_v2 = vld [vmem:[#allocation12 + $0x14] sm:$0xf] }
 0x3d0   :  { %v12749_v42 = vld [vmem:[#allocation12 + $0x30] sm:$0xf0] }
 0x3d1   :  { %v4768_v46 = vrot.slane %v4751_v9, 1 }
 0x3d3   :  { %v4773_v14 = vsel %vm2689_vm4, %v4767_v5, %v4768_v46  ;;  %v16151_v5 = vld [vmem:[#allocation12 + $0x3ec] sm:$0xf0]  ;;  %v16083_v46 = vld [vmem:[#allocation12 + $0x1d4] sm:$0xf] }
 0x3d4   :  { %v4774_v53 = vsel %vm2691_vm5, %v4772_v12, %v4773_v14  ;;  %v13228_v11 = vor.u32 %v16151_v5, %v13227_v1  ;;  %v12939_v12 = vld [vmem:[#allocation12 + $0x190] sm:$0xf]  ;;  %v12976_v56 = vor.u32 %v16083_v46, %v12973_v6 }
 0x3d5   :  { %v4775_v60 = vsel %vm2693_vm6, %v4771_v16, %v4774_v53  ;;  %v16079_v14 = vld [vmem:[#allocation12 + $0x1ac] sm:$0xf0]  ;;  %v16075_v16 = vld [vmem:[#allocation12 + $0x194] sm:$0xf] }
 0x3d6   :  { %v4777_v20 = vadd.f32 %v4775_v60, %v3770_v7  ;;  %v4739_v21 = vpop.f32.mrf.mxu2  ;;  %v4752_v63 = vpop.f32.mrf.mxu3  ;;  %v13229_v7 = vld [vmem:[#allocation12 + $0x3f0] sm:$0xf0]  ;;  %v12940_v60 = vor.u32 %v16079_v14, %v12939_v12  ;;  %v12811_v1 = vld [vmem:[#allocation12 + $0x90] sm:$0xf] }
 0x3d7   :  { %v13232_v27 = vor.u32 %v16147_v47, %v13229_v7  ;;  %v12941_v53 = vld [vmem:[#allocation12 + $0x1b0] sm:$0xf0]  ;;  %v13200_v21 = vor.u32 %v16139_v59, %v13197_v15  ;;  %v13163_v63 = vld [vmem:[#allocation12 + $0x350] sm:$0xf] }
 0x3d8   :  { %v4778_v36 = vmul.f32 0.5, %v4777_v20  ;;  %v4783_v37 = vrot.slane %v4777_v20, 2  ;;  %v4792_v41 = vrot.slane %v4777_v20, 6  ;;  %v4789_v43 = vrot.slane %v4777_v20, 4  ;;  %v16047_v5 = vld [vmem:[#allocation12 + $0xac] sm:$0xf0] }
 0x3d9   :  { %v12944_v20 = vor.u32 %v16075_v16, %v12941_v53  ;;  %v13164_v34 = vor.u32 %v16135_v22, %v13163_v63  ;;  %v13067_v47 = vld [vmem:[#allocation12 + $0x290] sm:$0xf]  ;;  %v12812_v12 = vor.u32 %v16047_v5, %v12811_v1  ;;  %v16035_v59 = vld [vmem:[#allocation12 + $0x54] sm:$0xf] }
 0x3da   :  { %16744 = vtanh.f32 %v4778_v36  ;;  %v4785_v39 = vmul.f32 0.5, %v4783_v37  ;;  %v4794_v44 = vmul.f32 0.5, %v4792_v41  ;;  %v16063_v36 = vld [vmem:[#allocation12 + $0x12c] sm:$0xf0]  ;;  %v12912_v37 = vor.u32 %v16067_v23, %v12909_v30  ;;  %v12781_v15 = vld [vmem:[#allocation12 + $0x70] sm:$0xf0] }
 0x3db   :  { %v16127_v41 = vld [vmem:[#allocation12 + $0x32c] sm:$0xf0]  ;;  %v12784_v23 = vor.u32 %v16035_v59, %v12781_v15  ;;  %v13139_v59 = vld [vmem:[#allocation12 + $0x318] sm:$0xf] }
 0x3dc   :  { %16746 = vtanh.f32 %v4785_v39  ;;  %v13131_v39 = vld [vmem:[#allocation12 + $0x310] sm:$0xf]  ;;  %v16128_v15 = vld [vmem:[#allocation12 + $0x334] sm:$0xf0] }
 0x3dd   :  { %16748 = vtanh.f32 %v4789_v43  ;;  %v16059_v43 = vld [vmem:[#allocation12 + $0x114] sm:$0xf]  ;;  %v16111_v7 = vld [vmem:[#allocation12 + $0x2ac] sm:$0xf0] }
 0x3de   :  { %16750 = vtanh.f32 %v4794_v44  ;;  %v12877_v44 = vld [vmem:[#allocation12 + $0x130] sm:$0xf0]  ;;  %v13068_v14 = vor.u32 %v16111_v7, %v13067_v47  ;;  %v13035_v16 = vld [vmem:[#allocation12 + $0x250] sm:$0xf] }
 0x3df   :  { %v16103_v53 = vld [vmem:[#allocation12 + $0x26c] sm:$0xf0] }
 0x3e0   :  { %v16745_v45 = vpop.eup %16744  ;;  %v13003_v63 = vld [vmem:[#allocation12 + $0x210] sm:$0xf] }
 0x3e1   :  { %v4780_v48 = vmul.f32 0.5, %v16745_v45  ;;  %v16123_v45 = vld [vmem:[#allocation12 + $0x314] sm:$0xf]  ;;  %v16095_v22 = vld [vmem:[#allocation12 + $0x22c] sm:$0xf0] }
 0x3e2   :  { %v16747_v35 = vpop.eup %16746 }
 0x3e3   :  { %v4781_v31 = vadd.f32 0.5, %v4780_v48  ;;  %v4787_v49 = vmul.f32 0.5, %v16747_v35  ;;  %v16749_v8 = vpop.eup %16748  ;;  %v13133_v48 = vld [vmem:[#allocation12 + $0x330] sm:$0xf0]  ;;  %v12876_v35 = vor.u32 %v16063_v36, %v12875_v17  ;;  %v12979_v17 = vld [vmem:[#allocation12 + $0x1d8] sm:$0xf] }
 0x3e4   :  { %v16751_v26 = vpop.eup %16750  ;;  %v16088_v36 = vld [vmem:[#allocation12 + $0x1f4] sm:$0xf0] }
 0x3e5   :  { %v4788_v50 = vadd.f32 0.5, %v4787_v49  ;;  %v4799_v18 = vmul.f32 %v16749_v8, %v4781_v31  ;;  %v4796_v54 = vmul.f32 0.5, %v16751_v26  ;;  %v13132_v31 = vor.u32 %v16127_v41, %v13131_v39  ;;  %v12843_v49 = vld [vmem:[#allocation12 + $0xd0] sm:$0xf]  ;;  %v16084_v39 = vld [vmem:[#allocation12 + $0x1dc] sm:$0xf] }
 0x3e6   :  { %v12880_v8 = vor.u32 %v16059_v43, %v12877_v44  ;;  %v16119_v26 = vld [vmem:[#allocation12 + $0x2ec] sm:$0xf0]  ;;  %v13004_v43 = vor.u32 %v16095_v22, %v13003_v63  ;;  %v12981_v44 = vld [vmem:[#allocation12 + $0x1f8] sm:$0xf0]  ;;  %v12851_v63 = vld [vmem:[#allocation12 + $0xd8] sm:$0xf] }
 0x3e7   :  { %v4798_v9 = vmul.f32 %v4788_v50, %v17351_v3  ;;  %v4797_v25 = vadd.f32 0.5, %v4796_v54  ;;  %v16055_v50 = vld [vmem:[#allocation12 + $0xec] sm:$0xf0]  ;;  %v16051_v54 = vld [vmem:[#allocation12 + $0xd4] sm:$0xf] }
 0x3e8   :  { %v12844_v58 = vor.u32 %v16055_v50, %v12843_v49  ;;  %v12980_v49 = vor.u32 %v16088_v36, %v12979_v17  ;;  %v16056_v22 = vld [vmem:[#allocation12 + $0xf4] sm:$0xf0]  ;;  %v16116_v17 = vld [vmem:[#allocation12 + $0x2dc] sm:$0xf] }
 0x3e9   :  { %v17423_v13 = vadd.f32 %v4799_v18, %v4798_v9  ;;  %v13136_v9 = vor.u32 %v16123_v45, %v13133_v48  ;;  %v13099_v18 = vld [vmem:[#allocation12 + $0x2d0] sm:$0xf]  ;;  %v16148_v45 = vld [vmem:[#allocation12 + $0x3dc] sm:$0xf] }
 0x3ea   :  { %v13237_v48 = vld [vmem:[#allocation12 + $0x3f8] sm:$0xf0] }
 0x3eb   :  { %16752 = vtanh.f32 %v17423_v13  ;;  %v13109_v36 = vld [vmem:[#allocation12 + $0x2f8] sm:$0xf0] }
 0x3f1   :  { %v16753_v24 = vpop.eup %16752 }
 0x3f2   :  { %v4802_v0 = vmul.f32 %v16753_v24, %v4797_v25  ;;  %v12845_v25 = vld [vmem:[#allocation12 + $0xf0] sm:$0xf0] }
 0x3f3   :  { %v16115_v24 = vld [vmem:[#allocation12 + $0x2d4] sm:$0xf]  ;;  %v12848_v46 = vor.u32 %v16051_v54, %v12845_v25  ;;  %v13203_v54 = vld [vmem:[#allocation12 + $0x398] sm:$0xf] }
 0x3f4   :  { %4804 = vst.msk [vmem:[#allocation2 + $0x2] ss:$8 sm:$0x3] %vm17278_vm7, %v4802_v0  ;;  %v4811_v3 = vperm.slane %v4802_v0, 0  ;;  %v4812_v10 = vperm.slane %v4802_v0, 1  ;;  %v13100_v0 = vor.u32 %v16119_v26, %v13099_v18  ;;  %v13104_v6 = vor.u32 %v16115_v24, %v13101_v55 }
 0x3f5   :  { %v12984_v18 = vor.u32 %v16084_v39, %v12981_v44  ;;  %v13240_v26 = vor.u32 %v16148_v45, %v13237_v48  ;;  %v16144_v25 = vld [vmem:[#allocation12 + $0x3b4] sm:$0xf0]  ;;  %v16076_v24 = vld [vmem:[#allocation12 + $0x19c] sm:$0xf]  ;;  %v13112_v44 = vor.u32 %v16116_v17, %v13109_v36 }
 0x3f6   :  { %v17428_v61 = vpack.c.bf16 %v4811_v3, %v4811_v3  ;;  %v17430_v62 = vpack.c.bf16 %v4812_v10, %v4812_v10  ;;  %v16043_v3 = vld [vmem:[#allocation12 + $0x94] sm:$0xf]  ;;  %v12949_v55 = vld [vmem:[#allocation12 + $0x1b8] sm:$0xf0]  ;;  %v13204_v5 = vor.u32 %v16144_v25, %v13203_v54  ;;  %v12819_v39 = vld [vmem:[#allocation12 + $0x98] sm:$0xf] }
 0x3f7   :  { %v12813_v10 = vld [vmem:[#allocation12 + $0xb0] sm:$0xf0]  ;;  %v12952_v47 = vor.u32 %v16076_v24, %v12949_v55  ;;  %v13075_v45 = vld [vmem:[#allocation12 + $0x298] sm:$0xf] }
 0x3f8   :  { %5593 = vmatmul.bf16.vlgmr.msra.gmra.mxu0 %v17428_v61  ;;  %5606 = vmatmul.bf16.vlgmr.msra.gmra.mxu1 %v17430_v62  ;;  %v12816_v57 = vor.u32 %v16043_v3, %v12813_v10  ;;  %v13171_v3 = vld [vmem:[#allocation12 + $0x358] sm:$0xf] }
 0x3f9   :  { %5619 = vmatmul.bf16.vlgmr.msra.gmra.mxu2 %v17428_v61  ;;  %5632 = vmatmul.bf16.vlgmr.msra.gmra.mxu3 %v17430_v62  ;;  %v16136_v10 = vld [vmem:[#allocation12 + $0x374] sm:$0xf0] }
 0x3fa   :  { %5689 = vmatpush.bf16.msra.mxu0 %v12972_v51  ;;  %5702 = vmatpush.bf16.msra.mxu1 %v13228_v11  ;;  %v16107_v51 = vld [vmem:[#allocation12 + $0x294] sm:$0xf]  ;;  %v16112_v48 = vld [vmem:[#allocation12 + $0x2b4] sm:$0xf0] }
 0x3fb   :  { %5715 = vmatpush.bf16.msra.mxu2 %v12976_v56  ;;  %5728 = vmatpush.bf16.msra.mxu3 %v13232_v27  ;;  %v13069_v11 = vld [vmem:[#allocation12 + $0x2b0] sm:$0xf0]  ;;  %v12779_v56 = vld [vmem:[#allocation12 + $0x50] sm:$0xf]  ;;  %v13043_v24 = vld [vmem:[#allocation12 + $0x258] sm:$0xf] }
 0x3fc   :  { %v16039_v27 = vld [vmem:[#allocation12 + $0x6c] sm:$0xf0]  ;;  %v13072_v28 = vor.u32 %v16107_v51, %v13069_v11  ;;  %v16068_v51 = vld [vmem:[#allocation12 + $0x15c] sm:$0xf]  ;;  %v16104_v55 = vld [vmem:[#allocation12 + $0x274] sm:$0xf0] }
 0x3fd   :  { %v12780_v19 = vor.u32 %v16039_v27, %v12779_v56  ;;  %v12917_v11 = vld [vmem:[#allocation12 + $0x178] sm:$0xf0]  ;;  %v13172_v27 = vor.u32 %v16136_v10, %v13171_v3 }
 0x3fe   :  { %5690 = vmatpush.bf16.msra.mxu0 %v12940_v60  ;;  %5703 = vmatpush.bf16.msra.mxu1 %v13196_v40  ;;  %v16099_v60 = vld [vmem:[#allocation12 + $0x254] sm:$0xf] }
 0x3ff   :  { %5716 = vmatpush.bf16.msra.mxu2 %v12944_v20  ;;  %5729 = vmatpush.bf16.msra.mxu3 %v13200_v21  ;;  %v13037_v40 = vld [vmem:[#allocation12 + $0x270] sm:$0xf0]  ;;  %v13036_v20 = vor.u32 %v16103_v53, %v13035_v16  ;;  %v16031_v21 = vld [vmem:[#allocation12 + $0x2c] sm:$0xf0]  ;;  %v12920_v16 = vor.u32 %v16068_v51, %v12917_v11  ;;  %v13011_v51 = vld [vmem:[#allocation12 + $0x218] sm:$0xf] }
 0x400   :  { %v13040_v30 = vor.u32 %v16099_v60, %v13037_v40  ;;  %v12748_v41 = vor.u32 %v16031_v21, %v12747_v4  ;;  %v16060_v60 = vld [vmem:[#allocation12 + $0x11c] sm:$0xf]  ;;  %v13140_v21 = vor.u32 %v16128_v15, %v13139_v59  ;;  %v16096_v11 = vld [vmem:[#allocation12 + $0x234] sm:$0xf0] }
 0x401   :  { %v12885_v40 = vld [vmem:[#allocation12 + $0x138] sm:$0xf0] }
 0x402   :  { %5691 = vmatpush.bf16.msra.mxu0 %v12908_v32  ;;  %5704 = vmatpush.bf16.msra.mxu1 %v13164_v34  ;;  %v16091_v32 = vld [vmem:[#allocation12 + $0x214] sm:$0xf]  ;;  %v16124_v4 = vld [vmem:[#allocation12 + $0x31c] sm:$0xf] }
 0x403   :  { %5717 = vmatpush.bf16.msra.mxu2 %v12912_v37  ;;  %5730 = vmatpush.bf16.msra.mxu3 %v13168_v38  ;;  %v13005_v34 = vld [vmem:[#allocation12 + $0x230] sm:$0xf0]  ;;  %v13235_v37 = vld [vmem:[#allocation12 + $0x3d8] sm:$0xf] }
 0x404   :  { %v16152_v38 = vld [vmem:[#allocation12 + $0x3f4] sm:$0xf0] }
 0x405   :  { %v13236_v50 = vor.u32 %v16152_v38, %v13235_v37  ;;  %v12852_v37 = vor.u32 %v16056_v22, %v12851_v63 }
 0x406   :  { %5692 = vmatpush.bf16.msra.mxu0 %v12876_v35  ;;  %5705 = vmatpush.bf16.msra.mxu1 %v13132_v31  ;;  %v12752_v35 = vor.u32 %v16027_v2, %v12749_v42  ;;  %v13008_v31 = vor.u32 %v16091_v32, %v13005_v34  ;;  %v13107_v2 = vld [vmem:[#allocation12 + $0x2d8] sm:$0xf]  ;;  %v16052_v32 = vld [vmem:[#allocation12 + $0xdc] sm:$0xf] }
 0x407   :  { %5718 = vmatpush.bf16.msra.mxu2 %v12880_v8  ;;  %5731 = vmatpush.bf16.msra.mxu3 %v13136_v9  ;;  %v12947_v8 = vld [vmem:[#allocation12 + $0x198] sm:$0xf]  ;;  %v12853_v34 = vld [vmem:[#allocation12 + $0xf8] sm:$0xf0] }
 0x408   :  { %5645 = vmatmul.bf16.vlgmr.msrb.gmra.mxu0 %v17428_v61  ;;  %5658 = vmatmul.bf16.vlgmr.msrb.gmra.mxu1 %v17430_v62  ;;  %v16080_v9 = vld [vmem:[#allocation12 + $0x1b4] sm:$0xf0] }
 0x409   :  { %5671 = vmatmul.bf16.vlgmr.msrb.gmra.mxu2 %v17428_v61  ;;  %5684 = vmatmul.bf16.vlgmr.msrb.gmra.mxu3 %v17430_v62  ;;  %v12948_v1 = vor.u32 %v16080_v9, %v12947_v8  ;;  %v16120_v42 = vld [vmem:[#allocation12 + $0x2f4] sm:$0xf0]  ;;  %v13076_v9 = vor.u32 %v16112_v48, %v13075_v45  ;;  %v16269_v48 = vld [vmem:[#allocation12 + $0x39c] sm:$0xf0] }
 0x40a   :  { %5693 = vmatpush.bf16.msra.mxu0 %v12844_v58  ;;  %5706 = vmatpush.bf16.msra.mxu1 %v13100_v0  ;;  %v16140_v58 = vld [vmem:[#allocation12 + $0x39c] sm:$0xf]  ;;  %v13108_v38 = vor.u32 %v16120_v42, %v13107_v2  ;;  %v13723_v2 = vld [vmem:[#allocation12 + $0x3c0] sm:$0xf] }
 0x40b   :  { %5719 = vmatpush.bf16.msra.mxu2 %v12848_v46  ;;  %5732 = vmatpush.bf16.msra.mxu3 %v13104_v6  ;;  %v13205_v0 = vld [vmem:[#allocation12 + $0x3b8] sm:$0xf0]  ;;  %v12915_v46 = vld [vmem:[#allocation12 + $0x158] sm:$0xf]  ;;  %v16277_v42 = vld [vmem:[#allocation12 + $0x3dc] sm:$0xf0] }
 0x40c   :  { %v16072_v6 = vld [vmem:[#allocation12 + $0x174] sm:$0xf0]  ;;  %v13208_v7 = vor.u32 %v16140_v58, %v13205_v0  ;;  %v16036_v58 = vld [vmem:[#allocation12 + $0x5c] sm:$0xf]  ;;  %v13724_v17 = vor.u32 %v16277_v42, %v13723_v2  ;;  %v16181_v2 = vld [vmem:[#allocation12 + $0xdc] sm:$0xf0] }
 0x40d   :  { %v12916_v56 = vor.u32 %v16072_v6, %v12915_v46  ;;  %v12789_v0 = vld [vmem:[#allocation12 + $0x78] sm:$0xf0]  ;;  %v13044_v6 = vor.u32 %v16104_v55, %v13043_v24  ;;  %v16197_v24 = vld [vmem:[#allocation12 + $0x15c] sm:$0xf0] }
 0x40e   :  { %5694 = vmatpush.bf16.msra.mxu0 %v12812_v12  ;;  %5707 = vmatpush.bf16.msra.mxu1 %v13068_v14  ;;  %v16132_v12 = vld [vmem:[#allocation12 + $0x35c] sm:$0xf]  ;;  %v12792_v3 = vor.u32 %v16036_v58, %v12789_v0  ;;  %v13659_v55 = vld [vmem:[#allocation12 + $0x340] sm:$0xf] }
 0x40f   :  { %5720 = vmatpush.bf16.msra.mxu2 %v12816_v57  ;;  %5733 = vmatpush.bf16.msra.mxu3 %v13072_v28  ;;  %v13173_v14 = vld [vmem:[#allocation12 + $0x378] sm:$0xf0]  ;;  %v12883_v57 = vld [vmem:[#allocation12 + $0x118] sm:$0xf]  ;;  %v16261_v58 = vld [vmem:[#allocation12 + $0x35c] sm:$0xf0] }
 0x410   :  { %v16064_v28 = vld [vmem:[#allocation12 + $0x134] sm:$0xf0]  ;;  %v13176_v53 = vor.u32 %v16132_v12, %v13173_v14  ;;  %v16028_v12 = vld [vmem:[#allocation12 + $0x1c] sm:$0xf] }
 0x411   :  { %v12757_v14 = vld [vmem:[#allocation12 + $0x38] sm:$0xf0] }
 0x412   :  { %5695 = vmatpush.bf16.msra.mxu0 %v12780_v19  ;;  %5708 = vmatpush.bf16.msra.mxu1 %v13036_v20  ;;  %v13141_v19 = vld [vmem:[#allocation12 + $0x338] sm:$0xf0]  ;;  %v12884_v20 = vor.u32 %v16064_v28, %v12883_v57  ;;  %v13012_v28 = vor.u32 %v16096_v11, %v13011_v51 }
 0x413   :  { %5721 = vmatpush.bf16.msra.mxu2 %v12784_v23  ;;  %5734 = vmatpush.bf16.msra.mxu3 %v13040_v30  ;;  %v12888_v23 = vor.u32 %v16060_v60, %v12885_v40  ;;  %v13144_v30 = vor.u32 %v16124_v4, %v13141_v19 }
 0x416   :  { %5696 = vmatpush.bf16.msra.mxu0 %v12748_v41  ;;  %5709 = vmatpush.bf16.msra.mxu1 %v13004_v43  ;;  %v16048_v41 = vld [vmem:[#allocation12 + $0xb4] sm:$0xf0]  ;;  %v12856_v43 = vor.u32 %v16052_v32, %v12853_v34  ;;  %v16209_v32 = vld [vmem:[#allocation12 + $0x1c4] sm:$0xf] }
 0x417   :  { %5722 = vmatpush.bf16.msra.mxu2 %v12752_v35  ;;  %5735 = vmatpush.bf16.msra.mxu3 %v13008_v31  ;;  %v16044_v35 = vld [vmem:[#allocation12 + $0x9c] sm:$0xf]  ;;  %v12820_v8 = vor.u32 %v16048_v41, %v12819_v39  ;;  %v13469_v34 = vld [vmem:[#allocation12 + $0x1e0] sm:$0xf0]  ;;  %v13435_v41 = vld [vmem:[#allocation12 + $0x180] sm:$0xf] }
 0x418   :  { %v12821_v31 = vld [vmem:[#allocation12 + $0xb8] sm:$0xf0]  ;;  %v13472_v36 = vor.u32 %v16209_v32, %v13469_v34  ;;  %v16245_v32 = vld [vmem:[#allocation12 + $0x2dc] sm:$0xf0]  ;;  %v16177_v34 = vld [vmem:[#allocation12 + $0xc4] sm:$0xf] }
 0x419   :  { %5697 = vmatmul.bf16.vlgmr.msra.gmra.mxu0 %v17428_v61  ;;  %5710 = vmatmul.bf16.vlgmr.msra.gmra.mxu1 %v17430_v62  ;;  %v12824_v54 = vor.u32 %v16044_v35, %v12821_v31  ;;  %v16201_v35 = vld [vmem:[#allocation12 + $0x184] sm:$0xf] }
 0x41a   :  { %5741 = vmatpush.bf16.msrb.mxu0 %v12980_v49  ;;  %5754 = vmatpush.bf16.msrb.mxu1 %v13236_v50  ;;  %v16108_v49 = vld [vmem:[#allocation12 + $0x29c] sm:$0xf]  ;;  %v13437_v31 = vld [vmem:[#allocation12 + $0x1a0] sm:$0xf0] }
 0x41b   :  { %5767 = vmatpush.bf16.msrb.mxu2 %v12984_v18  ;;  %5780 = vmatpush.bf16.msrb.mxu3 %v13240_v26  ;;  %v13077_v50 = vld [vmem:[#allocation12 + $0x2b8] sm:$0xf0]  ;;  %v12787_v18 = vld [vmem:[#allocation12 + $0x58] sm:$0xf] }
 0x41c   :  { %5723 = vmatmul.bf16.vlgmr.msra.gmra.mxu2 %v17428_v61  ;;  %5736 = vmatmul.bf16.vlgmr.msra.gmra.mxu3 %v17430_v62  ;;  %v16040_v26 = vld [vmem:[#allocation12 + $0x74] sm:$0xf0]  ;;  %v13080_v25 = vor.u32 %v16108_v49, %v13077_v50  ;;  %v13440_v50 = vor.u32 %v16201_v35, %v13437_v31 }
 0x41d   :  { %v12788_v46 = vor.u32 %v16040_v26, %v12787_v18  ;;  %v13403_v18 = vld [vmem:[#allocation12 + $0x140] sm:$0xf] }
 0x41e   :  { %5742 = vmatpush.bf16.msrb.mxu0 %v12948_v1  ;;  %5755 = vmatpush.bf16.msrb.mxu1 %v13204_v5  ;;  %v16100_v1 = vld [vmem:[#allocation12 + $0x25c] sm:$0xf] }
 0x41f   :  { %5768 = vmatpush.bf16.msrb.mxu2 %v12952_v47  ;;  %5781 = vmatpush.bf16.msrb.mxu3 %v13208_v7  ;;  %v13045_v5 = vld [vmem:[#allocation12 + $0x278] sm:$0xf0]  ;;  %v12755_v47 = vld [vmem:[#allocation12 + $0x18] sm:$0xf] }
 0x420   :  { %v16032_v7 = vld [vmem:[#allocation12 + $0x34] sm:$0xf0]  ;;  %v13048_v10 = vor.u32 %v16100_v1, %v13045_v5  ;;  %v13404_v5 = vor.u32 %v16197_v24, %v13403_v18 }
 0x421   :  { %v12756_v57 = vor.u32 %v16032_v7, %v12755_v47  ;;  %v16257_v47 = vld [vmem:[#allocation12 + $0x344] sm:$0xf]  ;;  %v13660_v7 = vor.u32 %v16261_v58, %v13659_v55 }
 0x422   :  { %5743 = vmatpush.bf16.msrb.mxu0 %v12916_v56  ;;  %5756 = vmatpush.bf16.msrb.mxu1 %v13172_v27  ;;  %v16092_v56 = vld [vmem:[#allocation12 + $0x21c] sm:$0xf]  ;;  %v16233_v55 = vld [vmem:[#allocation12 + $0x284] sm:$0xf] }
 0x423   :  { %5769 = vmatpush.bf16.msrb.mxu2 %v12920_v16  ;;  %5782 = vmatpush.bf16.msrb.mxu3 %v13176_v53  ;;  %v13013_v27 = vld [vmem:[#allocation12 + $0x238] sm:$0xf0]  ;;  %v12760_v16 = vor.u32 %v16028_v12, %v12757_v14  ;;  %v13371_v14 = vld [vmem:[#allocation12 + $0x100] sm:$0xf]  ;;  %v13565_v58 = vld [vmem:[#allocation12 + $0x2a0] sm:$0xf0] }
 0x424   :  { %v13016_v53 = vor.u32 %v16092_v56, %v13013_v27  ;;  %v16189_v56 = vld [vmem:[#allocation12 + $0x11c] sm:$0xf0] }
 0x425   :  { %v13627_v27 = vld [vmem:[#allocation12 + $0x300] sm:$0xf] }
 0x426   :  { %5744 = vmatpush.bf16.msrb.mxu0 %v12884_v20  ;;  %5757 = vmatpush.bf16.msrb.mxu1 %v13140_v21 }
 0x427   :  { %5770 = vmatpush.bf16.msrb.mxu2 %v12888_v23  ;;  %5783 = vmatpush.bf16.msrb.mxu3 %v13144_v30  ;;  %v13467_v30 = vld [vmem:[#allocation12 + $0x1c0] sm:$0xf] }
 0x42a   :  { %5745 = vmatpush.bf16.msrb.mxu0 %v12852_v37  ;;  %5758 = vmatpush.bf16.msrb.mxu1 %v13108_v38  ;;  %v16273_v37 = vld [vmem:[#allocation12 + $0x3c4] sm:$0xf] }
 0x42b   :  { %5771 = vmatpush.bf16.msrb.mxu2 %v12856_v43  ;;  %5784 = vmatpush.bf16.msrb.mxu3 %v13112_v44  ;;  %v13725_v38 = vld [vmem:[#allocation12 + $0x3e0] sm:$0xf0]  ;;  %v16205_v43 = vld [vmem:[#allocation12 + $0x19c] sm:$0xf0] }
 0x42c   :  { %v13728_v39 = vor.u32 %v16273_v37, %v13725_v38  ;;  %v13691_v44 = vld [vmem:[#allocation12 + $0x380] sm:$0xf]  ;;  %v13436_v45 = vor.u32 %v16205_v43, %v13435_v41  ;;  %v16241_v37 = vld [vmem:[#allocation12 + $0x2c4] sm:$0xf] }
 0x42d   :  { %v13692_v49 = vor.u32 %v16269_v48, %v13691_v44  ;;  %v13597_v38 = vld [vmem:[#allocation12 + $0x2e0] sm:$0xf0]  ;;  %v13307_v43 = vld [vmem:[#allocation12 + $0x80] sm:$0xf] }
 0x42e   :  { %5746 = vmatpush.bf16.msrb.mxu0 %v12820_v8  ;;  %5759 = vmatpush.bf16.msrb.mxu1 %v13076_v9  ;;  %v16265_v8 = vld [vmem:[#allocation12 + $0x384] sm:$0xf]  ;;  %v13600_v41 = vor.u32 %v16241_v37, %v13597_v38  ;;  %v16173_v44 = vld [vmem:[#allocation12 + $0x9c] sm:$0xf0]  ;;  %v16210_v38 = vld [vmem:[#allocation12 + $0x1cc] sm:$0xf] }
 0x42f   :  { %5772 = vmatpush.bf16.msrb.mxu2 %v12824_v54  ;;  %5785 = vmatpush.bf16.msrb.mxu3 %v13080_v25  ;;  %v13693_v9 = vld [vmem:[#allocation12 + $0x3a0] sm:$0xf0]  ;;  %v13308_v31 = vor.u32 %v16173_v44, %v13307_v43  ;;  %v13733_v44 = vld [vmem:[#allocation12 + $0x3e8] sm:$0xf0] }
 0x430   :  { %v13696_v25 = vor.u32 %v16265_v8, %v13693_v9  ;;  %v13309_v8 = vld [vmem:[#allocation12 + $0xa0] sm:$0xf0] }
 0x432   :  { %5747 = vmatpush.bf16.msrb.mxu0 %v12788_v46  ;;  %5760 = vmatpush.bf16.msrb.mxu1 %v13044_v6  ;;  %v16193_v46 = vld [vmem:[#allocation12 + $0x144] sm:$0xf] }
 0x433   :  { %5773 = vmatpush.bf16.msrb.mxu2 %v12792_v3  ;;  %5786 = vmatpush.bf16.msrb.mxu3 %v13048_v10  ;;  %v13405_v6 = vld [vmem:[#allocation12 + $0x160] sm:$0xf0] }
 0x434   :  { %v13408_v3 = vor.u32 %v16193_v46, %v13405_v6  ;;  %v13661_v10 = vld [vmem:[#allocation12 + $0x360] sm:$0xf0]  ;;  %v13531_v6 = vld [vmem:[#allocation12 + $0x240] sm:$0xf] }
 0x435   :  { %v13664_v51 = vor.u32 %v16257_v47, %v13661_v10  ;;  %v16229_v47 = vld [vmem:[#allocation12 + $0x25c] sm:$0xf0]  ;;  %v13277_v10 = vld [vmem:[#allocation12 + $0x60] sm:$0xf0] }
 0x436   :  { %5748 = vmatpush.bf16.msrb.mxu0 %v12756_v57  ;;  %5761 = vmatpush.bf16.msrb.mxu1 %v13012_v28  ;;  %v13372_v57 = vor.u32 %v16189_v56, %v13371_v14  ;;  %v16253_v28 = vld [vmem:[#allocation12 + $0x31c] sm:$0xf0] }
 0x437   :  { %5774 = vmatpush.bf16.msrb.mxu2 %v12760_v16  ;;  %5787 = vmatpush.bf16.msrb.mxu3 %v13016_v53  ;;  %v16185_v16 = vld [vmem:[#allocation12 + $0x104] sm:$0xf]  ;;  %v13243_v56 = vld [vmem:[#allocation12] sm:$0xf] }
 0x438   :  { %v13373_v53 = vld [vmem:[#allocation12 + $0x120] sm:$0xf0] }
 0x439   :  { %5749 = vmatmul.bf16.vlgmr.msrb.gmra.mxu0 %v17428_v61  ;;  %5762 = vmatmul.bf16.vlgmr.msrb.gmra.mxu1 %v17430_v62 }
 0x43a   :  { %5775 = vmatmul.bf16.vlgmr.msrb.gmra.mxu2 %v17428_v61  ;;  %5788 = vmatmul.bf16.vlgmr.msrb.gmra.mxu3 %v17430_v62  ;;  %v16213_v61 = vld [vmem:[#allocation12 + $0x1dc] sm:$0xf0] }
 0x43b   :  { %v13468_v62 = vor.u32 %v16213_v61, %v13467_v30  ;;  %6637 = vmatpush.bf16.msra.mxu1 %v13724_v17  ;;  %6650 = vmatpush.bf16.msra.mxu2 %v13472_v36  ;;  %v13339_v61 = vld [vmem:[#allocation12 + $0xc0] sm:$0xf]  ;;  %v13341_v36 = vld [vmem:[#allocation12 + $0xe0] sm:$0xf0] }
 0x43c   :  { %6663 = vmatpush.bf16.msra.mxu3 %v13728_v39  ;;  %v13340_v42 = vor.u32 %v16181_v2, %v13339_v61  ;;  %v13344_v39 = vor.u32 %v16177_v34, %v13341_v36  ;;  %v16217_v61 = vld [vmem:[#allocation12 + $0x204] sm:$0xf]  ;;  %v13731_v34 = vld [vmem:[#allocation12 + $0x3c8] sm:$0xf] }
 0x43d   :  { %6624 = vmatpush.bf16.msra.mxu0 %v13468_v62  ;;  %v13595_v62 = vld [vmem:[#allocation12 + $0x2c0] sm:$0xf]  ;;  %v13501_v2 = vld [vmem:[#allocation12 + $0x220] sm:$0xf0] }
 0x43e   :  { %v13596_v17 = vor.u32 %v16245_v32, %v13595_v62  ;;  %v13475_v62 = vld [vmem:[#allocation12 + $0x1c8] sm:$0xf] }
 0x43f   :  { %6638 = vmatpush.bf16.msra.mxu1 %v13692_v49  ;;  %6651 = vmatpush.bf16.msra.mxu2 %v13440_v50  ;;  %v16237_v49 = vld [vmem:[#allocation12 + $0x29c] sm:$0xf0]  ;;  %v16169_v50 = vld [vmem:[#allocation12 + $0x84] sm:$0xf]  ;;  %v16214_v32 = vld [vmem:[#allocation12 + $0x1e4] sm:$0xf0] }
 0x440   :  { %6664 = vmatpush.bf16.msra.mxu3 %v13696_v25  ;;  %v13312_v24 = vor.u32 %v16169_v50, %v13309_v8  ;;  %v13476_v36 = vor.u32 %v16214_v32, %v13475_v62  ;;  %v13699_v8 = vld [vmem:[#allocation12 + $0x388] sm:$0xf]  ;;  %v13637_v32 = vld [vmem:[#allocation12 + $0x328] sm:$0xf0] }
 0x441   :  { %6625 = vmatpush.bf16.msra.mxu0 %v13436_v45  ;;  %v13563_v45 = vld [vmem:[#allocation12 + $0x280] sm:$0xf] }
 0x442   :  { %v13564_v25 = vor.u32 %v16237_v49, %v13563_v45  ;;  %v13443_v45 = vld [vmem:[#allocation12 + $0x188] sm:$0xf] }
 0x443   :  { %6639 = vmatpush.bf16.msra.mxu1 %v13660_v7  ;;  %6652 = vmatpush.bf16.msra.mxu2 %v13408_v3  ;;  %v16161_v7 = vld [vmem:[#allocation12 + $0x44] sm:$0xf]  ;;  %v13532_v3 = vor.u32 %v16229_v47, %v13531_v6  ;;  %v13667_v6 = vld [vmem:[#allocation12 + $0x348] sm:$0xf] }
 0x444   :  { %6665 = vmatpush.bf16.msra.mxu3 %v13664_v51  ;;  %v16225_v51 = vld [vmem:[#allocation12 + $0x244] sm:$0xf] }
 0x445   :  { %6626 = vmatpush.bf16.msra.mxu0 %v13404_v5  ;;  %v16165_v5 = vld [vmem:[#allocation12 + $0x5c] sm:$0xf0] }
 0x449   :  { %6627 = vmatpush.bf16.msra.mxu0 %v13372_v57  ;;  %v13499_v57 = vld [vmem:[#allocation12 + $0x200] sm:$0xf] }
 0x44d   :  { %6628 = vmatpush.bf16.msra.mxu0 %v13340_v42  ;;  %v13504_v42 = vor.u32 %v16217_v61, %v13501_v2 }
 0x451   :  { %6629 = vmatpush.bf16.msra.mxu0 %v13308_v31  ;;  %v16206_v31 = vld [vmem:[#allocation12 + $0x1a4] sm:$0xf0] }
 0x452   :  { %v13444_v50 = vor.u32 %v16206_v31, %v13443_v45 }
 0x475   :  { %v5594_v59 = vpop.f32.mrf.mxu0  ;;  %v5607_v15 = vpop.f32.mrf.mxu1 }
 0x476   :  { %v17448_v60 = vadd.f32 %v5607_v15, %v5594_v59  ;;  %v13628_v59 = vor.u32 %v16253_v28, %v13627_v27  ;;  %v13376_v15 = vor.u32 %v16185_v16, %v13373_v53  ;;  %v16157_v27 = vld [vmem:[#allocation12 + $0x1c] sm:$0xf0] }
 0x477   :  { %v13244_v53 = vor.u32 %v16157_v27, %v13243_v56  ;;  %v13379_v27 = vld [vmem:[#allocation12 + $0x108] sm:$0xf] }
 0x478   :  { %6640 = vmatpush.bf16.msra.mxu1 %v13628_v59  ;;  %6653 = vmatpush.bf16.msra.mxu2 %v13376_v15  ;;  %v16221_v59 = vld [vmem:[#allocation12 + $0x21c] sm:$0xf0]  ;;  %v16153_v15 = vld [vmem:[#allocation12 + $0x4] sm:$0xf] }
 0x47c   :  { %v17450_v40 = vpop.f32.mrf.mxu2  ;;  %v17452_v4 = vpop.f32.mrf.mxu3  ;;  %6641 = vmatpush.bf16.msra.mxu1 %v13596_v17  ;;  %6654 = vmatpush.bf16.msra.mxu2 %v13344_v39  ;;  %v16278_v17 = vld [vmem:[#allocation12 + $0x3e4] sm:$0xf0]  ;;  %v13477_v39 = vld [vmem:[#allocation12 + $0x1e8] sm:$0xf0] }
 0x47d   :  { %v5596_v19 = vpop.f32.mrf.mxu0  ;;  %v5609_v20 = vpop.f32.mrf.mxu1  ;;  %v13732_v37 = vor.u32 %v16278_v17, %v13731_v34  ;;  %v13480_v43 = vor.u32 %v16210_v38, %v13477_v39  ;;  %v13603_v34 = vld [vmem:[#allocation12 + $0x2c8] sm:$0xf]  ;;  %v16178_v39 = vld [vmem:[#allocation12 + $0xcc] sm:$0xf] }
 0x47e   :  { %v16249_v19 = vld [vmem:[#allocation12 + $0x304] sm:$0xf]  ;;  %v16246_v38 = vld [vmem:[#allocation12 + $0x2e4] sm:$0xf0] }
 0x47f   :  { %v13629_v20 = vld [vmem:[#allocation12 + $0x320] sm:$0xf0] }
 0x480   :  { %v13632_v30 = vor.u32 %v16249_v19, %v13629_v20  ;;  %6642 = vmatpush.bf16.msra.mxu1 %v13564_v25  ;;  %6655 = vmatpush.bf16.msra.mxu2 %v13312_v24  ;;  %v13245_v19 = vld [vmem:[#allocation12 + $0x20] sm:$0xf0]  ;;  %v13500_v20 = vor.u32 %v16221_v59, %v13499_v57  ;;  %v13445_v24 = vld [vmem:[#allocation12 + $0x1a8] sm:$0xf0]  ;;  %v16190_v57 = vld [vmem:[#allocation12 + $0x124] sm:$0xf0] }
 0x481   :  { %v13380_v59 = vor.u32 %v16190_v57, %v13379_v27  ;;  %v13283_v27 = vld [vmem:[#allocation12 + $0x48] sm:$0xf] }
 0x482   :  { %6666 = vmatpush.bf16.msra.mxu3 %v13632_v30  ;;  %v13248_v30 = vor.u32 %v16153_v15, %v13245_v19  ;;  %v16254_v15 = vld [vmem:[#allocation12 + $0x324] sm:$0xf0]  ;;  %v16186_v19 = vld [vmem:[#allocation12 + $0x10c] sm:$0xf] }
 0x483   :  { %v16166_v57 = vld [vmem:[#allocation12 + $0x64] sm:$0xf0] }
 0x484   :  { %v5622_v21 = vpop.f32.mrf.mxu2  ;;  %v5635_v63 = vpop.f32.mrf.mxu3  ;;  %6643 = vmatpush.bf16.msra.mxu1 %v13532_v3  ;;  %v16194_v3 = vld [vmem:[#allocation12 + $0x14c] sm:$0xf] }
 0x485   :  { %v17454_v22 = vpop.f32.mrf.mxu0  ;;  %v17456_v23 = vpop.f32.mrf.mxu1 }
 0x486   :  { %6667 = vmatpush.bf16.msra.mxu3 %v13600_v41  ;;  %v16274_v41 = vld [vmem:[#allocation12 + $0x3cc] sm:$0xf] }
 0x487   :  { %v13736_v49 = vor.u32 %v16274_v41, %v13733_v44  ;;  %v13605_v44 = vld [vmem:[#allocation12 + $0x2e8] sm:$0xf0] }
 0x488   :  { %6644 = vmatpush.bf16.msra.mxu1 %v13500_v20  ;;  %v13381_v20 = vld [vmem:[#allocation12 + $0x128] sm:$0xf0] }
 0x489   :  { %v13384_v62 = vor.u32 %v16186_v19, %v13381_v20 }
 0x48c   :  { %v17458_v26 = vpop.f32.mrf.mxu2  ;;  %v17460_v54 = vpop.f32.mrf.mxu3  ;;  %6689 = vmatpush.bf16.msrb.mxu1 %v13732_v37 }
 0x48d   :  { %v5648_v0 = vpop.f32.mrf.mxu0  ;;  %v5661_v1 = vpop.f32.mrf.mxu1 }
 0x48e   :  { %v13568_v0 = vor.u32 %v16233_v55, %v13565_v58  ;;  %v13275_v1 = vld [vmem:[#allocation12 + $0x40] sm:$0xf]  ;;  %v16266_v55 = vld [vmem:[#allocation12 + $0x38c] sm:$0xf] }
 0x48f   :  { %v13276_v46 = vor.u32 %v16165_v5, %v13275_v1  ;;  %v13701_v58 = vld [vmem:[#allocation12 + $0x3a8] sm:$0xf0]  ;;  %v13411_v5 = vld [vmem:[#allocation12 + $0x148] sm:$0xf] }
 0x490   :  { %6668 = vmatpush.bf16.msra.mxu3 %v13568_v0  ;;  %v13704_v1 = vor.u32 %v16266_v55, %v13701_v58 }
 0x491   :  { %6630 = vmatpush.bf16.msra.mxu0 %v13276_v46  ;;  %v16198_v46 = vld [vmem:[#allocation12 + $0x164] sm:$0xf0] }
 0x492   :  { %v13412_v47 = vor.u32 %v16198_v46, %v13411_v5 }
 0x494   :  { %v5674_v11 = vpop.f32.mrf.mxu2  ;;  %v5687_v12 = vpop.f32.mrf.mxu3 }
 0x495   :  { %v13533_v11 = vld [vmem:[#allocation12 + $0x260] sm:$0xf0]  ;;  %v13280_v12 = vor.u32 %v16161_v7, %v13277_v10  ;;  %6631 = vmatpush.bf16.msra.mxu0 %v13244_v53  ;;  %v16262_v7 = vld [vmem:[#allocation12 + $0x364] sm:$0xf0]  ;;  %v13413_v10 = vld [vmem:[#allocation12 + $0x168] sm:$0xf0]  ;;  %v17476_v53 = vadd.f32 %v17456_v23, %v17454_v22 }
 0x496   :  { %v17462_v21 = vpop.f32.mrf.mxu0  ;;  %v17464_v63 = vpop.f32.mrf.mxu1  ;;  %v13536_v14 = vor.u32 %v16225_v51, %v13533_v11  ;;  %v13668_v51 = vor.u32 %v16262_v7, %v13667_v6  ;;  %v13416_v11 = vor.u32 %v16194_v3, %v13413_v10  ;;  %v13347_v22 = vld [vmem:[#allocation12 + $0xc8] sm:$0xf]  ;;  %v16234_v7 = vld [vmem:[#allocation12 + $0x28c] sm:$0xf] }
 0x497   :  { %6656 = vmatpush.bf16.msra.mxu2 %v13280_v12  ;;  %v16258_v12 = vld [vmem:[#allocation12 + $0x34c] sm:$0xf]  ;;  %v16182_v23 = vld [vmem:[#allocation12 + $0xe4] sm:$0xf0]  ;;  %v5712_v31 = vadd.f32 %v17464_v63, %v17462_v21 }
 0x498   :  { %6669 = vmatpush.bf16.msra.mxu3 %v13536_v14  ;;  %v13669_v14 = vld [vmem:[#allocation12 + $0x368] sm:$0xf0]  ;;  %v13348_v37 = vor.u32 %v16182_v23, %v13347_v22 }
 0x499   :  { %6676 = vmatpush.bf16.msrb.mxu0 %v13476_v36  ;;  %v13672_v56 = vor.u32 %v16258_v12, %v13669_v14  ;;  %v5802_v36 = vrot.slane %v17476_v53, 6  ;;  %v13573_v3 = vld [vmem:[#allocation12 + $0x2a8] sm:$0xf0]  ;;  %v5804_v10 = vrot.slane %v5712_v31, 4  ;;  %v13539_v53 = vld [vmem:[#allocation12 + $0x248] sm:$0xf] }
 0x49a   :  { %v13509_v31 = vld [vmem:[#allocation12 + $0x228] sm:$0xf0] }
 0x49b   :  { %6657 = vmatpush.bf16.msra.mxu2 %v13248_v30 }
 0x49c   :  { %6670 = vmatpush.bf16.msra.mxu3 %v13504_v42  ;;  %v16250_v42 = vld [vmem:[#allocation12 + $0x30c] sm:$0xf] }
 0x49d   :  { %6677 = vmatpush.bf16.msrb.mxu0 %v13444_v50 }
 0x49e   :  { %v5700_v9 = vpop.f32.mrf.mxu0  ;;  %v5713_v18 = vpop.f32.mrf.mxu1 }
 0x49f   :  { %v17466_v48 = vpop.f32.mrf.mxu2  ;;  %v17468_v35 = vpop.f32.mrf.mxu3  ;;  %v16270_v9 = vld [vmem:[#allocation12 + $0x3a4] sm:$0xf0]  ;;  %v16202_v18 = vld [vmem:[#allocation12 + $0x18c] sm:$0xf]  ;;  %6702 = vmatpush.bf16.msrb.mxu2 %v13480_v43  ;;  %v13604_v43 = vor.u32 %v16246_v38, %v13603_v34 }
 0x4a0   :  { %v13700_v25 = vor.u32 %v16270_v9, %v13699_v8  ;;  %6715 = vmatpush.bf16.msrb.mxu3 %v13736_v49  ;;  %v13448_v0 = vor.u32 %v16202_v18, %v13445_v24  ;;  %v5738_v41 = vadd.f32 %v17468_v35, %v17466_v48  ;;  %v4808_v9 = vld [vmem:[#allocation3 + $0x3] ss:$8 sm:$0xf0] }
 0x4a1   :  { %6678 = vmatpush.bf16.msrb.mxu0 %v13412_v47  ;;  %v13315_v18 = vld [vmem:[#allocation12 + $0x88] sm:$0xf] }
 0x4a2   :  { %6690 = vmatpush.bf16.msrb.mxu1 %v13700_v25  ;;  %v16174_v25 = vld [vmem:[#allocation12 + $0xa4] sm:$0xf0]  ;;  %v5805_v5 = vrot.slane %v5738_v41, 3 }
 0x4a3   :  { %6703 = vmatpush.bf16.msrb.mxu2 %v13448_v0  ;;  %v13571_v24 = vld [vmem:[#allocation12 + $0x288] sm:$0xf]  ;;  %v13316_v48 = vor.u32 %v16174_v25, %v13315_v18  ;;  %v16170_v0 = vld [vmem:[#allocation12 + $0x8c] sm:$0xf] }
 0x4a4   :  { %6716 = vmatpush.bf16.msrb.mxu3 %v13704_v1  ;;  %v16238_v35 = vld [vmem:[#allocation12 + $0x2a4] sm:$0xf0]  ;;  %v13317_v1 = vld [vmem:[#allocation12 + $0xa8] sm:$0xf0]  ;;  %v5811_v20 = vsel %vm2687_vm3, %v5804_v10, %v5805_v5  ;;  %v13483_v10 = vld [vmem:[#allocation12 + $0x1d0] sm:$0xf] }
 0x4a5   :  { %6679 = vmatpush.bf16.msrb.mxu0 %v13380_v59  ;;  %v13572_v63 = vor.u32 %v16238_v35, %v13571_v24  ;;  %v13320_v47 = vor.u32 %v16170_v0, %v13317_v1  ;;  %v16230_v59 = vld [vmem:[#allocation12 + $0x264] sm:$0xf0] }
 0x4a6   :  { %6691 = vmatpush.bf16.msrb.mxu1 %v13668_v51  ;;  %v4807_v51 = vld [vmem:[#allocation3 + $0x3] ss:$8 sm:$0xf] }
 0x4a7   :  { %v5726_v28 = vpop.f32.mrf.mxu2  ;;  %v5739_v16 = vpop.f32.mrf.mxu3  ;;  %6704 = vmatpush.bf16.msrb.mxu2 %v13416_v11  ;;  %v13576_v11 = vor.u32 %v16234_v7, %v13573_v3  ;;  %v13251_v34 = vld [vmem:[#allocation12 + $0x8] sm:$0xf] }
 0x4a8   :  { %v13635_v28 = vld [vmem:[#allocation12 + $0x308] sm:$0xf]  ;;  %v17472_v16 = vadd.f32 %v17452_v4, %v17450_v40  ;;  %v5686_v40 = vadd.f32 %v17460_v54, %v17458_v26  ;;  %6717 = vmatpush.bf16.msrb.mxu3 %v13672_v56  ;;  %v13640_v4 = vor.u32 %v16250_v42, %v13637_v32  ;;  %v13349_v26 = vld [vmem:[#allocation12 + $0xe8] sm:$0xf0] }
 0x4a9   :  { %v13636_v2 = vor.u32 %v16254_v15, %v13635_v28  ;;  %v16242_v54 = vld [vmem:[#allocation12 + $0x2cc] sm:$0xf]  ;;  %v13352_v49 = vor.u32 %v16178_v39, %v13349_v26  ;;  %6680 = vmatpush.bf16.msrb.mxu0 %v13348_v37  ;;  %v4809_v28 = vor.u32 %v4808_v9, %v4807_v51  ;;  %v16222_v41 = vld [vmem:[#allocation12 + $0x224] sm:$0xf0]  ;;  %v16215_v51 = vld [vmem:[#allocation12 + $0x1ec] sm:$0xf0] }
 0x4aa   :  { %v5801_v17 = vrot.slane %v17472_v16, 7  ;;  %v5803_v45 = vrot.slane %v5686_v40, 5  ;;  %v13608_v50 = vor.u32 %v16242_v54, %v13605_v44  ;;  %v13284_v16 = vor.u32 %v16166_v57, %v13283_v27  ;;  %v16162_v15 = vld [vmem:[#allocation12 + $0x4c] sm:$0xf]  ;;  %v13485_v27 = vld [vmem:[#allocation12 + $0x1f0] sm:$0xf0] }
 0x4ab   :  { %6692 = vmatpush.bf16.msrb.mxu1 %v13636_v2  ;;  %6705 = vmatpush.bf16.msrb.mxu2 %v13384_v62  ;;  %v13285_v2 = vld [vmem:[#allocation12 + $0x68] sm:$0xf0]  ;;  %v16275_v57 = vld [vmem:[#allocation12 + $0x3d4] sm:$0xf] }
 0x4ac   :  { %6718 = vmatpush.bf16.msrb.mxu3 %v13640_v4  ;;  %v5809_v12 = vsel %vm2683_vm1, %v5802_v36, %v5803_v45  ;;  %v5808_v19 = vsel %vm2681_vm0, %v17448_v60, %v5801_v17  ;;  %v16226_v62 = vld [vmem:[#allocation12 + $0x24c] sm:$0xf]  ;;  %v13288_v4 = vor.u32 %v16162_v15, %v13285_v2  ;;  %v16158_v60 = vld [vmem:[#allocation12 + $0x24] sm:$0xf0]  ;;  %v13484_v15 = vor.u32 %v16215_v51, %v13483_v10  ;;  %v13613_v10 = vld [vmem:[#allocation12 + $0x2f0] sm:$0xf0] }
 0x4ad   :  { %6681 = vmatpush.bf16.msrb.mxu0 %v13316_v48  ;;  %v13541_v42 = vld [vmem:[#allocation12 + $0x268] sm:$0xf0]  ;;  %v5810_v32 = vsel %vm2685_vm2, %v5808_v19, %v5809_v12  ;;  %v13507_v17 = vld [vmem:[#allocation12 + $0x208] sm:$0xf]  ;;  %v13252_v39 = vor.u32 %v16158_v60, %v13251_v34  ;;  %v13739_v12 = vld [vmem:[#allocation12 + $0x3d0] sm:$0xf] }
 0x4ae   :  { %v13544_v22 = vor.u32 %v16226_v62, %v13541_v42  ;;  %v13253_v26 = vld [vmem:[#allocation12 + $0x28] sm:$0xf0]  ;;  %v13508_v54 = vor.u32 %v16222_v41, %v13507_v17  ;;  %v13707_v62 = vld [vmem:[#allocation12 + $0x390] sm:$0xf]  ;;  %v16195_v41 = vld [vmem:[#allocation12 + $0x154] sm:$0xf] }
 0x4af   :  { %6693 = vmatpush.bf16.msrb.mxu1 %v13604_v43  ;;  %6706 = vmatpush.bf16.msrb.mxu2 %v13352_v49  ;;  %v16154_v43 = vld [vmem:[#allocation12 + $0xc] sm:$0xf]  ;;  %v16271_v42 = vld [vmem:[#allocation12 + $0x3ac] sm:$0xf0] }
 0x4b0   :  { %6719 = vmatpush.bf16.msrb.mxu3 %v13608_v50  ;;  %v13256_v44 = vor.u32 %v16154_v43, %v13253_v26  ;;  %v16218_v45 = vld [vmem:[#allocation12 + $0x20c] sm:$0xf]  ;;  %v13708_v34 = vor.u32 %v16271_v42, %v13707_v62  ;;  %v13419_v60 = vld [vmem:[#allocation12 + $0x150] sm:$0xf]  ;;  %v13421_v43 = vld [vmem:[#allocation12 + $0x170] sm:$0xf0] }
 0x4b1   :  { %6682 = vmatpush.bf16.msrb.mxu0 %v13284_v16  ;;  %v16199_v17 = vld [vmem:[#allocation12 + $0x16c] sm:$0xf0]  ;;  %v16259_v26 = vld [vmem:[#allocation12 + $0x354] sm:$0xf] }
 0x4b3   :  { %6694 = vmatpush.bf16.msrb.mxu1 %v13572_v63  ;;  %6707 = vmatpush.bf16.msrb.mxu2 %v13320_v47 }
 0x4b4   :  { %6720 = vmatpush.bf16.msrb.mxu3 %v13576_v11 }
 0x4b5   :  { %6683 = vmatpush.bf16.msrb.mxu0 %v13252_v39  ;;  %v16263_v39 = vld [vmem:[#allocation12 + $0x36c] sm:$0xf0] }
 0x4b6   :  { %v5750_v30 = vpop.f32.mrf.mxu0  ;;  %v5763_v61 = vpop.f32.mrf.mxu1 }
 0x4b7   :  { %v5764_v8 = vadd.f32 %v5763_v61, %v5750_v30  ;;  %v13540_v61 = vor.u32 %v16230_v59, %v13539_v53  ;;  %6708 = vmatpush.bf16.msrb.mxu2 %v13288_v4  ;;  %v16267_v4 = vld [vmem:[#allocation12 + $0x394] sm:$0xf] }
 0x4b8   :  { %6721 = vmatpush.bf16.msrb.mxu3 %v13544_v22  ;;  %v13709_v22 = vld [vmem:[#allocation12 + $0x3b0] sm:$0xf0] }
 0x4b9   :  { %v5806_v14 = vrot.slane %v5764_v8, 2  ;;  %6695 = vmatpush.bf16.msrb.mxu1 %v13540_v61  ;;  %v13512_v8 = vor.u32 %v16218_v45, %v13509_v31  ;;  %v13387_v31 = vld [vmem:[#allocation12 + $0x110] sm:$0xf] }
 0x4bb   :  { %6709 = vmatpush.bf16.msrb.mxu2 %v13256_v44  ;;  %v13420_v44 = vor.u32 %v16199_v17, %v13419_v60  ;;  %v13259_v60 = vld [vmem:[#allocation12 + $0x10] sm:$0xf] }
 0x4bc   :  { %6722 = vmatpush.bf16.msrb.mxu3 %v13512_v8 }
 0x4bd   :  { %v5776_v55 = vpop.f32.mrf.mxu2  ;;  %v5789_v58 = vpop.f32.mrf.mxu3  ;;  %6696 = vmatpush.bf16.msrb.mxu1 %v13508_v54  ;;  %v13677_v54 = vld [vmem:[#allocation12 + $0x370] sm:$0xf0] }
 0x4be   :  { %v5790_v46 = vadd.f32 %v5789_v58, %v5776_v55  ;;  %v5752_v6 = vpop.f32.mrf.mxu0  ;;  %v5765_v21 = vpop.f32.mrf.mxu1  ;;  %v13680_v8 = vor.u32 %v16259_v26, %v13677_v54  ;;  %v16155_v26 = vld [vmem:[#allocation12 + $0x14] sm:$0xf] }
 0x4bf   :  { %v13261_v54 = vld [vmem:[#allocation12 + $0x30] sm:$0xf0] }
 0x4c0   :  { %v5807_v56 = vrot.slane %v5790_v46, 1 }
 0x4c2   :  { %v5812_v30 = vsel %vm2689_vm4, %v5806_v14, %v5807_v56  ;;  %v16279_v14 = vld [vmem:[#allocation12 + $0x3ec] sm:$0xf0]  ;;  %v16211_v56 = vld [vmem:[#allocation12 + $0x1d4] sm:$0xf] }
 0x4c3   :  { %v5813_v40 = vsel %vm2691_vm5, %v5811_v20, %v5812_v30  ;;  %v13740_v19 = vor.u32 %v16279_v14, %v13739_v12  ;;  %v13451_v20 = vld [vmem:[#allocation12 + $0x190] sm:$0xf]  ;;  %v13488_v61 = vor.u32 %v16211_v56, %v13485_v27 }
 0x4c4   :  { %v5814_v23 = vsel %vm2693_vm6, %v5810_v32, %v5813_v40  ;;  %v16207_v30 = vld [vmem:[#allocation12 + $0x1ac] sm:$0xf0]  ;;  %v16203_v32 = vld [vmem:[#allocation12 + $0x194] sm:$0xf] }
 0x4c5   :  { %v5816_v36 = vadd.f32 %v5814_v23, %v4809_v28  ;;  %v5778_v37 = vpop.f32.mrf.mxu2  ;;  %v5791_v38 = vpop.f32.mrf.mxu3  ;;  %v13741_v28 = vld [vmem:[#allocation12 + $0x3f0] sm:$0xf0]  ;;  %v13452_v23 = vor.u32 %v16207_v30, %v13451_v20  ;;  %v13323_v12 = vld [vmem:[#allocation12 + $0x90] sm:$0xf] }
 0x4c6   :  { %v13744_v2 = vor.u32 %v16275_v57, %v13741_v28  ;;  %v13453_v40 = vld [vmem:[#allocation12 + $0x1b0] sm:$0xf0]  ;;  %v13712_v37 = vor.u32 %v16267_v4, %v13709_v22  ;;  %v13675_v38 = vld [vmem:[#allocation12 + $0x350] sm:$0xf] }
 0x4c7   :  { %v5817_v49 = vmul.f32 0.5, %v5816_v36  ;;  %v5822_v50 = vrot.slane %v5816_v36, 2  ;;  %v5831_v18 = vrot.slane %v5816_v36, 6  ;;  %v5828_v25 = vrot.slane %v5816_v36, 4  ;;  %v16175_v14 = vld [vmem:[#allocation12 + $0xac] sm:$0xf0] }
 0x4c8   :  { %v13456_v36 = vor.u32 %v16203_v32, %v13453_v40  ;;  %v13676_v45 = vor.u32 %v16263_v39, %v13675_v38  ;;  %v13579_v57 = vld [vmem:[#allocation12 + $0x290] sm:$0xf]  ;;  %v13324_v20 = vor.u32 %v16175_v14, %v13323_v12  ;;  %v16163_v4 = vld [vmem:[#allocation12 + $0x54] sm:$0xf] }
 0x4c9   :  { %16754 = vtanh.f32 %v5817_v49  ;;  %v5824_v9 = vmul.f32 0.5, %v5822_v50  ;;  %v5833_v24 = vmul.f32 0.5, %v5831_v18  ;;  %v16191_v49 = vld [vmem:[#allocation12 + $0x12c] sm:$0xf0]  ;;  %v13424_v50 = vor.u32 %v16195_v41, %v13421_v43  ;;  %v13293_v22 = vld [vmem:[#allocation12 + $0x70] sm:$0xf0] }
 0x4ca   :  { %v16255_v18 = vld [vmem:[#allocation12 + $0x32c] sm:$0xf0]  ;;  %v13296_v41 = vor.u32 %v16163_v4, %v13293_v22  ;;  %v13651_v4 = vld [vmem:[#allocation12 + $0x318] sm:$0xf] }
 0x4cb   :  { %16756 = vtanh.f32 %v5824_v9  ;;  %v13643_v9 = vld [vmem:[#allocation12 + $0x310] sm:$0xf]  ;;  %v16256_v22 = vld [vmem:[#allocation12 + $0x334] sm:$0xf0] }
 0x4cc   :  { %16758 = vtanh.f32 %v5828_v25  ;;  %v16187_v25 = vld [vmem:[#allocation12 + $0x114] sm:$0xf]  ;;  %v16239_v28 = vld [vmem:[#allocation12 + $0x2ac] sm:$0xf0] }
 0x4cd   :  { %16760 = vtanh.f32 %v5833_v24  ;;  %v13389_v24 = vld [vmem:[#allocation12 + $0x130] sm:$0xf0]  ;;  %v13580_v30 = vor.u32 %v16239_v28, %v13579_v57  ;;  %v13547_v32 = vld [vmem:[#allocation12 + $0x250] sm:$0xf] }
 0x4ce   :  { %v16231_v40 = vld [vmem:[#allocation12 + $0x26c] sm:$0xf0] }
 0x4cf   :  { %v16755_v55 = vpop.eup %16754  ;;  %v13515_v38 = vld [vmem:[#allocation12 + $0x210] sm:$0xf] }
 0x4d0   :  { %v5819_v58 = vmul.f32 0.5, %v16755_v55  ;;  %v16251_v55 = vld [vmem:[#allocation12 + $0x314] sm:$0xf]  ;;  %v16223_v39 = vld [vmem:[#allocation12 + $0x22c] sm:$0xf0] }
 0x4d1   :  { %v16757_v48 = vpop.eup %16756 }
 0x4d2   :  { %v5820_v35 = vadd.f32 0.5, %v5819_v58  ;;  %v5826_v0 = vmul.f32 0.5, %v16757_v48  ;;  %v16759_v5 = vpop.eup %16758  ;;  %v13645_v58 = vld [vmem:[#allocation12 + $0x330] sm:$0xf0]  ;;  %v13388_v48 = vor.u32 %v16191_v49, %v13387_v31  ;;  %v13491_v31 = vld [vmem:[#allocation12 + $0x1d8] sm:$0xf] }
 0x4d3   :  { %v16761_v21 = vpop.eup %16760  ;;  %v16216_v49 = vld [vmem:[#allocation12 + $0x1f4] sm:$0xf0] }
 0x4d4   :  { %v5827_v1 = vadd.f32 0.5, %v5826_v0  ;;  %v5838_v6 = vmul.f32 %v16759_v5, %v5820_v35  ;;  %v5835_v47 = vmul.f32 0.5, %v16761_v21  ;;  %v13644_v35 = vor.u32 %v16255_v18, %v13643_v9  ;;  %v13355_v0 = vld [vmem:[#allocation12 + $0xd0] sm:$0xf]  ;;  %v16212_v9 = vld [vmem:[#allocation12 + $0x1dc] sm:$0xf] }
 0x4d5   :  { %v13392_v5 = vor.u32 %v16187_v25, %v13389_v24  ;;  %v16247_v21 = vld [vmem:[#allocation12 + $0x2ec] sm:$0xf0]  ;;  %v13516_v25 = vor.u32 %v16223_v39, %v13515_v38  ;;  %v13493_v24 = vld [vmem:[#allocation12 + $0x1f8] sm:$0xf0]  ;;  %v13363_v38 = vld [vmem:[#allocation12 + $0xd8] sm:$0xf] }
 0x4d6   :  { %v5837_v46 = vmul.f32 %v5827_v1, %v17423_v13  ;;  %v5836_v7 = vadd.f32 0.5, %v5835_v47  ;;  %v16183_v1 = vld [vmem:[#allocation12 + $0xec] sm:$0xf0]  ;;  %v16179_v47 = vld [vmem:[#allocation12 + $0xd4] sm:$0xf] }
 0x4d7   :  { %v13356_v51 = vor.u32 %v16183_v1, %v13355_v0  ;;  %v13492_v0 = vor.u32 %v16216_v49, %v13491_v31  ;;  %v16184_v39 = vld [vmem:[#allocation12 + $0xf4] sm:$0xf0]  ;;  %v16244_v31 = vld [vmem:[#allocation12 + $0x2dc] sm:$0xf] }
 0x4d8   :  { %v17495_v63 = vadd.f32 %v5838_v6, %v5837_v46  ;;  %v13648_v46 = vor.u32 %v16251_v55, %v13645_v58  ;;  %v13611_v6 = vld [vmem:[#allocation12 + $0x2d0] sm:$0xf]  ;;  %v16276_v55 = vld [vmem:[#allocation12 + $0x3dc] sm:$0xf] }
 0x4d9   :  { %v13749_v58 = vld [vmem:[#allocation12 + $0x3f8] sm:$0xf0] }
 0x4da   :  { %16762 = vtanh.f32 %v17495_v63  ;;  %v13621_v49 = vld [vmem:[#allocation12 + $0x2f8] sm:$0xf0] }
 0x4e0   :  { %v16763_v3 = vpop.eup %16762 }
 0x4e1   :  { %v5841_v11 = vmul.f32 %v16763_v3, %v5836_v7  ;;  %v13357_v7 = vld [vmem:[#allocation12 + $0xf0] sm:$0xf0] }
 0x4e2   :  { %v16243_v3 = vld [vmem:[#allocation12 + $0x2d4] sm:$0xf]  ;;  %v13360_v56 = vor.u32 %v16179_v47, %v13357_v7  ;;  %v13715_v47 = vld [vmem:[#allocation12 + $0x398] sm:$0xf] }
 0x4e3   :  { %5843 = vst.msk [vmem:[#allocation2 + $0x3] ss:$8 sm:$0x3] %vm17278_vm7, %v5841_v11  ;;  %v5850_v13 = vperm.slane %v5841_v11, 0  ;;  %v5851_v16 = vperm.slane %v5841_v11, 1  ;;  %v13612_v11 = vor.u32 %v16247_v21, %v13611_v6  ;;  %v13616_v27 = vor.u32 %v16243_v3, %v13613_v10 }
 0x4e4   :  { %v13496_v6 = vor.u32 %v16212_v9, %v13493_v24  ;;  %v13752_v21 = vor.u32 %v16276_v55, %v13749_v58  ;;  %v16272_v7 = vld [vmem:[#allocation12 + $0x3b4] sm:$0xf0]  ;;  %v16204_v3 = vld [vmem:[#allocation12 + $0x19c] sm:$0xf]  ;;  %v13624_v24 = vor.u32 %v16244_v31, %v13621_v49 }
 0x4e5   :  { %v17500_v53 = vpack.c.bf16 %v5850_v13, %v5850_v13  ;;  %v17502_v59 = vpack.c.bf16 %v5851_v16, %v5851_v16  ;;  %v16171_v13 = vld [vmem:[#allocation12 + $0x94] sm:$0xf]  ;;  %v13461_v10 = vld [vmem:[#allocation12 + $0x1b8] sm:$0xf0]  ;;  %v13716_v14 = vor.u32 %v16272_v7, %v13715_v47  ;;  %v13331_v9 = vld [vmem:[#allocation12 + $0x98] sm:$0xf] }
 0x4e6   :  { %v13325_v16 = vld [vmem:[#allocation12 + $0xb0] sm:$0xf0]  ;;  %v13464_v57 = vor.u32 %v16204_v3, %v13461_v10  ;;  %v13587_v55 = vld [vmem:[#allocation12 + $0x298] sm:$0xf] }
 0x4e7   :  { %6632 = vmatmul.bf16.vlgmr.msra.gmra.mxu0 %v17500_v53  ;;  %6645 = vmatmul.bf16.vlgmr.msra.gmra.mxu1 %v17502_v59  ;;  %v13328_v62 = vor.u32 %v16171_v13, %v13325_v16  ;;  %v13683_v13 = vld [vmem:[#allocation12 + $0x358] sm:$0xf] }
 0x4e8   :  { %6658 = vmatmul.bf16.vlgmr.msra.gmra.mxu2 %v17500_v53  ;;  %6671 = vmatmul.bf16.vlgmr.msra.gmra.mxu3 %v17502_v59  ;;  %v16264_v16 = vld [vmem:[#allocation12 + $0x374] sm:$0xf0] }
 0x4e9   :  { %6728 = vmatpush.bf16.msra.mxu0 %v13484_v15  ;;  %6741 = vmatpush.bf16.msra.mxu1 %v13740_v19  ;;  %v16235_v15 = vld [vmem:[#allocation12 + $0x294] sm:$0xf]  ;;  %v16240_v58 = vld [vmem:[#allocation12 + $0x2b4] sm:$0xf0] }
 0x4ea   :  { %6754 = vmatpush.bf16.msra.mxu2 %v13488_v61  ;;  %6767 = vmatpush.bf16.msra.mxu3 %v13744_v2  ;;  %v13581_v19 = vld [vmem:[#allocation12 + $0x2b0] sm:$0xf0]  ;;  %v13291_v61 = vld [vmem:[#allocation12 + $0x50] sm:$0xf]  ;;  %v13555_v3 = vld [vmem:[#allocation12 + $0x258] sm:$0xf] }
 0x4eb   :  { %v16167_v2 = vld [vmem:[#allocation12 + $0x6c] sm:$0xf0]  ;;  %v13584_v42 = vor.u32 %v16235_v15, %v13581_v19  ;;  %v16196_v15 = vld [vmem:[#allocation12 + $0x15c] sm:$0xf]  ;;  %v16232_v10 = vld [vmem:[#allocation12 + $0x274] sm:$0xf0] }
 0x4ec   :  { %v13292_v17 = vor.u32 %v16167_v2, %v13291_v61  ;;  %v13429_v19 = vld [vmem:[#allocation12 + $0x178] sm:$0xf0]  ;;  %v13684_v2 = vor.u32 %v16264_v16, %v13683_v13 }
 0x4ed   :  { %6729 = vmatpush.bf16.msra.mxu0 %v13452_v23  ;;  %6742 = vmatpush.bf16.msra.mxu1 %v13708_v34  ;;  %v16227_v23 = vld [vmem:[#allocation12 + $0x254] sm:$0xf] }
 0x4ee   :  { %6755 = vmatpush.bf16.msra.mxu2 %v13456_v36  ;;  %6768 = vmatpush.bf16.msra.mxu3 %v13712_v37  ;;  %v13549_v34 = vld [vmem:[#allocation12 + $0x270] sm:$0xf0]  ;;  %v13548_v36 = vor.u32 %v16231_v40, %v13547_v32  ;;  %v16159_v37 = vld [vmem:[#allocation12 + $0x2c] sm:$0xf0]  ;;  %v13432_v32 = vor.u32 %v16196_v15, %v13429_v19  ;;  %v13523_v15 = vld [vmem:[#allocation12 + $0x218] sm:$0xf] }
 0x4ef   :  { %v13552_v43 = vor.u32 %v16227_v23, %v13549_v34  ;;  %v13260_v18 = vor.u32 %v16159_v37, %v13259_v60  ;;  %v16188_v23 = vld [vmem:[#allocation12 + $0x11c] sm:$0xf]  ;;  %v13652_v37 = vor.u32 %v16256_v22, %v13651_v4  ;;  %v16224_v19 = vld [vmem:[#allocation12 + $0x234] sm:$0xf0] }
 0x4f0   :  { %v13397_v34 = vld [vmem:[#allocation12 + $0x138] sm:$0xf0] }
 0x4f1   :  { %6730 = vmatpush.bf16.msra.mxu0 %v13420_v44  ;;  %6743 = vmatpush.bf16.msra.mxu1 %v13676_v45  ;;  %v16219_v44 = vld [vmem:[#allocation12 + $0x214] sm:$0xf]  ;;  %v16252_v60 = vld [vmem:[#allocation12 + $0x31c] sm:$0xf] }
 0x4f2   :  { %6756 = vmatpush.bf16.msra.mxu2 %v13424_v50  ;;  %6769 = vmatpush.bf16.msra.mxu3 %v13680_v8  ;;  %v13517_v45 = vld [vmem:[#allocation12 + $0x230] sm:$0xf0]  ;;  %v13747_v50 = vld [vmem:[#allocation12 + $0x3d8] sm:$0xf] }
 0x4f3   :  { %v16280_v8 = vld [vmem:[#allocation12 + $0x3f4] sm:$0xf0] }
 0x4f4   :  { %v13748_v1 = vor.u32 %v16280_v8, %v13747_v50  ;;  %v13364_v50 = vor.u32 %v16184_v39, %v13363_v38 }
 0x4f5   :  { %6731 = vmatpush.bf16.msra.mxu0 %v13388_v48  ;;  %6744 = vmatpush.bf16.msra.mxu1 %v13644_v35  ;;  %v13264_v48 = vor.u32 %v16155_v26, %v13261_v54  ;;  %v13520_v35 = vor.u32 %v16219_v44, %v13517_v45  ;;  %v13619_v26 = vld [vmem:[#allocation12 + $0x2d8] sm:$0xf]  ;;  %v16180_v44 = vld [vmem:[#allocation12 + $0xdc] sm:$0xf] }
 0x4f6   :  { %6757 = vmatpush.bf16.msra.mxu2 %v13392_v5  ;;  %6770 = vmatpush.bf16.msra.mxu3 %v13648_v46  ;;  %v13459_v5 = vld [vmem:[#allocation12 + $0x198] sm:$0xf]  ;;  %v13365_v45 = vld [vmem:[#allocation12 + $0xf8] sm:$0xf0] }
 0x4f7   :  { %6684 = vmatmul.bf16.vlgmr.msrb.gmra.mxu0 %v17500_v53  ;;  %6697 = vmatmul.bf16.vlgmr.msrb.gmra.mxu1 %v17502_v59  ;;  %v16208_v46 = vld [vmem:[#allocation12 + $0x1b4] sm:$0xf0] }
 0x4f8   :  { %6710 = vmatmul.bf16.vlgmr.msrb.gmra.mxu2 %v17500_v53  ;;  %6723 = vmatmul.bf16.vlgmr.msrb.gmra.mxu3 %v17502_v59  ;;  %v13460_v12 = vor.u32 %v16208_v46, %v13459_v5  ;;  %v16248_v54 = vld [vmem:[#allocation12 + $0x2f4] sm:$0xf0]  ;;  %v13588_v46 = vor.u32 %v16240_v58, %v13587_v55  ;;  %v16397_v58 = vld [vmem:[#allocation12 + $0x39c] sm:$0xf0] }
 0x4f9   :  { %6732 = vmatpush.bf16.msra.mxu0 %v13356_v51  ;;  %6745 = vmatpush.bf16.msra.mxu1 %v13612_v11  ;;  %v16268_v51 = vld [vmem:[#allocation12 + $0x39c] sm:$0xf]  ;;  %v13620_v8 = vor.u32 %v16248_v54, %v13619_v26  ;;  %v14235_v26 = vld [vmem:[#allocation12 + $0x3c0] sm:$0xf] }
 0x4fa   :  { %6758 = vmatpush.bf16.msra.mxu2 %v13360_v56  ;;  %6771 = vmatpush.bf16.msra.mxu3 %v13616_v27  ;;  %v13717_v11 = vld [vmem:[#allocation12 + $0x3b8] sm:$0xf0]  ;;  %v13427_v56 = vld [vmem:[#allocation12 + $0x158] sm:$0xf]  ;;  %v16405_v54 = vld [vmem:[#allocation12 + $0x3dc] sm:$0xf0] }
 0x4fb   :  { %v16200_v27 = vld [vmem:[#allocation12 + $0x174] sm:$0xf0]  ;;  %v13720_v28 = vor.u32 %v16268_v51, %v13717_v11  ;;  %v16164_v51 = vld [vmem:[#allocation12 + $0x5c] sm:$0xf]  ;;  %v14236_v31 = vor.u32 %v16405_v54, %v14235_v26  ;;  %v16309_v26 = vld [vmem:[#allocation12 + $0xdc] sm:$0xf0] }
 0x4fc   :  { %v13428_v61 = vor.u32 %v16200_v27, %v13427_v56  ;;  %v13301_v11 = vld [vmem:[#allocation12 + $0x78] sm:$0xf0]  ;;  %v13556_v27 = vor.u32 %v16232_v10, %v13555_v3  ;;  %v16325_v3 = vld [vmem:[#allocation12 + $0x15c] sm:$0xf0] }
 0x4fd   :  { %6733 = vmatpush.bf16.msra.mxu0 %v13324_v20  ;;  %6746 = vmatpush.bf16.msra.mxu1 %v13580_v30  ;;  %v16260_v20 = vld [vmem:[#allocation12 + $0x35c] sm:$0xf]  ;;  %v13304_v13 = vor.u32 %v16164_v51, %v13301_v11  ;;  %v14171_v10 = vld [vmem:[#allocation12 + $0x340] sm:$0xf] }
 0x4fe   :  { %6759 = vmatpush.bf16.msra.mxu2 %v13328_v62  ;;  %6772 = vmatpush.bf16.msra.mxu3 %v13584_v42  ;;  %v13685_v30 = vld [vmem:[#allocation12 + $0x378] sm:$0xf0]  ;;  %v13395_v62 = vld [vmem:[#allocation12 + $0x118] sm:$0xf]  ;;  %v16389_v51 = vld [vmem:[#allocation12 + $0x35c] sm:$0xf0] }
 0x4ff   :  { %v16192_v42 = vld [vmem:[#allocation12 + $0x134] sm:$0xf0]  ;;  %v13688_v40 = vor.u32 %v16260_v20, %v13685_v30  ;;  %v16156_v20 = vld [vmem:[#allocation12 + $0x1c] sm:$0xf] }
 0x500   :  { %v13269_v30 = vld [vmem:[#allocation12 + $0x38] sm:$0xf0] }
 0x501   :  { %6734 = vmatpush.bf16.msra.mxu0 %v13292_v17  ;;  %6747 = vmatpush.bf16.msra.mxu1 %v13548_v36  ;;  %v13653_v17 = vld [vmem:[#allocation12 + $0x338] sm:$0xf0]  ;;  %v13396_v36 = vor.u32 %v16192_v42, %v13395_v62  ;;  %v13524_v42 = vor.u32 %v16224_v19, %v13523_v15 }
 0x502   :  { %6760 = vmatpush.bf16.msra.mxu2 %v13296_v41  ;;  %6773 = vmatpush.bf16.msra.mxu3 %v13552_v43  ;;  %v13400_v41 = vor.u32 %v16188_v23, %v13397_v34  ;;  %v13656_v43 = vor.u32 %v16252_v60, %v13653_v17 }
 0x505   :  { %6735 = vmatpush.bf16.msra.mxu0 %v13260_v18  ;;  %6748 = vmatpush.bf16.msra.mxu1 %v13516_v25  ;;  %v16176_v18 = vld [vmem:[#allocation12 + $0xb4] sm:$0xf0]  ;;  %v13368_v25 = vor.u32 %v16180_v44, %v13365_v45  ;;  %v16337_v44 = vld [vmem:[#allocation12 + $0x1c4] sm:$0xf] }
 0x506   :  { %6761 = vmatpush.bf16.msra.mxu2 %v13264_v48  ;;  %6774 = vmatpush.bf16.msra.mxu3 %v13520_v35  ;;  %v16172_v48 = vld [vmem:[#allocation12 + $0x9c] sm:$0xf]  ;;  %v13332_v5 = vor.u32 %v16176_v18, %v13331_v9  ;;  %v13981_v45 = vld [vmem:[#allocation12 + $0x1e0] sm:$0xf0]  ;;  %v13947_v18 = vld [vmem:[#allocation12 + $0x180] sm:$0xf] }
 0x507   :  { %v13333_v35 = vld [vmem:[#allocation12 + $0xb8] sm:$0xf0]  ;;  %v13984_v49 = vor.u32 %v16337_v44, %v13981_v45  ;;  %v16373_v44 = vld [vmem:[#allocation12 + $0x2dc] sm:$0xf0]  ;;  %v16305_v45 = vld [vmem:[#allocation12 + $0xc4] sm:$0xf] }
 0x508   :  { %6736 = vmatmul.bf16.vlgmr.msra.gmra.mxu0 %v17500_v53  ;;  %6749 = vmatmul.bf16.vlgmr.msra.gmra.mxu1 %v17502_v59  ;;  %v13336_v47 = vor.u32 %v16172_v48, %v13333_v35  ;;  %v16329_v48 = vld [vmem:[#allocation12 + $0x184] sm:$0xf] }
 0x509   :  { %6780 = vmatpush.bf16.msrb.mxu0 %v13492_v0  ;;  %6793 = vmatpush.bf16.msrb.mxu1 %v13748_v1  ;;  %v16236_v0 = vld [vmem:[#allocation12 + $0x29c] sm:$0xf]  ;;  %v13949_v35 = vld [vmem:[#allocation12 + $0x1a0] sm:$0xf0] }
 0x50a   :  { %6806 = vmatpush.bf16.msrb.mxu2 %v13496_v6  ;;  %6819 = vmatpush.bf16.msrb.mxu3 %v13752_v21  ;;  %v13589_v1 = vld [vmem:[#allocation12 + $0x2b8] sm:$0xf0]  ;;  %v13299_v6 = vld [vmem:[#allocation12 + $0x58] sm:$0xf] }
 0x50b   :  { %6762 = vmatmul.bf16.vlgmr.msra.gmra.mxu2 %v17500_v53  ;;  %6775 = vmatmul.bf16.vlgmr.msra.gmra.mxu3 %v17502_v59  ;;  %v16168_v21 = vld [vmem:[#allocation12 + $0x74] sm:$0xf0]  ;;  %v13592_v7 = vor.u32 %v16236_v0, %v13589_v1  ;;  %v13952_v1 = vor.u32 %v16329_v48, %v13949_v35 }
 0x50c   :  { %v13300_v56 = vor.u32 %v16168_v21, %v13299_v6  ;;  %v13915_v6 = vld [vmem:[#allocation12 + $0x140] sm:$0xf] }
 0x50d   :  { %6781 = vmatpush.bf16.msrb.mxu0 %v13460_v12  ;;  %6794 = vmatpush.bf16.msrb.mxu1 %v13716_v14  ;;  %v16228_v12 = vld [vmem:[#allocation12 + $0x25c] sm:$0xf] }
 0x50e   :  { %6807 = vmatpush.bf16.msrb.mxu2 %v13464_v57  ;;  %6820 = vmatpush.bf16.msrb.mxu3 %v13720_v28  ;;  %v13557_v14 = vld [vmem:[#allocation12 + $0x278] sm:$0xf0]  ;;  %v13267_v57 = vld [vmem:[#allocation12 + $0x18] sm:$0xf] }
 0x50f   :  { %v16160_v28 = vld [vmem:[#allocation12 + $0x34] sm:$0xf0]  ;;  %v13560_v16 = vor.u32 %v16228_v12, %v13557_v14  ;;  %v13916_v14 = vor.u32 %v16325_v3, %v13915_v6 }
 0x510   :  { %v13268_v62 = vor.u32 %v16160_v28, %v13267_v57  ;;  %v16385_v57 = vld [vmem:[#allocation12 + $0x344] sm:$0xf]  ;;  %v14172_v28 = vor.u32 %v16389_v51, %v14171_v10 }
 0x511   :  { %6782 = vmatpush.bf16.msrb.mxu0 %v13428_v61  ;;  %6795 = vmatpush.bf16.msrb.mxu1 %v13684_v2  ;;  %v16220_v61 = vld [vmem:[#allocation12 + $0x21c] sm:$0xf]  ;;  %v16361_v10 = vld [vmem:[#allocation12 + $0x284] sm:$0xf] }
 0x512   :  { %6808 = vmatpush.bf16.msrb.mxu2 %v13432_v32  ;;  %6821 = vmatpush.bf16.msrb.mxu3 %v13688_v40  ;;  %v13525_v2 = vld [vmem:[#allocation12 + $0x238] sm:$0xf0]  ;;  %v13272_v32 = vor.u32 %v16156_v20, %v13269_v30  ;;  %v13883_v30 = vld [vmem:[#allocation12 + $0x100] sm:$0xf]  ;;  %v14077_v51 = vld [vmem:[#allocation12 + $0x2a0] sm:$0xf0] }
 0x513   :  { %v13528_v40 = vor.u32 %v16220_v61, %v13525_v2  ;;  %v16317_v61 = vld [vmem:[#allocation12 + $0x11c] sm:$0xf0] }
 0x514   :  { %v14139_v2 = vld [vmem:[#allocation12 + $0x300] sm:$0xf] }
 0x515   :  { %6783 = vmatpush.bf16.msrb.mxu0 %v13396_v36  ;;  %6796 = vmatpush.bf16.msrb.mxu1 %v13652_v37 }
 0x516   :  { %6809 = vmatpush.bf16.msrb.mxu2 %v13400_v41  ;;  %6822 = vmatpush.bf16.msrb.mxu3 %v13656_v43  ;;  %v13979_v43 = vld [vmem:[#allocation12 + $0x1c0] sm:$0xf] }
 0x519   :  { %6784 = vmatpush.bf16.msrb.mxu0 %v13364_v50  ;;  %6797 = vmatpush.bf16.msrb.mxu1 %v13620_v8  ;;  %v16401_v50 = vld [vmem:[#allocation12 + $0x3c4] sm:$0xf] }
 0x51a   :  { %6810 = vmatpush.bf16.msrb.mxu2 %v13368_v25  ;;  %6823 = vmatpush.bf16.msrb.mxu3 %v13624_v24  ;;  %v14237_v8 = vld [vmem:[#allocation12 + $0x3e0] sm:$0xf0]  ;;  %v16333_v25 = vld [vmem:[#allocation12 + $0x19c] sm:$0xf0] }
 0x51b   :  { %v14240_v9 = vor.u32 %v16401_v50, %v14237_v8  ;;  %v14203_v24 = vld [vmem:[#allocation12 + $0x380] sm:$0xf]  ;;  %v13948_v55 = vor.u32 %v16333_v25, %v13947_v18  ;;  %v16369_v50 = vld [vmem:[#allocation12 + $0x2c4] sm:$0xf] }
 0x51c   :  { %v14204_v0 = vor.u32 %v16397_v58, %v14203_v24  ;;  %v14109_v8 = vld [vmem:[#allocation12 + $0x2e0] sm:$0xf0]  ;;  %v13819_v25 = vld [vmem:[#allocation12 + $0x80] sm:$0xf] }
 0x51d   :  { %6785 = vmatpush.bf16.msrb.mxu0 %v13332_v5  ;;  %6798 = vmatpush.bf16.msrb.mxu1 %v13588_v46  ;;  %v16393_v5 = vld [vmem:[#allocation12 + $0x384] sm:$0xf]  ;;  %v14112_v18 = vor.u32 %v16369_v50, %v14109_v8  ;;  %v16301_v24 = vld [vmem:[#allocation12 + $0x9c] sm:$0xf0]  ;;  %v16338_v8 = vld [vmem:[#allocation12 + $0x1cc] sm:$0xf] }
 0x51e   :  { %6811 = vmatpush.bf16.msrb.mxu2 %v13336_v47  ;;  %6824 = vmatpush.bf16.msrb.mxu3 %v13592_v7  ;;  %v14205_v46 = vld [vmem:[#allocation12 + $0x3a0] sm:$0xf0]  ;;  %v13820_v35 = vor.u32 %v16301_v24, %v13819_v25  ;;  %v14245_v24 = vld [vmem:[#allocation12 + $0x3e8] sm:$0xf0] }
 0x51f   :  { %v14208_v7 = vor.u32 %v16393_v5, %v14205_v46  ;;  %v13821_v5 = vld [vmem:[#allocation12 + $0xa0] sm:$0xf0] }
 0x521   :  { %6786 = vmatpush.bf16.msrb.mxu0 %v13300_v56  ;;  %6799 = vmatpush.bf16.msrb.mxu1 %v13556_v27  ;;  %v16321_v56 = vld [vmem:[#allocation12 + $0x144] sm:$0xf] }
 0x522   :  { %6812 = vmatpush.bf16.msrb.mxu2 %v13304_v13  ;;  %6825 = vmatpush.bf16.msrb.mxu3 %v13560_v16  ;;  %v13917_v27 = vld [vmem:[#allocation12 + $0x160] sm:$0xf0] }
 0x523   :  { %v13920_v13 = vor.u32 %v16321_v56, %v13917_v27  ;;  %v14173_v16 = vld [vmem:[#allocation12 + $0x360] sm:$0xf0]  ;;  %v14043_v27 = vld [vmem:[#allocation12 + $0x240] sm:$0xf] }
 0x524   :  { %v14176_v15 = vor.u32 %v16385_v57, %v14173_v16  ;;  %v16357_v57 = vld [vmem:[#allocation12 + $0x25c] sm:$0xf0]  ;;  %v13789_v16 = vld [vmem:[#allocation12 + $0x60] sm:$0xf0] }
 0x525   :  { %6787 = vmatpush.bf16.msrb.mxu0 %v13268_v62  ;;  %6800 = vmatpush.bf16.msrb.mxu1 %v13524_v42  ;;  %v13884_v62 = vor.u32 %v16317_v61, %v13883_v30  ;;  %v16381_v42 = vld [vmem:[#allocation12 + $0x31c] sm:$0xf0] }
 0x526   :  { %6813 = vmatpush.bf16.msrb.mxu2 %v13272_v32  ;;  %6826 = vmatpush.bf16.msrb.mxu3 %v13528_v40  ;;  %v16313_v32 = vld [vmem:[#allocation12 + $0x104] sm:$0xf]  ;;  %v13755_v61 = vld [vmem:[#allocation12] sm:$0xf] }
 0x527   :  { %v13885_v40 = vld [vmem:[#allocation12 + $0x120] sm:$0xf0] }
 0x528   :  { %6788 = vmatmul.bf16.vlgmr.msrb.gmra.mxu0 %v17500_v53  ;;  %6801 = vmatmul.bf16.vlgmr.msrb.gmra.mxu1 %v17502_v59 }
 0x529   :  { %6814 = vmatmul.bf16.vlgmr.msrb.gmra.mxu2 %v17500_v53  ;;  %6827 = vmatmul.bf16.vlgmr.msrb.gmra.mxu3 %v17502_v59  ;;  %v16341_v53 = vld [vmem:[#allocation12 + $0x1dc] sm:$0xf0] }
 0x52a   :  { %v13980_v59 = vor.u32 %v16341_v53, %v13979_v43  ;;  %7676 = vmatpush.bf16.msra.mxu1 %v14236_v31  ;;  %7689 = vmatpush.bf16.msra.mxu2 %v13984_v49  ;;  %v13851_v53 = vld [vmem:[#allocation12 + $0xc0] sm:$0xf]  ;;  %v13853_v49 = vld [vmem:[#allocation12 + $0xe0] sm:$0xf0] }
 0x52b   :  { %7702 = vmatpush.bf16.msra.mxu3 %v14240_v9  ;;  %v13852_v54 = vor.u32 %v16309_v26, %v13851_v53  ;;  %v13856_v9 = vor.u32 %v16305_v45, %v13853_v49  ;;  %v16345_v53 = vld [vmem:[#allocation12 + $0x204] sm:$0xf]  ;;  %v14243_v45 = vld [vmem:[#allocation12 + $0x3c8] sm:$0xf] }
 0x52c   :  { %7663 = vmatpush.bf16.msra.mxu0 %v13980_v59  ;;  %v14107_v59 = vld [vmem:[#allocation12 + $0x2c0] sm:$0xf]  ;;  %v14013_v26 = vld [vmem:[#allocation12 + $0x220] sm:$0xf0] }
 0x52d   :  { %v14108_v31 = vor.u32 %v16373_v44, %v14107_v59  ;;  %v13987_v59 = vld [vmem:[#allocation12 + $0x1c8] sm:$0xf] }
 0x52e   :  { %7677 = vmatpush.bf16.msra.mxu1 %v14204_v0  ;;  %7690 = vmatpush.bf16.msra.mxu2 %v13952_v1  ;;  %v16365_v0 = vld [vmem:[#allocation12 + $0x29c] sm:$0xf0]  ;;  %v16297_v1 = vld [vmem:[#allocation12 + $0x84] sm:$0xf]  ;;  %v16342_v44 = vld [vmem:[#allocation12 + $0x1e4] sm:$0xf0] }
 0x52f   :  { %7703 = vmatpush.bf16.msra.mxu3 %v14208_v7  ;;  %v13824_v3 = vor.u32 %v16297_v1, %v13821_v5  ;;  %v13988_v49 = vor.u32 %v16342_v44, %v13987_v59  ;;  %v14211_v5 = vld [vmem:[#allocation12 + $0x388] sm:$0xf]  ;;  %v14149_v44 = vld [vmem:[#allocation12 + $0x328] sm:$0xf0] }
 0x530   :  { %7664 = vmatpush.bf16.msra.mxu0 %v13948_v55  ;;  %v14075_v55 = vld [vmem:[#allocation12 + $0x280] sm:$0xf] }
 0x531   :  { %v14076_v7 = vor.u32 %v16365_v0, %v14075_v55  ;;  %v13955_v55 = vld [vmem:[#allocation12 + $0x188] sm:$0xf] }
 0x532   :  { %7678 = vmatpush.bf16.msra.mxu1 %v14172_v28  ;;  %7691 = vmatpush.bf16.msra.mxu2 %v13920_v13  ;;  %v16289_v28 = vld [vmem:[#allocation12 + $0x44] sm:$0xf]  ;;  %v14044_v13 = vor.u32 %v16357_v57, %v14043_v27  ;;  %v14179_v27 = vld [vmem:[#allocation12 + $0x348] sm:$0xf] }
 0x533   :  { %7704 = vmatpush.bf16.msra.mxu3 %v14176_v15  ;;  %v16353_v15 = vld [vmem:[#allocation12 + $0x244] sm:$0xf] }
 0x534   :  { %7665 = vmatpush.bf16.msra.mxu0 %v13916_v14  ;;  %v16293_v14 = vld [vmem:[#allocation12 + $0x5c] sm:$0xf0] }
 0x538   :  { %7666 = vmatpush.bf16.msra.mxu0 %v13884_v62  ;;  %v14011_v62 = vld [vmem:[#allocation12 + $0x200] sm:$0xf] }
 0x53c   :  { %7667 = vmatpush.bf16.msra.mxu0 %v13852_v54  ;;  %v14016_v54 = vor.u32 %v16345_v53, %v14013_v26 }
 0x540   :  { %7668 = vmatpush.bf16.msra.mxu0 %v13820_v35  ;;  %v16334_v35 = vld [vmem:[#allocation12 + $0x1a4] sm:$0xf0] }
 0x541   :  { %v13956_v1 = vor.u32 %v16334_v35, %v13955_v55 }
 0x564   :  { %v6633_v4 = vpop.f32.mrf.mxu0  ;;  %v6646_v22 = vpop.f32.mrf.mxu1 }
 0x565   :  { %v17520_v23 = vadd.f32 %v6646_v22, %v6633_v4  ;;  %v14140_v4 = vor.u32 %v16381_v42, %v14139_v2  ;;  %v13888_v22 = vor.u32 %v16313_v32, %v13885_v40  ;;  %v16285_v2 = vld [vmem:[#allocation12 + $0x1c] sm:$0xf0] }
 0x566   :  { %v13756_v40 = vor.u32 %v16285_v2, %v13755_v61  ;;  %v13891_v2 = vld [vmem:[#allocation12 + $0x108] sm:$0xf] }
 0x567   :  { %7679 = vmatpush.bf16.msra.mxu1 %v14140_v4  ;;  %7692 = vmatpush.bf16.msra.mxu2 %v13888_v22  ;;  %v16349_v4 = vld [vmem:[#allocation12 + $0x21c] sm:$0xf0]  ;;  %v16281_v22 = vld [vmem:[#allocation12 + $0x4] sm:$0xf] }
 0x56b   :  { %v17522_v34 = vpop.f32.mrf.mxu2  ;;  %v17524_v60 = vpop.f32.mrf.mxu3  ;;  %7680 = vmatpush.bf16.msra.mxu1 %v14108_v31  ;;  %7693 = vmatpush.bf16.msra.mxu2 %v13856_v9  ;;  %v16406_v31 = vld [vmem:[#allocation12 + $0x3e4] sm:$0xf0]  ;;  %v13989_v9 = vld [vmem:[#allocation12 + $0x1e8] sm:$0xf0] }
 0x56c   :  { %v6635_v17 = vpop.f32.mrf.mxu0  ;;  %v6648_v36 = vpop.f32.mrf.mxu1  ;;  %v14244_v50 = vor.u32 %v16406_v31, %v14243_v45  ;;  %v13992_v25 = vor.u32 %v16338_v8, %v13989_v9  ;;  %v14115_v45 = vld [vmem:[#allocation12 + $0x2c8] sm:$0xf]  ;;  %v16306_v9 = vld [vmem:[#allocation12 + $0xcc] sm:$0xf] }
 0x56d   :  { %v16377_v17 = vld [vmem:[#allocation12 + $0x304] sm:$0xf]  ;;  %v16374_v8 = vld [vmem:[#allocation12 + $0x2e4] sm:$0xf0] }
 0x56e   :  { %v14141_v36 = vld [vmem:[#allocation12 + $0x320] sm:$0xf0] }
 0x56f   :  { %v14144_v43 = vor.u32 %v16377_v17, %v14141_v36  ;;  %7681 = vmatpush.bf16.msra.mxu1 %v14076_v7  ;;  %7694 = vmatpush.bf16.msra.mxu2 %v13824_v3  ;;  %v13757_v17 = vld [vmem:[#allocation12 + $0x20] sm:$0xf0]  ;;  %v14012_v36 = vor.u32 %v16349_v4, %v14011_v62  ;;  %v13957_v3 = vld [vmem:[#allocation12 + $0x1a8] sm:$0xf0]  ;;  %v16318_v62 = vld [vmem:[#allocation12 + $0x124] sm:$0xf0] }
 0x570   :  { %v13892_v4 = vor.u32 %v16318_v62, %v13891_v2  ;;  %v13795_v2 = vld [vmem:[#allocation12 + $0x48] sm:$0xf] }
 0x571   :  { %7705 = vmatpush.bf16.msra.mxu3 %v14144_v43  ;;  %v13760_v43 = vor.u32 %v16281_v22, %v13757_v17  ;;  %v16382_v22 = vld [vmem:[#allocation12 + $0x324] sm:$0xf0]  ;;  %v16314_v17 = vld [vmem:[#allocation12 + $0x10c] sm:$0xf] }
 0x572   :  { %v16294_v62 = vld [vmem:[#allocation12 + $0x64] sm:$0xf0] }
 0x573   :  { %v6661_v37 = vpop.f32.mrf.mxu2  ;;  %v6674_v38 = vpop.f32.mrf.mxu3  ;;  %7682 = vmatpush.bf16.msra.mxu1 %v14044_v13  ;;  %v16322_v13 = vld [vmem:[#allocation12 + $0x14c] sm:$0xf] }
 0x574   :  { %v17526_v39 = vpop.f32.mrf.mxu0  ;;  %v17528_v41 = vpop.f32.mrf.mxu1 }
 0x575   :  { %7706 = vmatpush.bf16.msra.mxu3 %v14112_v18  ;;  %v16402_v18 = vld [vmem:[#allocation12 + $0x3cc] sm:$0xf] }
 0x576   :  { %v14248_v0 = vor.u32 %v16402_v18, %v14245_v24  ;;  %v14117_v24 = vld [vmem:[#allocation12 + $0x2e8] sm:$0xf0] }
 0x577   :  { %7683 = vmatpush.bf16.msra.mxu1 %v14012_v36  ;;  %v13893_v36 = vld [vmem:[#allocation12 + $0x128] sm:$0xf0] }
 0x578   :  { %v13896_v59 = vor.u32 %v16314_v17, %v13893_v36 }
 0x57b   :  { %v17530_v21 = vpop.f32.mrf.mxu2  ;;  %v17532_v47 = vpop.f32.mrf.mxu3  ;;  %7728 = vmatpush.bf16.msrb.mxu1 %v14244_v50 }
 0x57c   :  { %v6687_v11 = vpop.f32.mrf.mxu0  ;;  %v6700_v12 = vpop.f32.mrf.mxu1 }
 0x57d   :  { %v14080_v11 = vor.u32 %v16361_v10, %v14077_v51  ;;  %v13787_v12 = vld [vmem:[#allocation12 + $0x40] sm:$0xf]  ;;  %v16394_v10 = vld [vmem:[#allocation12 + $0x38c] sm:$0xf] }
 0x57e   :  { %v13788_v56 = vor.u32 %v16293_v14, %v13787_v12  ;;  %v14213_v51 = vld [vmem:[#allocation12 + $0x3a8] sm:$0xf0]  ;;  %v13923_v14 = vld [vmem:[#allocation12 + $0x148] sm:$0xf] }
 0x57f   :  { %7707 = vmatpush.bf16.msra.mxu3 %v14080_v11  ;;  %v14216_v12 = vor.u32 %v16394_v10, %v14213_v51 }
 0x580   :  { %7669 = vmatpush.bf16.msra.mxu0 %v13788_v56  ;;  %v16326_v56 = vld [vmem:[#allocation12 + $0x164] sm:$0xf0] }
 0x581   :  { %v13924_v57 = vor.u32 %v16326_v56, %v13923_v14 }
 0x583   :  { %v6713_v19 = vpop.f32.mrf.mxu2  ;;  %v6726_v20 = vpop.f32.mrf.mxu3 }
 0x584   :  { %v14045_v19 = vld [vmem:[#allocation12 + $0x260] sm:$0xf0]  ;;  %v13792_v20 = vor.u32 %v16289_v28, %v13789_v16  ;;  %7670 = vmatpush.bf16.msra.mxu0 %v13756_v40  ;;  %v16390_v28 = vld [vmem:[#allocation12 + $0x364] sm:$0xf0]  ;;  %v13925_v16 = vld [vmem:[#allocation12 + $0x168] sm:$0xf0]  ;;  %v17548_v40 = vadd.f32 %v17528_v41, %v17526_v39 }
 0x585   :  { %v17534_v37 = vpop.f32.mrf.mxu0  ;;  %v17536_v38 = vpop.f32.mrf.mxu1  ;;  %v14048_v30 = vor.u32 %v16353_v15, %v14045_v19  ;;  %v14180_v15 = vor.u32 %v16390_v28, %v14179_v27  ;;  %v13928_v19 = vor.u32 %v16322_v13, %v13925_v16  ;;  %v13859_v39 = vld [vmem:[#allocation12 + $0xc8] sm:$0xf]  ;;  %v16362_v28 = vld [vmem:[#allocation12 + $0x28c] sm:$0xf] }
 0x586   :  { %7695 = vmatpush.bf16.msra.mxu2 %v13792_v20  ;;  %v16386_v20 = vld [vmem:[#allocation12 + $0x34c] sm:$0xf]  ;;  %v16310_v41 = vld [vmem:[#allocation12 + $0xe4] sm:$0xf0]  ;;  %v6751_v35 = vadd.f32 %v17536_v38, %v17534_v37 }
 0x587   :  { %7708 = vmatpush.bf16.msra.mxu3 %v14048_v30  ;;  %v14181_v30 = vld [vmem:[#allocation12 + $0x368] sm:$0xf0]  ;;  %v13860_v50 = vor.u32 %v16310_v41, %v13859_v39 }
 0x588   :  { %7715 = vmatpush.bf16.msrb.mxu0 %v13988_v49  ;;  %v14184_v61 = vor.u32 %v16386_v20, %v14181_v30  ;;  %v6841_v49 = vrot.slane %v17548_v40, 6  ;;  %v14085_v13 = vld [vmem:[#allocation12 + $0x2a8] sm:$0xf0]  ;;  %v6843_v16 = vrot.slane %v6751_v35, 4  ;;  %v14051_v40 = vld [vmem:[#allocation12 + $0x248] sm:$0xf] }
 0x589   :  { %v14021_v35 = vld [vmem:[#allocation12 + $0x228] sm:$0xf0] }
 0x58a   :  { %7696 = vmatpush.bf16.msra.mxu2 %v13760_v43 }
 0x58b   :  { %7709 = vmatpush.bf16.msra.mxu3 %v14016_v54  ;;  %v16378_v54 = vld [vmem:[#allocation12 + $0x30c] sm:$0xf] }
 0x58c   :  { %7716 = vmatpush.bf16.msrb.mxu0 %v13956_v1 }
 0x58d   :  { %v6739_v46 = vpop.f32.mrf.mxu0  ;;  %v6752_v6 = vpop.f32.mrf.mxu1 }
 0x58e   :  { %v17538_v58 = vpop.f32.mrf.mxu2  ;;  %v17540_v48 = vpop.f32.mrf.mxu3  ;;  %v16398_v46 = vld [vmem:[#allocation12 + $0x3a4] sm:$0xf0]  ;;  %v16330_v6 = vld [vmem:[#allocation12 + $0x18c] sm:$0xf]  ;;  %7741 = vmatpush.bf16.msrb.mxu2 %v13992_v25  ;;  %v14116_v25 = vor.u32 %v16374_v8, %v14115_v45 }
 0x58f   :  { %v14212_v7 = vor.u32 %v16398_v46, %v14211_v5  ;;  %7754 = vmatpush.bf16.msrb.mxu3 %v14248_v0  ;;  %v13960_v11 = vor.u32 %v16330_v6, %v13957_v3  ;;  %v6777_v18 = vadd.f32 %v17540_v48, %v17538_v58  ;;  %v5847_v46 = vld [vmem:[#allocation3 + $0x4] ss:$8 sm:$0xf0]  ;;  %v13827_v6 = vld [vmem:[#allocation12 + $0x88] sm:$0xf] }
 0x590   :  { %7717 = vmatpush.bf16.msrb.mxu0 %v13924_v57  ;;  %v14083_v3 = vld [vmem:[#allocation12 + $0x288] sm:$0xf] }
 0x591   :  { %7729 = vmatpush.bf16.msrb.mxu1 %v14212_v7  ;;  %v16302_v7 = vld [vmem:[#allocation12 + $0xa4] sm:$0xf0]  ;;  %v6844_v14 = vrot.slane %v6777_v18, 3 }
 0x592   :  { %7742 = vmatpush.bf16.msrb.mxu2 %v13960_v11  ;;  %v13828_v58 = vor.u32 %v16302_v7, %v13827_v6  ;;  %v16366_v48 = vld [vmem:[#allocation12 + $0x2a4] sm:$0xf0]  ;;  %v16298_v11 = vld [vmem:[#allocation12 + $0x8c] sm:$0xf] }
 0x593   :  { %7755 = vmatpush.bf16.msrb.mxu3 %v14216_v12  ;;  %v13829_v12 = vld [vmem:[#allocation12 + $0xa8] sm:$0xf0]  ;;  %v14084_v38 = vor.u32 %v16366_v48, %v14083_v3  ;;  %v6850_v36 = vsel %vm2687_vm3, %v6843_v16, %v6844_v14  ;;  %v13763_v45 = vld [vmem:[#allocation12 + $0x8] sm:$0xf]  ;;  %v13995_v16 = vld [vmem:[#allocation12 + $0x1d0] sm:$0xf] }
 0x594   :  { %7718 = vmatpush.bf16.msrb.mxu0 %v13892_v4  ;;  %v13832_v57 = vor.u32 %v16298_v11, %v13829_v12  ;;  %v16358_v4 = vld [vmem:[#allocation12 + $0x264] sm:$0xf0] }
 0x595   :  { %7730 = vmatpush.bf16.msrb.mxu1 %v14180_v15  ;;  %v5846_v15 = vld [vmem:[#allocation3 + $0x4] ss:$8 sm:$0xf]  ;;  %v16350_v18 = vld [vmem:[#allocation12 + $0x224] sm:$0xf0] }
 0x596   :  { %v6765_v42 = vpop.f32.mrf.mxu2  ;;  %v6778_v32 = vpop.f32.mrf.mxu3  ;;  %7743 = vmatpush.bf16.msrb.mxu2 %v13928_v19  ;;  %v14088_v19 = vor.u32 %v16362_v28, %v14085_v13 }
 0x597   :  { %v14147_v42 = vld [vmem:[#allocation12 + $0x308] sm:$0xf]  ;;  %v17544_v32 = vadd.f32 %v17524_v60, %v17522_v34  ;;  %v6725_v34 = vadd.f32 %v17532_v47, %v17530_v21  ;;  %7756 = vmatpush.bf16.msrb.mxu3 %v14184_v61  ;;  %v14152_v60 = vor.u32 %v16378_v54, %v14149_v44  ;;  %v13861_v21 = vld [vmem:[#allocation12 + $0xe8] sm:$0xf0] }
 0x598   :  { %v14148_v26 = vor.u32 %v16382_v22, %v14147_v42  ;;  %v16370_v47 = vld [vmem:[#allocation12 + $0x2cc] sm:$0xf]  ;;  %v13864_v0 = vor.u32 %v16306_v9, %v13861_v21  ;;  %7719 = vmatpush.bf16.msrb.mxu0 %v13860_v50  ;;  %v5848_v42 = vor.u32 %v5847_v46, %v5846_v15  ;;  %v16343_v15 = vld [vmem:[#allocation12 + $0x1ec] sm:$0xf0] }
 0x599   :  { %v6840_v31 = vrot.slane %v17544_v32, 7  ;;  %v6842_v55 = vrot.slane %v6725_v34, 5  ;;  %v14120_v1 = vor.u32 %v16370_v47, %v14117_v24  ;;  %v13796_v32 = vor.u32 %v16294_v62, %v13795_v2  ;;  %v16290_v22 = vld [vmem:[#allocation12 + $0x4c] sm:$0xf]  ;;  %v13997_v2 = vld [vmem:[#allocation12 + $0x1f0] sm:$0xf0] }
 0x59a   :  { %7731 = vmatpush.bf16.msrb.mxu1 %v14148_v26  ;;  %7744 = vmatpush.bf16.msrb.mxu2 %v13896_v59  ;;  %v13797_v26 = vld [vmem:[#allocation12 + $0x68] sm:$0xf0]  ;;  %v16403_v62 = vld [vmem:[#allocation12 + $0x3d4] sm:$0xf] }
 0x59b   :  { %7757 = vmatpush.bf16.msrb.mxu3 %v14152_v60  ;;  %v6848_v20 = vsel %vm2683_vm1, %v6841_v49, %v6842_v55  ;;  %v6847_v17 = vsel %vm2681_vm0, %v17520_v23, %v6840_v31  ;;  %v16354_v59 = vld [vmem:[#allocation12 + $0x24c] sm:$0xf]  ;;  %v13800_v60 = vor.u32 %v16290_v22, %v13797_v26  ;;  %v16286_v23 = vld [vmem:[#allocation12 + $0x24] sm:$0xf0]  ;;  %v13996_v22 = vor.u32 %v16343_v15, %v13995_v16  ;;  %v14125_v16 = vld [vmem:[#allocation12 + $0x2f0] sm:$0xf0] }
 0x59c   :  { %7720 = vmatpush.bf16.msrb.mxu0 %v13828_v58  ;;  %v14053_v54 = vld [vmem:[#allocation12 + $0x268] sm:$0xf0]  ;;  %v6849_v44 = vsel %vm2685_vm2, %v6847_v17, %v6848_v20  ;;  %v14019_v31 = vld [vmem:[#allocation12 + $0x208] sm:$0xf]  ;;  %v13764_v9 = vor.u32 %v16286_v23, %v13763_v45  ;;  %v14251_v20 = vld [vmem:[#allocation12 + $0x3d0] sm:$0xf] }
 0x59d   :  { %v14056_v39 = vor.u32 %v16354_v59, %v14053_v54  ;;  %v13765_v21 = vld [vmem:[#allocation12 + $0x28] sm:$0xf0]  ;;  %v14020_v47 = vor.u32 %v16350_v18, %v14019_v31  ;;  %v14219_v59 = vld [vmem:[#allocation12 + $0x390] sm:$0xf]  ;;  %v16323_v18 = vld [vmem:[#allocation12 + $0x154] sm:$0xf] }
 0x59e   :  { %7732 = vmatpush.bf16.msrb.mxu1 %v14116_v25  ;;  %7745 = vmatpush.bf16.msrb.mxu2 %v13864_v0  ;;  %v16282_v25 = vld [vmem:[#allocation12 + $0xc] sm:$0xf]  ;;  %v16399_v54 = vld [vmem:[#allocation12 + $0x3ac] sm:$0xf0] }
 0x59f   :  { %7758 = vmatpush.bf16.msrb.mxu3 %v14120_v1  ;;  %v13768_v24 = vor.u32 %v16282_v25, %v13765_v21  ;;  %v16346_v55 = vld [vmem:[#allocation12 + $0x20c] sm:$0xf]  ;;  %v14220_v45 = vor.u32 %v16399_v54, %v14219_v59  ;;  %v13931_v23 = vld [vmem:[#allocation12 + $0x150] sm:$0xf]  ;;  %v13933_v25 = vld [vmem:[#allocation12 + $0x170] sm:$0xf0] }
 0x5a0   :  { %7721 = vmatpush.bf16.msrb.mxu0 %v13796_v32  ;;  %v16327_v31 = vld [vmem:[#allocation12 + $0x16c] sm:$0xf0]  ;;  %v16387_v21 = vld [vmem:[#allocation12 + $0x354] sm:$0xf] }
 0x5a2   :  { %7733 = vmatpush.bf16.msrb.mxu1 %v14084_v38  ;;  %7746 = vmatpush.bf16.msrb.mxu2 %v13832_v57 }
 0x5a3   :  { %7759 = vmatpush.bf16.msrb.mxu3 %v14088_v19 }
 0x5a4   :  { %7722 = vmatpush.bf16.msrb.mxu0 %v13764_v9  ;;  %v16391_v9 = vld [vmem:[#allocation12 + $0x36c] sm:$0xf0] }
 0x5a5   :  { %v6789_v43 = vpop.f32.mrf.mxu0  ;;  %v6802_v53 = vpop.f32.mrf.mxu1 }
 0x5a6   :  { %v6803_v5 = vadd.f32 %v6802_v53, %v6789_v43  ;;  %v14052_v53 = vor.u32 %v16358_v4, %v14051_v40  ;;  %7747 = vmatpush.bf16.msrb.mxu2 %v13800_v60  ;;  %v16395_v60 = vld [vmem:[#allocation12 + $0x394] sm:$0xf] }
 0x5a7   :  { %7760 = vmatpush.bf16.msrb.mxu3 %v14056_v39  ;;  %v14221_v39 = vld [vmem:[#allocation12 + $0x3b0] sm:$0xf0] }
 0x5a8   :  { %v6845_v30 = vrot.slane %v6803_v5, 2  ;;  %7734 = vmatpush.bf16.msrb.mxu1 %v14052_v53  ;;  %v14024_v5 = vor.u32 %v16346_v55, %v14021_v35  ;;  %v13899_v35 = vld [vmem:[#allocation12 + $0x110] sm:$0xf] }
 0x5aa   :  { %7748 = vmatpush.bf16.msrb.mxu2 %v13768_v24  ;;  %v13932_v24 = vor.u32 %v16327_v31, %v13931_v23  ;;  %v13771_v23 = vld [vmem:[#allocation12 + $0x10] sm:$0xf] }
 0x5ab   :  { %7761 = vmatpush.bf16.msrb.mxu3 %v14024_v5 }
 0x5ac   :  { %v6815_v10 = vpop.f32.mrf.mxu2  ;;  %v6828_v51 = vpop.f32.mrf.mxu3  ;;  %7735 = vmatpush.bf16.msrb.mxu1 %v14020_v47  ;;  %v14189_v47 = vld [vmem:[#allocation12 + $0x370] sm:$0xf0] }
 0x5ad   :  { %v6829_v56 = vadd.f32 %v6828_v51, %v6815_v10  ;;  %v6791_v27 = vpop.f32.mrf.mxu0  ;;  %v6804_v37 = vpop.f32.mrf.mxu1  ;;  %v14192_v5 = vor.u32 %v16387_v21, %v14189_v47  ;;  %v16283_v21 = vld [vmem:[#allocation12 + $0x14] sm:$0xf] }
 0x5ae   :  { %v13773_v47 = vld [vmem:[#allocation12 + $0x30] sm:$0xf0] }
 0x5af   :  { %v6846_v61 = vrot.slane %v6829_v56, 1 }
 0x5b1   :  { %v6851_v43 = vsel %vm2689_vm4, %v6845_v30, %v6846_v61  ;;  %v16407_v30 = vld [vmem:[#allocation12 + $0x3ec] sm:$0xf0]  ;;  %v16339_v61 = vld [vmem:[#allocation12 + $0x1d4] sm:$0xf] }
 0x5b2   :  { %v6852_v34 = vsel %vm2691_vm5, %v6850_v36, %v6851_v43  ;;  %v14252_v17 = vor.u32 %v16407_v30, %v14251_v20  ;;  %v13963_v36 = vld [vmem:[#allocation12 + $0x190] sm:$0xf]  ;;  %v14000_v53 = vor.u32 %v16339_v61, %v13997_v2 }
 0x5b3   :  { %v6853_v41 = vsel %vm2693_vm6, %v6849_v44, %v6852_v34  ;;  %v16335_v43 = vld [vmem:[#allocation12 + $0x1ac] sm:$0xf0]  ;;  %v16331_v44 = vld [vmem:[#allocation12 + $0x194] sm:$0xf] }
 0x5b4   :  { %v6855_v49 = vadd.f32 %v6853_v41, %v5848_v42  ;;  %v6817_v50 = vpop.f32.mrf.mxu2  ;;  %v6830_v8 = vpop.f32.mrf.mxu3  ;;  %v14253_v42 = vld [vmem:[#allocation12 + $0x3f0] sm:$0xf0]  ;;  %v13964_v41 = vor.u32 %v16335_v43, %v13963_v36  ;;  %v13835_v20 = vld [vmem:[#allocation12 + $0x90] sm:$0xf] }
 0x5b5   :  { %v14256_v26 = vor.u32 %v16403_v62, %v14253_v42  ;;  %v13965_v34 = vld [vmem:[#allocation12 + $0x1b0] sm:$0xf0]  ;;  %v14224_v50 = vor.u32 %v16395_v60, %v14221_v39  ;;  %v14187_v8 = vld [vmem:[#allocation12 + $0x350] sm:$0xf] }
 0x5b6   :  { %v6856_v0 = vmul.f32 0.5, %v6855_v49  ;;  %v6861_v1 = vrot.slane %v6855_v49, 2  ;;  %v6870_v6 = vrot.slane %v6855_v49, 6  ;;  %v6867_v7 = vrot.slane %v6855_v49, 4  ;;  %v16303_v30 = vld [vmem:[#allocation12 + $0xac] sm:$0xf0] }
 0x5b7   :  { %v13968_v49 = vor.u32 %v16331_v44, %v13965_v34  ;;  %v14188_v55 = vor.u32 %v16391_v9, %v14187_v8  ;;  %v14091_v62 = vld [vmem:[#allocation12 + $0x290] sm:$0xf]  ;;  %v13836_v36 = vor.u32 %v16303_v30, %v13835_v20  ;;  %v16291_v60 = vld [vmem:[#allocation12 + $0x54] sm:$0xf] }
 0x5b8   :  { %16764 = vtanh.f32 %v6856_v0  ;;  %v6863_v46 = vmul.f32 0.5, %v6861_v1  ;;  %v6872_v3 = vmul.f32 0.5, %v6870_v6  ;;  %v16319_v0 = vld [vmem:[#allocation12 + $0x12c] sm:$0xf0]  ;;  %v13936_v1 = vor.u32 %v16323_v18, %v13933_v25  ;;  %v13805_v39 = vld [vmem:[#allocation12 + $0x70] sm:$0xf0] }
 0x5b9   :  { %v16383_v6 = vld [vmem:[#allocation12 + $0x32c] sm:$0xf0]  ;;  %v13808_v18 = vor.u32 %v16291_v60, %v13805_v39  ;;  %v14163_v60 = vld [vmem:[#allocation12 + $0x318] sm:$0xf] }
 0x5ba   :  { %16766 = vtanh.f32 %v6863_v46  ;;  %v14155_v46 = vld [vmem:[#allocation12 + $0x310] sm:$0xf]  ;;  %v16384_v39 = vld [vmem:[#allocation12 + $0x334] sm:$0xf0] }
 0x5bb   :  { %16768 = vtanh.f32 %v6867_v7  ;;  %v16315_v7 = vld [vmem:[#allocation12 + $0x114] sm:$0xf]  ;;  %v16367_v42 = vld [vmem:[#allocation12 + $0x2ac] sm:$0xf0] }
 0x5bc   :  { %16770 = vtanh.f32 %v6872_v3  ;;  %v13901_v3 = vld [vmem:[#allocation12 + $0x130] sm:$0xf0]  ;;  %v14092_v43 = vor.u32 %v16367_v42, %v14091_v62  ;;  %v14059_v44 = vld [vmem:[#allocation12 + $0x250] sm:$0xf] }
 0x5bd   :  { %v16359_v34 = vld [vmem:[#allocation12 + $0x26c] sm:$0xf0] }
 0x5be   :  { %v16765_v10 = vpop.eup %16764  ;;  %v14027_v8 = vld [vmem:[#allocation12 + $0x210] sm:$0xf] }
 0x5bf   :  { %v6858_v51 = vmul.f32 0.5, %v16765_v10  ;;  %v16379_v10 = vld [vmem:[#allocation12 + $0x314] sm:$0xf]  ;;  %v16351_v9 = vld [vmem:[#allocation12 + $0x22c] sm:$0xf0] }
 0x5c0   :  { %v16767_v58 = vpop.eup %16766 }
 0x5c1   :  { %v6859_v48 = vadd.f32 0.5, %v6858_v51  ;;  %v6865_v11 = vmul.f32 0.5, %v16767_v58  ;;  %v16769_v14 = vpop.eup %16768  ;;  %v14157_v51 = vld [vmem:[#allocation12 + $0x330] sm:$0xf0]  ;;  %v13900_v58 = vor.u32 %v16319_v0, %v13899_v35  ;;  %v14003_v35 = vld [vmem:[#allocation12 + $0x1d8] sm:$0xf] }
 0x5c2   :  { %v16771_v37 = vpop.eup %16770  ;;  %v16344_v0 = vld [vmem:[#allocation12 + $0x1f4] sm:$0xf0] }
 0x5c3   :  { %v6866_v12 = vadd.f32 0.5, %v6865_v11  ;;  %v6877_v27 = vmul.f32 %v16769_v14, %v6859_v48  ;;  %v6874_v57 = vmul.f32 0.5, %v16771_v37  ;;  %v14156_v48 = vor.u32 %v16383_v6, %v14155_v46  ;;  %v13867_v11 = vld [vmem:[#allocation12 + $0xd0] sm:$0xf]  ;;  %v16340_v46 = vld [vmem:[#allocation12 + $0x1dc] sm:$0xf] }
 0x5c4   :  { %v13904_v14 = vor.u32 %v16315_v7, %v13901_v3  ;;  %v16375_v37 = vld [vmem:[#allocation12 + $0x2ec] sm:$0xf0]  ;;  %v14028_v7 = vor.u32 %v16351_v9, %v14027_v8  ;;  %v14005_v3 = vld [vmem:[#allocation12 + $0x1f8] sm:$0xf0]  ;;  %v13875_v8 = vld [vmem:[#allocation12 + $0xd8] sm:$0xf] }
 0x5c5   :  { %v6876_v56 = vmul.f32 %v6866_v12, %v17495_v63  ;;  %v6875_v28 = vadd.f32 0.5, %v6874_v57  ;;  %v16311_v12 = vld [vmem:[#allocation12 + $0xec] sm:$0xf0]  ;;  %v16307_v57 = vld [vmem:[#allocation12 + $0xd4] sm:$0xf] }
 0x5c6   :  { %v13868_v15 = vor.u32 %v16311_v12, %v13867_v11  ;;  %v14004_v11 = vor.u32 %v16344_v0, %v14003_v35  ;;  %v16312_v9 = vld [vmem:[#allocation12 + $0xf4] sm:$0xf0]  ;;  %v16372_v35 = vld [vmem:[#allocation12 + $0x2dc] sm:$0xf] }
 0x5c7   :  { %v17567_v38 = vadd.f32 %v6877_v27, %v6876_v56  ;;  %v14160_v56 = vor.u32 %v16379_v10, %v14157_v51  ;;  %v14123_v27 = vld [vmem:[#allocation12 + $0x2d0] sm:$0xf]  ;;  %v16404_v10 = vld [vmem:[#allocation12 + $0x3dc] sm:$0xf] }
 0x5c8   :  { %v14261_v51 = vld [vmem:[#allocation12 + $0x3f8] sm:$0xf0] }
 0x5c9   :  { %16772 = vtanh.f32 %v17567_v38  ;;  %v14133_v0 = vld [vmem:[#allocation12 + $0x2f8] sm:$0xf0] }
 0x5cf   :  { %v16773_v13 = vpop.eup %16772 }
 0x5d0   :  { %v6880_v19 = vmul.f32 %v16773_v13, %v6875_v28  ;;  %v13869_v28 = vld [vmem:[#allocation12 + $0xf0] sm:$0xf0] }
 0x5d1   :  { %v16371_v13 = vld [vmem:[#allocation12 + $0x2d4] sm:$0xf]  ;;  %v13872_v61 = vor.u32 %v16307_v57, %v13869_v28  ;;  %v14227_v57 = vld [vmem:[#allocation12 + $0x398] sm:$0xf] }
 0x5d2   :  { %6882 = vst.msk [vmem:[#allocation2 + $0x4] ss:$8 sm:$0x3] %vm17278_vm7, %v6880_v19  ;;  %v6889_v63 = vperm.slane %v6880_v19, 0  ;;  %v6890_v32 = vperm.slane %v6880_v19, 1  ;;  %v14124_v19 = vor.u32 %v16375_v37, %v14123_v27  ;;  %v14128_v2 = vor.u32 %v16371_v13, %v14125_v16 }
 0x5d3   :  { %v14008_v27 = vor.u32 %v16340_v46, %v14005_v3  ;;  %v14264_v37 = vor.u32 %v16404_v10, %v14261_v51  ;;  %v16400_v28 = vld [vmem:[#allocation12 + $0x3b4] sm:$0xf0]  ;;  %v16332_v13 = vld [vmem:[#allocation12 + $0x19c] sm:$0xf]  ;;  %v14136_v3 = vor.u32 %v16372_v35, %v14133_v0 }
 0x5d4   :  { %v17572_v40 = vpack.c.bf16 %v6889_v63, %v6889_v63  ;;  %v17574_v4 = vpack.c.bf16 %v6890_v32, %v6890_v32  ;;  %v16299_v63 = vld [vmem:[#allocation12 + $0x94] sm:$0xf]  ;;  %v13973_v16 = vld [vmem:[#allocation12 + $0x1b8] sm:$0xf0]  ;;  %v14228_v30 = vor.u32 %v16400_v28, %v14227_v57  ;;  %v13843_v46 = vld [vmem:[#allocation12 + $0x98] sm:$0xf] }
 0x5d5   :  { %v13837_v32 = vld [vmem:[#allocation12 + $0xb0] sm:$0xf0]  ;;  %v13976_v62 = vor.u32 %v16332_v13, %v13973_v16  ;;  %v14099_v10 = vld [vmem:[#allocation12 + $0x298] sm:$0xf] }
 0x5d6   :  { %7671 = vmatmul.bf16.vlgmr.msra.gmra.mxu0 %v17572_v40  ;;  %7684 = vmatmul.bf16.vlgmr.msra.gmra.mxu1 %v17574_v4  ;;  %v13840_v59 = vor.u32 %v16299_v63, %v13837_v32  ;;  %v14195_v63 = vld [vmem:[#allocation12 + $0x358] sm:$0xf] }
 0x5d7   :  { %7697 = vmatmul.bf16.vlgmr.msra.gmra.mxu2 %v17572_v40  ;;  %7710 = vmatmul.bf16.vlgmr.msra.gmra.mxu3 %v17574_v4  ;;  %v16392_v32 = vld [vmem:[#allocation12 + $0x374] sm:$0xf0] }
 0x5d8   :  { %7767 = vmatpush.bf16.msra.mxu0 %v13996_v22  ;;  %7780 = vmatpush.bf16.msra.mxu1 %v14252_v17  ;;  %v16363_v22 = vld [vmem:[#allocation12 + $0x294] sm:$0xf]  ;;  %v16368_v51 = vld [vmem:[#allocation12 + $0x2b4] sm:$0xf0] }
 0x5d9   :  { %7793 = vmatpush.bf16.msra.mxu2 %v14000_v53  ;;  %7806 = vmatpush.bf16.msra.mxu3 %v14256_v26  ;;  %v14093_v17 = vld [vmem:[#allocation12 + $0x2b0] sm:$0xf0]  ;;  %v13803_v53 = vld [vmem:[#allocation12 + $0x50] sm:$0xf]  ;;  %v14067_v13 = vld [vmem:[#allocation12 + $0x258] sm:$0xf] }
 0x5da   :  { %v16295_v26 = vld [vmem:[#allocation12 + $0x6c] sm:$0xf0]  ;;  %v14096_v54 = vor.u32 %v16363_v22, %v14093_v17  ;;  %v16324_v22 = vld [vmem:[#allocation12 + $0x15c] sm:$0xf]  ;;  %v16360_v16 = vld [vmem:[#allocation12 + $0x274] sm:$0xf0] }
 0x5db   :  { %v13804_v31 = vor.u32 %v16295_v26, %v13803_v53  ;;  %v13941_v17 = vld [vmem:[#allocation12 + $0x178] sm:$0xf0]  ;;  %v14196_v26 = vor.u32 %v16392_v32, %v14195_v63 }
 0x5dc   :  { %7768 = vmatpush.bf16.msra.mxu0 %v13964_v41  ;;  %7781 = vmatpush.bf16.msra.mxu1 %v14220_v45  ;;  %v16355_v41 = vld [vmem:[#allocation12 + $0x254] sm:$0xf] }
 0x5dd   :  { %7794 = vmatpush.bf16.msra.mxu2 %v13968_v49  ;;  %7807 = vmatpush.bf16.msra.mxu3 %v14224_v50  ;;  %v14061_v45 = vld [vmem:[#allocation12 + $0x270] sm:$0xf0]  ;;  %v14060_v49 = vor.u32 %v16359_v34, %v14059_v44  ;;  %v16287_v50 = vld [vmem:[#allocation12 + $0x2c] sm:$0xf0]  ;;  %v13944_v44 = vor.u32 %v16324_v22, %v13941_v17  ;;  %v14035_v22 = vld [vmem:[#allocation12 + $0x218] sm:$0xf] }
 0x5de   :  { %v14064_v25 = vor.u32 %v16355_v41, %v14061_v45  ;;  %v13772_v6 = vor.u32 %v16287_v50, %v13771_v23  ;;  %v16316_v41 = vld [vmem:[#allocation12 + $0x11c] sm:$0xf]  ;;  %v14164_v50 = vor.u32 %v16384_v39, %v14163_v60  ;;  %v16352_v17 = vld [vmem:[#allocation12 + $0x234] sm:$0xf0] }
 0x5df   :  { %v13909_v45 = vld [vmem:[#allocation12 + $0x138] sm:$0xf0] }
 0x5e0   :  { %7769 = vmatpush.bf16.msra.mxu0 %v13932_v24  ;;  %7782 = vmatpush.bf16.msra.mxu1 %v14188_v55  ;;  %v16347_v24 = vld [vmem:[#allocation12 + $0x214] sm:$0xf]  ;;  %v16380_v23 = vld [vmem:[#allocation12 + $0x31c] sm:$0xf] }
 0x5e1   :  { %7795 = vmatpush.bf16.msra.mxu2 %v13936_v1  ;;  %7808 = vmatpush.bf16.msra.mxu3 %v14192_v5  ;;  %v14029_v55 = vld [vmem:[#allocation12 + $0x230] sm:$0xf0]  ;;  %v14259_v1 = vld [vmem:[#allocation12 + $0x3d8] sm:$0xf] }
 0x5e2   :  { %v16408_v5 = vld [vmem:[#allocation12 + $0x3f4] sm:$0xf0] }
 0x5e3   :  { %v14260_v12 = vor.u32 %v16408_v5, %v14259_v1  ;;  %v13876_v1 = vor.u32 %v16312_v9, %v13875_v8 }
 0x5e4   :  { %7770 = vmatpush.bf16.msra.mxu0 %v13900_v58  ;;  %7783 = vmatpush.bf16.msra.mxu1 %v14156_v48  ;;  %v13776_v58 = vor.u32 %v16283_v21, %v13773_v47  ;;  %v14032_v48 = vor.u32 %v16347_v24, %v14029_v55  ;;  %v14131_v21 = vld [vmem:[#allocation12 + $0x2d8] sm:$0xf]  ;;  %v16308_v24 = vld [vmem:[#allocation12 + $0xdc] sm:$0xf] }
 0x5e5   :  { %7796 = vmatpush.bf16.msra.mxu2 %v13904_v14  ;;  %7809 = vmatpush.bf16.msra.mxu3 %v14160_v56  ;;  %v13971_v14 = vld [vmem:[#allocation12 + $0x198] sm:$0xf]  ;;  %v13877_v55 = vld [vmem:[#allocation12 + $0xf8] sm:$0xf0] }
 0x5e6   :  { %7723 = vmatmul.bf16.vlgmr.msrb.gmra.mxu0 %v17572_v40  ;;  %7736 = vmatmul.bf16.vlgmr.msrb.gmra.mxu1 %v17574_v4  ;;  %v16336_v56 = vld [vmem:[#allocation12 + $0x1b4] sm:$0xf0] }
 0x5e7   :  { %7749 = vmatmul.bf16.vlgmr.msrb.gmra.mxu2 %v17572_v40  ;;  %7762 = vmatmul.bf16.vlgmr.msrb.gmra.mxu3 %v17574_v4  ;;  %v13972_v20 = vor.u32 %v16336_v56, %v13971_v14  ;;  %v16376_v47 = vld [vmem:[#allocation12 + $0x2f4] sm:$0xf0]  ;;  %v14100_v56 = vor.u32 %v16368_v51, %v14099_v10  ;;  %v16525_v51 = vld [vmem:[#allocation12 + $0x39c] sm:$0xf0] }
 0x5e8   :  { %7771 = vmatpush.bf16.msra.mxu0 %v13868_v15  ;;  %7784 = vmatpush.bf16.msra.mxu1 %v14124_v19  ;;  %v16396_v15 = vld [vmem:[#allocation12 + $0x39c] sm:$0xf]  ;;  %v14132_v5 = vor.u32 %v16376_v47, %v14131_v21  ;;  %v14747_v21 = vld [vmem:[#allocation12 + $0x3c0] sm:$0xf] }
 0x5e9   :  { %7797 = vmatpush.bf16.msra.mxu2 %v13872_v61  ;;  %7810 = vmatpush.bf16.msra.mxu3 %v14128_v2  ;;  %v14229_v19 = vld [vmem:[#allocation12 + $0x3b8] sm:$0xf0]  ;;  %v13939_v61 = vld [vmem:[#allocation12 + $0x158] sm:$0xf]  ;;  %v16533_v47 = vld [vmem:[#allocation12 + $0x3dc] sm:$0xf0] }
 0x5ea   :  { %v16328_v2 = vld [vmem:[#allocation12 + $0x174] sm:$0xf0]  ;;  %v14232_v42 = vor.u32 %v16396_v15, %v14229_v19  ;;  %v16292_v15 = vld [vmem:[#allocation12 + $0x5c] sm:$0xf]  ;;  %v14748_v35 = vor.u32 %v16533_v47, %v14747_v21  ;;  %v16437_v21 = vld [vmem:[#allocation12 + $0xdc] sm:$0xf0] }
 0x5eb   :  { %v13940_v53 = vor.u32 %v16328_v2, %v13939_v61  ;;  %v13813_v19 = vld [vmem:[#allocation12 + $0x78] sm:$0xf0]  ;;  %v14068_v2 = vor.u32 %v16360_v16, %v14067_v13  ;;  %v16453_v13 = vld [vmem:[#allocation12 + $0x15c] sm:$0xf0] }
 0x5ec   :  { %7772 = vmatpush.bf16.msra.mxu0 %v13836_v36  ;;  %7785 = vmatpush.bf16.msra.mxu1 %v14092_v43  ;;  %v16388_v36 = vld [vmem:[#allocation12 + $0x35c] sm:$0xf]  ;;  %v13816_v63 = vor.u32 %v16292_v15, %v13813_v19  ;;  %v14683_v16 = vld [vmem:[#allocation12 + $0x340] sm:$0xf] }
 0x5ed   :  { %7798 = vmatpush.bf16.msra.mxu2 %v13840_v59  ;;  %7811 = vmatpush.bf16.msra.mxu3 %v14096_v54  ;;  %v14197_v43 = vld [vmem:[#allocation12 + $0x378] sm:$0xf0]  ;;  %v13907_v59 = vld [vmem:[#allocation12 + $0x118] sm:$0xf]  ;;  %v16517_v15 = vld [vmem:[#allocation12 + $0x35c] sm:$0xf0] }
 0x5ee   :  { %v16320_v54 = vld [vmem:[#allocation12 + $0x134] sm:$0xf0]  ;;  %v14200_v34 = vor.u32 %v16388_v36, %v14197_v43  ;;  %v16284_v36 = vld [vmem:[#allocation12 + $0x1c] sm:$0xf] }
 0x5ef   :  { %v13781_v43 = vld [vmem:[#allocation12 + $0x38] sm:$0xf0] }
 0x5f0   :  { %7773 = vmatpush.bf16.msra.mxu0 %v13804_v31  ;;  %7786 = vmatpush.bf16.msra.mxu1 %v14060_v49  ;;  %v14165_v31 = vld [vmem:[#allocation12 + $0x338] sm:$0xf0]  ;;  %v13908_v49 = vor.u32 %v16320_v54, %v13907_v59  ;;  %v14036_v54 = vor.u32 %v16352_v17, %v14035_v22 }
 0x5f1   :  { %7799 = vmatpush.bf16.msra.mxu2 %v13808_v18  ;;  %7812 = vmatpush.bf16.msra.mxu3 %v14064_v25  ;;  %v13912_v18 = vor.u32 %v16316_v41, %v13909_v45  ;;  %v14168_v25 = vor.u32 %v16380_v23, %v14165_v31 }
 0x5f4   :  { %7774 = vmatpush.bf16.msra.mxu0 %v13772_v6  ;;  %7787 = vmatpush.bf16.msra.mxu1 %v14028_v7  ;;  %v16304_v6 = vld [vmem:[#allocation12 + $0xb4] sm:$0xf0]  ;;  %v13880_v7 = vor.u32 %v16308_v24, %v13877_v55  ;;  %v16465_v24 = vld [vmem:[#allocation12 + $0x1c4] sm:$0xf] }
 0x5f5   :  { %7800 = vmatpush.bf16.msra.mxu2 %v13776_v58  ;;  %7813 = vmatpush.bf16.msra.mxu3 %v14032_v48  ;;  %v16300_v58 = vld [vmem:[#allocation12 + $0x9c] sm:$0xf]  ;;  %v13844_v14 = vor.u32 %v16304_v6, %v13843_v46  ;;  %v14493_v55 = vld [vmem:[#allocation12 + $0x1e0] sm:$0xf0]  ;;  %v14459_v6 = vld [vmem:[#allocation12 + $0x180] sm:$0xf] }
 0x5f6   :  { %v13845_v48 = vld [vmem:[#allocation12 + $0xb8] sm:$0xf0]  ;;  %v14496_v0 = vor.u32 %v16465_v24, %v14493_v55  ;;  %v16501_v24 = vld [vmem:[#allocation12 + $0x2dc] sm:$0xf0]  ;;  %v16433_v55 = vld [vmem:[#allocation12 + $0xc4] sm:$0xf] }
 0x5f7   :  { %7775 = vmatmul.bf16.vlgmr.msra.gmra.mxu0 %v17572_v40  ;;  %7788 = vmatmul.bf16.vlgmr.msra.gmra.mxu1 %v17574_v4  ;;  %v13848_v57 = vor.u32 %v16300_v58, %v13845_v48  ;;  %v16457_v58 = vld [vmem:[#allocation12 + $0x184] sm:$0xf] }
 0x5f8   :  { %7819 = vmatpush.bf16.msrb.mxu0 %v14004_v11  ;;  %7832 = vmatpush.bf16.msrb.mxu1 %v14260_v12  ;;  %v16364_v11 = vld [vmem:[#allocation12 + $0x29c] sm:$0xf]  ;;  %v14461_v48 = vld [vmem:[#allocation12 + $0x1a0] sm:$0xf0] }
 0x5f9   :  { %7845 = vmatpush.bf16.msrb.mxu2 %v14008_v27  ;;  %7858 = vmatpush.bf16.msrb.mxu3 %v14264_v37  ;;  %v14101_v12 = vld [vmem:[#allocation12 + $0x2b8] sm:$0xf0]  ;;  %v13811_v27 = vld [vmem:[#allocation12 + $0x58] sm:$0xf] }
 0x5fa   :  { %7801 = vmatmul.bf16.vlgmr.msra.gmra.mxu2 %v17572_v40  ;;  %7814 = vmatmul.bf16.vlgmr.msra.gmra.mxu3 %v17574_v4  ;;  %v16296_v37 = vld [vmem:[#allocation12 + $0x74] sm:$0xf0]  ;;  %v14104_v28 = vor.u32 %v16364_v11, %v14101_v12  ;;  %v14464_v12 = vor.u32 %v16457_v58, %v14461_v48 }
 0x5fb   :  { %v13812_v61 = vor.u32 %v16296_v37, %v13811_v27  ;;  %v14427_v27 = vld [vmem:[#allocation12 + $0x140] sm:$0xf] }
 0x5fc   :  { %7820 = vmatpush.bf16.msrb.mxu0 %v13972_v20  ;;  %7833 = vmatpush.bf16.msrb.mxu1 %v14228_v30  ;;  %v16356_v20 = vld [vmem:[#allocation12 + $0x25c] sm:$0xf] }
 0x5fd   :  { %7846 = vmatpush.bf16.msrb.mxu2 %v13976_v62  ;;  %7859 = vmatpush.bf16.msrb.mxu3 %v14232_v42  ;;  %v14069_v30 = vld [vmem:[#allocation12 + $0x278] sm:$0xf0]  ;;  %v13779_v62 = vld [vmem:[#allocation12 + $0x18] sm:$0xf] }
 0x5fe   :  { %v16288_v42 = vld [vmem:[#allocation12 + $0x34] sm:$0xf0]  ;;  %v14072_v32 = vor.u32 %v16356_v20, %v14069_v30  ;;  %v14428_v30 = vor.u32 %v16453_v13, %v14427_v27 }
 0x5ff   :  { %v13780_v59 = vor.u32 %v16288_v42, %v13779_v62  ;;  %v16513_v62 = vld [vmem:[#allocation12 + $0x344] sm:$0xf]  ;;  %v14684_v42 = vor.u32 %v16517_v15, %v14683_v16 }
 0x600   :  { %7821 = vmatpush.bf16.msrb.mxu0 %v13940_v53  ;;  %7834 = vmatpush.bf16.msrb.mxu1 %v14196_v26  ;;  %v16348_v53 = vld [vmem:[#allocation12 + $0x21c] sm:$0xf]  ;;  %v16489_v16 = vld [vmem:[#allocation12 + $0x284] sm:$0xf] }
 0x601   :  { %7847 = vmatpush.bf16.msrb.mxu2 %v13944_v44  ;;  %7860 = vmatpush.bf16.msrb.mxu3 %v14200_v34  ;;  %v14037_v26 = vld [vmem:[#allocation12 + $0x238] sm:$0xf0]  ;;  %v13784_v44 = vor.u32 %v16284_v36, %v13781_v43  ;;  %v14395_v43 = vld [vmem:[#allocation12 + $0x100] sm:$0xf]  ;;  %v14589_v15 = vld [vmem:[#allocation12 + $0x2a0] sm:$0xf0] }
 0x602   :  { %v14040_v34 = vor.u32 %v16348_v53, %v14037_v26  ;;  %v16445_v53 = vld [vmem:[#allocation12 + $0x11c] sm:$0xf0] }
 0x603   :  { %v14651_v26 = vld [vmem:[#allocation12 + $0x300] sm:$0xf] }
 0x604   :  { %7822 = vmatpush.bf16.msrb.mxu0 %v13908_v49  ;;  %7835 = vmatpush.bf16.msrb.mxu1 %v14164_v50 }
 0x605   :  { %7848 = vmatpush.bf16.msrb.mxu2 %v13912_v18  ;;  %7861 = vmatpush.bf16.msrb.mxu3 %v14168_v25  ;;  %v14491_v25 = vld [vmem:[#allocation12 + $0x1c0] sm:$0xf] }
 0x608   :  { %7823 = vmatpush.bf16.msrb.mxu0 %v13876_v1  ;;  %7836 = vmatpush.bf16.msrb.mxu1 %v14132_v5  ;;  %v16529_v1 = vld [vmem:[#allocation12 + $0x3c4] sm:$0xf] }
 0x609   :  { %7849 = vmatpush.bf16.msrb.mxu2 %v13880_v7  ;;  %7862 = vmatpush.bf16.msrb.mxu3 %v14136_v3  ;;  %v14749_v5 = vld [vmem:[#allocation12 + $0x3e0] sm:$0xf0]  ;;  %v16461_v7 = vld [vmem:[#allocation12 + $0x19c] sm:$0xf0] }
 0x60a   :  { %v14752_v46 = vor.u32 %v16529_v1, %v14749_v5  ;;  %v14715_v3 = vld [vmem:[#allocation12 + $0x380] sm:$0xf]  ;;  %v14460_v10 = vor.u32 %v16461_v7, %v14459_v6  ;;  %v16497_v1 = vld [vmem:[#allocation12 + $0x2c4] sm:$0xf] }
 0x60b   :  { %v14716_v11 = vor.u32 %v16525_v51, %v14715_v3  ;;  %v14621_v5 = vld [vmem:[#allocation12 + $0x2e0] sm:$0xf0]  ;;  %v14331_v7 = vld [vmem:[#allocation12 + $0x80] sm:$0xf] }
 0x60c   :  { %7824 = vmatpush.bf16.msrb.mxu0 %v13844_v14  ;;  %7837 = vmatpush.bf16.msrb.mxu1 %v14100_v56  ;;  %v16521_v14 = vld [vmem:[#allocation12 + $0x384] sm:$0xf]  ;;  %v14624_v6 = vor.u32 %v16497_v1, %v14621_v5  ;;  %v16429_v3 = vld [vmem:[#allocation12 + $0x9c] sm:$0xf0]  ;;  %v16466_v5 = vld [vmem:[#allocation12 + $0x1cc] sm:$0xf] }
 0x60d   :  { %7850 = vmatpush.bf16.msrb.mxu2 %v13848_v57  ;;  %7863 = vmatpush.bf16.msrb.mxu3 %v14104_v28  ;;  %v14717_v56 = vld [vmem:[#allocation12 + $0x3a0] sm:$0xf0]  ;;  %v14332_v48 = vor.u32 %v16429_v3, %v14331_v7  ;;  %v14757_v3 = vld [vmem:[#allocation12 + $0x3e8] sm:$0xf0] }
 0x60e   :  { %v14720_v28 = vor.u32 %v16521_v14, %v14717_v56  ;;  %v14333_v14 = vld [vmem:[#allocation12 + $0xa0] sm:$0xf0] }
 0x610   :  { %7825 = vmatpush.bf16.msrb.mxu0 %v13812_v61  ;;  %7838 = vmatpush.bf16.msrb.mxu1 %v14068_v2  ;;  %v16449_v61 = vld [vmem:[#allocation12 + $0x144] sm:$0xf] }
 0x611   :  { %7851 = vmatpush.bf16.msrb.mxu2 %v13816_v63  ;;  %7864 = vmatpush.bf16.msrb.mxu3 %v14072_v32  ;;  %v14429_v2 = vld [vmem:[#allocation12 + $0x160] sm:$0xf0] }
 0x612   :  { %v14432_v63 = vor.u32 %v16449_v61, %v14429_v2  ;;  %v14685_v32 = vld [vmem:[#allocation12 + $0x360] sm:$0xf0]  ;;  %v14555_v2 = vld [vmem:[#allocation12 + $0x240] sm:$0xf] }
 0x613   :  { %v14688_v22 = vor.u32 %v16513_v62, %v14685_v32  ;;  %v16485_v62 = vld [vmem:[#allocation12 + $0x25c] sm:$0xf0]  ;;  %v14301_v32 = vld [vmem:[#allocation12 + $0x60] sm:$0xf0] }
 0x614   :  { %7826 = vmatpush.bf16.msrb.mxu0 %v13780_v59  ;;  %7839 = vmatpush.bf16.msrb.mxu1 %v14036_v54  ;;  %v14396_v59 = vor.u32 %v16445_v53, %v14395_v43  ;;  %v16509_v54 = vld [vmem:[#allocation12 + $0x31c] sm:$0xf0] }
 0x615   :  { %7852 = vmatpush.bf16.msrb.mxu2 %v13784_v44  ;;  %7865 = vmatpush.bf16.msrb.mxu3 %v14040_v34  ;;  %v16441_v44 = vld [vmem:[#allocation12 + $0x104] sm:$0xf]  ;;  %v14267_v53 = vld [vmem:[#allocation12] sm:$0xf] }
 0x616   :  { %v14397_v34 = vld [vmem:[#allocation12 + $0x120] sm:$0xf0] }
 0x617   :  { %7827 = vmatmul.bf16.vlgmr.msrb.gmra.mxu0 %v17572_v40  ;;  %7840 = vmatmul.bf16.vlgmr.msrb.gmra.mxu1 %v17574_v4 }
 0x618   :  { %7853 = vmatmul.bf16.vlgmr.msrb.gmra.mxu2 %v17572_v40  ;;  %7866 = vmatmul.bf16.vlgmr.msrb.gmra.mxu3 %v17574_v4  ;;  %v16469_v40 = vld [vmem:[#allocation12 + $0x1dc] sm:$0xf0] }
 0x619   :  { %v14492_v4 = vor.u32 %v16469_v40, %v14491_v25  ;;  %8715 = vmatpush.bf16.msra.mxu1 %v14748_v35  ;;  %8728 = vmatpush.bf16.msra.mxu2 %v14496_v0  ;;  %v14363_v40 = vld [vmem:[#allocation12 + $0xc0] sm:$0xf]  ;;  %v14365_v0 = vld [vmem:[#allocation12 + $0xe0] sm:$0xf0] }
 0x61a   :  { %8741 = vmatpush.bf16.msra.mxu3 %v14752_v46  ;;  %v14364_v47 = vor.u32 %v16437_v21, %v14363_v40  ;;  %v14368_v46 = vor.u32 %v16433_v55, %v14365_v0  ;;  %v16473_v40 = vld [vmem:[#allocation12 + $0x204] sm:$0xf]  ;;  %v14755_v55 = vld [vmem:[#allocation12 + $0x3c8] sm:$0xf] }
 0x61b   :  { %8702 = vmatpush.bf16.msra.mxu0 %v14492_v4  ;;  %v14619_v4 = vld [vmem:[#allocation12 + $0x2c0] sm:$0xf]  ;;  %v14525_v21 = vld [vmem:[#allocation12 + $0x220] sm:$0xf0] }
 0x61c   :  { %v14620_v35 = vor.u32 %v16501_v24, %v14619_v4  ;;  %v14499_v4 = vld [vmem:[#allocation12 + $0x1c8] sm:$0xf] }
 0x61d   :  { %8716 = vmatpush.bf16.msra.mxu1 %v14716_v11  ;;  %8729 = vmatpush.bf16.msra.mxu2 %v14464_v12  ;;  %v16493_v11 = vld [vmem:[#allocation12 + $0x29c] sm:$0xf0]  ;;  %v16425_v12 = vld [vmem:[#allocation12 + $0x84] sm:$0xf]  ;;  %v16470_v24 = vld [vmem:[#allocation12 + $0x1e4] sm:$0xf0] }
 0x61e   :  { %8742 = vmatpush.bf16.msra.mxu3 %v14720_v28  ;;  %v14336_v13 = vor.u32 %v16425_v12, %v14333_v14  ;;  %v14500_v0 = vor.u32 %v16470_v24, %v14499_v4  ;;  %v14723_v14 = vld [vmem:[#allocation12 + $0x388] sm:$0xf]  ;;  %v14661_v24 = vld [vmem:[#allocation12 + $0x328] sm:$0xf0] }
 0x61f   :  { %8703 = vmatpush.bf16.msra.mxu0 %v14460_v10  ;;  %v14587_v10 = vld [vmem:[#allocation12 + $0x280] sm:$0xf] }
 0x620   :  { %v14588_v28 = vor.u32 %v16493_v11, %v14587_v10  ;;  %v14467_v10 = vld [vmem:[#allocation12 + $0x188] sm:$0xf] }
 0x621   :  { %8717 = vmatpush.bf16.msra.mxu1 %v14684_v42  ;;  %8730 = vmatpush.bf16.msra.mxu2 %v14432_v63  ;;  %v16417_v42 = vld [vmem:[#allocation12 + $0x44] sm:$0xf]  ;;  %v14556_v63 = vor.u32 %v16485_v62, %v14555_v2  ;;  %v14691_v2 = vld [vmem:[#allocation12 + $0x348] sm:$0xf] }
 0x622   :  { %8743 = vmatpush.bf16.msra.mxu3 %v14688_v22  ;;  %v16481_v22 = vld [vmem:[#allocation12 + $0x244] sm:$0xf] }
 0x623   :  { %8704 = vmatpush.bf16.msra.mxu0 %v14428_v30  ;;  %v16421_v30 = vld [vmem:[#allocation12 + $0x5c] sm:$0xf0] }
 0x627   :  { %8705 = vmatpush.bf16.msra.mxu0 %v14396_v59  ;;  %v14523_v59 = vld [vmem:[#allocation12 + $0x200] sm:$0xf] }
 0x62b   :  { %8706 = vmatpush.bf16.msra.mxu0 %v14364_v47  ;;  %v14528_v47 = vor.u32 %v16473_v40, %v14525_v21 }
 0x62f   :  { %8707 = vmatpush.bf16.msra.mxu0 %v14332_v48  ;;  %v16462_v48 = vld [vmem:[#allocation12 + $0x1a4] sm:$0xf0] }
 0x630   :  { %v14468_v12 = vor.u32 %v16462_v48, %v14467_v10 }
 0x653   :  { %v7672_v60 = vpop.f32.mrf.mxu0  ;;  %v7685_v39 = vpop.f32.mrf.mxu1 }
 0x654   :  { %v17592_v41 = vadd.f32 %v7685_v39, %v7672_v60  ;;  %v14652_v60 = vor.u32 %v16509_v54, %v14651_v26  ;;  %v14400_v39 = vor.u32 %v16441_v44, %v14397_v34  ;;  %v16413_v26 = vld [vmem:[#allocation12 + $0x1c] sm:$0xf0] }
 0x655   :  { %v14268_v34 = vor.u32 %v16413_v26, %v14267_v53  ;;  %v14403_v26 = vld [vmem:[#allocation12 + $0x108] sm:$0xf] }
 0x656   :  { %8718 = vmatpush.bf16.msra.mxu1 %v14652_v60  ;;  %8731 = vmatpush.bf16.msra.mxu2 %v14400_v39  ;;  %v16477_v60 = vld [vmem:[#allocation12 + $0x21c] sm:$0xf0]  ;;  %v16409_v39 = vld [vmem:[#allocation12 + $0x4] sm:$0xf] }
 0x65a   :  { %v17594_v45 = vpop.f32.mrf.mxu2  ;;  %v17596_v23 = vpop.f32.mrf.mxu3  ;;  %8719 = vmatpush.bf16.msra.mxu1 %v14620_v35  ;;  %8732 = vmatpush.bf16.msra.mxu2 %v14368_v46  ;;  %v16534_v35 = vld [vmem:[#allocation12 + $0x3e4] sm:$0xf0]  ;;  %v14501_v46 = vld [vmem:[#allocation12 + $0x1e8] sm:$0xf0] }
 0x65b   :  { %v7674_v31 = vpop.f32.mrf.mxu0  ;;  %v7687_v49 = vpop.f32.mrf.mxu1  ;;  %v14756_v1 = vor.u32 %v16534_v35, %v14755_v55  ;;  %v14504_v7 = vor.u32 %v16466_v5, %v14501_v46  ;;  %v14627_v55 = vld [vmem:[#allocation12 + $0x2c8] sm:$0xf]  ;;  %v16434_v46 = vld [vmem:[#allocation12 + $0xcc] sm:$0xf] }
 0x65c   :  { %v16505_v31 = vld [vmem:[#allocation12 + $0x304] sm:$0xf]  ;;  %v16502_v5 = vld [vmem:[#allocation12 + $0x2e4] sm:$0xf0] }
 0x65d   :  { %v14653_v49 = vld [vmem:[#allocation12 + $0x320] sm:$0xf0] }
 0x65e   :  { %v14656_v25 = vor.u32 %v16505_v31, %v14653_v49  ;;  %8720 = vmatpush.bf16.msra.mxu1 %v14588_v28  ;;  %8733 = vmatpush.bf16.msra.mxu2 %v14336_v13  ;;  %v14269_v31 = vld [vmem:[#allocation12 + $0x20] sm:$0xf0]  ;;  %v14524_v49 = vor.u32 %v16477_v60, %v14523_v59  ;;  %v14469_v13 = vld [vmem:[#allocation12 + $0x1a8] sm:$0xf0]  ;;  %v16446_v59 = vld [vmem:[#allocation12 + $0x124] sm:$0xf0] }
 0x65f   :  { %v14404_v60 = vor.u32 %v16446_v59, %v14403_v26  ;;  %v14307_v26 = vld [vmem:[#allocation12 + $0x48] sm:$0xf] }
 0x660   :  { %8744 = vmatpush.bf16.msra.mxu3 %v14656_v25  ;;  %v14272_v25 = vor.u32 %v16409_v39, %v14269_v31  ;;  %v16510_v39 = vld [vmem:[#allocation12 + $0x324] sm:$0xf0]  ;;  %v16442_v31 = vld [vmem:[#allocation12 + $0x10c] sm:$0xf] }
 0x661   :  { %v16422_v59 = vld [vmem:[#allocation12 + $0x64] sm:$0xf0] }
 0x662   :  { %v7700_v50 = vpop.f32.mrf.mxu2  ;;  %v7713_v8 = vpop.f32.mrf.mxu3  ;;  %8721 = vmatpush.bf16.msra.mxu1 %v14556_v63  ;;  %v16450_v63 = vld [vmem:[#allocation12 + $0x14c] sm:$0xf] }
 0x663   :  { %v17598_v9 = vpop.f32.mrf.mxu0  ;;  %v17600_v18 = vpop.f32.mrf.mxu1 }
 0x664   :  { %8745 = vmatpush.bf16.msra.mxu3 %v14624_v6  ;;  %v16530_v6 = vld [vmem:[#allocation12 + $0x3cc] sm:$0xf] }
 0x665   :  { %v14760_v11 = vor.u32 %v16530_v6, %v14757_v3  ;;  %v14629_v3 = vld [vmem:[#allocation12 + $0x2e8] sm:$0xf0] }
 0x666   :  { %8722 = vmatpush.bf16.msra.mxu1 %v14524_v49  ;;  %v14405_v49 = vld [vmem:[#allocation12 + $0x128] sm:$0xf0] }
 0x667   :  { %v14408_v4 = vor.u32 %v16442_v31, %v14405_v49 }
 0x66a   :  { %v17602_v37 = vpop.f32.mrf.mxu2  ;;  %v17604_v57 = vpop.f32.mrf.mxu3  ;;  %8767 = vmatpush.bf16.msrb.mxu1 %v14756_v1 }
 0x66b   :  { %v7726_v19 = vpop.f32.mrf.mxu0  ;;  %v7739_v20 = vpop.f32.mrf.mxu1 }
 0x66c   :  { %v14592_v19 = vor.u32 %v16489_v16, %v14589_v15  ;;  %v14299_v20 = vld [vmem:[#allocation12 + $0x40] sm:$0xf]  ;;  %v16522_v16 = vld [vmem:[#allocation12 + $0x38c] sm:$0xf] }
 0x66d   :  { %v14300_v61 = vor.u32 %v16421_v30, %v14299_v20  ;;  %v14725_v15 = vld [vmem:[#allocation12 + $0x3a8] sm:$0xf0]  ;;  %v14435_v30 = vld [vmem:[#allocation12 + $0x148] sm:$0xf] }
 0x66e   :  { %8746 = vmatpush.bf16.msra.mxu3 %v14592_v19  ;;  %v14728_v20 = vor.u32 %v16522_v16, %v14725_v15 }
 0x66f   :  { %8708 = vmatpush.bf16.msra.mxu0 %v14300_v61  ;;  %v16454_v61 = vld [vmem:[#allocation12 + $0x164] sm:$0xf0] }
 0x670   :  { %v14436_v62 = vor.u32 %v16454_v61, %v14435_v30 }
 0x672   :  { %v7752_v17 = vpop.f32.mrf.mxu2  ;;  %v7765_v36 = vpop.f32.mrf.mxu3 }
 0x673   :  { %v14557_v17 = vld [vmem:[#allocation12 + $0x260] sm:$0xf0]  ;;  %v14304_v36 = vor.u32 %v16417_v42, %v14301_v32  ;;  %8709 = vmatpush.bf16.msra.mxu0 %v14268_v34  ;;  %v16518_v42 = vld [vmem:[#allocation12 + $0x364] sm:$0xf0]  ;;  %v14437_v32 = vld [vmem:[#allocation12 + $0x168] sm:$0xf0]  ;;  %v17620_v34 = vadd.f32 %v17600_v18, %v17598_v9 }
 0x674   :  { %v17606_v50 = vpop.f32.mrf.mxu0  ;;  %v17608_v8 = vpop.f32.mrf.mxu1  ;;  %v14560_v43 = vor.u32 %v16481_v22, %v14557_v17  ;;  %v14692_v22 = vor.u32 %v16518_v42, %v14691_v2  ;;  %v14440_v17 = vor.u32 %v16450_v63, %v14437_v32  ;;  %v14371_v9 = vld [vmem:[#allocation12 + $0xc8] sm:$0xf]  ;;  %v16490_v42 = vld [vmem:[#allocation12 + $0x28c] sm:$0xf] }
 0x675   :  { %8734 = vmatpush.bf16.msra.mxu2 %v14304_v36  ;;  %v16514_v36 = vld [vmem:[#allocation12 + $0x34c] sm:$0xf]  ;;  %v16438_v18 = vld [vmem:[#allocation12 + $0xe4] sm:$0xf0]  ;;  %v7790_v48 = vadd.f32 %v17608_v8, %v17606_v50 }
 0x676   :  { %8747 = vmatpush.bf16.msra.mxu3 %v14560_v43  ;;  %v14693_v43 = vld [vmem:[#allocation12 + $0x368] sm:$0xf0]  ;;  %v14372_v1 = vor.u32 %v16438_v18, %v14371_v9 }
 0x677   :  { %8754 = vmatpush.bf16.msrb.mxu0 %v14500_v0  ;;  %v14696_v53 = vor.u32 %v16514_v36, %v14693_v43  ;;  %v7880_v0 = vrot.slane %v17620_v34, 6  ;;  %v14597_v63 = vld [vmem:[#allocation12 + $0x2a8] sm:$0xf0]  ;;  %v7882_v32 = vrot.slane %v7790_v48, 4  ;;  %v14563_v34 = vld [vmem:[#allocation12 + $0x248] sm:$0xf] }
 0x678   :  { %v14533_v48 = vld [vmem:[#allocation12 + $0x228] sm:$0xf0] }
 0x679   :  { %8735 = vmatpush.bf16.msra.mxu2 %v14272_v25 }
 0x67a   :  { %8748 = vmatpush.bf16.msra.mxu3 %v14528_v47  ;;  %v16506_v47 = vld [vmem:[#allocation12 + $0x30c] sm:$0xf] }
 0x67b   :  { %8755 = vmatpush.bf16.msrb.mxu0 %v14468_v12 }
 0x67c   :  { %v7778_v56 = vpop.f32.mrf.mxu0  ;;  %v7791_v27 = vpop.f32.mrf.mxu1 }
 0x67d   :  { %v17610_v51 = vpop.f32.mrf.mxu2  ;;  %v17612_v58 = vpop.f32.mrf.mxu3  ;;  %v16526_v56 = vld [vmem:[#allocation12 + $0x3a4] sm:$0xf0]  ;;  %v16458_v27 = vld [vmem:[#allocation12 + $0x18c] sm:$0xf]  ;;  %8780 = vmatpush.bf16.msrb.mxu2 %v14504_v7  ;;  %v14628_v7 = vor.u32 %v16502_v5, %v14627_v55 }
 0x67e   :  { %v14724_v28 = vor.u32 %v16526_v56, %v14723_v14  ;;  %8793 = vmatpush.bf16.msrb.mxu3 %v14760_v11  ;;  %v14472_v19 = vor.u32 %v16458_v27, %v14469_v13  ;;  %v7816_v6 = vadd.f32 %v17612_v58, %v17610_v51  ;;  %v6886_v56 = vld [vmem:[#allocation3 + $0x5] ss:$8 sm:$0xf0]  ;;  %v14339_v27 = vld [vmem:[#allocation12 + $0x88] sm:$0xf] }
 0x67f   :  { %8756 = vmatpush.bf16.msrb.mxu0 %v14436_v62  ;;  %v14595_v13 = vld [vmem:[#allocation12 + $0x288] sm:$0xf] }
 0x680   :  { %8768 = vmatpush.bf16.msrb.mxu1 %v14724_v28  ;;  %v16430_v28 = vld [vmem:[#allocation12 + $0xa4] sm:$0xf0]  ;;  %v7883_v30 = vrot.slane %v7816_v6, 3 }
 0x681   :  { %8781 = vmatpush.bf16.msrb.mxu2 %v14472_v19  ;;  %v14340_v51 = vor.u32 %v16430_v28, %v14339_v27  ;;  %v16494_v58 = vld [vmem:[#allocation12 + $0x2a4] sm:$0xf0]  ;;  %v16426_v19 = vld [vmem:[#allocation12 + $0x8c] sm:$0xf] }
 0x682   :  { %8794 = vmatpush.bf16.msrb.mxu3 %v14728_v20  ;;  %v14341_v20 = vld [vmem:[#allocation12 + $0xa8] sm:$0xf0]  ;;  %v14596_v8 = vor.u32 %v16494_v58, %v14595_v13  ;;  %v7889_v49 = vsel %vm2687_vm3, %v7882_v32, %v7883_v30  ;;  %v14275_v55 = vld [vmem:[#allocation12 + $0x8] sm:$0xf]  ;;  %v14507_v32 = vld [vmem:[#allocation12 + $0x1d0] sm:$0xf] }
 0x683   :  { %8757 = vmatpush.bf16.msrb.mxu0 %v14404_v60  ;;  %v14344_v62 = vor.u32 %v16426_v19, %v14341_v20  ;;  %v16486_v60 = vld [vmem:[#allocation12 + $0x264] sm:$0xf0] }
 0x684   :  { %8769 = vmatpush.bf16.msrb.mxu1 %v14692_v22  ;;  %v6885_v22 = vld [vmem:[#allocation3 + $0x5] ss:$8 sm:$0xf]  ;;  %v16478_v6 = vld [vmem:[#allocation12 + $0x224] sm:$0xf0] }
 0x685   :  { %v7804_v54 = vpop.f32.mrf.mxu2  ;;  %v7817_v44 = vpop.f32.mrf.mxu3  ;;  %8782 = vmatpush.bf16.msrb.mxu2 %v14440_v17  ;;  %v14600_v17 = vor.u32 %v16490_v42, %v14597_v63 }
 0x686   :  { %v14659_v54 = vld [vmem:[#allocation12 + $0x308] sm:$0xf]  ;;  %v17616_v44 = vadd.f32 %v17596_v23, %v17594_v45  ;;  %v7764_v45 = vadd.f32 %v17604_v57, %v17602_v37  ;;  %8795 = vmatpush.bf16.msrb.mxu3 %v14696_v53  ;;  %v14664_v23 = vor.u32 %v16506_v47, %v14661_v24  ;;  %v14373_v37 = vld [vmem:[#allocation12 + $0xe8] sm:$0xf0] }
 0x687   :  { %v14660_v21 = vor.u32 %v16510_v39, %v14659_v54  ;;  %v16498_v57 = vld [vmem:[#allocation12 + $0x2cc] sm:$0xf]  ;;  %v14376_v11 = vor.u32 %v16434_v46, %v14373_v37  ;;  %8758 = vmatpush.bf16.msrb.mxu0 %v14372_v1  ;;  %v6887_v54 = vor.u32 %v6886_v56, %v6885_v22  ;;  %v16471_v22 = vld [vmem:[#allocation12 + $0x1ec] sm:$0xf0] }
 0x688   :  { %v7879_v35 = vrot.slane %v17616_v44, 7  ;;  %v7881_v10 = vrot.slane %v7764_v45, 5  ;;  %v14632_v12 = vor.u32 %v16498_v57, %v14629_v3  ;;  %v14308_v44 = vor.u32 %v16422_v59, %v14307_v26  ;;  %v16418_v39 = vld [vmem:[#allocation12 + $0x4c] sm:$0xf]  ;;  %v14509_v26 = vld [vmem:[#allocation12 + $0x1f0] sm:$0xf0] }
 0x689   :  { %8770 = vmatpush.bf16.msrb.mxu1 %v14660_v21  ;;  %8783 = vmatpush.bf16.msrb.mxu2 %v14408_v4  ;;  %v14309_v21 = vld [vmem:[#allocation12 + $0x68] sm:$0xf0]  ;;  %v16531_v59 = vld [vmem:[#allocation12 + $0x3d4] sm:$0xf] }
 0x68a   :  { %8796 = vmatpush.bf16.msrb.mxu3 %v14664_v23  ;;  %v7887_v36 = vsel %vm2683_vm1, %v7880_v0, %v7881_v10  ;;  %v7886_v31 = vsel %vm2681_vm0, %v17592_v41, %v7879_v35  ;;  %v16482_v4 = vld [vmem:[#allocation12 + $0x24c] sm:$0xf]  ;;  %v14312_v23 = vor.u32 %v16418_v39, %v14309_v21  ;;  %v16414_v41 = vld [vmem:[#allocation12 + $0x24] sm:$0xf0]  ;;  %v14508_v39 = vor.u32 %v16471_v22, %v14507_v32  ;;  %v14637_v32 = vld [vmem:[#allocation12 + $0x2f0] sm:$0xf0] }
 0x68b   :  { %8759 = vmatpush.bf16.msrb.mxu0 %v14340_v51  ;;  %v14565_v47 = vld [vmem:[#allocation12 + $0x268] sm:$0xf0]  ;;  %v7888_v24 = vsel %vm2685_vm2, %v7886_v31, %v7887_v36  ;;  %v14531_v35 = vld [vmem:[#allocation12 + $0x208] sm:$0xf]  ;;  %v14276_v46 = vor.u32 %v16414_v41, %v14275_v55  ;;  %v14763_v36 = vld [vmem:[#allocation12 + $0x3d0] sm:$0xf] }
 0x68c   :  { %v14568_v9 = vor.u32 %v16482_v4, %v14565_v47  ;;  %v14277_v37 = vld [vmem:[#allocation12 + $0x28] sm:$0xf0]  ;;  %v14532_v57 = vor.u32 %v16478_v6, %v14531_v35  ;;  %v14731_v4 = vld [vmem:[#allocation12 + $0x390] sm:$0xf]  ;;  %v16451_v6 = vld [vmem:[#allocation12 + $0x154] sm:$0xf] }
 0x68d   :  { %8771 = vmatpush.bf16.msrb.mxu1 %v14628_v7  ;;  %8784 = vmatpush.bf16.msrb.mxu2 %v14376_v11  ;;  %v16410_v7 = vld [vmem:[#allocation12 + $0xc] sm:$0xf]  ;;  %v16527_v47 = vld [vmem:[#allocation12 + $0x3ac] sm:$0xf0] }
 0x68e   :  { %8797 = vmatpush.bf16.msrb.mxu3 %v14632_v12  ;;  %v14280_v3 = vor.u32 %v16410_v7, %v14277_v37  ;;  %v16474_v10 = vld [vmem:[#allocation12 + $0x20c] sm:$0xf]  ;;  %v14732_v55 = vor.u32 %v16527_v47, %v14731_v4  ;;  %v14443_v41 = vld [vmem:[#allocation12 + $0x150] sm:$0xf]  ;;  %v14445_v7 = vld [vmem:[#allocation12 + $0x170] sm:$0xf0] }
 0x68f   :  { %8760 = vmatpush.bf16.msrb.mxu0 %v14308_v44  ;;  %v16455_v35 = vld [vmem:[#allocation12 + $0x16c] sm:$0xf0]  ;;  %v16515_v37 = vld [vmem:[#allocation12 + $0x354] sm:$0xf] }
 0x691   :  { %8772 = vmatpush.bf16.msrb.mxu1 %v14596_v8  ;;  %8785 = vmatpush.bf16.msrb.mxu2 %v14344_v62 }
 0x692   :  { %8798 = vmatpush.bf16.msrb.mxu3 %v14600_v17 }
 0x693   :  { %8761 = vmatpush.bf16.msrb.mxu0 %v14276_v46  ;;  %v16519_v46 = vld [vmem:[#allocation12 + $0x36c] sm:$0xf0] }
 0x694   :  { %v7828_v25 = vpop.f32.mrf.mxu0  ;;  %v7841_v40 = vpop.f32.mrf.mxu1 }
 0x695   :  { %v7842_v14 = vadd.f32 %v7841_v40, %v7828_v25  ;;  %v14564_v40 = vor.u32 %v16486_v60, %v14563_v34  ;;  %8786 = vmatpush.bf16.msrb.mxu2 %v14312_v23  ;;  %v16523_v23 = vld [vmem:[#allocation12 + $0x394] sm:$0xf] }
 0x696   :  { %8799 = vmatpush.bf16.msrb.mxu3 %v14568_v9  ;;  %v14733_v9 = vld [vmem:[#allocation12 + $0x3b0] sm:$0xf0] }
 0x697   :  { %v7884_v43 = vrot.slane %v7842_v14, 2  ;;  %8773 = vmatpush.bf16.msrb.mxu1 %v14564_v40  ;;  %v14536_v14 = vor.u32 %v16474_v10, %v14533_v48  ;;  %v14411_v48 = vld [vmem:[#allocation12 + $0x110] sm:$0xf] }
 0x699   :  { %8787 = vmatpush.bf16.msrb.mxu2 %v14280_v3  ;;  %v14444_v3 = vor.u32 %v16455_v35, %v14443_v41  ;;  %v14283_v41 = vld [vmem:[#allocation12 + $0x10] sm:$0xf] }
 0x69a   :  { %8800 = vmatpush.bf16.msrb.mxu3 %v14536_v14 }
 0x69b   :  { %v7854_v16 = vpop.f32.mrf.mxu2  ;;  %v7867_v15 = vpop.f32.mrf.mxu3  ;;  %8774 = vmatpush.bf16.msrb.mxu1 %v14532_v57  ;;  %v14701_v57 = vld [vmem:[#allocation12 + $0x370] sm:$0xf0] }
 0x69c   :  { %v7868_v61 = vadd.f32 %v7867_v15, %v7854_v16  ;;  %v7830_v2 = vpop.f32.mrf.mxu0  ;;  %v7843_v50 = vpop.f32.mrf.mxu1  ;;  %v14704_v14 = vor.u32 %v16515_v37, %v14701_v57  ;;  %v16411_v37 = vld [vmem:[#allocation12 + $0x14] sm:$0xf] }
 0x69d   :  { %v14285_v57 = vld [vmem:[#allocation12 + $0x30] sm:$0xf0] }
 0x69e   :  { %v7885_v53 = vrot.slane %v7868_v61, 1 }
 0x6a0   :  { %v7890_v25 = vsel %vm2689_vm4, %v7884_v43, %v7885_v53  ;;  %v16535_v43 = vld [vmem:[#allocation12 + $0x3ec] sm:$0xf0]  ;;  %v16467_v53 = vld [vmem:[#allocation12 + $0x1d4] sm:$0xf] }
 0x6a1   :  { %v7891_v45 = vsel %vm2691_vm5, %v7889_v49, %v7890_v25  ;;  %v14764_v31 = vor.u32 %v16535_v43, %v14763_v36  ;;  %v14475_v49 = vld [vmem:[#allocation12 + $0x190] sm:$0xf]  ;;  %v14512_v40 = vor.u32 %v16467_v53, %v14509_v26 }
 0x6a2   :  { %v7892_v18 = vsel %vm2693_vm6, %v7888_v24, %v7891_v45  ;;  %v16463_v25 = vld [vmem:[#allocation12 + $0x1ac] sm:$0xf0]  ;;  %v16459_v24 = vld [vmem:[#allocation12 + $0x194] sm:$0xf] }
 0x6a3   :  { %v7894_v0 = vadd.f32 %v7892_v18, %v6887_v54  ;;  %v7856_v1 = vpop.f32.mrf.mxu2  ;;  %v7869_v5 = vpop.f32.mrf.mxu3  ;;  %v14765_v54 = vld [vmem:[#allocation12 + $0x3f0] sm:$0xf0]  ;;  %v14476_v18 = vor.u32 %v16463_v25, %v14475_v49  ;;  %v14347_v36 = vld [vmem:[#allocation12 + $0x90] sm:$0xf] }
 0x6a4   :  { %v14768_v21 = vor.u32 %v16531_v59, %v14765_v54  ;;  %v14477_v45 = vld [vmem:[#allocation12 + $0x1b0] sm:$0xf0]  ;;  %v14736_v1 = vor.u32 %v16523_v23, %v14733_v9  ;;  %v14699_v5 = vld [vmem:[#allocation12 + $0x350] sm:$0xf] }
 0x6a5   :  { %v7895_v11 = vmul.f32 0.5, %v7894_v0  ;;  %v7900_v12 = vrot.slane %v7894_v0, 2  ;;  %v7909_v27 = vrot.slane %v7894_v0, 6  ;;  %v7906_v28 = vrot.slane %v7894_v0, 4  ;;  %v16431_v43 = vld [vmem:[#allocation12 + $0xac] sm:$0xf0] }
 0x6a6   :  { %v14480_v0 = vor.u32 %v16459_v24, %v14477_v45  ;;  %v14700_v10 = vor.u32 %v16519_v46, %v14699_v5  ;;  %v14603_v59 = vld [vmem:[#allocation12 + $0x290] sm:$0xf]  ;;  %v14348_v49 = vor.u32 %v16431_v43, %v14347_v36  ;;  %v16419_v23 = vld [vmem:[#allocation12 + $0x54] sm:$0xf] }
 0x6a7   :  { %16774 = vtanh.f32 %v7895_v11  ;;  %v7902_v56 = vmul.f32 0.5, %v7900_v12  ;;  %v7911_v13 = vmul.f32 0.5, %v7909_v27  ;;  %v16447_v11 = vld [vmem:[#allocation12 + $0x12c] sm:$0xf0]  ;;  %v14448_v12 = vor.u32 %v16451_v6, %v14445_v7  ;;  %v14317_v9 = vld [vmem:[#allocation12 + $0x70] sm:$0xf0] }
 0x6a8   :  { %v16511_v27 = vld [vmem:[#allocation12 + $0x32c] sm:$0xf0]  ;;  %v14320_v6 = vor.u32 %v16419_v23, %v14317_v9  ;;  %v14675_v23 = vld [vmem:[#allocation12 + $0x318] sm:$0xf] }
 0x6a9   :  { %16776 = vtanh.f32 %v7902_v56  ;;  %v14667_v56 = vld [vmem:[#allocation12 + $0x310] sm:$0xf]  ;;  %v16512_v9 = vld [vmem:[#allocation12 + $0x334] sm:$0xf0] }
 0x6aa   :  { %16778 = vtanh.f32 %v7906_v28  ;;  %v16443_v28 = vld [vmem:[#allocation12 + $0x114] sm:$0xf]  ;;  %v16495_v54 = vld [vmem:[#allocation12 + $0x2ac] sm:$0xf0] }
 0x6ab   :  { %16780 = vtanh.f32 %v7911_v13  ;;  %v14413_v13 = vld [vmem:[#allocation12 + $0x130] sm:$0xf0]  ;;  %v14604_v25 = vor.u32 %v16495_v54, %v14603_v59  ;;  %v14571_v24 = vld [vmem:[#allocation12 + $0x250] sm:$0xf] }
 0x6ac   :  { %v16487_v45 = vld [vmem:[#allocation12 + $0x26c] sm:$0xf0] }
 0x6ad   :  { %v16775_v16 = vpop.eup %16774  ;;  %v14539_v5 = vld [vmem:[#allocation12 + $0x210] sm:$0xf] }
 0x6ae   :  { %v7897_v15 = vmul.f32 0.5, %v16775_v16  ;;  %v16507_v16 = vld [vmem:[#allocation12 + $0x314] sm:$0xf]  ;;  %v16479_v46 = vld [vmem:[#allocation12 + $0x22c] sm:$0xf0] }
 0x6af   :  { %v16777_v51 = vpop.eup %16776 }
 0x6b0   :  { %v7898_v58 = vadd.f32 0.5, %v7897_v15  ;;  %v7904_v19 = vmul.f32 0.5, %v16777_v51  ;;  %v16779_v30 = vpop.eup %16778  ;;  %v14669_v15 = vld [vmem:[#allocation12 + $0x330] sm:$0xf0]  ;;  %v14412_v51 = vor.u32 %v16447_v11, %v14411_v48  ;;  %v14515_v48 = vld [vmem:[#allocation12 + $0x1d8] sm:$0xf] }
 0x6b1   :  { %v16781_v50 = vpop.eup %16780  ;;  %v16472_v11 = vld [vmem:[#allocation12 + $0x1f4] sm:$0xf0] }
 0x6b2   :  { %v7905_v20 = vadd.f32 0.5, %v7904_v19  ;;  %v7916_v2 = vmul.f32 %v16779_v30, %v7898_v58  ;;  %v7913_v62 = vmul.f32 0.5, %v16781_v50  ;;  %v14668_v58 = vor.u32 %v16511_v27, %v14667_v56  ;;  %v14379_v19 = vld [vmem:[#allocation12 + $0xd0] sm:$0xf]  ;;  %v16468_v56 = vld [vmem:[#allocation12 + $0x1dc] sm:$0xf] }
 0x6b3   :  { %v14416_v30 = vor.u32 %v16443_v28, %v14413_v13  ;;  %v16503_v50 = vld [vmem:[#allocation12 + $0x2ec] sm:$0xf0]  ;;  %v14540_v28 = vor.u32 %v16479_v46, %v14539_v5  ;;  %v14517_v13 = vld [vmem:[#allocation12 + $0x1f8] sm:$0xf0]  ;;  %v14387_v5 = vld [vmem:[#allocation12 + $0xd8] sm:$0xf] }
 0x6b4   :  { %v7915_v61 = vmul.f32 %v7905_v20, %v17567_v38  ;;  %v7914_v42 = vadd.f32 0.5, %v7913_v62  ;;  %v16439_v20 = vld [vmem:[#allocation12 + $0xec] sm:$0xf0]  ;;  %v16435_v62 = vld [vmem:[#allocation12 + $0xd4] sm:$0xf] }
 0x6b5   :  { %v14380_v22 = vor.u32 %v16439_v20, %v14379_v19  ;;  %v14516_v19 = vor.u32 %v16472_v11, %v14515_v48  ;;  %v16440_v46 = vld [vmem:[#allocation12 + $0xf4] sm:$0xf0]  ;;  %v16500_v48 = vld [vmem:[#allocation12 + $0x2dc] sm:$0xf] }
 0x6b6   :  { %v17639_v8 = vadd.f32 %v7916_v2, %v7915_v61  ;;  %v14672_v61 = vor.u32 %v16507_v16, %v14669_v15  ;;  %v14635_v2 = vld [vmem:[#allocation12 + $0x2d0] sm:$0xf]  ;;  %v16532_v16 = vld [vmem:[#allocation12 + $0x3dc] sm:$0xf] }
 0x6b7   :  { %v14773_v15 = vld [vmem:[#allocation12 + $0x3f8] sm:$0xf0] }
 0x6b8   :  { %16782 = vtanh.f32 %v17639_v8  ;;  %v14645_v11 = vld [vmem:[#allocation12 + $0x2f8] sm:$0xf0] }
 0x6be   :  { %v16783_v63 = vpop.eup %16782 }
 0x6bf   :  { %v7919_v17 = vmul.f32 %v16783_v63, %v7914_v42  ;;  %v14381_v42 = vld [vmem:[#allocation12 + $0xf0] sm:$0xf0] }
 0x6c0   :  { %v16499_v63 = vld [vmem:[#allocation12 + $0x2d4] sm:$0xf]  ;;  %v14384_v53 = vor.u32 %v16435_v62, %v14381_v42  ;;  %v14739_v62 = vld [vmem:[#allocation12 + $0x398] sm:$0xf] }
 0x6c1   :  { %7921 = vst.msk [vmem:[#allocation2 + $0x5] ss:$8 sm:$0x3] %vm17278_vm7, %v7919_v17  ;;  %v7928_v38 = vperm.slane %v7919_v17, 0  ;;  %v7929_v44 = vperm.slane %v7919_v17, 1  ;;  %v14636_v17 = vor.u32 %v16503_v50, %v14635_v2  ;;  %v14640_v26 = vor.u32 %v16499_v63, %v14637_v32 }
 0x6c2   :  { %v14520_v2 = vor.u32 %v16468_v56, %v14517_v13  ;;  %v14776_v50 = vor.u32 %v16532_v16, %v14773_v15  ;;  %v16528_v42 = vld [vmem:[#allocation12 + $0x3b4] sm:$0xf0]  ;;  %v16460_v63 = vld [vmem:[#allocation12 + $0x19c] sm:$0xf]  ;;  %v14648_v13 = vor.u32 %v16500_v48, %v14645_v11 }
 0x6c3   :  { %v17644_v34 = vpack.c.bf16 %v7928_v38, %v7928_v38  ;;  %v17646_v60 = vpack.c.bf16 %v7929_v44, %v7929_v44  ;;  %v16427_v38 = vld [vmem:[#allocation12 + $0x94] sm:$0xf]  ;;  %v14485_v32 = vld [vmem:[#allocation12 + $0x1b8] sm:$0xf0]  ;;  %v14740_v43 = vor.u32 %v16528_v42, %v14739_v62  ;;  %v14355_v56 = vld [vmem:[#allocation12 + $0x98] sm:$0xf] }
 0x6c4   :  { %v14349_v44 = vld [vmem:[#allocation12 + $0xb0] sm:$0xf0]  ;;  %v14488_v59 = vor.u32 %v16460_v63, %v14485_v32  ;;  %v14611_v16 = vld [vmem:[#allocation12 + $0x298] sm:$0xf] }
 0x6c5   :  { %8710 = vmatmul.bf16.vlgmr.msra.gmra.mxu0 %v17644_v34  ;;  %8723 = vmatmul.bf16.vlgmr.msra.gmra.mxu1 %v17646_v60  ;;  %v14352_v4 = vor.u32 %v16427_v38, %v14349_v44  ;;  %v14707_v38 = vld [vmem:[#allocation12 + $0x358] sm:$0xf] }
 0x6c6   :  { %8736 = vmatmul.bf16.vlgmr.msra.gmra.mxu2 %v17644_v34  ;;  %8749 = vmatmul.bf16.vlgmr.msra.gmra.mxu3 %v17646_v60  ;;  %v16520_v44 = vld [vmem:[#allocation12 + $0x374] sm:$0xf0] }
 0x6c7   :  { %8806 = vmatpush.bf16.msra.mxu0 %v14508_v39  ;;  %8819 = vmatpush.bf16.msra.mxu1 %v14764_v31  ;;  %v16491_v39 = vld [vmem:[#allocation12 + $0x294] sm:$0xf]  ;;  %v16496_v15 = vld [vmem:[#allocation12 + $0x2b4] sm:$0xf0] }
 0x6c8   :  { %8832 = vmatpush.bf16.msra.mxu2 %v14512_v40  ;;  %8845 = vmatpush.bf16.msra.mxu3 %v14768_v21  ;;  %v14605_v31 = vld [vmem:[#allocation12 + $0x2b0] sm:$0xf0]  ;;  %v14315_v40 = vld [vmem:[#allocation12 + $0x50] sm:$0xf]  ;;  %v14579_v63 = vld [vmem:[#allocation12 + $0x258] sm:$0xf] }
 0x6c9   :  { %v16423_v21 = vld [vmem:[#allocation12 + $0x6c] sm:$0xf0]  ;;  %v14608_v47 = vor.u32 %v16491_v39, %v14605_v31  ;;  %v16452_v39 = vld [vmem:[#allocation12 + $0x15c] sm:$0xf]  ;;  %v16488_v32 = vld [vmem:[#allocation12 + $0x274] sm:$0xf0] }
 0x6ca   :  { %v14316_v35 = vor.u32 %v16423_v21, %v14315_v40  ;;  %v14453_v31 = vld [vmem:[#allocation12 + $0x178] sm:$0xf0]  ;;  %v14708_v21 = vor.u32 %v16520_v44, %v14707_v38 }
 0x6cb   :  { %8807 = vmatpush.bf16.msra.mxu0 %v14476_v18  ;;  %8820 = vmatpush.bf16.msra.mxu1 %v14732_v55  ;;  %v16483_v18 = vld [vmem:[#allocation12 + $0x254] sm:$0xf] }
 0x6cc   :  { %8833 = vmatpush.bf16.msra.mxu2 %v14480_v0  ;;  %8846 = vmatpush.bf16.msra.mxu3 %v14736_v1  ;;  %v14573_v55 = vld [vmem:[#allocation12 + $0x270] sm:$0xf0]  ;;  %v14572_v0 = vor.u32 %v16487_v45, %v14571_v24  ;;  %v16415_v1 = vld [vmem:[#allocation12 + $0x2c] sm:$0xf0]  ;;  %v14456_v24 = vor.u32 %v16452_v39, %v14453_v31  ;;  %v14547_v39 = vld [vmem:[#allocation12 + $0x218] sm:$0xf] }
 0x6cd   :  { %v14576_v7 = vor.u32 %v16483_v18, %v14573_v55  ;;  %v14284_v27 = vor.u32 %v16415_v1, %v14283_v41  ;;  %v16444_v18 = vld [vmem:[#allocation12 + $0x11c] sm:$0xf]  ;;  %v14676_v1 = vor.u32 %v16512_v9, %v14675_v23  ;;  %v16480_v31 = vld [vmem:[#allocation12 + $0x234] sm:$0xf0] }
 0x6ce   :  { %v14421_v55 = vld [vmem:[#allocation12 + $0x138] sm:$0xf0] }
 0x6cf   :  { %8808 = vmatpush.bf16.msra.mxu0 %v14444_v3  ;;  %8821 = vmatpush.bf16.msra.mxu1 %v14700_v10  ;;  %v16475_v3 = vld [vmem:[#allocation12 + $0x214] sm:$0xf]  ;;  %v16508_v41 = vld [vmem:[#allocation12 + $0x31c] sm:$0xf] }
 0x6d0   :  { %8834 = vmatpush.bf16.msra.mxu2 %v14448_v12  ;;  %8847 = vmatpush.bf16.msra.mxu3 %v14704_v14  ;;  %v14541_v10 = vld [vmem:[#allocation12 + $0x230] sm:$0xf0]  ;;  %v14771_v12 = vld [vmem:[#allocation12 + $0x3d8] sm:$0xf] }
 0x6d1   :  { %v16536_v14 = vld [vmem:[#allocation12 + $0x3f4] sm:$0xf0] }
 0x6d2   :  { %v14772_v20 = vor.u32 %v16536_v14, %v14771_v12  ;;  %v14388_v12 = vor.u32 %v16440_v46, %v14387_v5 }
 0x6d3   :  { %8809 = vmatpush.bf16.msra.mxu0 %v14412_v51  ;;  %8822 = vmatpush.bf16.msra.mxu1 %v14668_v58  ;;  %v14288_v51 = vor.u32 %v16411_v37, %v14285_v57  ;;  %v14544_v58 = vor.u32 %v16475_v3, %v14541_v10  ;;  %v14643_v37 = vld [vmem:[#allocation12 + $0x2d8] sm:$0xf]  ;;  %v16436_v3 = vld [vmem:[#allocation12 + $0xdc] sm:$0xf] }
 0x6d4   :  { %8835 = vmatpush.bf16.msra.mxu2 %v14416_v30  ;;  %8848 = vmatpush.bf16.msra.mxu3 %v14672_v61  ;;  %v14483_v30 = vld [vmem:[#allocation12 + $0x198] sm:$0xf]  ;;  %v14389_v10 = vld [vmem:[#allocation12 + $0xf8] sm:$0xf0] }
 0x6d5   :  { %8762 = vmatmul.bf16.vlgmr.msrb.gmra.mxu0 %v17644_v34  ;;  %8775 = vmatmul.bf16.vlgmr.msrb.gmra.mxu1 %v17646_v60  ;;  %v16464_v61 = vld [vmem:[#allocation12 + $0x1b4] sm:$0xf0] }
 0x6d6   :  { %8788 = vmatmul.bf16.vlgmr.msrb.gmra.mxu2 %v17644_v34  ;;  %8801 = vmatmul.bf16.vlgmr.msrb.gmra.mxu3 %v17646_v60  ;;  %v14484_v36 = vor.u32 %v16464_v61, %v14483_v30  ;;  %v16504_v57 = vld [vmem:[#allocation12 + $0x2f4] sm:$0xf0]  ;;  %v14612_v61 = vor.u32 %v16496_v15, %v14611_v16  ;;  %v16653_v15 = vld [vmem:[#allocation12 + $0x39c] sm:$0xf0] }
 0x6d7   :  { %8810 = vmatpush.bf16.msra.mxu0 %v14380_v22  ;;  %8823 = vmatpush.bf16.msra.mxu1 %v14636_v17  ;;  %v16524_v22 = vld [vmem:[#allocation12 + $0x39c] sm:$0xf]  ;;  %v14644_v14 = vor.u32 %v16504_v57, %v14643_v37  ;;  %v15259_v37 = vld [vmem:[#allocation12 + $0x3c0] sm:$0xf] }
 0x6d8   :  { %8836 = vmatpush.bf16.msra.mxu2 %v14384_v53  ;;  %8849 = vmatpush.bf16.msra.mxu3 %v14640_v26  ;;  %v14741_v17 = vld [vmem:[#allocation12 + $0x3b8] sm:$0xf0]  ;;  %v14451_v53 = vld [vmem:[#allocation12 + $0x158] sm:$0xf]  ;;  %v16661_v57 = vld [vmem:[#allocation12 + $0x3dc] sm:$0xf0] }
 0x6d9   :  { %v16456_v26 = vld [vmem:[#allocation12 + $0x174] sm:$0xf0]  ;;  %v14744_v54 = vor.u32 %v16524_v22, %v14741_v17  ;;  %v16420_v22 = vld [vmem:[#allocation12 + $0x5c] sm:$0xf]  ;;  %v15260_v48 = vor.u32 %v16661_v57, %v15259_v37  ;;  %v16565_v37 = vld [vmem:[#allocation12 + $0xdc] sm:$0xf0] }
 0x6da   :  { %v14452_v40 = vor.u32 %v16456_v26, %v14451_v53  ;;  %v14325_v17 = vld [vmem:[#allocation12 + $0x78] sm:$0xf0]  ;;  %v14580_v26 = vor.u32 %v16488_v32, %v14579_v63  ;;  %v16581_v63 = vld [vmem:[#allocation12 + $0x15c] sm:$0xf0] }
 0x6db   :  { %8811 = vmatpush.bf16.msra.mxu0 %v14348_v49  ;;  %8824 = vmatpush.bf16.msra.mxu1 %v14604_v25  ;;  %v16516_v49 = vld [vmem:[#allocation12 + $0x35c] sm:$0xf]  ;;  %v14328_v38 = vor.u32 %v16420_v22, %v14325_v17  ;;  %v15195_v32 = vld [vmem:[#allocation12 + $0x340] sm:$0xf] }
 0x6dc   :  { %8837 = vmatpush.bf16.msra.mxu2 %v14352_v4  ;;  %8850 = vmatpush.bf16.msra.mxu3 %v14608_v47  ;;  %v14709_v25 = vld [vmem:[#allocation12 + $0x378] sm:$0xf0]  ;;  %v14419_v4 = vld [vmem:[#allocation12 + $0x118] sm:$0xf]  ;;  %v16645_v22 = vld [vmem:[#allocation12 + $0x35c] sm:$0xf0] }
 0x6dd   :  { %v16448_v47 = vld [vmem:[#allocation12 + $0x134] sm:$0xf0]  ;;  %v14712_v45 = vor.u32 %v16516_v49, %v14709_v25  ;;  %v16412_v49 = vld [vmem:[#allocation12 + $0x1c] sm:$0xf] }
 0x6de   :  { %v14293_v25 = vld [vmem:[#allocation12 + $0x38] sm:$0xf0] }
 0x6df   :  { %8812 = vmatpush.bf16.msra.mxu0 %v14316_v35  ;;  %8825 = vmatpush.bf16.msra.mxu1 %v14572_v0  ;;  %v14677_v35 = vld [vmem:[#allocation12 + $0x338] sm:$0xf0]  ;;  %v14420_v0 = vor.u32 %v16448_v47, %v14419_v4  ;;  %v14548_v47 = vor.u32 %v16480_v31, %v14547_v39 }
 0x6e0   :  { %8838 = vmatpush.bf16.msra.mxu2 %v14320_v6  ;;  %8851 = vmatpush.bf16.msra.mxu3 %v14576_v7  ;;  %v14424_v6 = vor.u32 %v16444_v18, %v14421_v55  ;;  %v14680_v7 = vor.u32 %v16508_v41, %v14677_v35 }
 0x6e3   :  { %8813 = vmatpush.bf16.msra.mxu0 %v14284_v27  ;;  %8826 = vmatpush.bf16.msra.mxu1 %v14540_v28  ;;  %v16432_v27 = vld [vmem:[#allocation12 + $0xb4] sm:$0xf0]  ;;  %v14392_v28 = vor.u32 %v16436_v3, %v14389_v10  ;;  %v16593_v3 = vld [vmem:[#allocation12 + $0x1c4] sm:$0xf] }
 0x6e4   :  { %8839 = vmatpush.bf16.msra.mxu2 %v14288_v51  ;;  %8852 = vmatpush.bf16.msra.mxu3 %v14544_v58  ;;  %v16428_v51 = vld [vmem:[#allocation12 + $0x9c] sm:$0xf]  ;;  %v14356_v30 = vor.u32 %v16432_v27, %v14355_v56  ;;  %v15005_v10 = vld [vmem:[#allocation12 + $0x1e0] sm:$0xf0]  ;;  %v14971_v27 = vld [vmem:[#allocation12 + $0x180] sm:$0xf] }
 0x6e5   :  { %v14357_v58 = vld [vmem:[#allocation12 + $0xb8] sm:$0xf0]  ;;  %v15008_v11 = vor.u32 %v16593_v3, %v15005_v10  ;;  %v16629_v3 = vld [vmem:[#allocation12 + $0x2dc] sm:$0xf0]  ;;  %v16561_v10 = vld [vmem:[#allocation12 + $0xc4] sm:$0xf] }
 0x6e6   :  { %8814 = vmatmul.bf16.vlgmr.msra.gmra.mxu0 %v17644_v34  ;;  %8827 = vmatmul.bf16.vlgmr.msra.gmra.mxu1 %v17646_v60  ;;  %v14360_v62 = vor.u32 %v16428_v51, %v14357_v58  ;;  %v16585_v51 = vld [vmem:[#allocation12 + $0x184] sm:$0xf] }
 0x6e7   :  { %8858 = vmatpush.bf16.msrb.mxu0 %v14516_v19  ;;  %8871 = vmatpush.bf16.msrb.mxu1 %v14772_v20  ;;  %v16492_v19 = vld [vmem:[#allocation12 + $0x29c] sm:$0xf]  ;;  %v14973_v58 = vld [vmem:[#allocation12 + $0x1a0] sm:$0xf0] }
 0x6e8   :  { %8884 = vmatpush.bf16.msrb.mxu2 %v14520_v2  ;;  %8897 = vmatpush.bf16.msrb.mxu3 %v14776_v50  ;;  %v14613_v20 = vld [vmem:[#allocation12 + $0x2b8] sm:$0xf0]  ;;  %v14323_v2 = vld [vmem:[#allocation12 + $0x58] sm:$0xf] }
 0x6e9   :  { %8840 = vmatmul.bf16.vlgmr.msra.gmra.mxu2 %v17644_v34  ;;  %8853 = vmatmul.bf16.vlgmr.msra.gmra.mxu3 %v17646_v60  ;;  %v16424_v50 = vld [vmem:[#allocation12 + $0x74] sm:$0xf0]  ;;  %v14616_v42 = vor.u32 %v16492_v19, %v14613_v20  ;;  %v14976_v20 = vor.u32 %v16585_v51, %v14973_v58 }
 0x6ea   :  { %v14324_v53 = vor.u32 %v16424_v50, %v14323_v2  ;;  %v14939_v2 = vld [vmem:[#allocation12 + $0x140] sm:$0xf] }
 0x6eb   :  { %8859 = vmatpush.bf16.msrb.mxu0 %v14484_v36  ;;  %8872 = vmatpush.bf16.msrb.mxu1 %v14740_v43  ;;  %v16484_v36 = vld [vmem:[#allocation12 + $0x25c] sm:$0xf] }
 0x6ec   :  { %8885 = vmatpush.bf16.msrb.mxu2 %v14488_v59  ;;  %8898 = vmatpush.bf16.msrb.mxu3 %v14744_v54  ;;  %v14581_v43 = vld [vmem:[#allocation12 + $0x278] sm:$0xf0]  ;;  %v14291_v59 = vld [vmem:[#allocation12 + $0x18] sm:$0xf] }
 0x6ed   :  { %v16416_v54 = vld [vmem:[#allocation12 + $0x34] sm:$0xf0]  ;;  %v14584_v44 = vor.u32 %v16484_v36, %v14581_v43  ;;  %v14940_v43 = vor.u32 %v16581_v63, %v14939_v2 }
 0x6ee   :  { %v14292_v4 = vor.u32 %v16416_v54, %v14291_v59  ;;  %v16641_v59 = vld [vmem:[#allocation12 + $0x344] sm:$0xf]  ;;  %v15196_v54 = vor.u32 %v16645_v22, %v15195_v32 }
 0x6ef   :  { %8860 = vmatpush.bf16.msrb.mxu0 %v14452_v40  ;;  %8873 = vmatpush.bf16.msrb.mxu1 %v14708_v21  ;;  %v16476_v40 = vld [vmem:[#allocation12 + $0x21c] sm:$0xf]  ;;  %v16617_v32 = vld [vmem:[#allocation12 + $0x284] sm:$0xf] }
 0x6f0   :  { %8886 = vmatpush.bf16.msrb.mxu2 %v14456_v24  ;;  %8899 = vmatpush.bf16.msrb.mxu3 %v14712_v45  ;;  %v14549_v21 = vld [vmem:[#allocation12 + $0x238] sm:$0xf0]  ;;  %v14296_v24 = vor.u32 %v16412_v49, %v14293_v25  ;;  %v14907_v25 = vld [vmem:[#allocation12 + $0x100] sm:$0xf]  ;;  %v15101_v22 = vld [vmem:[#allocation12 + $0x2a0] sm:$0xf0] }
 0x6f1   :  { %v14552_v45 = vor.u32 %v16476_v40, %v14549_v21  ;;  %v16573_v40 = vld [vmem:[#allocation12 + $0x11c] sm:$0xf0] }
 0x6f2   :  { %v15163_v21 = vld [vmem:[#allocation12 + $0x300] sm:$0xf] }
 0x6f3   :  { %8861 = vmatpush.bf16.msrb.mxu0 %v14420_v0  ;;  %8874 = vmatpush.bf16.msrb.mxu1 %v14676_v1 }
 0x6f4   :  { %8887 = vmatpush.bf16.msrb.mxu2 %v14424_v6  ;;  %8900 = vmatpush.bf16.msrb.mxu3 %v14680_v7  ;;  %v15003_v7 = vld [vmem:[#allocation12 + $0x1c0] sm:$0xf] }
 0x6f7   :  { %8862 = vmatpush.bf16.msrb.mxu0 %v14388_v12  ;;  %8875 = vmatpush.bf16.msrb.mxu1 %v14644_v14  ;;  %v16657_v12 = vld [vmem:[#allocation12 + $0x3c4] sm:$0xf] }
 0x6f8   :  { %8888 = vmatpush.bf16.msrb.mxu2 %v14392_v28  ;;  %8901 = vmatpush.bf16.msrb.mxu3 %v14648_v13  ;;  %v15261_v14 = vld [vmem:[#allocation12 + $0x3e0] sm:$0xf0]  ;;  %v16589_v28 = vld [vmem:[#allocation12 + $0x19c] sm:$0xf0] }
 0x6f9   :  { %v15264_v56 = vor.u32 %v16657_v12, %v15261_v14  ;;  %v15227_v13 = vld [vmem:[#allocation12 + $0x380] sm:$0xf]  ;;  %v14972_v16 = vor.u32 %v16589_v28, %v14971_v27  ;;  %v16625_v12 = vld [vmem:[#allocation12 + $0x2c4] sm:$0xf] }
 0x6fa   :  { %v15228_v19 = vor.u32 %v16653_v15, %v15227_v13  ;;  %v15133_v14 = vld [vmem:[#allocation12 + $0x2e0] sm:$0xf0]  ;;  %v14843_v28 = vld [vmem:[#allocation12 + $0x80] sm:$0xf] }
 0x6fb   :  { %8863 = vmatpush.bf16.msrb.mxu0 %v14356_v30  ;;  %8876 = vmatpush.bf16.msrb.mxu1 %v14612_v61  ;;  %v16649_v30 = vld [vmem:[#allocation12 + $0x384] sm:$0xf]  ;;  %v15136_v27 = vor.u32 %v16625_v12, %v15133_v14  ;;  %v16557_v13 = vld [vmem:[#allocation12 + $0x9c] sm:$0xf0]  ;;  %v16594_v14 = vld [vmem:[#allocation12 + $0x1cc] sm:$0xf] }
 0x6fc   :  { %8889 = vmatpush.bf16.msrb.mxu2 %v14360_v62  ;;  %8902 = vmatpush.bf16.msrb.mxu3 %v14616_v42  ;;  %v15229_v61 = vld [vmem:[#allocation12 + $0x3a0] sm:$0xf0]  ;;  %v14844_v58 = vor.u32 %v16557_v13, %v14843_v28  ;;  %v15269_v13 = vld [vmem:[#allocation12 + $0x3e8] sm:$0xf0] }
 0x6fd   :  { %v15232_v42 = vor.u32 %v16649_v30, %v15229_v61  ;;  %v14845_v30 = vld [vmem:[#allocation12 + $0xa0] sm:$0xf0] }
 0x6ff   :  { %8864 = vmatpush.bf16.msrb.mxu0 %v14324_v53  ;;  %8877 = vmatpush.bf16.msrb.mxu1 %v14580_v26  ;;  %v16577_v53 = vld [vmem:[#allocation12 + $0x144] sm:$0xf] }
 0x700   :  { %8890 = vmatpush.bf16.msrb.mxu2 %v14328_v38  ;;  %8903 = vmatpush.bf16.msrb.mxu3 %v14584_v44  ;;  %v14941_v26 = vld [vmem:[#allocation12 + $0x160] sm:$0xf0] }
 0x701   :  { %v14944_v38 = vor.u32 %v16577_v53, %v14941_v26  ;;  %v15197_v44 = vld [vmem:[#allocation12 + $0x360] sm:$0xf0]  ;;  %v15067_v26 = vld [vmem:[#allocation12 + $0x240] sm:$0xf] }
 0x702   :  { %v15200_v39 = vor.u32 %v16641_v59, %v15197_v44  ;;  %v16613_v59 = vld [vmem:[#allocation12 + $0x25c] sm:$0xf0]  ;;  %v14813_v44 = vld [vmem:[#allocation12 + $0x60] sm:$0xf0] }
 0x703   :  { %8865 = vmatpush.bf16.msrb.mxu0 %v14292_v4  ;;  %8878 = vmatpush.bf16.msrb.mxu1 %v14548_v47  ;;  %v14908_v4 = vor.u32 %v16573_v40, %v14907_v25  ;;  %v16637_v47 = vld [vmem:[#allocation12 + $0x31c] sm:$0xf0] }
 0x704   :  { %8891 = vmatpush.bf16.msrb.mxu2 %v14296_v24  ;;  %8904 = vmatpush.bf16.msrb.mxu3 %v14552_v45  ;;  %v16569_v24 = vld [vmem:[#allocation12 + $0x104] sm:$0xf]  ;;  %v14779_v40 = vld [vmem:[#allocation12] sm:$0xf] }
 0x705   :  { %v14909_v45 = vld [vmem:[#allocation12 + $0x120] sm:$0xf0] }
 0x706   :  { %8866 = vmatmul.bf16.vlgmr.msrb.gmra.mxu0 %v17644_v34  ;;  %8879 = vmatmul.bf16.vlgmr.msrb.gmra.mxu1 %v17646_v60 }
 0x707   :  { %8892 = vmatmul.bf16.vlgmr.msrb.gmra.mxu2 %v17644_v34  ;;  %8905 = vmatmul.bf16.vlgmr.msrb.gmra.mxu3 %v17646_v60  ;;  %v16597_v34 = vld [vmem:[#allocation12 + $0x1dc] sm:$0xf0] }
 0x708   :  { %v15004_v60 = vor.u32 %v16597_v34, %v15003_v7  ;;  %9754 = vmatpush.bf16.msra.mxu1 %v15260_v48  ;;  %9767 = vmatpush.bf16.msra.mxu2 %v15008_v11  ;;  %v14875_v34 = vld [vmem:[#allocation12 + $0xc0] sm:$0xf]  ;;  %v14877_v11 = vld [vmem:[#allocation12 + $0xe0] sm:$0xf0] }
 0x709   :  { %9780 = vmatpush.bf16.msra.mxu3 %v15264_v56  ;;  %v14876_v57 = vor.u32 %v16565_v37, %v14875_v34  ;;  %v14880_v56 = vor.u32 %v16561_v10, %v14877_v11  ;;  %v16601_v34 = vld [vmem:[#allocation12 + $0x204] sm:$0xf]  ;;  %v15267_v10 = vld [vmem:[#allocation12 + $0x3c8] sm:$0xf] }
 0x70a   :  { %9741 = vmatpush.bf16.msra.mxu0 %v15004_v60  ;;  %v15131_v60 = vld [vmem:[#allocation12 + $0x2c0] sm:$0xf]  ;;  %v15037_v37 = vld [vmem:[#allocation12 + $0x220] sm:$0xf0] }
 0x70b   :  { %v15132_v48 = vor.u32 %v16629_v3, %v15131_v60  ;;  %v15011_v60 = vld [vmem:[#allocation12 + $0x1c8] sm:$0xf] }
 0x70c   :  { %9755 = vmatpush.bf16.msra.mxu1 %v15228_v19  ;;  %9768 = vmatpush.bf16.msra.mxu2 %v14976_v20  ;;  %v16621_v19 = vld [vmem:[#allocation12 + $0x29c] sm:$0xf0]  ;;  %v16553_v20 = vld [vmem:[#allocation12 + $0x84] sm:$0xf]  ;;  %v16598_v3 = vld [vmem:[#allocation12 + $0x1e4] sm:$0xf0] }
 0x70d   :  { %9781 = vmatpush.bf16.msra.mxu3 %v15232_v42  ;;  %v14848_v63 = vor.u32 %v16553_v20, %v14845_v30  ;;  %v15012_v11 = vor.u32 %v16598_v3, %v15011_v60  ;;  %v15235_v30 = vld [vmem:[#allocation12 + $0x388] sm:$0xf]  ;;  %v15173_v3 = vld [vmem:[#allocation12 + $0x328] sm:$0xf0] }
 0x70e   :  { %9742 = vmatpush.bf16.msra.mxu0 %v14972_v16  ;;  %v15099_v16 = vld [vmem:[#allocation12 + $0x280] sm:$0xf] }
 0x70f   :  { %v15100_v42 = vor.u32 %v16621_v19, %v15099_v16  ;;  %v14979_v16 = vld [vmem:[#allocation12 + $0x188] sm:$0xf] }
 0x710   :  { %9756 = vmatpush.bf16.msra.mxu1 %v15196_v54  ;;  %9769 = vmatpush.bf16.msra.mxu2 %v14944_v38  ;;  %v16545_v54 = vld [vmem:[#allocation12 + $0x44] sm:$0xf]  ;;  %v15068_v38 = vor.u32 %v16613_v59, %v15067_v26  ;;  %v15203_v26 = vld [vmem:[#allocation12 + $0x348] sm:$0xf] }
 0x711   :  { %9782 = vmatpush.bf16.msra.mxu3 %v15200_v39  ;;  %v16609_v39 = vld [vmem:[#allocation12 + $0x244] sm:$0xf] }
 0x712   :  { %9743 = vmatpush.bf16.msra.mxu0 %v14940_v43  ;;  %v16549_v43 = vld [vmem:[#allocation12 + $0x5c] sm:$0xf0] }
 0x716   :  { %9744 = vmatpush.bf16.msra.mxu0 %v14908_v4  ;;  %v15035_v4 = vld [vmem:[#allocation12 + $0x200] sm:$0xf] }
 0x71a   :  { %9745 = vmatpush.bf16.msra.mxu0 %v14876_v57  ;;  %v15040_v57 = vor.u32 %v16601_v34, %v15037_v37 }
 0x71e   :  { %9746 = vmatpush.bf16.msra.mxu0 %v14844_v58  ;;  %v16590_v58 = vld [vmem:[#allocation12 + $0x1a4] sm:$0xf0] }
 0x71f   :  { %v14980_v20 = vor.u32 %v16590_v58, %v14979_v16 }
 0x742   :  { %v8711_v23 = vpop.f32.mrf.mxu0  ;;  %v8724_v9 = vpop.f32.mrf.mxu1 }
 0x743   :  { %v17664_v18 = vadd.f32 %v8724_v9, %v8711_v23  ;;  %v15164_v23 = vor.u32 %v16637_v47, %v15163_v21  ;;  %v14912_v9 = vor.u32 %v16569_v24, %v14909_v45  ;;  %v16541_v21 = vld [vmem:[#allocation12 + $0x1c] sm:$0xf0] }
 0x744   :  { %v14780_v45 = vor.u32 %v16541_v21, %v14779_v40  ;;  %v14915_v21 = vld [vmem:[#allocation12 + $0x108] sm:$0xf] }
 0x745   :  { %9757 = vmatpush.bf16.msra.mxu1 %v15164_v23  ;;  %9770 = vmatpush.bf16.msra.mxu2 %v14912_v9  ;;  %v16605_v23 = vld [vmem:[#allocation12 + $0x21c] sm:$0xf0]  ;;  %v16537_v9 = vld [vmem:[#allocation12 + $0x4] sm:$0xf] }
 0x749   :  { %v17666_v55 = vpop.f32.mrf.mxu2  ;;  %v17668_v41 = vpop.f32.mrf.mxu3  ;;  %9758 = vmatpush.bf16.msra.mxu1 %v15132_v48  ;;  %9771 = vmatpush.bf16.msra.mxu2 %v14880_v56  ;;  %v16662_v48 = vld [vmem:[#allocation12 + $0x3e4] sm:$0xf0]  ;;  %v15013_v56 = vld [vmem:[#allocation12 + $0x1e8] sm:$0xf0] }
 0x74a   :  { %v8713_v35 = vpop.f32.mrf.mxu0  ;;  %v8726_v0 = vpop.f32.mrf.mxu1  ;;  %v15268_v12 = vor.u32 %v16662_v48, %v15267_v10  ;;  %v15016_v28 = vor.u32 %v16594_v14, %v15013_v56  ;;  %v15139_v10 = vld [vmem:[#allocation12 + $0x2c8] sm:$0xf]  ;;  %v16562_v56 = vld [vmem:[#allocation12 + $0xcc] sm:$0xf] }
 0x74b   :  { %v16633_v35 = vld [vmem:[#allocation12 + $0x304] sm:$0xf]  ;;  %v16630_v14 = vld [vmem:[#allocation12 + $0x2e4] sm:$0xf0] }
 0x74c   :  { %v15165_v0 = vld [vmem:[#allocation12 + $0x320] sm:$0xf0] }
 0x74d   :  { %v15168_v7 = vor.u32 %v16633_v35, %v15165_v0  ;;  %9759 = vmatpush.bf16.msra.mxu1 %v15100_v42  ;;  %9772 = vmatpush.bf16.msra.mxu2 %v14848_v63  ;;  %v14781_v35 = vld [vmem:[#allocation12 + $0x20] sm:$0xf0]  ;;  %v15036_v0 = vor.u32 %v16605_v23, %v15035_v4  ;;  %v14981_v63 = vld [vmem:[#allocation12 + $0x1a8] sm:$0xf0]  ;;  %v16574_v4 = vld [vmem:[#allocation12 + $0x124] sm:$0xf0] }
 0x74e   :  { %v14916_v23 = vor.u32 %v16574_v4, %v14915_v21  ;;  %v14819_v21 = vld [vmem:[#allocation12 + $0x48] sm:$0xf] }
 0x74f   :  { %9783 = vmatpush.bf16.msra.mxu3 %v15168_v7  ;;  %v14784_v7 = vor.u32 %v16537_v9, %v14781_v35  ;;  %v16638_v9 = vld [vmem:[#allocation12 + $0x324] sm:$0xf0]  ;;  %v16570_v35 = vld [vmem:[#allocation12 + $0x10c] sm:$0xf] }
 0x750   :  { %v16550_v4 = vld [vmem:[#allocation12 + $0x64] sm:$0xf0] }
 0x751   :  { %v8739_v1 = vpop.f32.mrf.mxu2  ;;  %v8752_v5 = vpop.f32.mrf.mxu3  ;;  %9760 = vmatpush.bf16.msra.mxu1 %v15068_v38  ;;  %v16578_v38 = vld [vmem:[#allocation12 + $0x14c] sm:$0xf] }
 0x752   :  { %v17670_v46 = vpop.f32.mrf.mxu0  ;;  %v17672_v6 = vpop.f32.mrf.mxu1 }
 0x753   :  { %9784 = vmatpush.bf16.msra.mxu3 %v15136_v27  ;;  %v16658_v27 = vld [vmem:[#allocation12 + $0x3cc] sm:$0xf] }
 0x754   :  { %v15272_v19 = vor.u32 %v16658_v27, %v15269_v13  ;;  %v15141_v13 = vld [vmem:[#allocation12 + $0x2e8] sm:$0xf0] }
 0x755   :  { %9761 = vmatpush.bf16.msra.mxu1 %v15036_v0  ;;  %v14917_v0 = vld [vmem:[#allocation12 + $0x128] sm:$0xf0] }
 0x756   :  { %v14920_v60 = vor.u32 %v16570_v35, %v14917_v0 }
 0x759   :  { %v17674_v50 = vpop.f32.mrf.mxu2  ;;  %v17676_v62 = vpop.f32.mrf.mxu3  ;;  %9806 = vmatpush.bf16.msrb.mxu1 %v15268_v12 }
 0x75a   :  { %v8765_v17 = vpop.f32.mrf.mxu0  ;;  %v8778_v36 = vpop.f32.mrf.mxu1 }
 0x75b   :  { %v15104_v17 = vor.u32 %v16617_v32, %v15101_v22  ;;  %v14811_v36 = vld [vmem:[#allocation12 + $0x40] sm:$0xf]  ;;  %v16650_v32 = vld [vmem:[#allocation12 + $0x38c] sm:$0xf] }
 0x75c   :  { %v14812_v53 = vor.u32 %v16549_v43, %v14811_v36  ;;  %v15237_v22 = vld [vmem:[#allocation12 + $0x3a8] sm:$0xf0]  ;;  %v14947_v43 = vld [vmem:[#allocation12 + $0x148] sm:$0xf] }
 0x75d   :  { %9785 = vmatpush.bf16.msra.mxu3 %v15104_v17  ;;  %v15240_v36 = vor.u32 %v16650_v32, %v15237_v22 }
 0x75e   :  { %9747 = vmatpush.bf16.msra.mxu0 %v14812_v53  ;;  %v16582_v53 = vld [vmem:[#allocation12 + $0x164] sm:$0xf0] }
 0x75f   :  { %v14948_v59 = vor.u32 %v16582_v53, %v14947_v43 }
 0x761   :  { %v8791_v31 = vpop.f32.mrf.mxu2  ;;  %v8804_v49 = vpop.f32.mrf.mxu3 }
 0x762   :  { %v15069_v31 = vld [vmem:[#allocation12 + $0x260] sm:$0xf0]  ;;  %v14816_v49 = vor.u32 %v16545_v54, %v14813_v44  ;;  %9748 = vmatpush.bf16.msra.mxu0 %v14780_v45  ;;  %v16646_v54 = vld [vmem:[#allocation12 + $0x364] sm:$0xf0]  ;;  %v14949_v44 = vld [vmem:[#allocation12 + $0x168] sm:$0xf0]  ;;  %v17692_v45 = vadd.f32 %v17672_v6, %v17670_v46 }
 0x763   :  { %v17678_v1 = vpop.f32.mrf.mxu0  ;;  %v17680_v5 = vpop.f32.mrf.mxu1  ;;  %v15072_v25 = vor.u32 %v16609_v39, %v15069_v31  ;;  %v15204_v39 = vor.u32 %v16646_v54, %v15203_v26  ;;  %v14952_v31 = vor.u32 %v16578_v38, %v14949_v44  ;;  %v14883_v46 = vld [vmem:[#allocation12 + $0xc8] sm:$0xf]  ;;  %v16618_v54 = vld [vmem:[#allocation12 + $0x28c] sm:$0xf] }
 0x764   :  { %9773 = vmatpush.bf16.msra.mxu2 %v14816_v49  ;;  %v16642_v49 = vld [vmem:[#allocation12 + $0x34c] sm:$0xf]  ;;  %v16566_v6 = vld [vmem:[#allocation12 + $0xe4] sm:$0xf0]  ;;  %v8829_v58 = vadd.f32 %v17680_v5, %v17678_v1 }
 0x765   :  { %9786 = vmatpush.bf16.msra.mxu3 %v15072_v25  ;;  %v15205_v25 = vld [vmem:[#allocation12 + $0x368] sm:$0xf0]  ;;  %v14884_v12 = vor.u32 %v16566_v6, %v14883_v46 }
 0x766   :  { %9793 = vmatpush.bf16.msrb.mxu0 %v15012_v11  ;;  %v15208_v40 = vor.u32 %v16642_v49, %v15205_v25  ;;  %v8919_v11 = vrot.slane %v17692_v45, 6  ;;  %v15109_v38 = vld [vmem:[#allocation12 + $0x2a8] sm:$0xf0]  ;;  %v8921_v44 = vrot.slane %v8829_v58, 4  ;;  %v15075_v45 = vld [vmem:[#allocation12 + $0x248] sm:$0xf] }
 0x767   :  { %v15045_v58 = vld [vmem:[#allocation12 + $0x228] sm:$0xf0] }
 0x768   :  { %9774 = vmatpush.bf16.msra.mxu2 %v14784_v7 }
 0x769   :  { %9787 = vmatpush.bf16.msra.mxu3 %v15040_v57  ;;  %v16634_v57 = vld [vmem:[#allocation12 + $0x30c] sm:$0xf] }
 0x76a   :  { %9794 = vmatpush.bf16.msrb.mxu0 %v14980_v20 }
 0x76b   :  { %v8817_v61 = vpop.f32.mrf.mxu0  ;;  %v8830_v2 = vpop.f32.mrf.mxu1 }
 0x76c   :  { %v17682_v15 = vpop.f32.mrf.mxu2  ;;  %v17684_v51 = vpop.f32.mrf.mxu3  ;;  %v16654_v61 = vld [vmem:[#allocation12 + $0x3a4] sm:$0xf0]  ;;  %v16586_v2 = vld [vmem:[#allocation12 + $0x18c] sm:$0xf]  ;;  %9819 = vmatpush.bf16.msrb.mxu2 %v15016_v28  ;;  %v15140_v28 = vor.u32 %v16630_v14, %v15139_v10 }
 0x76d   :  { %v15236_v42 = vor.u32 %v16654_v61, %v15235_v30  ;;  %9832 = vmatpush.bf16.msrb.mxu3 %v15272_v19  ;;  %v14984_v17 = vor.u32 %v16586_v2, %v14981_v63  ;;  %v8855_v27 = vadd.f32 %v17684_v51, %v17682_v15  ;;  %v7925_v61 = vld [vmem:[#allocation3 + $0x6] ss:$8 sm:$0xf0]  ;;  %v14851_v2 = vld [vmem:[#allocation12 + $0x88] sm:$0xf] }
 0x76e   :  { %9795 = vmatpush.bf16.msrb.mxu0 %v14948_v59  ;;  %v15107_v63 = vld [vmem:[#allocation12 + $0x288] sm:$0xf] }
 0x76f   :  { %9807 = vmatpush.bf16.msrb.mxu1 %v15236_v42  ;;  %v16558_v42 = vld [vmem:[#allocation12 + $0xa4] sm:$0xf0]  ;;  %v8922_v43 = vrot.slane %v8855_v27, 3 }
 0x770   :  { %9820 = vmatpush.bf16.msrb.mxu2 %v14984_v17  ;;  %v14852_v15 = vor.u32 %v16558_v42, %v14851_v2  ;;  %v16622_v51 = vld [vmem:[#allocation12 + $0x2a4] sm:$0xf0]  ;;  %v16554_v17 = vld [vmem:[#allocation12 + $0x8c] sm:$0xf] }
 0x771   :  { %9833 = vmatpush.bf16.msrb.mxu3 %v15240_v36  ;;  %v14853_v36 = vld [vmem:[#allocation12 + $0xa8] sm:$0xf0]  ;;  %v15108_v5 = vor.u32 %v16622_v51, %v15107_v63  ;;  %v8928_v0 = vsel %vm2687_vm3, %v8921_v44, %v8922_v43  ;;  %v14787_v10 = vld [vmem:[#allocation12 + $0x8] sm:$0xf]  ;;  %v15019_v44 = vld [vmem:[#allocation12 + $0x1d0] sm:$0xf] }
 0x772   :  { %9796 = vmatpush.bf16.msrb.mxu0 %v14916_v23  ;;  %v14856_v59 = vor.u32 %v16554_v17, %v14853_v36  ;;  %v16614_v23 = vld [vmem:[#allocation12 + $0x264] sm:$0xf0] }
 0x773   :  { %9808 = vmatpush.bf16.msrb.mxu1 %v15204_v39  ;;  %v7924_v39 = vld [vmem:[#allocation3 + $0x6] ss:$8 sm:$0xf]  ;;  %v16606_v27 = vld [vmem:[#allocation12 + $0x224] sm:$0xf0] }
 0x774   :  { %v8843_v47 = vpop.f32.mrf.mxu2  ;;  %v8856_v24 = vpop.f32.mrf.mxu3  ;;  %9821 = vmatpush.bf16.msrb.mxu2 %v14952_v31  ;;  %v15112_v31 = vor.u32 %v16618_v54, %v15109_v38 }
 0x775   :  { %v15171_v47 = vld [vmem:[#allocation12 + $0x308] sm:$0xf]  ;;  %v17688_v24 = vadd.f32 %v17668_v41, %v17666_v55  ;;  %v8803_v55 = vadd.f32 %v17676_v62, %v17674_v50  ;;  %9834 = vmatpush.bf16.msrb.mxu3 %v15208_v40  ;;  %v15176_v41 = vor.u32 %v16634_v57, %v15173_v3  ;;  %v14885_v50 = vld [vmem:[#allocation12 + $0xe8] sm:$0xf0] }
 0x776   :  { %v15172_v37 = vor.u32 %v16638_v9, %v15171_v47  ;;  %v16626_v62 = vld [vmem:[#allocation12 + $0x2cc] sm:$0xf]  ;;  %v14888_v19 = vor.u32 %v16562_v56, %v14885_v50  ;;  %9797 = vmatpush.bf16.msrb.mxu0 %v14884_v12  ;;  %v7926_v47 = vor.u32 %v7925_v61, %v7924_v39  ;;  %v16599_v39 = vld [vmem:[#allocation12 + $0x1ec] sm:$0xf0] }
 0x777   :  { %v8918_v48 = vrot.slane %v17688_v24, 7  ;;  %v8920_v16 = vrot.slane %v8803_v55, 5  ;;  %v15144_v20 = vor.u32 %v16626_v62, %v15141_v13  ;;  %v14820_v24 = vor.u32 %v16550_v4, %v14819_v21  ;;  %v16546_v9 = vld [vmem:[#allocation12 + $0x4c] sm:$0xf]  ;;  %v15021_v21 = vld [vmem:[#allocation12 + $0x1f0] sm:$0xf0] }
 0x778   :  { %9809 = vmatpush.bf16.msrb.mxu1 %v15172_v37  ;;  %9822 = vmatpush.bf16.msrb.mxu2 %v14920_v60  ;;  %v14821_v37 = vld [vmem:[#allocation12 + $0x68] sm:$0xf0]  ;;  %v16659_v4 = vld [vmem:[#allocation12 + $0x3d4] sm:$0xf] }
 0x779   :  { %9835 = vmatpush.bf16.msrb.mxu3 %v15176_v41  ;;  %v8926_v49 = vsel %vm2683_vm1, %v8919_v11, %v8920_v16  ;;  %v8925_v35 = vsel %vm2681_vm0, %v17664_v18, %v8918_v48  ;;  %v16610_v60 = vld [vmem:[#allocation12 + $0x24c] sm:$0xf]  ;;  %v14824_v41 = vor.u32 %v16546_v9, %v14821_v37  ;;  %v16542_v18 = vld [vmem:[#allocation12 + $0x24] sm:$0xf0]  ;;  %v15020_v9 = vor.u32 %v16599_v39, %v15019_v44  ;;  %v15149_v44 = vld [vmem:[#allocation12 + $0x2f0] sm:$0xf0] }
 0x77a   :  { %9798 = vmatpush.bf16.msrb.mxu0 %v14852_v15  ;;  %v15077_v57 = vld [vmem:[#allocation12 + $0x268] sm:$0xf0]  ;;  %v8927_v3 = vsel %vm2685_vm2, %v8925_v35, %v8926_v49  ;;  %v15043_v48 = vld [vmem:[#allocation12 + $0x208] sm:$0xf]  ;;  %v14788_v56 = vor.u32 %v16542_v18, %v14787_v10  ;;  %v15275_v49 = vld [vmem:[#allocation12 + $0x3d0] sm:$0xf] }
 0x77b   :  { %v15080_v46 = vor.u32 %v16610_v60, %v15077_v57  ;;  %v14789_v50 = vld [vmem:[#allocation12 + $0x28] sm:$0xf0]  ;;  %v15044_v62 = vor.u32 %v16606_v27, %v15043_v48  ;;  %v15243_v60 = vld [vmem:[#allocation12 + $0x390] sm:$0xf]  ;;  %v16579_v27 = vld [vmem:[#allocation12 + $0x154] sm:$0xf] }
 0x77c   :  { %9810 = vmatpush.bf16.msrb.mxu1 %v15140_v28  ;;  %9823 = vmatpush.bf16.msrb.mxu2 %v14888_v19  ;;  %v16538_v28 = vld [vmem:[#allocation12 + $0xc] sm:$0xf]  ;;  %v16655_v57 = vld [vmem:[#allocation12 + $0x3ac] sm:$0xf0] }
 0x77d   :  { %9836 = vmatpush.bf16.msrb.mxu3 %v15144_v20  ;;  %v14792_v13 = vor.u32 %v16538_v28, %v14789_v50  ;;  %v16602_v16 = vld [vmem:[#allocation12 + $0x20c] sm:$0xf]  ;;  %v15244_v10 = vor.u32 %v16655_v57, %v15243_v60  ;;  %v14955_v18 = vld [vmem:[#allocation12 + $0x150] sm:$0xf]  ;;  %v14957_v28 = vld [vmem:[#allocation12 + $0x170] sm:$0xf0] }
 0x77e   :  { %9799 = vmatpush.bf16.msrb.mxu0 %v14820_v24  ;;  %v16583_v48 = vld [vmem:[#allocation12 + $0x16c] sm:$0xf0]  ;;  %v16643_v50 = vld [vmem:[#allocation12 + $0x354] sm:$0xf] }
 0x780   :  { %9811 = vmatpush.bf16.msrb.mxu1 %v15108_v5  ;;  %9824 = vmatpush.bf16.msrb.mxu2 %v14856_v59 }
 0x781   :  { %9837 = vmatpush.bf16.msrb.mxu3 %v15112_v31 }
 0x782   :  { %9800 = vmatpush.bf16.msrb.mxu0 %v14788_v56  ;;  %v16647_v56 = vld [vmem:[#allocation12 + $0x36c] sm:$0xf0] }
 0x783   :  { %v8867_v7 = vpop.f32.mrf.mxu0  ;;  %v8880_v34 = vpop.f32.mrf.mxu1 }
 0x784   :  { %v8881_v30 = vadd.f32 %v8880_v34, %v8867_v7  ;;  %v15076_v34 = vor.u32 %v16614_v23, %v15075_v45  ;;  %9825 = vmatpush.bf16.msrb.mxu2 %v14824_v41  ;;  %v16651_v41 = vld [vmem:[#allocation12 + $0x394] sm:$0xf] }
 0x785   :  { %9838 = vmatpush.bf16.msrb.mxu3 %v15080_v46  ;;  %v15245_v46 = vld [vmem:[#allocation12 + $0x3b0] sm:$0xf0] }
 0x786   :  { %v8923_v25 = vrot.slane %v8881_v30, 2  ;;  %9812 = vmatpush.bf16.msrb.mxu1 %v15076_v34  ;;  %v15048_v30 = vor.u32 %v16602_v16, %v15045_v58  ;;  %v14923_v58 = vld [vmem:[#allocation12 + $0x110] sm:$0xf] }
 0x788   :  { %9826 = vmatpush.bf16.msrb.mxu2 %v14792_v13  ;;  %v14956_v13 = vor.u32 %v16583_v48, %v14955_v18  ;;  %v14795_v18 = vld [vmem:[#allocation12 + $0x10] sm:$0xf] }
 0x789   :  { %9839 = vmatpush.bf16.msrb.mxu3 %v15048_v30 }
 0x78a   :  { %v8893_v32 = vpop.f32.mrf.mxu2  ;;  %v8906_v22 = vpop.f32.mrf.mxu3  ;;  %9813 = vmatpush.bf16.msrb.mxu1 %v15044_v62  ;;  %v15213_v62 = vld [vmem:[#allocation12 + $0x370] sm:$0xf0] }
 0x78b   :  { %v8907_v53 = vadd.f32 %v8906_v22, %v8893_v32  ;;  %v8869_v26 = vpop.f32.mrf.mxu0  ;;  %v8882_v1 = vpop.f32.mrf.mxu1  ;;  %v15216_v30 = vor.u32 %v16643_v50, %v15213_v62  ;;  %v16539_v50 = vld [vmem:[#allocation12 + $0x14] sm:$0xf] }
 0x78c   :  { %v14797_v62 = vld [vmem:[#allocation12 + $0x30] sm:$0xf0] }
 0x78d   :  { %v8924_v40 = vrot.slane %v8907_v53, 1 }
 0x78f   :  { %v8929_v7 = vsel %vm2689_vm4, %v8923_v25, %v8924_v40  ;;  %v16663_v25 = vld [vmem:[#allocation12 + $0x3ec] sm:$0xf0]  ;;  %v16595_v40 = vld [vmem:[#allocation12 + $0x1d4] sm:$0xf] }
 0x790   :  { %v8930_v55 = vsel %vm2691_vm5, %v8928_v0, %v8929_v7  ;;  %v15276_v35 = vor.u32 %v16663_v25, %v15275_v49  ;;  %v14987_v0 = vld [vmem:[#allocation12 + $0x190] sm:$0xf]  ;;  %v15024_v34 = vor.u32 %v16595_v40, %v15021_v21 }
 0x791   :  { %v8931_v6 = vsel %vm2693_vm6, %v8927_v3, %v8930_v55  ;;  %v16591_v7 = vld [vmem:[#allocation12 + $0x1ac] sm:$0xf0]  ;;  %v16587_v3 = vld [vmem:[#allocation12 + $0x194] sm:$0xf] }
 0x792   :  { %v8933_v11 = vadd.f32 %v8931_v6, %v7926_v47  ;;  %v8895_v12 = vpop.f32.mrf.mxu2  ;;  %v8908_v14 = vpop.f32.mrf.mxu3  ;;  %v15277_v47 = vld [vmem:[#allocation12 + $0x3f0] sm:$0xf0]  ;;  %v14988_v6 = vor.u32 %v16591_v7, %v14987_v0  ;;  %v14859_v49 = vld [vmem:[#allocation12 + $0x90] sm:$0xf] }
 0x793   :  { %v15280_v37 = vor.u32 %v16659_v4, %v15277_v47  ;;  %v14989_v55 = vld [vmem:[#allocation12 + $0x1b0] sm:$0xf0]  ;;  %v15248_v12 = vor.u32 %v16651_v41, %v15245_v46  ;;  %v15211_v14 = vld [vmem:[#allocation12 + $0x350] sm:$0xf] }
 0x794   :  { %v8934_v19 = vmul.f32 0.5, %v8933_v11  ;;  %v8939_v20 = vrot.slane %v8933_v11, 2  ;;  %v8948_v2 = vrot.slane %v8933_v11, 6  ;;  %v8945_v42 = vrot.slane %v8933_v11, 4  ;;  %v16559_v25 = vld [vmem:[#allocation12 + $0xac] sm:$0xf0] }
 0x795   :  { %v14992_v11 = vor.u32 %v16587_v3, %v14989_v55  ;;  %v15212_v16 = vor.u32 %v16647_v56, %v15211_v14  ;;  %v15115_v4 = vld [vmem:[#allocation12 + $0x290] sm:$0xf]  ;;  %v14860_v0 = vor.u32 %v16559_v25, %v14859_v49  ;;  %v16547_v41 = vld [vmem:[#allocation12 + $0x54] sm:$0xf] }
 0x796   :  { %16784 = vtanh.f32 %v8934_v19  ;;  %v8941_v61 = vmul.f32 0.5, %v8939_v20  ;;  %v8950_v63 = vmul.f32 0.5, %v8948_v2  ;;  %v16575_v19 = vld [vmem:[#allocation12 + $0x12c] sm:$0xf0]  ;;  %v14960_v20 = vor.u32 %v16579_v27, %v14957_v28  ;;  %v14829_v46 = vld [vmem:[#allocation12 + $0x70] sm:$0xf0] }
 0x797   :  { %v16639_v2 = vld [vmem:[#allocation12 + $0x32c] sm:$0xf0]  ;;  %v14832_v27 = vor.u32 %v16547_v41, %v14829_v46  ;;  %v15187_v41 = vld [vmem:[#allocation12 + $0x318] sm:$0xf] }
 0x798   :  { %16786 = vtanh.f32 %v8941_v61  ;;  %v15179_v61 = vld [vmem:[#allocation12 + $0x310] sm:$0xf]  ;;  %v16640_v46 = vld [vmem:[#allocation12 + $0x334] sm:$0xf0] }
 0x799   :  { %16788 = vtanh.f32 %v8945_v42  ;;  %v16571_v42 = vld [vmem:[#allocation12 + $0x114] sm:$0xf]  ;;  %v16623_v47 = vld [vmem:[#allocation12 + $0x2ac] sm:$0xf0] }
 0x79a   :  { %16790 = vtanh.f32 %v8950_v63  ;;  %v14925_v63 = vld [vmem:[#allocation12 + $0x130] sm:$0xf0]  ;;  %v15116_v7 = vor.u32 %v16623_v47, %v15115_v4  ;;  %v15083_v3 = vld [vmem:[#allocation12 + $0x250] sm:$0xf] }
 0x79b   :  { %v16615_v55 = vld [vmem:[#allocation12 + $0x26c] sm:$0xf0] }
 0x79c   :  { %v16785_v32 = vpop.eup %16784  ;;  %v15051_v14 = vld [vmem:[#allocation12 + $0x210] sm:$0xf] }
 0x79d   :  { %v8936_v22 = vmul.f32 0.5, %v16785_v32  ;;  %v16635_v32 = vld [vmem:[#allocation12 + $0x314] sm:$0xf]  ;;  %v16607_v56 = vld [vmem:[#allocation12 + $0x22c] sm:$0xf0] }
 0x79e   :  { %v16787_v15 = vpop.eup %16786 }
 0x79f   :  { %v8937_v51 = vadd.f32 0.5, %v8936_v22  ;;  %v8943_v17 = vmul.f32 0.5, %v16787_v15  ;;  %v16789_v43 = vpop.eup %16788  ;;  %v15181_v22 = vld [vmem:[#allocation12 + $0x330] sm:$0xf0]  ;;  %v14924_v15 = vor.u32 %v16575_v19, %v14923_v58  ;;  %v15027_v58 = vld [vmem:[#allocation12 + $0x1d8] sm:$0xf] }
 0x7a0   :  { %v16791_v1 = vpop.eup %16790  ;;  %v16600_v19 = vld [vmem:[#allocation12 + $0x1f4] sm:$0xf0] }
 0x7a1   :  { %v8944_v36 = vadd.f32 0.5, %v8943_v17  ;;  %v8955_v26 = vmul.f32 %v16789_v43, %v8937_v51  ;;  %v8952_v59 = vmul.f32 0.5, %v16791_v1  ;;  %v15180_v51 = vor.u32 %v16639_v2, %v15179_v61  ;;  %v14891_v17 = vld [vmem:[#allocation12 + $0xd0] sm:$0xf]  ;;  %v16596_v61 = vld [vmem:[#allocation12 + $0x1dc] sm:$0xf] }
 0x7a2   :  { %v14928_v43 = vor.u32 %v16571_v42, %v14925_v63  ;;  %v16631_v1 = vld [vmem:[#allocation12 + $0x2ec] sm:$0xf0]  ;;  %v15052_v42 = vor.u32 %v16607_v56, %v15051_v14  ;;  %v15029_v63 = vld [vmem:[#allocation12 + $0x1f8] sm:$0xf0]  ;;  %v14899_v14 = vld [vmem:[#allocation12 + $0xd8] sm:$0xf] }
 0x7a3   :  { %v8954_v53 = vmul.f32 %v8944_v36, %v17639_v8  ;;  %v8953_v54 = vadd.f32 0.5, %v8952_v59  ;;  %v16567_v36 = vld [vmem:[#allocation12 + $0xec] sm:$0xf0]  ;;  %v16563_v59 = vld [vmem:[#allocation12 + $0xd4] sm:$0xf] }
 0x7a4   :  { %v14892_v39 = vor.u32 %v16567_v36, %v14891_v17  ;;  %v15028_v17 = vor.u32 %v16600_v19, %v15027_v58  ;;  %v16568_v56 = vld [vmem:[#allocation12 + $0xf4] sm:$0xf0]  ;;  %v16628_v58 = vld [vmem:[#allocation12 + $0x2dc] sm:$0xf] }
 0x7a5   :  { %v17711_v5 = vadd.f32 %v8955_v26, %v8954_v53  ;;  %v15184_v53 = vor.u32 %v16635_v32, %v15181_v22  ;;  %v15147_v26 = vld [vmem:[#allocation12 + $0x2d0] sm:$0xf]  ;;  %v16660_v32 = vld [vmem:[#allocation12 + $0x3dc] sm:$0xf] }
 0x7a6   :  { %v15285_v22 = vld [vmem:[#allocation12 + $0x3f8] sm:$0xf0] }
 0x7a7   :  { %16792 = vtanh.f32 %v17711_v5  ;;  %v15157_v19 = vld [vmem:[#allocation12 + $0x2f8] sm:$0xf0] }
 0x7ad   :  { %v16793_v38 = vpop.eup %16792 }
 0x7ae   :  { %v8958_v31 = vmul.f32 %v16793_v38, %v8953_v54  ;;  %v14893_v54 = vld [vmem:[#allocation12 + $0xf0] sm:$0xf0] }
 0x7af   :  { %v16627_v38 = vld [vmem:[#allocation12 + $0x2d4] sm:$0xf]  ;;  %v14896_v40 = vor.u32 %v16563_v59, %v14893_v54  ;;  %v15251_v59 = vld [vmem:[#allocation12 + $0x398] sm:$0xf] }
 0x7b0   :  { %8960 = vst.msk [vmem:[#allocation2 + $0x6] ss:$8 sm:$0x3] %vm17278_vm7, %v8958_v31  ;;  %v8967_v8 = vperm.slane %v8958_v31, 0  ;;  %v8968_v24 = vperm.slane %v8958_v31, 1  ;;  %v15148_v31 = vor.u32 %v16631_v1, %v15147_v26  ;;  %v15152_v21 = vor.u32 %v16627_v38, %v15149_v44 }
 0x7b1   :  { %v15032_v26 = vor.u32 %v16596_v61, %v15029_v63  ;;  %v15288_v1 = vor.u32 %v16660_v32, %v15285_v22  ;;  %v16656_v54 = vld [vmem:[#allocation12 + $0x3b4] sm:$0xf0]  ;;  %v16588_v38 = vld [vmem:[#allocation12 + $0x19c] sm:$0xf]  ;;  %v15160_v63 = vor.u32 %v16628_v58, %v15157_v19 }
 0x7b2   :  { %v17716_v45 = vpack.c.bf16 %v8967_v8, %v8967_v8  ;;  %v17718_v23 = vpack.c.bf16 %v8968_v24, %v8968_v24  ;;  %v16555_v8 = vld [vmem:[#allocation12 + $0x94] sm:$0xf]  ;;  %v14997_v44 = vld [vmem:[#allocation12 + $0x1b8] sm:$0xf0]  ;;  %v15252_v25 = vor.u32 %v16656_v54, %v15251_v59  ;;  %v14867_v61 = vld [vmem:[#allocation12 + $0x98] sm:$0xf] }
 0x7b3   :  { %v14861_v24 = vld [vmem:[#allocation12 + $0xb0] sm:$0xf0]  ;;  %v15000_v4 = vor.u32 %v16588_v38, %v14997_v44  ;;  %v15123_v32 = vld [vmem:[#allocation12 + $0x298] sm:$0xf] }
 0x7b4   :  { %9749 = vmatmul.bf16.vlgmr.msra.gmra.mxu0 %v17716_v45  ;;  %9762 = vmatmul.bf16.vlgmr.msra.gmra.mxu1 %v17718_v23  ;;  %v14864_v60 = vor.u32 %v16555_v8, %v14861_v24  ;;  %v15219_v8 = vld [vmem:[#allocation12 + $0x358] sm:$0xf] }
 0x7b5   :  { %9775 = vmatmul.bf16.vlgmr.msra.gmra.mxu2 %v17716_v45  ;;  %9788 = vmatmul.bf16.vlgmr.msra.gmra.mxu3 %v17718_v23  ;;  %v16648_v24 = vld [vmem:[#allocation12 + $0x374] sm:$0xf0] }
 0x7b6   :  { %9845 = vmatpush.bf16.msra.mxu0 %v15020_v9  ;;  %9858 = vmatpush.bf16.msra.mxu1 %v15276_v35  ;;  %v16619_v9 = vld [vmem:[#allocation12 + $0x294] sm:$0xf]  ;;  %v16624_v22 = vld [vmem:[#allocation12 + $0x2b4] sm:$0xf0] }
 0x7b7   :  { %9871 = vmatpush.bf16.msra.mxu2 %v15024_v34  ;;  %9884 = vmatpush.bf16.msra.mxu3 %v15280_v37  ;;  %v15117_v35 = vld [vmem:[#allocation12 + $0x2b0] sm:$0xf0]  ;;  %v14827_v34 = vld [vmem:[#allocation12 + $0x50] sm:$0xf]  ;;  %v15091_v38 = vld [vmem:[#allocation12 + $0x258] sm:$0xf] }
 0x7b8   :  { %v16551_v37 = vld [vmem:[#allocation12 + $0x6c] sm:$0xf0]  ;;  %v15120_v57 = vor.u32 %v16619_v9, %v15117_v35  ;;  %v16580_v9 = vld [vmem:[#allocation12 + $0x15c] sm:$0xf]  ;;  %v16616_v44 = vld [vmem:[#allocation12 + $0x274] sm:$0xf0] }
 0x7b9   :  { %v14828_v48 = vor.u32 %v16551_v37, %v14827_v34  ;;  %v14965_v35 = vld [vmem:[#allocation12 + $0x178] sm:$0xf0]  ;;  %v15220_v37 = vor.u32 %v16648_v24, %v15219_v8 }
 0x7ba   :  { %9846 = vmatpush.bf16.msra.mxu0 %v14988_v6  ;;  %9859 = vmatpush.bf16.msra.mxu1 %v15244_v10  ;;  %v16611_v6 = vld [vmem:[#allocation12 + $0x254] sm:$0xf] }
 0x7bb   :  { %9872 = vmatpush.bf16.msra.mxu2 %v14992_v11  ;;  %9885 = vmatpush.bf16.msra.mxu3 %v15248_v12  ;;  %v15085_v10 = vld [vmem:[#allocation12 + $0x270] sm:$0xf0]  ;;  %v15084_v11 = vor.u32 %v16615_v55, %v15083_v3  ;;  %v16543_v12 = vld [vmem:[#allocation12 + $0x2c] sm:$0xf0]  ;;  %v14968_v3 = vor.u32 %v16580_v9, %v14965_v35  ;;  %v15059_v9 = vld [vmem:[#allocation12 + $0x218] sm:$0xf] }
 0x7bc   :  { %v15088_v28 = vor.u32 %v16611_v6, %v15085_v10  ;;  %v14796_v2 = vor.u32 %v16543_v12, %v14795_v18  ;;  %v16572_v6 = vld [vmem:[#allocation12 + $0x11c] sm:$0xf]  ;;  %v15188_v12 = vor.u32 %v16640_v46, %v15187_v41  ;;  %v16608_v35 = vld [vmem:[#allocation12 + $0x234] sm:$0xf0]  ;;  %v16672_v41 = vld [vmem:[#allocation15 + $0x38] sm:$0xff] }
 0x7bd   :  { %v14933_v10 = vld [vmem:[#allocation12 + $0x138] sm:$0xf0]  ;;  %v16680_v46 = vld [vmem:[#allocation15 + $0x78] sm:$0xff] }
 0x7be   :  { %9847 = vmatpush.bf16.msra.mxu0 %v14956_v13  ;;  %9860 = vmatpush.bf16.msra.mxu1 %v15212_v16  ;;  %v16603_v13 = vld [vmem:[#allocation12 + $0x214] sm:$0xf]  ;;  %v16636_v18 = vld [vmem:[#allocation12 + $0x31c] sm:$0xf] }
 0x7bf   :  { %9873 = vmatpush.bf16.msra.mxu2 %v14960_v20  ;;  %9886 = vmatpush.bf16.msra.mxu3 %v15216_v30  ;;  %v15053_v16 = vld [vmem:[#allocation12 + $0x230] sm:$0xf0]  ;;  %v15283_v20 = vld [vmem:[#allocation12 + $0x3d8] sm:$0xf] }
 0x7c0   :  { %v16664_v30 = vld [vmem:[#allocation12 + $0x3f4] sm:$0xf0] }
 0x7c1   :  { %v15284_v36 = vor.u32 %v16664_v30, %v15283_v20  ;;  %v14900_v20 = vor.u32 %v16568_v56, %v14899_v14  ;;  %v16668_v14 = vld [vmem:[#allocation15 + $0x18] sm:$0xff] }
 0x7c2   :  { %9848 = vmatpush.bf16.msra.mxu0 %v14924_v15  ;;  %9861 = vmatpush.bf16.msra.mxu1 %v15180_v51  ;;  %v14800_v15 = vor.u32 %v16539_v50, %v14797_v62  ;;  %v15056_v51 = vor.u32 %v16603_v13, %v15053_v16  ;;  %v15155_v50 = vld [vmem:[#allocation12 + $0x2d8] sm:$0xf]  ;;  %v16564_v13 = vld [vmem:[#allocation12 + $0xdc] sm:$0xf]  ;;  %v16676_v56 = vld [vmem:[#allocation15 + $0x58] sm:$0xff] }
 0x7c3   :  { %9874 = vmatpush.bf16.msra.mxu2 %v14928_v43  ;;  %9887 = vmatpush.bf16.msra.mxu3 %v15184_v53  ;;  %v14995_v43 = vld [vmem:[#allocation12 + $0x198] sm:$0xf]  ;;  %v14901_v16 = vld [vmem:[#allocation12 + $0xf8] sm:$0xf0] }
 0x7c4   :  { %9801 = vmatmul.bf16.vlgmr.msrb.gmra.mxu0 %v17716_v45  ;;  %9814 = vmatmul.bf16.vlgmr.msrb.gmra.mxu1 %v17718_v23  ;;  %v16592_v53 = vld [vmem:[#allocation12 + $0x1b4] sm:$0xf0] }
 0x7c5   :  { %9827 = vmatmul.bf16.vlgmr.msrb.gmra.mxu2 %v17716_v45  ;;  %9840 = vmatmul.bf16.vlgmr.msrb.gmra.mxu3 %v17718_v23  ;;  %v14996_v49 = vor.u32 %v16592_v53, %v14995_v43  ;;  %v16632_v62 = vld [vmem:[#allocation12 + $0x2f4] sm:$0xf0]  ;;  %v15124_v53 = vor.u32 %v16624_v22, %v15123_v32 }
 0x7c6   :  { %9849 = vmatpush.bf16.msra.mxu0 %v14892_v39  ;;  %9862 = vmatpush.bf16.msra.mxu1 %v15148_v31  ;;  %v16652_v39 = vld [vmem:[#allocation12 + $0x39c] sm:$0xf]  ;;  %v15156_v30 = vor.u32 %v16632_v62, %v15155_v50  ;;  %v16665_v50 = vld [vmem:[#allocation15] sm:$0xff] }
 0x7c7   :  { %9875 = vmatpush.bf16.msra.mxu2 %v14896_v40  ;;  %9888 = vmatpush.bf16.msra.mxu3 %v15152_v21  ;;  %v15253_v31 = vld [vmem:[#allocation12 + $0x3b8] sm:$0xf0]  ;;  %v14963_v40 = vld [vmem:[#allocation12 + $0x158] sm:$0xf]  ;;  %v16673_v62 = vld [vmem:[#allocation15 + $0x40] sm:$0xff] }
 0x7c8   :  { %v16584_v21 = vld [vmem:[#allocation12 + $0x174] sm:$0xf0]  ;;  %v15256_v47 = vor.u32 %v16652_v39, %v15253_v31  ;;  %v16548_v39 = vld [vmem:[#allocation12 + $0x5c] sm:$0xf] }
 0x7c9   :  { %v14964_v34 = vor.u32 %v16584_v21, %v14963_v40  ;;  %v14837_v31 = vld [vmem:[#allocation12 + $0x78] sm:$0xf0]  ;;  %v15092_v21 = vor.u32 %v16616_v44, %v15091_v38 }
 0x7ca   :  { %9850 = vmatpush.bf16.msra.mxu0 %v14860_v0  ;;  %9863 = vmatpush.bf16.msra.mxu1 %v15116_v7  ;;  %v16644_v0 = vld [vmem:[#allocation12 + $0x35c] sm:$0xf]  ;;  %v14840_v8 = vor.u32 %v16548_v39, %v14837_v31 }
 0x7cb   :  { %9876 = vmatpush.bf16.msra.mxu2 %v14864_v60  ;;  %9889 = vmatpush.bf16.msra.mxu3 %v15120_v57  ;;  %v15221_v7 = vld [vmem:[#allocation12 + $0x378] sm:$0xf0]  ;;  %v14931_v60 = vld [vmem:[#allocation12 + $0x118] sm:$0xf] }
 0x7cc   :  { %v16576_v57 = vld [vmem:[#allocation12 + $0x134] sm:$0xf0]  ;;  %v15224_v55 = vor.u32 %v16644_v0, %v15221_v7  ;;  %v16540_v0 = vld [vmem:[#allocation12 + $0x1c] sm:$0xf] }
 0x7cd   :  { %v14805_v7 = vld [vmem:[#allocation12 + $0x38] sm:$0xf0] }
 0x7ce   :  { %9851 = vmatpush.bf16.msra.mxu0 %v14828_v48  ;;  %9864 = vmatpush.bf16.msra.mxu1 %v15084_v11  ;;  %v15189_v48 = vld [vmem:[#allocation12 + $0x338] sm:$0xf0]  ;;  %v14932_v11 = vor.u32 %v16576_v57, %v14931_v60  ;;  %v15060_v57 = vor.u32 %v16608_v35, %v15059_v9 }
 0x7cf   :  { %9877 = vmatpush.bf16.msra.mxu2 %v14832_v27  ;;  %9890 = vmatpush.bf16.msra.mxu3 %v15088_v28  ;;  %v14936_v27 = vor.u32 %v16572_v6, %v14933_v10  ;;  %v15192_v28 = vor.u32 %v16636_v18, %v15189_v48  ;;  %v16671_v6 = vld [vmem:[#allocation15 + $0x30] sm:$0xff]  ;;  %v16670_v18 = vld [vmem:[#allocation15 + $0x28] sm:$0xff] }
 0x7d0   :  { %v16679_v10 = vld [vmem:[#allocation15 + $0x70] sm:$0xff]  ;;  %v16678_v48 = vld [vmem:[#allocation15 + $0x68] sm:$0xff] }
 0x7d2   :  { %9852 = vmatpush.bf16.msra.mxu0 %v14796_v2  ;;  %9865 = vmatpush.bf16.msra.mxu1 %v15052_v42  ;;  %v16560_v2 = vld [vmem:[#allocation12 + $0xb4] sm:$0xf0]  ;;  %v14904_v42 = vor.u32 %v16564_v13, %v14901_v16  ;;  %v679_v13 = vmax.f32 %v17218_v29, 0.0  ;;  %v680_v16 = vmax.f32 %v17225_v52, 0.0 }
 0x7d3   :  { %9878 = vmatpush.bf16.msra.mxu2 %v14800_v15  ;;  %9891 = vmatpush.bf16.msra.mxu3 %v15056_v51  ;;  %v16556_v15 = vld [vmem:[#allocation12 + $0x9c] sm:$0xf]  ;;  %v14868_v43 = vor.u32 %v16560_v2, %v14867_v61 }
 0x7d4   :  { %v14869_v51 = vld [vmem:[#allocation12 + $0xb8] sm:$0xf0]  ;;  %v10001_v58 = vpack.c.bf16 %v679_v13, %v679_v13  ;;  %v10002_v19 = vpack.c.bf16 %v680_v16, %v680_v16 }
 0x7d5   :  { %9853 = vmatmul.bf16.vlgmr.msra.gmra.mxu0 %v17716_v45  ;;  %9866 = vmatmul.bf16.vlgmr.msra.gmra.mxu1 %v17718_v23  ;;  %v14872_v59 = vor.u32 %v16556_v15, %v14869_v51  ;;  %v16691_v13 = vld [vmem:[#allocation16 + $0x50] sm:$0xff] }
 0x7d6   :  { %9897 = vmatpush.bf16.msrb.mxu0 %v15028_v17  ;;  %9910 = vmatpush.bf16.msrb.mxu1 %v15284_v36  ;;  %v16620_v17 = vld [vmem:[#allocation12 + $0x29c] sm:$0xf] }
 0x7d7   :  { %9923 = vmatpush.bf16.msrb.mxu2 %v15032_v26  ;;  %9936 = vmatpush.bf16.msrb.mxu3 %v15288_v1  ;;  %v15125_v36 = vld [vmem:[#allocation12 + $0x2b8] sm:$0xf0]  ;;  %v14835_v26 = vld [vmem:[#allocation12 + $0x58] sm:$0xf] }
 0x7d8   :  { %9879 = vmatmul.bf16.vlgmr.msra.gmra.mxu2 %v17716_v45  ;;  %9892 = vmatmul.bf16.vlgmr.msra.gmra.mxu3 %v17718_v23  ;;  %v16552_v1 = vld [vmem:[#allocation12 + $0x74] sm:$0xf0]  ;;  %v15128_v54 = vor.u32 %v16620_v17, %v15125_v36 }
 0x7d9   :  { %v14836_v40 = vor.u32 %v16552_v1, %v14835_v26 }
 0x7da   :  { %9898 = vmatpush.bf16.msrb.mxu0 %v14996_v49  ;;  %9911 = vmatpush.bf16.msrb.mxu1 %v15252_v25  ;;  %v16612_v49 = vld [vmem:[#allocation12 + $0x25c] sm:$0xf] }
 0x7db   :  { %9924 = vmatpush.bf16.msrb.mxu2 %v15000_v4  ;;  %9937 = vmatpush.bf16.msrb.mxu3 %v15256_v47  ;;  %v15093_v25 = vld [vmem:[#allocation12 + $0x278] sm:$0xf0]  ;;  %v14803_v4 = vld [vmem:[#allocation12 + $0x18] sm:$0xf] }
 0x7dc   :  { %v16544_v47 = vld [vmem:[#allocation12 + $0x34] sm:$0xf0]  ;;  %v15096_v24 = vor.u32 %v16612_v49, %v15093_v25  ;;  %v16688_v25 = vld [vmem:[#allocation16 + $0x38] sm:$0xff] }
 0x7dd   :  { %v14804_v60 = vor.u32 %v16544_v47, %v14803_v4  ;;  %v16695_v4 = vld [vmem:[#allocation16 + $0x70] sm:$0xff]  ;;  %v16686_v47 = vld [vmem:[#allocation16 + $0x28] sm:$0xff] }
 0x7de   :  { %9899 = vmatpush.bf16.msrb.mxu0 %v14964_v34  ;;  %9912 = vmatpush.bf16.msrb.mxu1 %v15220_v37  ;;  %v16604_v34 = vld [vmem:[#allocation12 + $0x21c] sm:$0xf] }
 0x7df   :  { %9925 = vmatpush.bf16.msrb.mxu2 %v14968_v3  ;;  %9938 = vmatpush.bf16.msrb.mxu3 %v15224_v55  ;;  %v15061_v37 = vld [vmem:[#allocation12 + $0x238] sm:$0xf0]  ;;  %v14808_v3 = vor.u32 %v16540_v0, %v14805_v7  ;;  %v16685_v0 = vld [vmem:[#allocation16 + $0x20] sm:$0xff] }
 0x7e0   :  { %v15064_v55 = vor.u32 %v16604_v34, %v15061_v37  ;;  %v16693_v7 = vld [vmem:[#allocation16 + $0x60] sm:$0xff] }
 0x7e2   :  { %9900 = vmatpush.bf16.msrb.mxu0 %v14932_v11  ;;  %9913 = vmatpush.bf16.msrb.mxu1 %v15188_v12  ;;  %v16669_v11 = vld [vmem:[#allocation15 + $0x20] sm:$0xff] }
 0x7e3   :  { %9926 = vmatpush.bf16.msrb.mxu2 %v14936_v27  ;;  %9939 = vmatpush.bf16.msrb.mxu3 %v15192_v28  ;;  %v16677_v12 = vld [vmem:[#allocation15 + $0x60] sm:$0xff]  ;;  %v16667_v27 = vld [vmem:[#allocation15 + $0x10] sm:$0xff] }
 0x7e4   :  { %v16675_v28 = vld [vmem:[#allocation15 + $0x50] sm:$0xff] }
 0x7e6   :  { %9901 = vmatpush.bf16.msrb.mxu0 %v14900_v20  ;;  %9914 = vmatpush.bf16.msrb.mxu1 %v15156_v30 }
 0x7e7   :  { %9927 = vmatpush.bf16.msrb.mxu2 %v14904_v42  ;;  %9940 = vmatpush.bf16.msrb.mxu3 %v15160_v63 }
 0x7ea   :  { %9902 = vmatpush.bf16.msrb.mxu0 %v14868_v43  ;;  %9915 = vmatpush.bf16.msrb.mxu1 %v15124_v53 }
 0x7eb   :  { %9928 = vmatpush.bf16.msrb.mxu2 %v14872_v59  ;;  %9941 = vmatpush.bf16.msrb.mxu3 %v15128_v54 }
 0x7ee   :  { %9903 = vmatpush.bf16.msrb.mxu0 %v14836_v40  ;;  %9916 = vmatpush.bf16.msrb.mxu1 %v15092_v21  ;;  %v16696_v40 = vld [vmem:[#allocation16 + $0x78] sm:$0xff]  ;;  %v16687_v21 = vld [vmem:[#allocation16 + $0x30] sm:$0xff] }
 0x7ef   :  { %9929 = vmatpush.bf16.msrb.mxu2 %v14840_v8  ;;  %9942 = vmatpush.bf16.msrb.mxu3 %v15096_v24  ;;  %v16694_v8 = vld [vmem:[#allocation16 + $0x68] sm:$0xff] }
 0x7f2   :  { %9904 = vmatpush.bf16.msrb.mxu0 %v14804_v60  ;;  %9917 = vmatpush.bf16.msrb.mxu1 %v15060_v57 }
 0x7f3   :  { %9930 = vmatpush.bf16.msrb.mxu2 %v14808_v3  ;;  %9943 = vmatpush.bf16.msrb.mxu3 %v15064_v55 }
 0x7f5   :  { %9905 = vmatmul.bf16.vlgmr.msrb.gmra.mxu0 %v17716_v45  ;;  %9918 = vmatmul.bf16.vlgmr.msrb.gmra.mxu1 %v17718_v23 }
 0x7f6   :  { %9931 = vmatmul.bf16.vlgmr.msrb.gmra.mxu2 %v17716_v45  ;;  %9944 = vmatmul.bf16.vlgmr.msrb.gmra.mxu3 %v17718_v23  ;;  %v16666_v45 = vld [vmem:[#allocation15 + $0x8] sm:$0xff] }
 0x7f7   :  { %10289 = vmatpush.bf16.msra.mxu2 %v16672_v41  ;;  %10302 = vmatpush.bf16.msra.mxu3 %v16680_v46  ;;  %v16674_v23 = vld [vmem:[#allocation15 + $0x48] sm:$0xff] }
 0x7f8   :  { %10167 = vmatpush.bf16.msra.mxu0 %v16688_v25  ;;  %10180 = vmatpush.bf16.msra.mxu1 %v16696_v40  ;;  %v16702_v25 = vld [vmem:[#allocation18 + $0x28] sm:$0xff] }
 0x7fb   :  { %10290 = vmatpush.bf16.msra.mxu2 %v16671_v6  ;;  %10303 = vmatpush.bf16.msra.mxu3 %v16679_v10  ;;  %v16684_v6 = vld [vmem:[#allocation16 + $0x18] sm:$0xff] }
 0x7fc   :  { %10168 = vmatpush.bf16.msra.mxu0 %v16687_v21  ;;  %10181 = vmatpush.bf16.msra.mxu1 %v16695_v4  ;;  %v16692_v10 = vld [vmem:[#allocation16 + $0x58] sm:$0xff] }
 0x7ff   :  { %10291 = vmatpush.bf16.msra.mxu2 %v16670_v18  ;;  %10304 = vmatpush.bf16.msra.mxu3 %v16678_v48 }
 0x800   :  { %10169 = vmatpush.bf16.msra.mxu0 %v16686_v47  ;;  %10182 = vmatpush.bf16.msra.mxu1 %v16694_v8  ;;  %v16701_v8 = vld [vmem:[#allocation18 + $0x20] sm:$0xff] }
 0x803   :  { %10292 = vmatpush.bf16.msra.mxu2 %v16669_v11  ;;  %10305 = vmatpush.bf16.msra.mxu3 %v16677_v12 }
 0x804   :  { %10170 = vmatpush.bf16.msra.mxu0 %v16685_v0  ;;  %10183 = vmatpush.bf16.msra.mxu1 %v16693_v7 }
 0x807   :  { %10293 = vmatpush.bf16.msra.mxu2 %v16668_v14  ;;  %10306 = vmatpush.bf16.msra.mxu3 %v16676_v56 }
 0x808   :  { %10171 = vmatpush.bf16.msra.mxu0 %v16684_v6  ;;  %10184 = vmatpush.bf16.msra.mxu1 %v16692_v10  ;;  %v16699_v10 = vld [vmem:[#allocation18 + $0x10] sm:$0xff] }
 0x80b   :  { %10294 = vmatpush.bf16.msra.mxu2 %v16667_v27  ;;  %10307 = vmatpush.bf16.msra.mxu3 %v16675_v28 }
 0x80c   :  { %10185 = vmatpush.bf16.msra.mxu1 %v16691_v13  ;;  %v16723_v13 = vld [vmem:[%s17771_s11] ss:$0 sm:$0xff] }
 0x80f   :  { %10295 = vmatpush.bf16.msra.mxu2 %v16666_v45  ;;  %10308 = vmatpush.bf16.msra.mxu3 %v16674_v23  ;;  %v8964_v23 = vld [vmem:[#allocation3 + $0x7] ss:$8 sm:$0xf0] }
 0x813   :  { %10296 = vmatpush.bf16.msra.mxu2 %v16665_v50  ;;  %10309 = vmatpush.bf16.msra.mxu3 %v16673_v62  ;;  %v16683_v62 = vld [vmem:[#allocation16 + $0x10] sm:$0xff] }
 0x814   :  { %10172 = vmatpush.bf16.msra.mxu0 %v16683_v62 }
 0x816   :  { %10297 = vmatmul.bf16.vlgmr.msra.gmra.mxu2 %v10001_v58  ;;  %10310 = vmatmul.bf16.vlgmr.msra.gmra.mxu3 %v10002_v19  ;;  %v8963_v19 = vld [vmem:[#allocation3 + $0x7] ss:$8 sm:$0xf] }
 0x831   :  { %v9750_v20 = vpop.f32.mrf.mxu0  ;;  %v9763_v30 = vpop.f32.mrf.mxu1 }
 0x832   :  { %v17738_v61 = vadd.f32 %v9763_v30, %v9750_v20 }
 0x838   :  { %v9776_v2 = vpop.f32.mrf.mxu2  ;;  %v9789_v42 = vpop.f32.mrf.mxu3 }
 0x839   :  { %v9752_v63 = vpop.f32.mrf.mxu0  ;;  %v9765_v32 = vpop.f32.mrf.mxu1  ;;  %v9790_v34 = vadd.f32 %v9789_v42, %v9776_v2  ;;  %v8965_v2 = vor.u32 %v8964_v23, %v8963_v19 }
 0x83a   :  { %v16682_v63 = vld [vmem:[#allocation16 + $0x8] sm:$0xff] }
 0x83b   :  { %v9957_v18 = vrot.slane %v9790_v34, 7  ;;  %v16690_v32 = vld [vmem:[#allocation16 + $0x48] sm:$0xff]  ;;  %10173 = vmatpush.bf16.msra.mxu0 %v16682_v63  ;;  %v16700_v34 = vld [vmem:[#allocation18 + $0x18] sm:$0xff] }
 0x83c   :  { %10186 = vmatpush.bf16.msra.mxu1 %v16690_v32 }
 0x83d   :  { %v9964_v16 = vsel %vm2681_vm0, %v17738_v61, %v9957_v18  ;;  %v16698_v18 = vld [vmem:[#allocation18 + $0x8] sm:$0xff] }
 0x840   :  { %v9778_v22 = vpop.f32.mrf.mxu2  ;;  %v9791_v15 = vpop.f32.mrf.mxu3 }
 0x841   :  { %v9802_v51 = vpop.f32.mrf.mxu0  ;;  %v9815_v29 = vpop.f32.mrf.mxu1 }
 0x842   :  { %v9816_v37 = vadd.f32 %v9815_v29, %v9802_v51 }
 0x844   :  { %v9958_v48 = vrot.slane %v9816_v37, 6 }
 0x848   :  { %v9828_v17 = vpop.f32.mrf.mxu2  ;;  %v9841_v52 = vpop.f32.mrf.mxu3 }
 0x849   :  { %v9804_v36 = vpop.f32.mrf.mxu0  ;;  %v9817_v43 = vpop.f32.mrf.mxu1  ;;  %v9842_v35 = vadd.f32 %v9841_v52, %v9828_v17  ;;  %v16681_v52 = vld [vmem:[#allocation16] sm:$0xff] }
 0x84a   :  { %v16689_v36 = vld [vmem:[#allocation16 + $0x40] sm:$0xff]  ;;  %10174 = vmatpush.bf16.msra.mxu0 %v16681_v52 }
 0x84b   :  { %v9959_v57 = vrot.slane %v9842_v35, 5  ;;  %10187 = vmatpush.bf16.msra.mxu1 %v16689_v36 }
 0x84d   :  { %v9965_v27 = vsel %vm2683_vm1, %v9958_v48, %v9959_v57  ;;  %v16697_v48 = vld [vmem:[#allocation18] sm:$0xff] }
 0x84e   :  { %v9966_v30 = vsel %vm2685_vm2, %v9964_v16, %v9965_v27 }
 0x850   :  { %v9830_v53 = vpop.f32.mrf.mxu2  ;;  %v9843_v26 = vpop.f32.mrf.mxu3 }
 0x852   :  { %v9854_v1 = vpop.f32.mrf.mxu0  ;;  %v9867_v59 = vpop.f32.mrf.mxu1 }
 0x853   :  { %v9868_v3 = vadd.f32 %v9867_v59, %v9854_v1  ;;  %v16704_v1 = vld [vmem:[#allocation18 + $0x38] sm:$0xff] }
 0x854   :  { %10390 = vmatpush.bf16.msrb.mxu0 %v16704_v1 }
 0x855   :  { %v9960_v28 = vrot.slane %v9868_v3, 4 }
 0x85a   :  { %v9856_v44 = vpop.f32.mrf.mxu0  ;;  %v9869_v39 = vpop.f32.mrf.mxu1 }
 0x85b   :  { %v9880_v54 = vpop.f32.mrf.mxu2  ;;  %v9893_v38 = vpop.f32.mrf.mxu3 }
 0x85c   :  { %v9894_v60 = vadd.f32 %v9893_v38, %v9880_v54  ;;  %v16703_v38 = vld [vmem:[#allocation18 + $0x30] sm:$0xff] }
 0x85d   :  { %10391 = vmatpush.bf16.msrb.mxu0 %v16703_v38 }
 0x85e   :  { %v9961_v11 = vrot.slane %v9894_v60, 3 }
 0x860   :  { %v9967_v58 = vsel %vm2687_vm3, %v9960_v28, %v9961_v11 }
 0x861   :  { %10392 = vmatpush.bf16.msrb.mxu0 %v16702_v25 }
 0x863   :  { %v9882_v31 = vpop.f32.mrf.mxu2  ;;  %v9895_v49 = vpop.f32.mrf.mxu3 }
 0x865   :  { %10393 = vmatpush.bf16.msrb.mxu0 %v16701_v8 }
 0x869   :  { %10394 = vmatpush.bf16.msrb.mxu0 %v16700_v34 }
 0x86d   :  { %10395 = vmatpush.bf16.msrb.mxu0 %v16699_v10 }
 0x871   :  { %10396 = vmatpush.bf16.msrb.mxu0 %v16698_v18 }
 0x872   :  { %v9906_v24 = vpop.f32.mrf.mxu0  ;;  %v9919_v9 = vpop.f32.mrf.mxu1 }
 0x873   :  { %v9920_v55 = vadd.f32 %v9919_v9, %v9906_v24 }
 0x875   :  { %v9962_v45 = vrot.slane %v9920_v55, 2  ;;  %10397 = vmatpush.bf16.msrb.mxu0 %v16697_v48 }
 0x879   :  { %v9932_v41 = vpop.f32.mrf.mxu2  ;;  %v9945_v46 = vpop.f32.mrf.mxu3 }
 0x87a   :  { %v9946_v12 = vadd.f32 %v9945_v46, %v9932_v41  ;;  %v9908_v14 = vpop.f32.mrf.mxu0  ;;  %v9921_v56 = vpop.f32.mrf.mxu1 }
 0x87c   :  { %v9963_v50 = vrot.slane %v9946_v12, 1 }
 0x87e   :  { %v9968_v20 = vsel %vm2689_vm4, %v9962_v45, %v9963_v50 }
 0x87f   :  { %v9969_v42 = vsel %vm2691_vm5, %v9967_v58, %v9968_v20 }
 0x880   :  { %v9970_v22 = vsel %vm2693_vm6, %v9966_v30, %v9969_v42 }
 0x881   :  { %v9972_v15 = vadd.f32 %v9970_v22, %v8965_v2  ;;  %v9934_v51 = vpop.f32.mrf.mxu2  ;;  %v9947_v29 = vpop.f32.mrf.mxu3 }
 0x883   :  { %v9973_v61 = vmul.f32 0.5, %v9972_v15  ;;  %v9978_v17 = vrot.slane %v9972_v15, 2  ;;  %v9987_v53 = vrot.slane %v9972_v15, 6  ;;  %v9984_v26 = vrot.slane %v9972_v15, 4 }
 0x885   :  { %16794 = vtanh.f32 %v9973_v61  ;;  %v9980_v43 = vmul.f32 0.5, %v9978_v17  ;;  %v9989_v59 = vmul.f32 0.5, %v9987_v53 }
 0x887   :  { %16796 = vtanh.f32 %v9980_v43 }
 0x888   :  { %16798 = vtanh.f32 %v9984_v26 }
 0x889   :  { %16800 = vtanh.f32 %v9989_v59 }
 0x88b   :  { %v16795_v54 = vpop.eup %16794 }
 0x88c   :  { %v9975_v44 = vmul.f32 0.5, %v16795_v54 }
 0x88d   :  { %v16797_v39 = vpop.eup %16796 }
 0x88e   :  { %v9976_v31 = vadd.f32 0.5, %v9975_v44  ;;  %v9982_v49 = vmul.f32 0.5, %v16797_v39  ;;  %v16799_v21 = vpop.eup %16798 }
 0x88f   :  { %v16801_v24 = vpop.eup %16800 }
 0x890   :  { %v9983_v40 = vadd.f32 0.5, %v9982_v49  ;;  %v9994_v47 = vmul.f32 %v16799_v21, %v9976_v31  ;;  %v9991_v7 = vmul.f32 0.5, %v16801_v24 }
 0x892   :  { %v9993_v4 = vmul.f32 %v9983_v40, %v17711_v5  ;;  %v9992_v37 = vadd.f32 0.5, %v9991_v7 }
 0x894   :  { %v9995_v9 = vadd.f32 %v9994_v47, %v9993_v4 }
 0x896   :  { %16802 = vtanh.f32 %v9995_v9 }
 0x899   :  { %v10298_v35 = vpop.f32.mrf.mxu2  ;;  %v10311_v0 = vpop.f32.mrf.mxu3 }
 0x89c   :  { %v16803_v60 = vpop.eup %16802 }
 0x89d   :  { %v9997_v57 = vmul.f32 %v16803_v60, %v9992_v37 }
 0x89f   :  { %9999 = vst.msk [vmem:[#allocation2 + $0x7] ss:$8 sm:$0x3] %vm17278_vm7, %v9997_v57 }
 0x8a1   :  { %v10300_v3 = vpop.f32.mrf.mxu2  ;;  %v10313_v55 = vpop.f32.mrf.mxu3 }
 0x8a6   :  { %v10035_v5 = vld [vmem:[#allocation2] sm:$0xff]  ;;  %v10036_v41 = vld [vmem:[#allocation2 + $0x8] sm:$0xff] }
 0x8a7   :  { %v10037_v46 = vpack.c.bf16 %v10035_v5, %v10035_v5  ;;  %v10038_v6 = vpack.c.bf16 %v10036_v41, %v10036_v41 }
 0x8a9   :  { %10175 = vmatmul.bf16.vlgmr.msra.gmra.mxu0 %v10037_v46  ;;  %10188 = vmatmul.bf16.vlgmr.msra.gmra.mxu1 %v10038_v6 }
 0x926   :  { %v10176_v11 = vpop.f32.mrf.mxu0  ;;  %v10189_v12 = vpop.f32.mrf.mxu1 }
 0x927   :  { %v10190_v14 = vadd.f32 %v10189_v12, %v10176_v11 }
 0x929   :  { %v10299_v56 = vadd.f32 %v10298_v35, %v10190_v14 }
 0x92b   :  { %v10312_v27 = vadd.f32 %v10311_v0, %v10299_v56 }
 0x92d   :  { %v10319_v28 = vadd.f32 %v16722_v33, %v10312_v27 }
 0x92e   :  { %v10178_v45 = vpop.f32.mrf.mxu0  ;;  %v10191_v23 = vpop.f32.mrf.mxu1 }
 0x92f   :  { %v10320_v50 = vmax.f32 %v10319_v28, 0.0 }
 0x931   :  { %v10321_v62 = vpack.c.bf16 %v10320_v50, %v10320_v50 }
 0x933   :  { %10398 = vmatmul.bf16.vlgmr.msrb.gmra.mxu0 %v10321_v62 }
 0x9b0   :  { %v10399_v16 = vpop.f32.mrf.mxu0 }
 0x9b1   :  { %v10400_v58 = vadd.f32 %v16723_v13, %v10399_v16 }
 0x9b3   :  { %10403 = vst [vmem:[#allocation19] sm:$0xff] %v10400_v58 }
 0x9b4   :  { %10414 = dma.vmem_to_hbm [thread:$0]  %s10410_s8, 128, %s10412_s15, [#allocation6]  }
 0x9b8   :  { %v10401_v19 = vpop.f32.mrf.mxu0 }
 0x9b9   :  { %17054 = dma.done.wait [#allocation6], 128  }
 0x9ba   :  { %17055 = vsyncadd [#allocation6], 4294967168 }
 0x9bb   :  { %10419 = vsyncpa [#allocation5], 1 }
 0x9bc   :  { %10420 = vsyncpa [#allocation8], 1 }
 0x9bd   :  { %10421 = vsyncpa [#allocation11], 1 }
 0x9be   :  { %10422 = vsyncpa [#allocation14], 1 }
 0x9bf   :  { %10423 = vsyncpa [#allocation17], 1 }
 0x9c0   :  { %10424 = vsyncpa [#allocation6], 1 }

</bundles_post_ra>
